<compile_context>
chip_gen: v7x
topology: tpu7x:2x2x1
jax: 0.10.0
libtpu: 0.0.40
codegen_flags: <defaults>
</compile_context>

<pallas_src>
import functools

import numpy as np
import jax
import jax.numpy as jnp
from jax.experimental import pallas as pl
from jax.experimental.pallas import tpu as pltpu

_VMEM_LIMIT = 48 * 1024 * 1024  # fits v5e/v6e (128 MiB) and v7x (64 MiB)


# ----------------------------------------------------------------------------
# Pallas kernels
# ----------------------------------------------------------------------------
def _conv_pool_kernel(p_ref, w_ref, b_ref, o_ref):
    """conv1 as im2col matmul + 2x2 max-pool (4 quadrants) + bias + ReLU.

    p_ref: (4, TILE_R, K)  im2col patches for the 4 pooling quadrants
    w_ref: (K, N)          block-diagonal conv weight (lane-dense output)
    b_ref: (1, N)          bias (tiled per packed column)
    o_ref: (TILE_R, N)     pooled + ReLU'd output
    """
    q, r, k = p_ref.shape
    n = w_ref.shape[1]
    p = p_ref[...].reshape(q * r, k)                      # one long MXU stream
    h = jnp.dot(p, w_ref[...], preferred_element_type=jnp.float32)
    h = h.reshape(q, r, n)
    o_ref[...] = jnp.maximum(jnp.max(h, axis=0) + b_ref[...], 0.0)


def _conv2_mlp_kernel(p_ref, w2_ref, b2_ref, w1_ref, b1_ref, wf2_ref, bf2_ref,
                      o_ref):
    """Fused conv2(+pool+ReLU) + fc1(+ReLU) + fc2 (scores head).

    p_ref:  (4, 16, TILE_B, 800)  im2col patches, rows ordered (quadrant, spatial, batch)
    w2_ref: (800, 64)             conv2 weight
    b2_ref: (1, 1, 64)            conv2 bias
    w1_ref: (16, 64, 64)          fc1 weight split per spatial position (h*4+w, c, j)
    b1_ref: (1, 64)               fc1 bias
    wf2_ref:(1, 64)               fc2 weight row
    bf2_ref:(1, 1)                fc2 bias
    o_ref:  (TILE_B, 1)           scores
    """
    q, s16, tb, k = p_ref.shape
    c = w2_ref.shape[1]
    p = p_ref[...].reshape(q * s16 * tb, k)
    h = jnp.dot(p, w2_ref[...], preferred_element_type=jnp.float32)
    h = h.reshape(q, s16, tb, c)
    h = jnp.max(h, axis=0)                                # 2x2 max-pool (quadrant max)
    h = jnp.maximum(h + b2_ref[...], 0.0)                 # (16, TILE_B, 64)

    # fc1 == sum over the 16 spatial positions of (TILE_B,64) @ (64,64)
    acc = jnp.zeros((tb, w1_ref.shape[2]), jnp.float32)
    for s in range(s16):
        acc = acc + jnp.dot(h[s], w1_ref[s], preferred_element_type=jnp.float32)
    h1 = jnp.maximum(acc + b1_ref[...], 0.0)              # (TILE_B, 64)

    # fc2 (output width 1): VPU multiply + lane reduction, not a 1-col matmul.
    o_ref[...] = jnp.sum(h1 * wf2_ref[...], axis=-1, keepdims=True) + bf2_ref[...]


def _neural_sort_kernel(s_ref, scal_ref, o_ref, *, tau):
    """NeuralSort (soft permutation), hard=False, bag dim M on the lane axis.

    s_ref:    (n, TILE_M)     scores (passed once; row/col views built here)
    scal_ref: (n, 1, 1)       (n + 1 - 2*(j+1)) for rank j
    o_ref:    (n, n, TILE_M)  P_hat transposed to (rank j, item i, bag m)
    """
    s = s_ref[...]                                        # (n, M)
    a = jnp.abs(s[:, None, :] - s[None, :, :])            # (n_i, n_k, M)
    rsum = jnp.sum(a, axis=1)                             # (n_i, M)
    p = (scal_ref[...] * s[None, :, :] - rsum[None, :, :]) * (1.0 / tau)
    mx = jnp.max(p, axis=1, keepdims=True)
    e = jnp.exp(p - mx)
    o_ref[...] = e / jnp.sum(e, axis=1, keepdims=True)


# ----------------------------------------------------------------------------
# pallas_call wrappers
# ----------------------------------------------------------------------------
def conv1_pool_relu(patches, w_big, b_big, tile_r):
    q, r, k = patches.shape
    n = w_big.shape[1]
    return pl.pallas_call(
        _conv_pool_kernel,
        out_shape=jax.ShapeDtypeStruct((r, n), jnp.float32),
        grid=(pl.cdiv(r, tile_r),),
        in_specs=[
            pl.BlockSpec((q, tile_r, k), lambda i: (0, i, 0)),
            pl.BlockSpec((k, n), lambda i: (0, 0)),        # resident weight
            pl.BlockSpec((1, n), lambda i: (0, 0)),        # resident bias
        ],
        out_specs=pl.BlockSpec((tile_r, n), lambda i: (i, 0)),
        compiler_params=pltpu.CompilerParams(
            dimension_semantics=("parallel",),
            vmem_limit_bytes=_VMEM_LIMIT,
            allow_input_fusion=[True, False, False],
        ),
    )(patches, w_big, b_big)


def conv2_fc_scores(patches, w2, b2, w1, b1, wf2, bf2, tile_b):
    q, s16, bsz, k = patches.shape
    c = w2.shape[1]
    j = w1.shape[2]
    return pl.pallas_call(
        _conv2_mlp_kernel,
        out_shape=jax.ShapeDtypeStruct((bsz, 1), jnp.float32),
        grid=(pl.cdiv(bsz, tile_b),),
        in_specs=[
            pl.BlockSpec((q, s16, tile_b, k), lambda i: (0, 0, i, 0)),
            pl.BlockSpec((k, c), lambda i: (0, 0)),
            pl.BlockSpec((1, 1, c), lambda i: (0, 0, 0)),
            pl.BlockSpec((s16, c, j), lambda i: (0, 0, 0)),
            pl.BlockSpec((1, j), lambda i: (0, 0)),
            pl.BlockSpec((1, j), lambda i: (0, 0)),
            pl.BlockSpec((1, 1), lambda i: (0, 0)),
        ],
        out_specs=pl.BlockSpec((tile_b, 1), lambda i: (i, 0)),
        compiler_params=pltpu.CompilerParams(
            dimension_semantics=("parallel",),
            vmem_limit_bytes=_VMEM_LIMIT,
            allow_input_fusion=[True, False, False, False, False, False, False],
        ),
    )(patches, w2, b2, w1, b1, wf2, bf2)


def neural_sort(s_t, scaling, tau=1.0):
    n, m = s_t.shape
    tile_m = m if m <= 512 else 512
    kernel = functools.partial(_neural_sort_kernel, tau=tau)
    return pl.pallas_call(
        kernel,
        out_shape=jax.ShapeDtypeStruct((n, n, m), jnp.float32),
        grid=(pl.cdiv(m, tile_m),),
        in_specs=[
            pl.BlockSpec((n, tile_m), lambda i: (0, i)),
            pl.BlockSpec((n, 1, 1), lambda i: (0, 0, 0)),
        ],
        out_specs=pl.BlockSpec((n, n, tile_m), lambda i: (0, 0, i)),
        compiler_params=pltpu.CompilerParams(
            dimension_semantics=("parallel",),
        ),
    )(s_t, scaling)


# ----------------------------------------------------------------------------
# JAX glue: im2col patch extraction (layout only; candidates for input fusion)
# ----------------------------------------------------------------------------
def build_conv1_patches(x):  # x: (B, 28, 28), B % 8 == 0
    bsz = x.shape[0]
    cols = [x[:, ki:ki + 24, kj:kj + 24] for ki in range(5) for kj in range(5)]
    pf = jnp.stack(cols, axis=-1)                         # (B, 24, 24, 25); tap = ki*5+kj
    quads = [
        pf[:, dp::2, dq::2, :].reshape(bsz * 12, 12 * 25)  # rows (b, ph), feats (pw, tap)
        for dp in (0, 1) for dq in (0, 1)
    ]
    return jnp.stack(quads, axis=0)                       # (4, B*12, 300)


def build_conv2_patches(h1):  # h1: (B, 12, 12, 32) NHWC, B % 8 == 0
    bsz = h1.shape[0]
    cols = [h1[:, ki:ki + 8, kj:kj + 8, :] for ki in range(5) for kj in range(5)]
    pf = jnp.concatenate(cols, axis=-1)                   # (B, 8, 8, 800); f = (ki*5+kj)*32+cin
    quads = [pf[:, dp::2, dq::2, :] for dp in (0, 1) for dq in (0, 1)]
    p = jnp.stack(quads, axis=0)                          # (4, B, 4, 4, 800)
    p = jnp.transpose(p, (0, 2, 3, 1, 4))                 # (4, 4, 4, B, 800)
    return p.reshape(4, 16, bsz, 800)                     # spatial index s = ph*4 + pw


# ----------------------------------------------------------------------------
# Full forward pass (NeuralSortMNIST.forward)
# ----------------------------------------------------------------------------
def neural_sort_mnist_forward(x, params, tau=1.0):
    m, n = x.shape[0], x.shape[1]
    bsz = m * n
    bsz_p = ((bsz + 7) // 8) * 8                          # pad batch to sublane multiple
    xb = x.reshape(bsz, 28, 28).astype(jnp.float32)
    if bsz_p != bsz:
        xb = jnp.pad(xb, ((0, bsz_p - bsz), (0, 0), (0, 0)))

    # ---- conv1 (1->32, 5x5) + max-pool 2x2 + ReLU (lane-dense 384-wide out) --
    p1 = build_conv1_patches(xb)                          # (4, B*12, 300)
    w1m = jnp.transpose(params["conv1_w"], (2, 3, 1, 0)).reshape(25, 32)
    w1big = jnp.kron(jnp.eye(12, dtype=jnp.float32), w1m)  # (300, 384) block-diagonal
    b1big = jnp.tile(params["conv1_b"], 12).reshape(1, 384)
    r1 = bsz_p * 12
    tile_r1 = r1 if r1 <= 768 else 768
    h1 = conv1_pool_relu(p1, w1big, b1big, tile_r1)       # (B*12, 384)
    h1 = h1.reshape(bsz_p, 12, 12, 32)                    # NHWC (pure reshape)

    # ---- fused conv2 (32->64, 5x5) + pool + ReLU + fc1 + ReLU + fc2 ----------
    p2 = build_conv2_patches(h1)                          # (4, 16, B, 800)
    w2m = jnp.transpose(params["conv2_w"], (2, 3, 1, 0)).reshape(800, 64)
    b2 = params["conv2_b"].reshape(1, 1, 64)
    # fc1 weight permuted at trace time (torch flatten index = c*16 + h*4 + w),
    # split per spatial position -> no activation transpose needed.
    w1p = jnp.transpose(params["fc1_w"].reshape(64, 64, 4, 4),
                        (2, 3, 1, 0)).reshape(16, 64, 64)
    b_fc1 = params["fc1_b"].reshape(1, 64)
    w_fc2 = params["fc2_w"].reshape(1, 64)
    b_fc2 = params["fc2_b"].reshape(1, 1)
    tile_b = bsz_p if bsz_p <= 32 else 32
    scores = conv2_fc_scores(p2, w2m, b2, w1p, b_fc1, w_fc2, b_fc2, tile_b)
    scores = scores[:bsz]                                 # drop padded images

    # ---- NeuralSort (tau, hard=False); bag dim M on the lane axis ------------
    s_t = scores.reshape(m, n).T                          # (n, M)
    scaling = ((n + 1) - 2.0 * (jnp.arange(n, dtype=jnp.float32) + 1.0)).reshape(n, 1, 1)
    p_hat_t = neural_sort(s_t, scaling, tau=tau)          # (n, n, M)
    return jnp.transpose(p_hat_t, (2, 0, 1))              # (M, n, n)


# ----------------------------------------------------------------------------
# Pure-JAX reference (for correctness check only)
# ----------------------------------------------------------------------------
def reference_forward(x, params, tau=1.0):
    prec = jax.lax.Precision.HIGHEST
    m, n = x.shape[0], x.shape[1]
    y = x.reshape(-1, 1, 28, 28).astype(jnp.float32)
    y = jax.lax.conv_general_dilated(
        y, params["conv1_w"], (1, 1), "VALID",
        dimension_numbers=("NCHW", "OIHW", "NCHW"), precision=prec,
    ) + params["conv1_b"][None, :, None, None]
    y = jax.lax.reduce_window(y, -jnp.inf, jax.lax.max, (1, 1, 2, 2), (1, 1, 2, 2), "VALID")
    y = jnp.maximum(y, 0.0)
    y = jax.lax.conv_general_dilated(
        y, params["conv2_w"], (1, 1), "VALID",
        dimension_numbers=("NCHW", "OIHW", "NCHW"), precision=prec,
    ) + params["conv2_b"][None, :, None, None]
    y = jax.lax.reduce_window(y, -jnp.inf, jax.lax.max, (1, 1, 2, 2), (1, 1, 2, 2), "VALID")
    y = jnp.maximum(y, 0.0)
    feat = y.reshape(-1, 4 * 4 * 64)
    h = jnp.maximum(jnp.dot(feat, params["fc1_w"].T, precision=prec) + params["fc1_b"], 0.0)
    scores = jnp.dot(h, params["fc2_w"].T, precision=prec) + params["fc2_b"]
    s = scores.reshape(m, n)
    a = jnp.abs(s[:, :, None] - s[:, None, :])
    rsum = a.sum(-1)
    scaling = (n + 1) - 2.0 * (jnp.arange(n, dtype=jnp.float32) + 1.0)
    p_max = scaling[None, :, None] * s[:, None, :] - rsum[:, None, :]
    return jax.nn.softmax(p_max / tau, axis=-1)


# ----------------------------------------------------------------------------
if __name__ == "__main__":
    key = jax.random.PRNGKey(0)
    keys = jax.random.split(key, 9)

    def init(k, shape, fan_in):
        return (jax.random.normal(k, shape, jnp.float32) / np.sqrt(fan_in)).astype(jnp.float32)

    params = {
        "conv1_w": init(keys[0], (32, 1, 5, 5), 25),
        "conv1_b": init(keys[1], (32,), 25),
        "conv2_w": init(keys[2], (64, 32, 5, 5), 800),
        "conv2_b": init(keys[3], (64,), 800),
        "fc1_w": init(keys[4], (64, 1024), 1024),
        "fc1_b": init(keys[5], (64,), 1024),
        "fc2_w": init(keys[6], (1, 64), 64),
        "fc2_b": init(keys[7], (1,), 64),
    }

    M, N = 2, 4  # M bags of n=4 "MNIST" images each
    x = jax.random.normal(keys[8], (M, N, 28, 28), jnp.float32)

    fwd = jax.jit(lambda inp: neural_sort_mnist_forward(inp, params, tau=1.0))
    out = jax.block_until_ready(fwd(x))

    ref = np.asarray(reference_forward(x, params, tau=1.0))
    out_np = np.asarray(out)
    assert out_np.shape == (M, N, N), out_np.shape
    if not np.allclose(out_np, ref, atol=2e-3, rtol=2e-3):
        raise SystemExit(
            "mismatch vs reference, max abs diff = %g" % np.max(np.abs(out_np - ref))
        )
    print("KERNEL_OK")
</pallas_src>

<mosaic_0001>
module attributes {stable_mosaic.version = 11 : i64} {
  func.func @_conv_pool_kernel(%arg0: i32, %arg1: memref<4x96x300xf32, #tpu.memory_space<vmem>>, %arg2: memref<300x384xf32, #tpu.memory_space<vmem>>, %arg3: memref<1x384xf32, #tpu.memory_space<vmem>>, %arg4: memref<96x384xf32, #tpu.memory_space<vmem>>) attributes {dimension_semantics = [#tpu.dimension_semantics<parallel>], iteration_bounds = array<i64: 1>, scalar_prefetch = 0 : i64, scratch_operands = 0 : i64, tpu.core_type = #tpu.core_type<tc>, window_params = [{transform_indices = @transform_0, window_bounds = array<i64: 4, 96, 300>}, {pipeline_mode = #tpu.pipeline_mode<synchronous>, transform_indices = @transform_1, window_bounds = array<i64: 300, 384>}, {pipeline_mode = #tpu.pipeline_mode<synchronous>, transform_indices = @transform_2, window_bounds = array<i64: 1, 384>}, {transform_indices = @transform_3, window_bounds = array<i64: 96, 384>}]} {
    %c0 = arith.constant 0 : index
    %c0_0 = arith.constant 0 : index
    %c0_1 = arith.constant 0 : index
    %0 = vector.load %arg1[%c0, %c0_0, %c0_1] : memref<4x96x300xf32, #tpu.memory_space<vmem>>, vector<4x96x300xf32>
    %1 = vector.shape_cast %0 : vector<4x96x300xf32> to vector<384x300xf32>
    %c0_2 = arith.constant 0 : index
    %c0_3 = arith.constant 0 : index
    %2 = vector.load %arg2[%c0_2, %c0_3] : memref<300x384xf32, #tpu.memory_space<vmem>>, vector<300x384xf32>
    %cst = arith.constant dense<0.000000e+00> : vector<384x384xf32>
    %3 = tpu.matmul %1, %2, %cst {dimension_numbers = #tpu.dot_dimension_numbers<[1], [0], [0], [1], [0, 0, 1, 1], [], []>} : vector<384x300xf32>, vector<300x384xf32>, vector<384x384xf32> -> vector<384x384xf32>
    %4 = vector.shape_cast %3 : vector<384x384xf32> to vector<4x96x384xf32>
    %cst_4 = arith.constant dense<0xFF800000> : vector<96x384xf32>
    %5 = vector.multi_reduction <maximumf>, %4, %cst_4 [0] : vector<4x96x384xf32> to vector<96x384xf32>
    %c0_5 = arith.constant 0 : index
    %c0_6 = arith.constant 0 : index
    %6 = vector.load %arg3[%c0_5, %c0_6] : memref<1x384xf32, #tpu.memory_space<vmem>>, vector<1x384xf32>
    %7 = vector.broadcast %6 : vector<1x384xf32> to vector<96x384xf32>
    %8 = arith.addf %5, %7 : vector<96x384xf32>
    %cst_7 = arith.constant 0.000000e+00 : f32
    %9 = vector.broadcast %cst_7 : f32 to vector<96x384xf32>
    %10 = arith.maximumf %8, %9 : vector<96x384xf32>
    %c0_8 = arith.constant 0 : index
    %c0_9 = arith.constant 0 : index
    %11 = vector.load %arg4[%c0_8, %c0_9] : memref<96x384xf32, #tpu.memory_space<vmem>>, vector<96x384xf32>
    tpu.vector_store %arg4[%c0_8, %c0_9], %10 {strides = array<i32>} : memref<96x384xf32, #tpu.memory_space<vmem>>, vector<96x384xf32>,
    return
  }
  func.func @transform_0(%arg0: i32) -> (i32, i32, i32) {
    %c0_i32 = arith.constant 0 : i32
    %c0_i32_0 = arith.constant 0 : i32
    %c0_i32_1 = arith.constant 0 : i32
    return %c0_i32, %arg0, %c0_i32_0 : i32, i32, i32
  }
  func.func @transform_1(%arg0: i32) -> (i32, i32) {
    %c0_i32 = arith.constant 0 : i32
    %c0_i32_0 = arith.constant 0 : i32
    %c0_i32_1 = arith.constant 0 : i32
    return %c0_i32, %c0_i32_0 : i32, i32
  }
  func.func @transform_2(%arg0: i32) -> (i32, i32) {
    %c0_i32 = arith.constant 0 : i32
    %c0_i32_0 = arith.constant 0 : i32
    %c0_i32_1 = arith.constant 0 : i32
    return %c0_i32, %c0_i32_0 : i32, i32
  }
  func.func @transform_3(%arg0: i32) -> (i32, i32) {
    %c0_i32 = arith.constant 0 : i32
    %c0_i32_0 = arith.constant 0 : i32
    return %arg0, %c0_i32 : i32, i32
  }
}

module attributes {stable_mosaic.version = 11 : i64} {
  func.func @_conv2_mlp_kernel(%arg0: i32, %arg1: memref<4x16x8x800xf32, #tpu.memory_space<vmem>>, %arg2: memref<800x64xf32, #tpu.memory_space<vmem>>, %arg3: memref<1x1x64xf32, #tpu.memory_space<vmem>>, %arg4: memref<16x64x64xf32, #tpu.memory_space<vmem>>, %arg5: memref<1x64xf32, #tpu.memory_space<vmem>>, %arg6: memref<1x64xf32, #tpu.memory_space<vmem>>, %arg7: memref<1x1xf32, #tpu.memory_space<vmem>>, %arg8: memref<8x1xf32, #tpu.memory_space<vmem>>) attributes {dimension_semantics = [#tpu.dimension_semantics<parallel>], iteration_bounds = array<i64: 1>, scalar_prefetch = 0 : i64, scratch_operands = 0 : i64, tpu.core_type = #tpu.core_type<tc>, window_params = [{transform_indices = @transform_0, window_bounds = array<i64: 4, 16, 8, 800>}, {pipeline_mode = #tpu.pipeline_mode<synchronous>, transform_indices = @transform_1, window_bounds = array<i64: 800, 64>}, {pipeline_mode = #tpu.pipeline_mode<synchronous>, transform_indices = @transform_2, window_bounds = array<i64: 1, 1, 64>}, {pipeline_mode = #tpu.pipeline_mode<synchronous>, transform_indices = @transform_3, window_bounds = array<i64: 16, 64, 64>}, {pipeline_mode = #tpu.pipeline_mode<synchronous>, transform_indices = @transform_4, window_bounds = array<i64: 1, 64>}, {pipeline_mode = #tpu.pipeline_mode<synchronous>, transform_indices = @transform_5, window_bounds = array<i64: 1, 64>}, {pipeline_mode = #tpu.pipeline_mode<synchronous>, transform_indices = @transform_6, window_bounds = array<i64: 1, 1>}, {transform_indices = @transform_7, window_bounds = array<i64: 8, 1>}]} {
    %c0 = arith.constant 0 : index
    %c0_0 = arith.constant 0 : index
    %c0_1 = arith.constant 0 : index
    %c0_2 = arith.constant 0 : index
    %0 = vector.load %arg1[%c0, %c0_0, %c0_1, %c0_2] : memref<4x16x8x800xf32, #tpu.memory_space<vmem>>, vector<4x16x8x800xf32>
    %1 = vector.shape_cast %0 : vector<4x16x8x800xf32> to vector<512x800xf32>
    %c0_3 = arith.constant 0 : index
    %c0_4 = arith.constant 0 : index
    %2 = vector.load %arg2[%c0_3, %c0_4] : memref<800x64xf32, #tpu.memory_space<vmem>>, vector<800x64xf32>
    %cst = arith.constant dense<0.000000e+00> : vector<512x64xf32>
    %3 = tpu.matmul %1, %2, %cst {dimension_numbers = #tpu.dot_dimension_numbers<[1], [0], [0], [1], [0, 0, 1, 1], [], []>} : vector<512x800xf32>, vector<800x64xf32>, vector<512x64xf32> -> vector<512x64xf32>
    %4 = vector.shape_cast %3 : vector<512x64xf32> to vector<4x16x8x64xf32>
    %cst_5 = arith.constant dense<0xFF800000> : vector<16x8x64xf32>
    %5 = vector.multi_reduction <maximumf>, %4, %cst_5 [0] : vector<4x16x8x64xf32> to vector<16x8x64xf32>
    %c0_6 = arith.constant 0 : index
    %c0_7 = arith.constant 0 : index
    %c0_8 = arith.constant 0 : index
    %6 = vector.load %arg3[%c0_6, %c0_7, %c0_8] : memref<1x1x64xf32, #tpu.memory_space<vmem>>, vector<1x1x64xf32>
    %7 = vector.broadcast %6 : vector<1x1x64xf32> to vector<16x8x64xf32>
    %8 = arith.addf %5, %7 : vector<16x8x64xf32>
    %cst_9 = arith.constant 0.000000e+00 : f32
    %9 = vector.broadcast %cst_9 : f32 to vector<16x8x64xf32>
    %10 = arith.maximumf %8, %9 : vector<16x8x64xf32>
    %cst_10 = arith.constant 0.000000e+00 : f32
    %11 = vector.broadcast %cst_10 : f32 to vector<8x64xf32>
    %12 = vector.extract_strided_slice %10 {offsets = [0, 0, 0], sizes = [1, 8, 64], strides = [1, 1, 1]} : vector<16x8x64xf32> to vector<1x8x64xf32>
    %13 = vector.shape_cast %12 : vector<1x8x64xf32> to vector<8x64xf32>
    %c0_11 = arith.constant 0 : index
    %c0_12 = arith.constant 0 : index
    %c0_13 = arith.constant 0 : index
    %14 = vector.load %arg4[%c0_11, %c0_12, %c0_13] : memref<16x64x64xf32, #tpu.memory_space<vmem>>, vector<1x64x64xf32>
    %15 = vector.shape_cast %14 : vector<1x64x64xf32> to vector<64x64xf32>
    %cst_14 = arith.constant dense<0.000000e+00> : vector<8x64xf32>
    %16 = tpu.matmul %13, %15, %cst_14 {dimension_numbers = #tpu.dot_dimension_numbers<[1], [0], [0], [1], [0, 0, 1, 1], [], []>} : vector<8x64xf32>, vector<64x64xf32>, vector<8x64xf32> -> vector<8x64xf32>
    %17 = arith.addf %11, %16 : vector<8x64xf32>
    %18 = vector.extract_strided_slice %10 {offsets = [1, 0, 0], sizes = [1, 8, 64], strides = [1, 1, 1]} : vector<16x8x64xf32> to vector<1x8x64xf32>
    %19 = vector.shape_cast %18 : vector<1x8x64xf32> to vector<8x64xf32>
    %c1 = arith.constant 1 : index
    %c0_15 = arith.constant 0 : index
    %c0_16 = arith.constant 0 : index
    %20 = vector.load %arg4[%c1, %c0_15, %c0_16] : memref<16x64x64xf32, #tpu.memory_space<vmem>>, vector<1x64x64xf32>
    %21 = vector.shape_cast %20 : vector<1x64x64xf32> to vector<64x64xf32>
    %cst_17 = arith.constant dense<0.000000e+00> : vector<8x64xf32>
    %22 = tpu.matmul %19, %21, %cst_17 {dimension_numbers = #tpu.dot_dimension_numbers<[1], [0], [0], [1], [0, 0, 1, 1], [], []>} : vector<8x64xf32>, vector<64x64xf32>, vector<8x64xf32> -> vector<8x64xf32>
    %23 = arith.addf %17, %22 : vector<8x64xf32>
    %24 = vector.extract_strided_slice %10 {offsets = [2, 0, 0], sizes = [1, 8, 64], strides = [1, 1, 1]} : vector<16x8x64xf32> to vector<1x8x64xf32>
    %25 = vector.shape_cast %24 : vector<1x8x64xf32> to vector<8x64xf32>
    %c2 = arith.constant 2 : index
    %c0_18 = arith.constant 0 : index
    %c0_19 = arith.constant 0 : index
    %26 = vector.load %arg4[%c2, %c0_18, %c0_19] : memref<16x64x64xf32, #tpu.memory_space<vmem>>, vector<1x64x64xf32>
    %27 = vector.shape_cast %26 : vector<1x64x64xf32> to vector<64x64xf32>
    %cst_20 = arith.constant dense<0.000000e+00> : vector<8x64xf32>
    %28 = tpu.matmul %25, %27, %cst_20 {dimension_numbers = #tpu.dot_dimension_numbers<[1], [0], [0], [1], [0, 0, 1, 1], [], []>} : vector<8x64xf32>, vector<64x64xf32>, vector<8x64xf32> -> vector<8x64xf32>
    %29 = arith.addf %23, %28 : vector<8x64xf32>
    %30 = vector.extract_strided_slice %10 {offsets = [3, 0, 0], sizes = [1, 8, 64], strides = [1, 1, 1]} : vector<16x8x64xf32> to vector<1x8x64xf32>
    %31 = vector.shape_cast %30 : vector<1x8x64xf32> to vector<8x64xf32>
    %c3 = arith.constant 3 : index
    %c0_21 = arith.constant 0 : index
    %c0_22 = arith.constant 0 : index
    %32 = vector.load %arg4[%c3, %c0_21, %c0_22] : memref<16x64x64xf32, #tpu.memory_space<vmem>>, vector<1x64x64xf32>
    %33 = vector.shape_cast %32 : vector<1x64x64xf32> to vector<64x64xf32>
    %cst_23 = arith.constant dense<0.000000e+00> : vector<8x64xf32>
    %34 = tpu.matmul %31, %33, %cst_23 {dimension_numbers = #tpu.dot_dimension_numbers<[1], [0], [0], [1], [0, 0, 1, 1], [], []>} : vector<8x64xf32>, vector<64x64xf32>, vector<8x64xf32> -> vector<8x64xf32>
    %35 = arith.addf %29, %34 : vector<8x64xf32>
    %36 = vector.extract_strided_slice %10 {offsets = [4, 0, 0], sizes = [1, 8, 64], strides = [1, 1, 1]} : vector<16x8x64xf32> to vector<1x8x64xf32>
    %37 = vector.shape_cast %36 : vector<1x8x64xf32> to vector<8x64xf32>
    %c4 = arith.constant 4 : index
    %c0_24 = arith.constant 0 : index
    %c0_25 = arith.constant 0 : index
    %38 = vector.load %arg4[%c4, %c0_24, %c0_25] : memref<16x64x64xf32, #tpu.memory_space<vmem>>, vector<1x64x64xf32>
    %39 = vector.shape_cast %38 : vector<1x64x64xf32> to vector<64x64xf32>
    %cst_26 = arith.constant dense<0.000000e+00> : vector<8x64xf32>
    %40 = tpu.matmul %37, %39, %cst_26 {dimension_numbers = #tpu.dot_dimension_numbers<[1], [0], [0], [1], [0, 0, 1, 1], [], []>} : vector<8x64xf32>, vector<64x64xf32>, vector<8x64xf32> -> vector<8x64xf32>
    %41 = arith.addf %35, %40 : vector<8x64xf32>
    %42 = vector.extract_strided_slice %10 {offsets = [5, 0, 0], sizes = [1, 8, 64], strides = [1, 1, 1]} : vector<16x8x64xf32> to vector<1x8x64xf32>
    %43 = vector.shape_cast %42 : vector<1x8x64xf32> to vector<8x64xf32>
    %c5 = arith.constant 5 : index
    %c0_27 = arith.constant 0 : index
    %c0_28 = arith.constant 0 : index
    %44 = vector.load %arg4[%c5, %c0_27, %c0_28] : memref<16x64x64xf32, #tpu.memory_space<vmem>>, vector<1x64x64xf32>
    %45 = vector.shape_cast %44 : vector<1x64x64xf32> to vector<64x64xf32>
    %cst_29 = arith.constant dense<0.000000e+00> : vector<8x64xf32>
    %46 = tpu.matmul %43, %45, %cst_29 {dimension_numbers = #tpu.dot_dimension_numbers<[1], [0], [0], [1], [0, 0, 1, 1], [], []>} : vector<8x64xf32>, vector<64x64xf32>, vector<8x64xf32> -> vector<8x64xf32>
    %47 = arith.addf %41, %46 : vector<8x64xf32>
    %48 = vector.extract_strided_slice %10 {offsets = [6, 0, 0], sizes = [1, 8, 64], strides = [1, 1, 1]} : vector<16x8x64xf32> to vector<1x8x64xf32>
    %49 = vector.shape_cast %48 : vector<1x8x64xf32> to vector<8x64xf32>
    %c6 = arith.constant 6 : index
    %c0_30 = arith.constant 0 : index
    %c0_31 = arith.constant 0 : index
    %50 = vector.load %arg4[%c6, %c0_30, %c0_31] : memref<16x64x64xf32, #tpu.memory_space<vmem>>, vector<1x64x64xf32>
    %51 = vector.shape_cast %50 : vector<1x64x64xf32> to vector<64x64xf32>
    %cst_32 = arith.constant dense<0.000000e+00> : vector<8x64xf32>
    %52 = tpu.matmul %49, %51, %cst_32 {dimension_numbers = #tpu.dot_dimension_numbers<[1], [0], [0], [1], [0, 0, 1, 1], [], []>} : vector<8x64xf32>, vector<64x64xf32>, vector<8x64xf32> -> vector<8x64xf32>
    %53 = arith.addf %47, %52 : vector<8x64xf32>
    %54 = vector.extract_strided_slice %10 {offsets = [7, 0, 0], sizes = [1, 8, 64], strides = [1, 1, 1]} : vector<16x8x64xf32> to vector<1x8x64xf32>
    %55 = vector.shape_cast %54 : vector<1x8x64xf32> to vector<8x64xf32>
    %c7 = arith.constant 7 : index
    %c0_33 = arith.constant 0 : index
    %c0_34 = arith.constant 0 : index
    %56 = vector.load %arg4[%c7, %c0_33, %c0_34] : memref<16x64x64xf32, #tpu.memory_space<vmem>>, vector<1x64x64xf32>
    %57 = vector.shape_cast %56 : vector<1x64x64xf32> to vector<64x64xf32>
    %cst_35 = arith.constant dense<0.000000e+00> : vector<8x64xf32>
    %58 = tpu.matmul %55, %57, %cst_35 {dimension_numbers = #tpu.dot_dimension_numbers<[1], [0], [0], [1], [0, 0, 1, 1], [], []>} : vector<8x64xf32>, vector<64x64xf32>, vector<8x64xf32> -> vector<8x64xf32>
    %59 = arith.addf %53, %58 : vector<8x64xf32>
    %60 = vector.extract_strided_slice %10 {offsets = [8, 0, 0], sizes = [1, 8, 64], strides = [1, 1, 1]} : vector<16x8x64xf32> to vector<1x8x64xf32>
    %61 = vector.shape_cast %60 : vector<1x8x64xf32> to vector<8x64xf32>
    %c8 = arith.constant 8 : index
    %c0_36 = arith.constant 0 : index
    %c0_37 = arith.constant 0 : index
    %62 = vector.load %arg4[%c8, %c0_36, %c0_37] : memref<16x64x64xf32, #tpu.memory_space<vmem>>, vector<1x64x64xf32>
    %63 = vector.shape_cast %62 : vector<1x64x64xf32> to vector<64x64xf32>
    %cst_38 = arith.constant dense<0.000000e+00> : vector<8x64xf32>
    %64 = tpu.matmul %61, %63, %cst_38 {dimension_numbers = #tpu.dot_dimension_numbers<[1], [0], [0], [1], [0, 0, 1, 1], [], []>} : vector<8x64xf32>, vector<64x64xf32>, vector<8x64xf32> -> vector<8x64xf32>
    %65 = arith.addf %59, %64 : vector<8x64xf32>
    %66 = vector.extract_strided_slice %10 {offsets = [9, 0, 0], sizes = [1, 8, 64], strides = [1, 1, 1]} : vector<16x8x64xf32> to vector<1x8x64xf32>
    %67 = vector.shape_cast %66 : vector<1x8x64xf32> to vector<8x64xf32>
    %c9 = arith.constant 9 : index
    %c0_39 = arith.constant 0 : index
    %c0_40 = arith.constant 0 : index
    %68 = vector.load %arg4[%c9, %c0_39, %c0_40] : memref<16x64x64xf32, #tpu.memory_space<vmem>>, vector<1x64x64xf32>
    %69 = vector.shape_cast %68 : vector<1x64x64xf32> to vector<64x64xf32>
    %cst_41 = arith.constant dense<0.000000e+00> : vector<8x64xf32>
    %70 = tpu.matmul %67, %69, %cst_41 {dimension_numbers = #tpu.dot_dimension_numbers<[1], [0], [0], [1], [0, 0, 1, 1], [], []>} : vector<8x64xf32>, vector<64x64xf32>, vector<8x64xf32> -> vector<8x64xf32>
    %71 = arith.addf %65, %70 : vector<8x64xf32>
    %72 = vector.extract_strided_slice %10 {offsets = [10, 0, 0], sizes = [1, 8, 64], strides = [1, 1, 1]} : vector<16x8x64xf32> to vector<1x8x64xf32>
    %73 = vector.shape_cast %72 : vector<1x8x64xf32> to vector<8x64xf32>
    %c10 = arith.constant 10 : index
    %c0_42 = arith.constant 0 : index
    %c0_43 = arith.constant 0 : index
    %74 = vector.load %arg4[%c10, %c0_42, %c0_43] : memref<16x64x64xf32, #tpu.memory_space<vmem>>, vector<1x64x64xf32>
    %75 = vector.shape_cast %74 : vector<1x64x64xf32> to vector<64x64xf32>
    %cst_44 = arith.constant dense<0.000000e+00> : vector<8x64xf32>
    %76 = tpu.matmul %73, %75, %cst_44 {dimension_numbers = #tpu.dot_dimension_numbers<[1], [0], [0], [1], [0, 0, 1, 1], [], []>} : vector<8x64xf32>, vector<64x64xf32>, vector<8x64xf32> -> vector<8x64xf32>
    %77 = arith.addf %71, %76 : vector<8x64xf32>
    %78 = vector.extract_strided_slice %10 {offsets = [11, 0, 0], sizes = [1, 8, 64], strides = [1, 1, 1]} : vector<16x8x64xf32> to vector<1x8x64xf32>
    %79 = vector.shape_cast %78 : vector<1x8x64xf32> to vector<8x64xf32>
    %c11 = arith.constant 11 : index
    %c0_45 = arith.constant 0 : index
    %c0_46 = arith.constant 0 : index
    %80 = vector.load %arg4[%c11, %c0_45, %c0_46] : memref<16x64x64xf32, #tpu.memory_space<vmem>>, vector<1x64x64xf32>
    %81 = vector.shape_cast %80 : vector<1x64x64xf32> to vector<64x64xf32>
    %cst_47 = arith.constant dense<0.000000e+00> : vector<8x64xf32>
    %82 = tpu.matmul %79, %81, %cst_47 {dimension_numbers = #tpu.dot_dimension_numbers<[1], [0], [0], [1], [0, 0, 1, 1], [], []>} : vector<8x64xf32>, vector<64x64xf32>, vector<8x64xf32> -> vector<8x64xf32>
    %83 = arith.addf %77, %82 : vector<8x64xf32>
    %84 = vector.extract_strided_slice %10 {offsets = [12, 0, 0], sizes = [1, 8, 64], strides = [1, 1, 1]} : vector<16x8x64xf32> to vector<1x8x64xf32>
    %85 = vector.shape_cast %84 : vector<1x8x64xf32> to vector<8x64xf32>
    %c12 = arith.constant 12 : index
    %c0_48 = arith.constant 0 : index
    %c0_49 = arith.constant 0 : index
    %86 = vector.load %arg4[%c12, %c0_48, %c0_49] : memref<16x64x64xf32, #tpu.memory_space<vmem>>, vector<1x64x64xf32>
    %87 = vector.shape_cast %86 : vector<1x64x64xf32> to vector<64x64xf32>
    %cst_50 = arith.constant dense<0.000000e+00> : vector<8x64xf32>
    %88 = tpu.matmul %85, %87, %cst_50 {dimension_numbers = #tpu.dot_dimension_numbers<[1], [0], [0], [1], [0, 0, 1, 1], [], []>} : vector<8x64xf32>, vector<64x64xf32>, vector<8x64xf32> -> vector<8x64xf32>
    %89 = arith.addf %83, %88 : vector<8x64xf32>
    %90 = vector.extract_strided_slice %10 {offsets = [13, 0, 0], sizes = [1, 8, 64], strides = [1, 1, 1]} : vector<16x8x64xf32> to vector<1x8x64xf32>
    %91 = vector.shape_cast %90 : vector<1x8x64xf32> to vector<8x64xf32>
    %c13 = arith.constant 13 : index
    %c0_51 = arith.constant 0 : index
    %c0_52 = arith.constant 0 : index
    %92 = vector.load %arg4[%c13, %c0_51, %c0_52] : memref<16x64x64xf32, #tpu.memory_space<vmem>>, vector<1x64x64xf32>
    %93 = vector.shape_cast %92 : vector<1x64x64xf32> to vector<64x64xf32>
    %cst_53 = arith.constant dense<0.000000e+00> : vector<8x64xf32>
    %94 = tpu.matmul %91, %93, %cst_53 {dimension_numbers = #tpu.dot_dimension_numbers<[1], [0], [0], [1], [0, 0, 1, 1], [], []>} : vector<8x64xf32>, vector<64x64xf32>, vector<8x64xf32> -> vector<8x64xf32>
    %95 = arith.addf %89, %94 : vector<8x64xf32>
    %96 = vector.extract_strided_slice %10 {offsets = [14, 0, 0], sizes = [1, 8, 64], strides = [1, 1, 1]} : vector<16x8x64xf32> to vector<1x8x64xf32>
    %97 = vector.shape_cast %96 : vector<1x8x64xf32> to vector<8x64xf32>
    %c14 = arith.constant 14 : index
    %c0_54 = arith.constant 0 : index
    %c0_55 = arith.constant 0 : index
    %98 = vector.load %arg4[%c14, %c0_54, %c0_55] : memref<16x64x64xf32, #tpu.memory_space<vmem>>, vector<1x64x64xf32>
    %99 = vector.shape_cast %98 : vector<1x64x64xf32> to vector<64x64xf32>
    %cst_56 = arith.constant dense<0.000000e+00> : vector<8x64xf32>
    %100 = tpu.matmul %97, %99, %cst_56 {dimension_numbers = #tpu.dot_dimension_numbers<[1], [0], [0], [1], [0, 0, 1, 1], [], []>} : vector<8x64xf32>, vector<64x64xf32>, vector<8x64xf32> -> vector<8x64xf32>
    %101 = arith.addf %95, %100 : vector<8x64xf32>
    %102 = vector.extract_strided_slice %10 {offsets = [15, 0, 0], sizes = [1, 8, 64], strides = [1, 1, 1]} : vector<16x8x64xf32> to vector<1x8x64xf32>
    %103 = vector.shape_cast %102 : vector<1x8x64xf32> to vector<8x64xf32>
    %c15 = arith.constant 15 : index
    %c0_57 = arith.constant 0 : index
    %c0_58 = arith.constant 0 : index
    %104 = vector.load %arg4[%c15, %c0_57, %c0_58] : memref<16x64x64xf32, #tpu.memory_space<vmem>>, vector<1x64x64xf32>
    %105 = vector.shape_cast %104 : vector<1x64x64xf32> to vector<64x64xf32>
    %cst_59 = arith.constant dense<0.000000e+00> : vector<8x64xf32>
    %106 = tpu.matmul %103, %105, %cst_59 {dimension_numbers = #tpu.dot_dimension_numbers<[1], [0], [0], [1], [0, 0, 1, 1], [], []>} : vector<8x64xf32>, vector<64x64xf32>, vector<8x64xf32> -> vector<8x64xf32>
    %107 = arith.addf %101, %106 : vector<8x64xf32>
    %c0_60 = arith.constant 0 : index
    %c0_61 = arith.constant 0 : index
    %108 = vector.load %arg5[%c0_60, %c0_61] : memref<1x64xf32, #tpu.memory_space<vmem>>, vector<1x64xf32>
    %109 = vector.broadcast %108 : vector<1x64xf32> to vector<8x64xf32>
    %110 = arith.addf %107, %109 : vector<8x64xf32>
    %cst_62 = arith.constant 0.000000e+00 : f32
    %111 = vector.broadcast %cst_62 : f32 to vector<8x64xf32>
    %112 = arith.maximumf %110, %111 : vector<8x64xf32>
    %c0_63 = arith.constant 0 : index
    %c0_64 = arith.constant 0 : index
    %113 = vector.load %arg6[%c0_63, %c0_64] : memref<1x64xf32, #tpu.memory_space<vmem>>, vector<1x64xf32>
    %114 = vector.broadcast %113 : vector<1x64xf32> to vector<8x64xf32>
    %115 = arith.mulf %112, %114 : vector<8x64xf32>
    %cst_65 = arith.constant dense<0.000000e+00> : vector<8xf32>
    %116 = vector.multi_reduction <add>, %115, %cst_65 [1] : vector<8x64xf32> to vector<8xf32>
    %117 = vector.shape_cast %116 : vector<8xf32> to vector<8x1xf32>
    %c0_66 = arith.constant 0 : index
    %c0_67 = arith.constant 0 : index
    %118 = vector.load %arg7[%c0_66, %c0_67] : memref<1x1xf32, #tpu.memory_space<vmem>>, vector<1x1xf32>
    %119 = vector.broadcast %118 : vector<1x1xf32> to vector<8x1xf32>
    %120 = arith.addf %117, %119 : vector<8x1xf32>
    %c0_68 = arith.constant 0 : index
    %c0_69 = arith.constant 0 : index
    %121 = vector.load %arg8[%c0_68, %c0_69] : memref<8x1xf32, #tpu.memory_space<vmem>>, vector<8x1xf32>
    tpu.vector_store %arg8[%c0_68, %c0_69], %120 {strides = array<i32>} : memref<8x1xf32, #tpu.memory_space<vmem>>, vector<8x1xf32>,
    return
  }
  func.func @transform_0(%arg0: i32) -> (i32, i32, i32, i32) {
    %c0_i32 = arith.constant 0 : i32
    %c0_i32_0 = arith.constant 0 : i32
    %c0_i32_1 = arith.constant 0 : i32
    %c0_i32_2 = arith.constant 0 : i32
    return %c0_i32, %c0_i32_0, %arg0, %c0_i32_1 : i32, i32, i32, i32
  }
  func.func @transform_1(%arg0: i32) -> (i32, i32) {
    %c0_i32 = arith.constant 0 : i32
    %c0_i32_0 = arith.constant 0 : i32
    %c0_i32_1 = arith.constant 0 : i32
    return %c0_i32, %c0_i32_0 : i32, i32
  }
  func.func @transform_2(%arg0: i32) -> (i32, i32, i32) {
    %c0_i32 = arith.constant 0 : i32
    %c0_i32_0 = arith.constant 0 : i32
    %c0_i32_1 = arith.constant 0 : i32
    %c0_i32_2 = arith.constant 0 : i32
    return %c0_i32, %c0_i32_0, %c0_i32_1 : i32, i32, i32
  }
  func.func @transform_3(%arg0: i32) -> (i32, i32, i32) {
    %c0_i32 = arith.constant 0 : i32
    %c0_i32_0 = arith.constant 0 : i32
    %c0_i32_1 = arith.constant 0 : i32
    %c0_i32_2 = arith.constant 0 : i32
    return %c0_i32, %c0_i32_0, %c0_i32_1 : i32, i32, i32
  }
  func.func @transform_4(%arg0: i32) -> (i32, i32) {
    %c0_i32 = arith.constant 0 : i32
    %c0_i32_0 = arith.constant 0 : i32
    %c0_i32_1 = arith.constant 0 : i32
    return %c0_i32, %c0_i32_0 : i32, i32
  }
  func.func @transform_5(%arg0: i32) -> (i32, i32) {
    %c0_i32 = arith.constant 0 : i32
    %c0_i32_0 = arith.constant 0 : i32
    %c0_i32_1 = arith.constant 0 : i32
    return %c0_i32, %c0_i32_0 : i32, i32
  }
  func.func @transform_6(%arg0: i32) -> (i32, i32) {
    %c0_i32 = arith.constant 0 : i32
    %c0_i32_0 = arith.constant 0 : i32
    %c0_i32_1 = arith.constant 0 : i32
    return %c0_i32, %c0_i32_0 : i32, i32
  }
  func.func @transform_7(%arg0: i32) -> (i32, i32) {
    %c0_i32 = arith.constant 0 : i32
    %c0_i32_0 = arith.constant 0 : i32
    return %arg0, %c0_i32 : i32, i32
  }
}

module attributes {stable_mosaic.version = 11 : i64} {
  func.func @_neural_sort_kernel(%arg0: i32, %arg1: memref<4x2xf32, #tpu.memory_space<vmem>>, %arg2: memref<4x1x1xf32, #tpu.memory_space<vmem>>, %arg3: memref<4x4x2xf32, #tpu.memory_space<vmem>>) attributes {dimension_semantics = [#tpu.dimension_semantics<parallel>], iteration_bounds = array<i64: 1>, scalar_prefetch = 0 : i64, scratch_operands = 0 : i64, tpu.core_type = #tpu.core_type<tc>, window_params = [{transform_indices = @transform_0, window_bounds = array<i64: 4, 2>}, {pipeline_mode = #tpu.pipeline_mode<synchronous>, transform_indices = @transform_1, window_bounds = array<i64: 4, 1, 1>}, {transform_indices = @transform_2, window_bounds = array<i64: 4, 4, 2>}]} {
    %c0 = arith.constant 0 : index
    %c0_0 = arith.constant 0 : index
    %0 = vector.load %arg1[%c0, %c0_0] : memref<4x2xf32, #tpu.memory_space<vmem>>, vector<4x2xf32>
    %1 = vector.shape_cast %0 : vector<4x2xf32> to vector<4x1x2xf32>
    %2 = vector.shape_cast %0 : vector<4x2xf32> to vector<1x4x2xf32>
    %3 = vector.broadcast %1 : vector<4x1x2xf32> to vector<4x4x2xf32>
    %4 = vector.broadcast %2 : vector<1x4x2xf32> to vector<4x4x2xf32>
    %5 = arith.subf %3, %4 : vector<4x4x2xf32>
    %6 = math.absf %5 : vector<4x4x2xf32>
    %cst = arith.constant dense<0.000000e+00> : vector<4x2xf32>
    %7 = vector.multi_reduction <add>, %6, %cst [1] : vector<4x4x2xf32> to vector<4x2xf32>
    %c0_1 = arith.constant 0 : index
    %c0_2 = arith.constant 0 : index
    %c0_3 = arith.constant 0 : index
    %8 = vector.load %arg2[%c0_1, %c0_2, %c0_3] : memref<4x1x1xf32, #tpu.memory_space<vmem>>, vector<4x1x1xf32>
    %9 = vector.shape_cast %0 : vector<4x2xf32> to vector<1x4x2xf32>
    %10 = vector.broadcast %8 : vector<4x1x1xf32> to vector<4x4x2xf32>
    %11 = vector.broadcast %9 : vector<1x4x2xf32> to vector<4x4x2xf32>
    %12 = arith.mulf %10, %11 : vector<4x4x2xf32>
    %13 = vector.shape_cast %7 : vector<4x2xf32> to vector<1x4x2xf32>
    %14 = vector.broadcast %13 : vector<1x4x2xf32> to vector<4x4x2xf32>
    %15 = arith.subf %12, %14 : vector<4x4x2xf32>
    %cst_4 = arith.constant 1.000000e+00 : f32
    %16 = vector.broadcast %cst_4 : f32 to vector<4x4x2xf32>
    %17 = arith.mulf %15, %16 : vector<4x4x2xf32>
    %cst_5 = arith.constant dense<0xFF800000> : vector<4x2xf32>
    %18 = vector.multi_reduction <maximumf>, %17, %cst_5 [1] : vector<4x4x2xf32> to vector<4x2xf32>
    %19 = vector.shape_cast %18 : vector<4x2xf32> to vector<4x1x2xf32>
    %20 = vector.broadcast %19 : vector<4x1x2xf32> to vector<4x4x2xf32>
    %21 = arith.subf %17, %20 : vector<4x4x2xf32>
    %22 = math.exp %21 : vector<4x4x2xf32>
    %cst_6 = arith.constant dense<0.000000e+00> : vector<4x2xf32>
    %23 = vector.multi_reduction <add>, %22, %cst_6 [1] : vector<4x4x2xf32> to vector<4x2xf32>
    %24 = vector.shape_cast %23 : vector<4x2xf32> to vector<4x1x2xf32>
    %25 = vector.broadcast %24 : vector<4x1x2xf32> to vector<4x4x2xf32>
    %26 = arith.divf %22, %25 : vector<4x4x2xf32>
    %c0_7 = arith.constant 0 : index
    %c0_8 = arith.constant 0 : index
    %c0_9 = arith.constant 0 : index
    %27 = vector.load %arg3[%c0_7, %c0_8, %c0_9] : memref<4x4x2xf32, #tpu.memory_space<vmem>>, vector<4x4x2xf32>
    tpu.vector_store %arg3[%c0_7, %c0_8, %c0_9], %26 {strides = array<i32>} : memref<4x4x2xf32, #tpu.memory_space<vmem>>, vector<4x4x2xf32>,
    return
  }
  func.func @transform_0(%arg0: i32) -> (i32, i32) {
    %c0_i32 = arith.constant 0 : i32
    %c0_i32_0 = arith.constant 0 : i32
    return %c0_i32, %arg0 : i32, i32
  }
  func.func @transform_1(%arg0: i32) -> (i32, i32, i32) {
    %c0_i32 = arith.constant 0 : i32
    %c0_i32_0 = arith.constant 0 : i32
    %c0_i32_1 = arith.constant 0 : i32
    %c0_i32_2 = arith.constant 0 : i32
    return %c0_i32, %c0_i32_0, %c0_i32_1 : i32, i32, i32
  }
  func.func @transform_2(%arg0: i32) -> (i32, i32, i32) {
    %c0_i32 = arith.constant 0 : i32
    %c0_i32_0 = arith.constant 0 : i32
    %c0_i32_1 = arith.constant 0 : i32
    return %c0_i32, %c0_i32_0, %arg0 : i32, i32, i32
  }
}

</mosaic_0001>

<bundles_post_ra>
// kernel: tile.6
= control target key start
LH: loop header
LB: loop body
LE: loop exit
PB: predicated region body
PF: predicated region fallthrough
CT: control target
= control target key end

     0   :  { %s28_s0 = inlined_call_operand.vmem [shape: f32[32], index: 0, kind: input, shape index: {}]   ;;  %s29_s1 = inlined_call_operand.vmem [shape: f32[12,32], index: 1, kind: output, shape index: {}]  }
   0x1   :  { %v4_v0 = vld [vmem:[%s28_s0] ss:$0 sm:$0xff] }
   0x2   :  { %5 = vst [vmem:[%s29_s1] sm:$0xff] %v4_v0  ;;  %8 = vst [vmem:[%s29_s1 + $0x8] sm:$0xff] %v4_v0 }

// kernel: tile.7
= control target key start
LH: loop header
LB: loop body
LE: loop exit
PB: predicated region body
PF: predicated region fallthrough
CT: control target
= control target key end

     0   :  { %s49_s8 = smov 96   ;;  %vm3_vm0 = vcmask 261120   ;;  %s51_s15 = smov 64   ;;  %vm9_vm1 = vcmask 1048320   ;;  %vm15_vm2 = vcmask 785920   ;;  %vm21_vm3 = vcmask 523520   ;;  %s83_s0 = inlined_call_operand.vmem [shape: f32[12,32], index: 0, kind: input, shape index: {}]   ;;  %s84_s1 = inlined_call_operand.vmem [shape: f32[1,384], index: 1, kind: output, shape index: {}]  }
   0x1   :  { %v41_v0 = vld [vmem:[%s83_s0 + $0x3] ss:$4 sm:$0x7]   ;;  %v42_v1 = vld [vmem:[%s83_s0 + $0x2] ss:$4 sm:$0x7]  }
   0x2   :  { %7 = vrot.lane.b32.xlu0 %v41_v0, %s49_s8  ;;  %v43_v2 = vld [vmem:[%s83_s0 + $0x1] ss:$4 sm:$0x7]   ;;  %v2_v3 = vld [vmem:[%s83_s0] ss:$4 sm:$0x7]  }
   0x3   :  { %s50_s0 = smov 32   ;;  %4 = vst.msk [vmem:[#allocation0] ss:$8 sm:$0x7] %vm3_vm0, %v2_v3  }
   0x4   :  { %19 = vrot.lane.b32.xlu1 %v43_v2, %s50_s0 }
   0x6   :  { %13 = vrot.lane.b32.xlu0 %v42_v1, %s51_s15 }
  0x74   :  { %v8_v4 = vpop.permute.xlu0 %7  }
  0x75   :  { %10 = vst.msk [vmem:[#allocation0] ss:$8 sm:$0x7] %vm9_vm1, %v8_v4  }
  0x76   :  { %v20_v5 = vpop.permute.xlu1 %19  }
  0x78   :  { %v14_v6 = vpop.permute.xlu0 %13  }
  0x79   :  { %16 = vst.msk [vmem:[#allocation0] ss:$8 sm:$0x7] %vm15_vm2, %v14_v6  }
  0x7a   :  { %22 = vst.msk [vmem:[#allocation0] ss:$8 sm:$0x7] %vm21_vm3, %v20_v5  }
  0x81   :  { %v26_v7 = vld [vmem:[#allocation0] sm:$0x1]  ;;  %v30_v8 = vld [vmem:[#allocation0 + $0x8] sm:$0x1]  ;;  %v35_v9 = vld [vmem:[#allocation0 + $0x10] sm:$0x1] }
  0x82   :  { %28 = vst [vmem:[%s84_s1] sm:$0x1] %v26_v7  ;;  %44 = vst [vmem:[%s84_s1 + $0x1] sm:$0x1] %v30_v8 }
  0x83   :  { %45 = vst [vmem:[%s84_s1 + $0x2] sm:$0x1] %v35_v9 }

// kernel: _lambda_.6
= control target key start
LH: loop header
LB: loop body
LE: loop exit
PB: predicated region body
PF: predicated region fallthrough
CT: control target
= control target key end

     0   :  { %s9184_s0 = inlined_call_operand.vmem [shape: f32[300,384], index: 0, kind: input, shape index: {}]   ;;  %s9185_s1 = inlined_call_operand.vmem [shape: f32[1,384], index: 1, kind: input, shape index: {}]   ;;  %s9186_s2 = inlined_call_operand.vmem [shape: f32[1,96,300], index: 2, kind: input, shape index: {}]   ;;  %s9187_s3 = inlined_call_operand.<no memory space> [shape: f32[], index: 3, kind: input, shape index: {}]   ;;  %s9188_s4 = inlined_call_operand.vmem [shape: f32[1,96,300], index: 4, kind: input, shape index: {}]   ;;  %s9189_s5 = inlined_call_operand.vmem [shape: f32[1,96,300], index: 5, kind: input, shape index: {}]   ;;  %s9190_s6 = inlined_call_operand.vmem [shape: f32[1,96,300], index: 6, kind: input, shape index: {}]   ;;  %s9191_s7 = inlined_call_operand.vmem [shape: f32[96,384], index: 7, kind: output, shape index: {}]  }
   0x1   :  { %v6602_v0 = vstv %s9187_s3 }
   0x2   :  { %v4095_v1 = vld [vmem:[%s9184_s0 + $0x8] sm:$0xff]  ;;  %v4098_v2 = vld [vmem:[%s9184_s0 + $0x20] sm:$0xff]  ;;  %v9192_v4 = vlaneseq  ;;  %v4097_v8 = vld [vmem:[%s9184_s0 + $0x18] sm:$0xff]  ;;  %v9193_v9 = vmov 0.0   ;;  %vm4353_vm0 = vcmask 1043456   ;;  %vm6557_vm1 = vmmov 1  }
   0x3   :  { %v4191_v3 = vld [vmem:[%s9184_s0 + $0x308] sm:$0xff]  ;;  %v6311_v5 = vpack.c.bf16 %v4098_v2, %v4095_v1  ;;  %v4194_v6 = vld [vmem:[%s9184_s0 + $0x320] sm:$0xff]  ;;  %4960 = vmatprep.mubr.f32.mxu1 %v9193_v9  ;;  %v4193_v13 = vld [vmem:[%s9184_s0 + $0x318] sm:$0xff]  ;;  %vm4208_vm4 = vcmask 359424   ;;  %v6558_v63 = vmov 0.0|0.0  }
   0x4   :  { %v4094_v7 = vld [vmem:[%s9184_s0] sm:$0xff]  ;;  %v6623_v10 = vpack.c.bf16 %v4194_v6, %v4191_v3  ;;  %v4101_v14 = vld [vmem:[%s9184_s0 + $0x38] sm:$0xff]  ;;  %v235_v15 = vand.u32 127, %v9192_v4  ;;  %v4104_v17 = vld [vmem:[%s9184_s0 + $0x50] sm:$0xff] }
   0x5   :  { %v6313_v11 = vpack.c.bf16 %v4097_v8, %v4094_v7  ;;  %v4190_v12 = vld [vmem:[%s9184_s0 + $0x300] sm:$0xff]  ;;  %6312 = vmatprep.subr.bf16.mxu0 %v6311_v5  ;;  %v4197_v18 = vld [vmem:[%s9184_s0 + $0x338] sm:$0xff]  ;;  %v4200_v19 = vld [vmem:[%s9184_s0 + $0x350] sm:$0xff]  ;;  %v6315_v20 = vpack.c.bf16 %v4104_v17, %v4101_v14 }
   0x6   :  { %v6635_v16 = vpack.c.bf16 %v4193_v13, %v4190_v12  ;;  %6451 = vmatprep.subr.bf16.mxu1 %v6623_v10  ;;  %v6647_v21 = vpack.c.bf16 %v4200_v19, %v4197_v18  ;;  %v4100_v22 = vld [vmem:[%s9184_s0 + $0x30] sm:$0xff]  ;;  %v4103_v23 = vld [vmem:[%s9184_s0 + $0x48] sm:$0xff]  ;;  %v6658_v25 = vadd.s32 256, %v235_v15  ;;  %v4110_v29 = vld [vmem:[%s9184_s0 + $0x80] sm:$0xff] }
   0x7   :  { %6314 = vmatpush1.bf16.msra.mxu0 %v6313_v11  ;;  %v4196_v24 = vld [vmem:[%s9184_s0 + $0x330] sm:$0xff]  ;;  %v6317_v26 = vpack.c.bf16 %v4103_v23, %v4100_v22  ;;  %v4199_v27 = vld [vmem:[%s9184_s0 + $0x348] sm:$0xff]  ;;  %v4206_v33 = vld [vmem:[%s9184_s0 + $0x380] sm:$0xf] }
   0x8   :  { %6454 = vmatpush1.bf16.msra.mxu1 %v6635_v16  ;;  %v4107_v28 = vld [vmem:[%s9184_s0 + $0x68] sm:$0xff]  ;;  %6316 = vmatprep.subr.bf16.mxu0 %v6315_v20  ;;  %v6671_v30 = vpack.c.bf16 %v4199_v27, %v4196_v24  ;;  %vm6680_vm2 = vmpackc.low %vm4353_vm0, %vm6557_vm1  ;;  %v4106_v36 = vld [vmem:[%s9184_s0 + $0x60] sm:$0xff]  ;;  %vm237_vm3 = vcmp.lt.s32.totalorder %v6658_v25, 300 }
   0x9   :  { %6452 = vmatprep.subr.bf16.mxu1 %v6647_v21  ;;  %v6319_v31 = vpack.c.bf16 %v4110_v29, %v4107_v28  ;;  %v4203_v32 = vld [vmem:[%s9184_s0 + $0x368] sm:$0xff]  ;;  %v4109_v37 = vld [vmem:[%s9184_s0 + $0x78] sm:$0xff]  ;;  %v4202_v38 = vld [vmem:[%s9184_s0 + $0x360] sm:$0xff] }
   0xa   :  { %v6684_v35 = vpack.c.bf16 %v4206_v33, %v4203_v32  ;;  %v6321_v39 = vpack.c.bf16 %v4109_v37, %v4106_v36  ;;  %v4205_v40 = vld [vmem:[%s9184_s0 + $0x378] sm:$0xf]  ;;  %v4116_v42 = vld [vmem:[%s9184_s0 + $0xb0] sm:$0xff]  ;;  %v6011_v45 = vld [vmem:[%s9188_s4 + $0xa0] sm:$0xff] }
   0xb   :  { %6318 = vmatpush1.bf16.msra.mxu0 %v6317_v26  ;;  %v4113_v41 = vld [vmem:[%s9184_s0 + $0x98] sm:$0xff]  ;;  %v6706_v43 = vpack.c.bf16 %v4205_v40, %v4202_v38  ;;  %v4112_v46 = vld [vmem:[%s9184_s0 + $0x90] sm:$0xff]  ;;  %v4115_v47 = vld [vmem:[%s9184_s0 + $0xa8] sm:$0xff]  ;;  %v2763_v48 = vsel %vm237_vm3, %v6011_v45, %v6602_v0 }
   0xc   :  { %6455 = vmatpush1.bf16.msra.mxu1 %v6671_v30  ;;  %6320 = vmatprep.subr.bf16.mxu0 %v6319_v31  ;;  %v6323_v44 = vpack.c.bf16 %v4116_v42, %v4113_v41  ;;  %v4119_v49 = vld [vmem:[%s9184_s0 + $0xc8] sm:$0xff]  ;;  %v4122_v50 = vld [vmem:[%s9184_s0 + $0xe0] sm:$0xff]  ;;  %v6023_v51 = vld [vmem:[%s9188_s4 + $0xb8] sm:$0xff]  ;;  %v2771_v52 = vmax.f32 %v6602_v0, %v2763_v48  ;;  %v6325_v55 = vpack.c.bf16 %v4115_v47, %v4112_v46 }
   0xd   :  { %6453 = vmatprep.subr.msk.bf16.mxu1 %vm6680_vm2, %v6684_v35  ;;  %v2832_v53 = vsel %vm237_vm3, %v6023_v51, %v6602_v0  ;;  %v4096_v54 = vld [vmem:[%s9184_s0 + $0x10] sm:$0xff]  ;;  %v4099_v57 = vld [vmem:[%s9184_s0 + $0x28] sm:$0xff]  ;;  %v6327_v59 = vpack.c.bf16 %v4122_v50, %v4119_v49  ;;  %v4118_v60 = vld [vmem:[%s9184_s0 + $0xc0] sm:$0xff] }
   0xe   :  { %v2840_v56 = vmax.f32 %v6602_v0, %v2832_v53  ;;  %v6747_v58 = vmax.f32 %v2771_v52, %v6602_v0  ;;  %v4121_v61 = vld [vmem:[%s9184_s0 + $0xd8] sm:$0xff]  ;;  %v6035_v62 = vld [vmem:[%s9188_s4 + $0xd0] sm:$0xff]  ;;  %v6390_v1 = vpack.c.bf16 %v4099_v57, %v4096_v54  ;;  %v4102_v6 = vld [vmem:[%s9184_s0 + $0x40] sm:$0xff] }
   0xf   :  { %6322 = vmatpush1.bf16.msra.mxu0 %v6321_v39  ;;  %v4125_v2 = vld [vmem:[%s9184_s0 + $0xf8] sm:$0xff]  ;;  %v4128_v3 = vld [vmem:[%s9184_s0 + $0x110] sm:$0xff]  ;;  %v2901_v5 = vsel %vm237_vm3, %v6035_v62, %v6602_v0  ;;  %v6047_v8 = vld [vmem:[%s9188_s4 + $0xe8] sm:$0xff]  ;;  %v6329_v12 = vpack.c.bf16 %v4121_v61, %v4118_v60 }
  0x10   :  { %6456 = vmatpush1.bf16.msk.msra.mxu1 %vm6680_vm2, %v6706_v43  ;;  %6324 = vmatprep.subr.bf16.mxu0 %v6323_v44  ;;  %v4105_v7 = vld [vmem:[%s9184_s0 + $0x58] sm:$0xff]  ;;  %v6780_v11 = vmax.f32 %v2840_v56, %v6602_v0  ;;  %v2909_v13 = vmax.f32 %v6602_v0, %v2901_v5  ;;  %v6331_v14 = vpack.c.bf16 %v4128_v3, %v4125_v2  ;;  %v4124_v15 = vld [vmem:[%s9184_s0 + $0xf0] sm:$0xff]  ;;  %v4127_v17 = vld [vmem:[%s9184_s0 + $0x108] sm:$0xff] }
  0x11   :  { %6389 = vmatprep.subr.bf16.mxu1 %v6558_v63  ;;  %v2970_v18 = vsel %vm237_vm3, %v6047_v8, %v6602_v0  ;;  %v6393_v19 = vpack.c.bf16 %v4105_v7, %v4102_v6  ;;  %v4131_v20 = vld [vmem:[%s9184_s0 + $0x128] sm:$0xff]  ;;  %v4134_v22 = vld [vmem:[%s9184_s0 + $0x140] sm:$0xff]  ;;  %v4108_v24 = vld [vmem:[%s9184_s0 + $0x70] sm:$0xff]  ;;  %v6333_v28 = vpack.c.bf16 %v4127_v17, %v4124_v15 }
  0x12   :  { %v6059_v23 = vld [vmem:[%s9188_s4 + $0x100] sm:$0xff]  ;;  %v4111_v26 = vld [vmem:[%s9184_s0 + $0x88] sm:$0xff]  ;;  %v6812_v27 = vmax.f32 %v2909_v13, %v6602_v0  ;;  %v2978_v29 = vmax.f32 %v6602_v0, %v2970_v18  ;;  %v6335_v31 = vpack.c.bf16 %v4134_v22, %v4131_v20  ;;  %v4133_v33 = vld [vmem:[%s9184_s0 + $0x138] sm:$0xff] }
  0x13   :  { %6106 = vmatmul.mubr.msk.f32.vlgmr.msra.gmra.mrb[0].mxu1 %vm4208_vm4, %v6747_v58  ;;  %6326 = vmatpush1.bf16.msra.mxu0 %v6325_v55  ;;  %v4130_v32 = vld [vmem:[%s9184_s0 + $0x120] sm:$0xff]  ;;  %v3039_v36 = vsel %vm237_vm3, %v6059_v23, %v6602_v0  ;;  %v6396_v37 = vpack.c.bf16 %v4111_v26, %v4108_v24  ;;  %v4137_v38 = vld [vmem:[%s9184_s0 + $0x158] sm:$0xff]  ;;  %v4140_v39 = vld [vmem:[%s9184_s0 + $0x170] sm:$0xff] }
  0x14   :  { %4966 = vmatprep.mubr.f32.mxu1 %v9193_v9  ;;  %6328 = vmatprep.subr.bf16.mxu0 %v6327_v59  ;;  %v6071_v40 = vld [vmem:[%s9188_s4 + $0x118] sm:$0xff]  ;;  %v4114_v41 = vld [vmem:[%s9184_s0 + $0xa0] sm:$0xff]  ;;  %v6844_v44 = vmax.f32 %v2978_v29, %v6602_v0  ;;  %v6337_v45 = vpack.c.bf16 %v4133_v33, %v4130_v32  ;;  %v3047_v46 = vmax.f32 %v6602_v0, %v3039_v36  ;;  %v4136_v48 = vld [vmem:[%s9184_s0 + $0x150] sm:$0xff] }
  0x15   :  { %6391 = vmatpush1.bf16.msra.mxu1 %v6390_v1  ;;  %v4117_v42 = vld [vmem:[%s9184_s0 + $0xb8] sm:$0xff]  ;;  %v6339_v47 = vpack.c.bf16 %v4140_v39, %v4137_v38  ;;  %v4139_v49 = vld [vmem:[%s9184_s0 + $0x168] sm:$0xff]  ;;  %v3108_v50 = vsel %vm237_vm3, %v6071_v40, %v6602_v0  ;;  %v4146_v53 = vld [vmem:[%s9184_s0 + $0x1a0] sm:$0xff] }
  0x16   :  { %6392 = vmatprep.subr.bf16.mxu1 %v6558_v63  ;;  %v6399_v51 = vpack.c.bf16 %v4117_v42, %v4114_v41  ;;  %v4143_v52 = vld [vmem:[%s9184_s0 + $0x188] sm:$0xff]  ;;  %v4120_v54 = vld [vmem:[%s9184_s0 + $0xd0] sm:$0xff]  ;;  %v6873_v56 = vmax.f32 %v3047_v46, %v6602_v0  ;;  %v6341_v57 = vpack.c.bf16 %v4139_v49, %v4136_v48  ;;  %v3116_v59 = vmax.f32 %v6602_v0, %v3108_v50  ;;  %v4142_v61 = vld [vmem:[%s9184_s0 + $0x180] sm:$0xff] }
  0x17   :  { %6107 = vmatmul.mubr.msk.f32.gmra.mrb[2].mxu1 %vm4208_vm4, %v6780_v11  ;;  %6330 = vmatpush1.bf16.msra.mxu0 %v6329_v12  ;;  %v4123_v55 = vld [vmem:[%s9184_s0 + $0xe8] sm:$0xff]  ;;  %v6343_v60 = vpack.c.bf16 %v4146_v53, %v4143_v52  ;;  %v4145_v62 = vld [vmem:[%s9184_s0 + $0x198] sm:$0xff]  ;;  %v4152_v3 = vld [vmem:[%s9184_s0 + $0x1d0] sm:$0xff] }
  0x18   :  { %4972 = vmatprep.mubr.f32.mxu1 %v9193_v9  ;;  %6332 = vmatprep.subr.bf16.mxu0 %v6331_v14  ;;  %v6402_v1 = vpack.c.bf16 %v4123_v55, %v4120_v54  ;;  %v4149_v2 = vld [vmem:[%s9184_s0 + $0x1b8] sm:$0xff]  ;;  %v5938_v5 = vld [vmem:[%s9186_s2 + $0x10] sm:$0xff]  ;;  %v4126_v6 = vld [vmem:[%s9184_s0 + $0x100] sm:$0xff]  ;;  %v6902_v8 = vmax.f32 %v3116_v59, %v6602_v0  ;;  %v6345_v12 = vpack.c.bf16 %v4145_v62, %v4142_v61 }
  0x19   :  { %6394 = vmatpush1.bf16.msra.mxu1 %v6393_v19  ;;  %v4129_v7 = vld [vmem:[%s9184_s0 + $0x118] sm:$0xff]  ;;  %v6347_v13 = vpack.c.bf16 %v4152_v3, %v4149_v2  ;;  %v3173_v14 = vsel %vm237_vm3, %v5938_v5, %v6602_v0  ;;  %v4148_v15 = vld [vmem:[%s9184_s0 + $0x1b0] sm:$0xff]  ;;  %v4151_v17 = vld [vmem:[%s9184_s0 + $0x1c8] sm:$0xff] }
  0x1a   :  { %6395 = vmatprep.subr.bf16.mxu1 %v6558_v63  ;;  %v4155_v18 = vld [vmem:[%s9184_s0 + $0x1e8] sm:$0xff]  ;;  %v4158_v19 = vld [vmem:[%s9184_s0 + $0x200] sm:$0xff]  ;;  %v6405_v22 = vpack.c.bf16 %v4129_v7, %v4126_v6  ;;  %v4132_v23 = vld [vmem:[%s9184_s0 + $0x130] sm:$0xff]  ;;  %v6933_v26 = vmax.f32 %v6602_v0, %v3173_v14 }
  0x1b   :  { %6108 = vmatmul.mubr.msk.f32.gmra.mrb[4].mxu1 %vm4208_vm4, %v6812_v27  ;;  %6334 = vmatpush1.bf16.msra.mxu0 %v6333_v28  ;;  %v5950_v20 = vld [vmem:[%s9186_s2 + $0x28] sm:$0xff]  ;;  %v6349_v28 = vpack.c.bf16 %v4151_v17, %v4148_v15  ;;  %v6351_v29 = vpack.c.bf16 %v4158_v19, %v4155_v18  ;;  %v4154_v32 = vld [vmem:[%s9184_s0 + $0x1e0] sm:$0xff]  ;;  %v4157_v33 = vld [vmem:[%s9184_s0 + $0x1f8] sm:$0xff] }
  0x1c   :  { %4978 = vmatprep.mubr.f32.mxu1 %v9193_v9  ;;  %6336 = vmatprep.subr.bf16.mxu0 %v6335_v31  ;;  %v4135_v24 = vld [vmem:[%s9184_s0 + $0x148] sm:$0xff]  ;;  %v3242_v31 = vsel %vm237_vm3, %v5950_v20, %v6602_v0  ;;  %v4164_v38 = vld [vmem:[%s9184_s0 + $0x230] sm:$0xff]  ;;  %v5962_v39 = vld [vmem:[%s9186_s2 + $0x40] sm:$0xff] }
  0x1d   :  { %6397 = vmatpush1.bf16.msra.mxu1 %v6396_v37  ;;  %v5937_v36 = vld [vmem:[%s9190_s6 + $0x8] sm:$0xff]  ;;  %v4161_v37 = vld [vmem:[%s9184_s0 + $0x218] sm:$0xff]  ;;  %v6408_v40 = vpack.c.bf16 %v4135_v24, %v4132_v23  ;;  %v4138_v42 = vld [vmem:[%s9184_s0 + $0x160] sm:$0xff]  ;;  %v6968_v46 = vmax.f32 %v6602_v0, %v3242_v31  ;;  %v3311_v50 = vsel %vm237_vm3, %v5962_v39, %v6602_v0 }
  0x1e   :  { %6398 = vmatprep.subr.bf16.mxu1 %v6558_v63  ;;  %v204_v41 = vmax.f32 %v5937_v36, %v6602_v0  ;;  %v6355_v49 = vpack.c.bf16 %v4164_v38, %v4161_v37  ;;  %v4163_v52 = vld [vmem:[%s9184_s0 + $0x228] sm:$0xff]  ;;  %v4170_v54 = vld [vmem:[%s9184_s0 + $0x260] sm:$0xff]  ;;  %v5974_v55 = vld [vmem:[%s9186_s2 + $0x58] sm:$0xff]  ;;  %v7003_v62 = vmax.f32 %v6602_v0, %v3311_v50 }
  0x1f   :  { %6109 = vmatmul.mubr.msk.f32.gmra.mrb[6].mxu1 %vm4208_vm4, %v6844_v44  ;;  %6338 = vmatpush1.bf16.msra.mxu0 %v6337_v45  ;;  %v4141_v45 = vld [vmem:[%s9184_s0 + $0x178] sm:$0xff]  ;;  %v4167_v53 = vld [vmem:[%s9184_s0 + $0x248] sm:$0xff]  ;;  %v3380_v3 = vsel %vm237_vm3, %v5974_v55, %v6602_v0  ;;  %v4166_v5 = vld [vmem:[%s9184_s0 + $0x240] sm:$0xff] }
  0x20   :  { %4984 = vmatprep.mubr.f32.mxu1 %v9193_v9  ;;  %6340 = vmatprep.subr.bf16.mxu0 %v6339_v47  ;;  %v6353_v47 = vpack.c.bf16 %v4157_v33, %v4154_v32  ;;  %v208_v48 = vmax.f32 %v204_v41, %v6602_v0  ;;  %v4147_v61 = vld [vmem:[%s9184_s0 + $0x1a8] sm:$0xff]  ;;  %v6359_v2 = vpack.c.bf16 %v4170_v54, %v4167_v53  ;;  %v4169_v6 = vld [vmem:[%s9184_s0 + $0x258] sm:$0xff]  ;;  %v4150_v15 = vld [vmem:[%s9184_s0 + $0x1c0] sm:$0xff] }
  0x21   :  { %6400 = vmatpush1.bf16.msra.mxu1 %v6399_v51  ;;  %v4160_v51 = vld [vmem:[%s9184_s0 + $0x210] sm:$0xff]  ;;  %v4173_v7 = vld [vmem:[%s9184_s0 + $0x278] sm:$0xff]  ;;  %v7035_v18 = vmax.f32 %v6602_v0, %v3380_v3  ;;  %v6361_v19 = vpack.c.bf16 %v4169_v6, %v4166_v5  ;;  %v4175_v24 = vld [vmem:[%s9184_s0 + $0x288] sm:$0xff] }
  0x22   :  { %6401 = vmatprep.subr.bf16.mxu1 %v6558_v63  ;;  %v6991_v59 = vmax.f32 %v208_v48, %v6602_v0  ;;  %v4153_v17 = vld [vmem:[%s9184_s0 + $0x1d8] sm:$0xff]  ;;  %v4172_v23 = vld [vmem:[%s9184_s0 + $0x270] sm:$0xff]  ;;  %v5998_v31 = vld [vmem:[%s9186_s2 + $0x88] sm:$0xff] }
  0x23   :  { %6110 = vmatmul.mubr.msk.f32.gmra.mrb[8].mxu1 %vm4208_vm4, %v6873_v56  ;;  %6342 = vmatpush1.bf16.msra.mxu0 %v6341_v57  ;;  %v6411_v57 = vpack.c.bf16 %v4141_v45, %v4138_v42  ;;  %v6417_v32 = vpack.c.bf16 %v4153_v17, %v4150_v15  ;;  %v4156_v33 = vld [vmem:[%s9184_s0 + $0x1f0] sm:$0xff]  ;;  %v4159_v36 = vld [vmem:[%s9184_s0 + $0x208] sm:$0xff]  ;;  %v6365_v38 = vpack.c.bf16 %v4175_v24, %v4172_v23  ;;  %v160_v39 = vld [vmem:[%s9190_s6] sm:$0xff] }
  0x24   :  { %4990 = vmatprep.mubr.f32.mxu1 %v9193_v9  ;;  %6344 = vmatprep.subr.bf16.mxu0 %v6343_v60  ;;  %v4144_v60 = vld [vmem:[%s9184_s0 + $0x190] sm:$0xff]  ;;  %v3518_v41 = vsel %vm237_vm3, %v5998_v31, %v6602_v0  ;;  %v4178_v42 = vld [vmem:[%s9184_s0 + $0x2a0] sm:$0xff]  ;;  %v4181_v45 = vld [vmem:[%s9184_s0 + $0x2b8] sm:$0xff]  ;;  %v6420_v50 = vpack.c.bf16 %v4159_v36, %v4156_v33 }
  0x25   :  { %6403 = vmatpush1.bf16.msra.mxu1 %v6402_v1  ;;  %v6357_v1 = vpack.c.bf16 %v4163_v52, %v4160_v51  ;;  %v6414_v14 = vpack.c.bf16 %v4147_v61, %v4144_v60  ;;  %4427 = vmatprep.mubr.f32.mxu0 %v6991_v59  ;;  %v4188_v48 = vld [vmem:[%s9184_s0 + $0x2f0] sm:$0xff]  ;;  %v5949_v51 = vld [vmem:[%s9190_s6 + $0x20] sm:$0xff]  ;;  %v168_v52 = vmax.f32 %v160_v39, %v6602_v0  ;;  %v4165_v54 = vld [vmem:[%s9184_s0 + $0x238] sm:$0xff] }
  0x26   :  { %6404 = vmatprep.subr.bf16.mxu1 %v6558_v63  ;;  %v4162_v53 = vld [vmem:[%s9184_s0 + $0x220] sm:$0xff]  ;;  %v7104_v55 = vmax.f32 %v6602_v0, %v3518_v41  ;;  %v5945_v60 = vld [vmem:[%s9190_s6 + $0x18] sm:$0xff]  ;;  %v4187_v3 = vld [vmem:[%s9184_s0 + $0x2e8] sm:$0xff]  ;;  %v315_v5 = vmax.f32 %v5949_v51, %v6602_v0 }
  0x27   :  { %6111 = vmatmul.mubr.msk.f32.gmra.mrb[10].mxu1 %vm4208_vm4, %v6902_v8  ;;  %6346 = vmatpush1.bf16.msra.mxu0 %v6345_v12  ;;  %v4176_v12 = vld [vmem:[%s9184_s0 + $0x290] sm:$0xff]  ;;  %v5961_v6 = vld [vmem:[%s9190_s6 + $0x38] sm:$0xff]  ;;  %v4171_v17 = vld [vmem:[%s9184_s0 + $0x268] sm:$0xff] }
  0x28   :  { %4996 = vmatprep.mubr.f32.mxu1 %v9193_v9  ;;  %6348 = vmatprep.subr.bf16.mxu0 %v6347_v13  ;;  %v5986_v13 = vld [vmem:[%s9186_s2 + $0x70] sm:$0xff]  ;;  %v6363_v20 = vpack.c.bf16 %v4176_v12, %v4173_v7  ;;  %v6022_v7 = vld [vmem:[%s9186_s2 + $0xb8] sm:$0xff]  ;;  %v6423_v12 = vpack.c.bf16 %v4165_v54, %v4162_v53  ;;  %v426_v23 = vmax.f32 %v5961_v6, %v6602_v0  ;;  %v4174_v41 = vld [vmem:[%s9184_s0 + $0x280] sm:$0xff] }
  0x29   :  { %6406 = vmatpush1.bf16.msra.mxu1 %v6405_v22  ;;  %v3449_v22 = vsel %vm237_vm3, %v5986_v13, %v6602_v0  ;;  %v172_v13 = vmax.f32 %v168_v52, %v6602_v0  ;;  %v4168_v15 = vld [vmem:[%s9184_s0 + $0x250] sm:$0xff]  ;;  %v5985_v51 = vld [vmem:[%s9190_s6 + $0x68] sm:$0xff] }
  0x2a   :  { %6407 = vmatprep.subr.bf16.mxu1 %v6558_v63  ;;  %v7066_v37 = vmax.f32 %v6602_v0, %v3449_v22  ;;  %v6034_v22 = vld [vmem:[%s9186_s2 + $0xd0] sm:$0xff]  ;;  %v648_v6 = vmax.f32 %v5985_v51, %v6602_v0 }
  0x2b   :  { %6112 = vmatmul.mubr.msk.f32.gmra.mrb[12].mxu1 %vm4208_vm4, %v6933_v26  ;;  %6350 = vmatpush1.bf16.msra.mxu0 %v6349_v28  ;;  %v4179_v28 = vld [vmem:[%s9184_s0 + $0x2a8] sm:$0xff]  ;;  %v5957_v24 = vld [vmem:[%s9190_s6 + $0x30] sm:$0xff]  ;;  %v7156_v33 = vmax.f32 %v172_v13, %v6602_v0 }
  0x2c   :  { %5002 = vmatprep.mubr.f32.mxu1 %v9193_v9  ;;  %6352 = vmatprep.subr.bf16.mxu0 %v6351_v29  ;;  %v4182_v29 = vld [vmem:[%s9184_s0 + $0x2c0] sm:$0xff]  ;;  %v5973_v31 = vld [vmem:[%s9190_s6 + $0x50] sm:$0xff]  ;;  %v389_v39 = vmax.f32 %v5957_v24, %v6602_v0  ;;  %v4189_v24 = vld [vmem:[%s9184_s0 + $0x2f8] sm:$0xff] }
  0x2d   :  { %6409 = vmatpush1.bf16.msra.mxu1 %v6408_v40  ;;  %v6367_v40 = vpack.c.bf16 %v4182_v29, %v4179_v28  ;;  %v3656_v28 = vsel %vm237_vm3, %v6022_v7, %v6602_v0  ;;  %v319_v29 = vmax.f32 %v315_v5, %v6602_v0  ;;  %v5981_v7 = vld [vmem:[%s9190_s6 + $0x60] sm:$0xff] }
  0x2e   :  { %6410 = vmatprep.subr.bf16.mxu1 %v6558_v63 }
  0x2f   :  { %6113 = vmatmul.mubr.msk.f32.gmra.mrb[14].mxu1 %vm4208_vm4, %v6968_v46  ;;  %6354 = vmatpush1.bf16.msra.mxu0 %v6353_v47  ;;  %v4185_v47 = vld [vmem:[%s9184_s0 + $0x2d8] sm:$0xff] }
  0x30   :  { %5008 = vmatprep.mubr.f32.mxu1 %v9193_v9  ;;  %6356 = vmatprep.subr.bf16.mxu0 %v6355_v49  ;;  %v6010_v49 = vld [vmem:[%s9186_s2 + $0xa0] sm:$0xff]  ;;  %v6371_v61 = vpack.c.bf16 %v4188_v48, %v4185_v47  ;;  %v430_v47 = vmax.f32 %v426_v23, %v6602_v0  ;;  %v537_v48 = vmax.f32 %v5973_v31, %v6602_v0 }
  0x31   :  { %6412 = vmatpush1.bf16.msra.mxu1 %v6411_v57  ;;  %v6369_v57 = vpack.c.bf16 %v4181_v45, %v4178_v42  ;;  %v4177_v42 = vld [vmem:[%s9184_s0 + $0x298] sm:$0xff]  ;;  %v7176_v45 = vmax.f32 %v6602_v0, %v3656_v28  ;;  %v4186_v23 = vld [vmem:[%s9184_s0 + $0x2e0] sm:$0xff]  ;;  %v652_v31 = vmax.f32 %v648_v6, %v6602_v0 }
  0x32   :  { %6413 = vmatprep.subr.bf16.mxu1 %v6558_v63  ;;  %v6429_v54 = vpack.c.bf16 %v4177_v42, %v4174_v41  ;;  %v541_v5 = vmax.f32 %v537_v48, %v6602_v0  ;;  %v5993_v28 = vld [vmem:[%s9190_s6 + $0x78] sm:$0xff]  ;;  %v6435_v42 = vpack.c.bf16 %v4189_v24, %v4186_v23 }
  0x33   :  { %6114 = vmatmul.mubr.msk.f32.gmra.mrb[16].mxu1 %vm4208_vm4, %v7003_v62  ;;  %6358 = vmatpush1.bf16.msra.mxu0 %v6357_v1  ;;  %v3587_v1 = vsel %vm237_vm3, %v6010_v49, %v6602_v0  ;;  %v5969_v49 = vld [vmem:[%s9190_s6 + $0x48] sm:$0xff]  ;;  %v7291_v51 = vmax.f32 %v652_v31, %v6602_v0  ;;  %v6045_v31 = vld [vmem:[%s9190_s6 + $0xe0] sm:$0xff] }
  0x34   :  { %5014 = vmatprep.mubr.f32.mxu1 %v9193_v9  ;;  %6360 = vmatprep.subr.bf16.mxu0 %v6359_v2  ;;  %v4184_v2 = vld [vmem:[%s9184_s0 + $0x2d0] sm:$0xff] }
  0x35   :  { %6415 = vmatpush1.bf16.msra.mxu1 %v6414_v14  ;;  %v278_v14 = vmax.f32 %v5945_v60, %v6602_v0  ;;  %v500_v60 = vmax.f32 %v5969_v49, %v6602_v0 }
  0x36   :  { %6416 = vmatprep.subr.bf16.mxu1 %v6558_v63 }
  0x37   :  { %6115 = vmatmul.mubr.msk.f32.gmra.mrb[18].mxu1 %vm4208_vm4, %v7035_v18  ;;  %6362 = vmatpush1.bf16.msra.mxu0 %v6361_v19  ;;  %v7138_v19 = vmax.f32 %v6602_v0, %v3587_v1  ;;  %v282_v36 = vmax.f32 %v278_v14, %v6602_v0  ;;  %v4180_v1 = vld [vmem:[%s9184_s0 + $0x2b0] sm:$0xff] }
  0x38   :  { %5020 = vmatprep.mubr.f32.mxu1 %v9193_v9  ;;  %6364 = vmatprep.subr.bf16.mxu0 %v6363_v20  ;;  %v6373_v20 = vpack.c.bf16 %v4187_v3, %v4184_v2  ;;  %v4183_v2 = vld [vmem:[%s9184_s0 + $0x2c8] sm:$0xff]  ;;  %v7217_v3 = vmax.f32 %v430_v47, %v6602_v0  ;;  %v722_v47 = vmax.f32 %v5993_v28, %v6602_v0  ;;  %v6029_v28 = vld [vmem:[%s9190_s6 + $0xc0] sm:$0xff] }
  0x39   :  { %6418 = vmatpush1.bf16.msra.mxu1 %v6417_v32  ;;  %v6426_v32 = vpack.c.bf16 %v4171_v17, %v4168_v15  ;;  %v6432_v14 = vpack.c.bf16 %v4183_v2, %v4180_v1  ;;  %v6070_v15 = vld [vmem:[%s9186_s2 + $0x118] sm:$0xff] }
  0x3a   :  { %6419 = vmatprep.subr.bf16.mxu1 %v6558_v63  ;;  %v3932_v41 = vsel %vm237_vm3, %v6070_v15, %v6602_v0 }
  0x3b   :  { %6116 = vmatmul.mubr.msk.f32.gmra.mrb[20].mxu1 %vm4208_vm4, %v7066_v37  ;;  %6366 = vmatpush1.bf16.msra.mxu0 %v6365_v38  ;;  %v3725_v38 = vsel %vm237_vm3, %v6034_v22, %v6602_v0  ;;  %v611_v22 = vmax.f32 %v5981_v7, %v6602_v0  ;;  %v6017_v7 = vld [vmem:[%s9190_s6 + $0xa8] sm:$0xff] }
  0x3c   :  { %5026 = vmatprep.mubr.f32.mxu1 %v9193_v9  ;;  %6368 = vmatprep.subr.bf16.mxu0 %v6367_v40  ;;  %v6046_v40 = vld [vmem:[%s9186_s2 + $0xe8] sm:$0xff]  ;;  %v7192_v52 = vmax.f32 %v6602_v0, %v3725_v38  ;;  %v944_v15 = vmax.f32 %v6017_v7, %v6602_v0 }
  0x3d   :  { %6421 = vmatpush1.bf16.msra.mxu1 %v6420_v50  ;;  %v7186_v50 = vmax.f32 %v319_v29, %v6602_v0  ;;  %v3794_v53 = vsel %vm237_vm3, %v6046_v40, %v6602_v0  ;;  %v7258_v29 = vmax.f32 %v541_v5, %v6602_v0  ;;  %v4195_v38 = vld [vmem:[%s9184_s0 + $0x328] sm:$0xff]  ;;  %v6009_v40 = vld [vmem:[%s9190_s6 + $0x98] sm:$0xff]  ;;  %v615_v49 = vmax.f32 %v611_v22, %v6602_v0 }
  0x3e   :  { %6422 = vmatprep.subr.bf16.mxu1 %v6558_v63  ;;  %v4201_v22 = vld [vmem:[%s9184_s0 + $0x358] sm:$0xff]  ;;  %v6065_v7 = vld [vmem:[%s9190_s6 + $0x108] sm:$0xff] }
  0x3f   :  { %6117 = vmatmul.mubr.msk.f32.gmra.mrb[22].mxu1 %vm4208_vm4, %v7104_v55  ;;  %6370 = vmatpush1.bf16.msra.mxu0 %v6369_v57  ;;  %v393_v57 = vmax.f32 %v389_v39, %v6602_v0 }
  0x40   :  { %5032 = vmatprep.mubr.f32.mxu1 %v9193_v9  ;;  %6372 = vmatprep.subr.bf16.mxu0 %v6371_v61  ;;  %v6058_v61 = vld [vmem:[%s9186_s2 + $0x100] sm:$0xff] }
  0x41   :  { %6424 = vmatpush1.bf16.msra.mxu1 %v6423_v12  ;;  %v5997_v12 = vld [vmem:[%s9190_s6 + $0x80] sm:$0xff]  ;;  %v3863_v13 = vsel %vm237_vm3, %v6058_v61, %v6602_v0  ;;  %v7240_v17 = vmax.f32 %v393_v57, %v6602_v0  ;;  %v7303_v57 = vmax.f32 %v6602_v0, %v3932_v41  ;;  %v726_v61 = vmax.f32 %v722_v47, %v6602_v0 }
  0x42   :  { %6425 = vmatprep.subr.bf16.mxu1 %v6558_v63  ;;  %v7270_v39 = vmax.f32 %v6602_v0, %v3863_v13 }
  0x43   :  { %6118 = vmatmul.mubr.msk.f32.gmra.mrb[24].mxu1 %vm4208_vm4, %v7138_v19  ;;  %6374 = vmatpush1.bf16.msra.mxu0 %v6373_v20  ;;  %v504_v20 = vmax.f32 %v500_v60, %v6602_v0  ;;  %v7307_v60 = vmax.f32 %v615_v49, %v6602_v0  ;;  %v7331_v13 = vmax.f32 %v726_v61, %v6602_v0 }
  0x44   :  { %5038 = vmatprep.mubr.f32.mxu1 %v9193_v9  ;;  %6376 = vmatprep.subr.bf16.mxu0 %v6623_v10  ;;  %v7199_v10 = vmax.f32 %v282_v36, %v6602_v0  ;;  %v4192_v36 = vld [vmem:[%s9184_s0 + $0x310] sm:$0xff] }
  0x45   :  { %6427 = vmatpush1.bf16.msra.mxu1 %v6426_v32  ;;  %v759_v32 = vmax.f32 %v5997_v12, %v6602_v0  ;;  %v7283_v48 = vmax.f32 %v504_v20, %v6602_v0  ;;  %v6033_v12 = vld [vmem:[%s9190_s6 + $0xc8] sm:$0xff]  ;;  %v4198_v20 = vld [vmem:[%s9184_s0 + $0x340] sm:$0xff] }
  0x46   :  { %4428 = vmatmul.mubr.f32.vlgmr.msra.gmra.mrb[0].mxu0 %v7156_v33  ;;  %6428 = vmatprep.subr.bf16.mxu1 %v6558_v63  ;;  %v1092_v24 = vmax.f32 %v6033_v12, %v6602_v0  ;;  %v5936_v12 = vld [vmem:[%s9189_s5 + $0x8] sm:$0xff] }
  0x47   :  { %6119 = vmatmul.mubr.msk.f32.gmra.mrb[26].mxu1 %vm4208_vm4, %v7176_v45  ;;  %6378 = vmatpush1.bf16.msra.mxu0 %v6635_v16  ;;  %v7230_v16 = vmax.f32 %v6602_v0, %v3794_v53  ;;  %v870_v53 = vmax.f32 %v6009_v40, %v6602_v0  ;;  %v1055_v40 = vmax.f32 %v6029_v28, %v6602_v0  ;;  %v159_v28 = vld [vmem:[%s9189_s5] sm:$0xff] }
  0x48   :  { %4433 = vmatprep.mubr.f32.mxu0 %v7186_v50  ;;  %5044 = vmatprep.mubr.f32.mxu1 %v9193_v9  ;;  %v1096_v41 = vmax.f32 %v1092_v24, %v6602_v0  ;;  %v1505_v24 = vmax.f32 %v6602_v0, %v5936_v12 }
  0x49   :  { %6430 = vmatpush1.bf16.msra.mxu1 %v6429_v54  ;;  %6380 = vmatprep.subr.bf16.mxu0 %v6647_v21  ;;  %v6437_v21 = vpack.c.bf16 %v4195_v38, %v4192_v36  ;;  %v6005_v54 = vld [vmem:[%s9190_s6 + $0x90] sm:$0xff]  ;;  %v874_v5 = vmax.f32 %v870_v53, %v6602_v0  ;;  %v948_v38 = vmax.f32 %v944_v15, %v6602_v0 }
  0x4a   :  { %4434 = vmatmul.mubr.f32.gmra.mrb[2].mxu0 %v7199_v10  ;;  %6431 = vmatprep.subr.bf16.mxu1 %v6558_v63  ;;  %v833_v1 = vmax.f32 %v6005_v54, %v6602_v0  ;;  %v1059_v49 = vmax.f32 %v1055_v40, %v6602_v0  ;;  %v6053_v54 = vld [vmem:[%s9190_s6 + $0xf0] sm:$0xff]  ;;  %v1482_v40 = vmax.f32 %v6602_v0, %v159_v28 }
  0x4b   :  { %6120 = vmatmul.mubr.msk.f32.gmra.mrb[28].mxu1 %vm4208_vm4, %v7192_v52  ;;  %4439 = vmatprep.mubr.f32.mxu0 %v7217_v3  ;;  %v7381_v47 = vmax.f32 %v948_v38, %v6602_v0 }
  0x4c   :  { %5050 = vmatprep.mubr.f32.mxu1 %v9193_v9  ;;  %6382 = vmatpush1.bf16.msra.mxu0 %v6671_v30  ;;  %v763_v30 = vmax.f32 %v759_v32, %v6602_v0  ;;  %v6441_v32 = vpack.c.bf16 %v4201_v22, %v4198_v20 }
  0x4d   :  { %6433 = vmatpush1.bf16.msra.mxu1 %v6432_v14  ;;  %6385 = vmatprep.subr.msk.bf16.mxu0 %vm6680_vm2, %v6684_v35  ;;  %v837_v14 = vmax.f32 %v833_v1, %v6602_v0  ;;  %v7345_v35 = vmax.f32 %v874_v5, %v6602_v0  ;;  %v1277_v1 = vmax.f32 %v6053_v54, %v6602_v0  ;;  %v5972_v54 = vld [vmem:[%s9189_s5 + $0x50] sm:$0xff] }
  0x4e   :  { %4440 = vmatmul.mubr.f32.gmra.mrb[4].mxu0 %v7240_v17  ;;  %6434 = vmatprep.subr.bf16.mxu1 %v6558_v63  ;;  %v6021_v63 = vld [vmem:[%s9190_s6 + $0xb0] sm:$0xff]  ;;  %v7315_v2 = vmax.f32 %v763_v30, %v6602_v0 }
  0x4f   :  { %6121 = vmatmul.mubr.msk.f32.gmra.mrb[30].mxu1 %vm4208_vm4, %v7230_v16  ;;  %4445 = vmatprep.mubr.f32.mxu0 %v7258_v29  ;;  %v981_v6 = vmax.f32 %v6021_v63, %v6602_v0  ;;  %v7361_v36 = vmax.f32 %v837_v14, %v6602_v0  ;;  %v6069_v63 = vld [vmem:[%s9190_s6 + $0x110] sm:$0xff]  ;;  %v4207_v14 = vld [vmem:[%s9184_s0 + $0x388] sm:$0xf]  ;;  %v1281_v20 = vmax.f32 %v1277_v1, %v6602_v0 }
  0x50   :  { %5056 = vmatprep.mubr.f32.mxu1 %v9193_v9  ;;  %6388 = vmatpush1.bf16.msk.msra.mxu0 %vm6680_vm2, %v6706_v43  ;;  %v1203_v43 = vmax.f32 %v6045_v31, %v6602_v0  ;;  %v5948_v31 = vld [vmem:[%s9189_s5 + $0x20] sm:$0xff] }
  0x51   :  { %6436 = vmatpush1.bf16.msra.mxu1 %v6435_v42  ;;  %v985_v23 = vmax.f32 %v981_v6, %v6602_v0  ;;  %v6041_v42 = vld [vmem:[%s9190_s6 + $0xd8] sm:$0xff]  ;;  %v1425_v6 = vmax.f32 %v6069_v63, %v6602_v0 }
  0x52   :  { %4446 = vmatmul.mubr.f32.gmra.mrb[6].mxu0 %v7283_v48  ;;  %6438 = vmatprep.subr.bf16.mxu1 %v6437_v21  ;;  %v1166_v30 = vmax.f32 %v6041_v42, %v6602_v0  ;;  %v5944_v42 = vld [vmem:[%s9189_s5 + $0x18] sm:$0xff] }
  0x53   :  { %6122 = vmatmul.mubr.msk.f32.gmra.mrb[32].mxu1 %vm4208_vm4, %v7270_v39  ;;  %4451 = vmatprep.mubr.f32.mxu0 %v7291_v51 }
  0x54   :  { %5062 = vmatprep.mubr.f32.mxu1 %v9193_v9  ;;  %v1170_v61 = vmax.f32 %v1166_v30, %v6602_v0  ;;  %v1551_v30 = vmax.f32 %v6602_v0, %v5944_v42 }
  0x56   :  { %4452 = vmatmul.mubr.f32.gmra.mrb[8].mxu0 %v7307_v60  ;;  %v7427_v15 = vmax.f32 %v1170_v61, %v6602_v0  ;;  %v1555_v63 = vmax.f32 %v1551_v30, %v6602_v0  ;;  %v6020_v30 = vld [vmem:[%s9189_s5 + $0xb0] sm:$0xff] }
  0x57   :  { %6123 = vmatmul.mubr.msk.f32.gmra.mrb[34].mxu1 %vm4208_vm4, %v7303_v57  ;;  %4457 = vmatprep.mubr.f32.mxu0 %v7315_v2 }
  0x58   :  { %5133 = vmatprep.mubr.f32.mxu1 %v6991_v59  ;;  %v7368_v59 = vmax.f32 %v985_v23, %v6602_v0  ;;  %v1429_v23 = vmax.f32 %v1425_v6, %v6602_v0  ;;  %v5968_v6 = vld [vmem:[%s9189_s5 + $0x48] sm:$0xff] }
  0x5a   :  { %4458 = vmatmul.mubr.f32.gmra.mrb[10].mxu0 %v7331_v13 }
  0x5b   :  { %5134 = vmatmul.mubr.f32.vlgmr.msra.gmra.mrb[36].mxu1 %v7156_v33  ;;  %4463 = vmatprep.mubr.f32.mxu0 %v7345_v35  ;;  %v6057_v33 = vld [vmem:[%s9190_s6 + $0xf8] sm:$0xff] }
  0x5c   :  { %5138 = vmatprep.mubr.f32.mxu1 %v7186_v50  ;;  %6440 = vmatpush3.bf16.msra.mxu1 %v6437_v21  ;;  %v7388_v50 = vmax.f32 %v1096_v41, %v6602_v0  ;;  %v1207_v21 = vmax.f32 %v1203_v43, %v6602_v0  ;;  %v1314_v53 = vmax.f32 %v6057_v33, %v6602_v0  ;;  %v5960_v33 = vld [vmem:[%s9189_s5 + $0x38] sm:$0xff] }
  0x5d   :  { %6442 = vmatprep.subr.bf16.mxu1 %v6441_v32  ;;  %v1509_v41 = vmax.f32 %v1505_v24, %v6602_v0  ;;  %v1574_v43 = vmax.f32 %v6602_v0, %v5948_v31  ;;  %v1643_v34 = vmax.f32 %v6602_v0, %v5960_v33 }
  0x5e   :  { %4464 = vmatmul.mubr.f32.gmra.mrb[12].mxu0 %v7361_v36  ;;  %v1318_v5 = vmax.f32 %v1314_v53, %v6602_v0  ;;  %v5956_v53 = vld [vmem:[%s9189_s5 + $0x30] sm:$0xff] }
  0x5f   :  { %5139 = vmatmul.mubr.f32.gmra.mrb[38].mxu1 %v7199_v10  ;;  %4469 = vmatprep.mubr.f32.mxu0 %v7368_v59  ;;  %v7401_v10 = vmax.f32 %v1059_v49, %v6602_v0  ;;  %v1486_v49 = vmax.f32 %v1482_v40, %v6602_v0  ;;  %v1620_v61 = vmax.f32 %v6602_v0, %v5956_v53  ;;  %v6008_v40 = vld [vmem:[%s9189_s5 + $0x98] sm:$0xff] }
  0x60   :  { %5143 = vmatprep.mubr.f32.mxu1 %v7217_v3  ;;  %6444 = vmatpush3.bf16.msra.mxu1 %v6441_v32  ;;  %v7408_v3 = vmax.f32 %v1207_v21, %v6602_v0  ;;  %v7434_v22 = vmax.f32 %v1318_v5, %v6602_v0  ;;  %v7447_v32 = vmax.f32 %v1281_v20, %v6602_v0 }
  0x61   :  { %v1578_v21 = vmax.f32 %v1574_v43, %v6602_v0  ;;  %v1712_v5 = vmax.f32 %v6602_v0, %v5972_v54  ;;  %v1624_v12 = vmax.f32 %v1620_v61, %v6602_v0  ;;  %v1919_v33 = vmax.f32 %v6602_v0, %v6008_v40  ;;  %v6032_v61 = vld [vmem:[%s9189_s5 + $0xc8] sm:$0xff] }
  0x62   :  { %4470 = vmatmul.mubr.f32.gmra.mrb[14].mxu0 %v7381_v47  ;;  %v1988_v54 = vmax.f32 %v6602_v0, %v6020_v30 }
  0x63   :  { %5144 = vmatmul.mubr.f32.gmra.mrb[40].mxu1 %v7240_v17  ;;  %4475 = vmatprep.mubr.f32.mxu0 %v7388_v50  ;;  %v4204_v17 = vld [vmem:[%s9184_s0 + $0x370] sm:$0xff]  ;;  %v7498_v1 = vmax.f32 %v1578_v21, %v6602_v0 }
  0x64   :  { %5148 = vmatprep.mubr.f32.mxu1 %v7258_v29  ;;  %v1388_v29 = vmax.f32 %v6065_v7, %v6602_v0  ;;  %v5984_v7 = vld [vmem:[%s9189_s5 + $0x68] sm:$0xff] }
  0x65   :  { %v1781_v20 = vmax.f32 %v6602_v0, %v5984_v7  ;;  %v2057_v7 = vmax.f32 %v6602_v0, %v6032_v61 }
  0x66   :  { %4476 = vmatmul.mubr.f32.gmra.mrb[16].mxu0 %v7401_v10  ;;  %v1392_v38 = vmax.f32 %v1388_v29, %v6602_v0  ;;  %v5980_v29 = vld [vmem:[%s9189_s5 + $0x60] sm:$0xff] }
  0x67   :  { %5149 = vmatmul.mubr.f32.gmra.mrb[42].mxu1 %v7283_v48  ;;  %4481 = vmatprep.mubr.f32.mxu0 %v7408_v3  ;;  %v6445_v48 = vpack.c.bf16 %v4207_v14, %v4204_v17  ;;  %v1689_v17 = vmax.f32 %v6602_v0, %v5968_v6  ;;  %v1758_v28 = vmax.f32 %v6602_v0, %v5980_v29 }
  0x68   :  { %5153 = vmatprep.mubr.f32.mxu1 %v7291_v51  ;;  %v7456_v51 = vmax.f32 %v1429_v23, %v6602_v0  ;;  %v5996_v23 = vld [vmem:[%s9189_s5 + $0x80] sm:$0xff] }
  0x69   :  { %6447 = vmatprep.subr.msk.bf16.mxu1 %vm6680_vm2, %v6445_v48  ;;  %v1693_v24 = vmax.f32 %v1689_v17, %v6602_v0  ;;  %v6044_v17 = vld [vmem:[%s9189_s5 + $0xe0] sm:$0xff] }
  0x6a   :  { %4482 = vmatmul.mubr.f32.gmra.mrb[18].mxu0 %v7427_v15  ;;  %6450 = vmatpush3.bf16.msk.msra.mxu1 %vm6680_vm2, %v6445_v48  ;;  %v1850_v48 = vmax.f32 %v6602_v0, %v5996_v23  ;;  %v2126_v23 = vmax.f32 %v6602_v0, %v6044_v17 }
  0x6b   :  { %5154 = vmatmul.mubr.f32.gmra.mrb[44].mxu1 %v7307_v60  ;;  %4487 = vmatprep.mubr.f32.mxu0 %v7434_v22  ;;  %v7471_v60 = vmax.f32 %v1392_v38, %v6602_v0  ;;  %v5992_v38 = vld [vmem:[%s9189_s5 + $0x78] sm:$0xff] }
  0x6c   :  { %5158 = vmatprep.mubr.f32.mxu1 %v7315_v2  ;;  %v7478_v2 = vmax.f32 %v1509_v41, %v6602_v0  ;;  %v1762_v41 = vmax.f32 %v1758_v28, %v6602_v0  ;;  %v1827_v43 = vmax.f32 %v6602_v0, %v5992_v38  ;;  %v6056_v28 = vld [vmem:[%s9189_s5 + $0xf8] sm:$0xff] }
  0x6d   :  { %v2195_v40 = vmax.f32 %v6602_v0, %v6056_v28 }
  0x6e   :  { %4488 = vmatmul.mubr.f32.gmra.mrb[20].mxu0 %v7447_v32  ;;  %v1831_v21 = vmax.f32 %v1827_v43, %v6602_v0  ;;  %v6068_v43 = vld [vmem:[%s9189_s5 + $0x110] sm:$0xff] }
  0x6f   :  { %5159 = vmatmul.mubr.f32.gmra.mrb[46].mxu1 %v7331_v13  ;;  %4493 = vmatprep.mubr.f32.mxu0 %v7456_v51  ;;  %v7491_v13 = vmax.f32 %v1486_v49, %v6602_v0  ;;  %v6004_v49 = vld [vmem:[%s9189_s5 + $0x90] sm:$0xff]  ;;  %v2264_v30 = vmax.f32 %v6602_v0, %v6068_v43 }
  0x70   :  { %5163 = vmatprep.mubr.f32.mxu1 %v7345_v35  ;;  %v1647_v35 = vmax.f32 %v1643_v34, %v6602_v0  ;;  %v1896_v34 = vmax.f32 %v6602_v0, %v6004_v49 }
  0x72   :  { %4494 = vmatmul.mubr.f32.gmra.mrb[22].mxu0 %v7471_v60  ;;  %v7518_v14 = vmax.f32 %v1647_v35, %v6602_v0  ;;  %v1900_v35 = vmax.f32 %v1896_v34, %v6602_v0 }
  0x73   :  { %5164 = vmatmul.mubr.f32.gmra.mrb[48].mxu1 %v7361_v36  ;;  %4499 = vmatprep.mubr.f32.mxu0 %v7478_v2  ;;  %v7511_v36 = vmax.f32 %v1555_v63, %v6602_v0  ;;  %v6016_v63 = vld [vmem:[%s9189_s5 + $0xa8] sm:$0xff] }
  0x74   :  { %5168 = vmatprep.mubr.f32.mxu1 %v7368_v59  ;;  %v1716_v59 = vmax.f32 %v1712_v5, %v6602_v0  ;;  %v1965_v5 = vmax.f32 %v6602_v0, %v6016_v63  ;;  %v2268_v63 = vmax.f32 %v2264_v30, %v6602_v0 }
  0x76   :  { %4500 = vmatmul.mubr.f32.gmra.mrb[24].mxu0 %v7491_v13  ;;  %v7538_v31 = vmax.f32 %v1716_v59, %v6602_v0  ;;  %v1969_v59 = vmax.f32 %v1965_v5, %v6602_v0 }
  0x77   :  { %5169 = vmatmul.mubr.f32.gmra.mrb[50].mxu1 %v7381_v47  ;;  %4505 = vmatprep.mubr.f32.mxu0 %v7498_v1  ;;  %v7531_v47 = vmax.f32 %v1624_v12, %v6602_v0  ;;  %v6028_v12 = vld [vmem:[%s9189_s5 + $0xc0] sm:$0xff] }
  0x78   :  { %5173 = vmatprep.mubr.f32.mxu1 %v7388_v50  ;;  %v1785_v50 = vmax.f32 %v1781_v20, %v6602_v0  ;;  %v2034_v20 = vmax.f32 %v6602_v0, %v6028_v12 }
  0x7a   :  { %4506 = vmatmul.mubr.f32.gmra.mrb[26].mxu0 %v7511_v36  ;;  %v7558_v42 = vmax.f32 %v1785_v50, %v6602_v0  ;;  %v2038_v50 = vmax.f32 %v2034_v20, %v6602_v0 }
  0x7b   :  { %5174 = vmatmul.mubr.f32.gmra.mrb[52].mxu1 %v7401_v10  ;;  %4511 = vmatprep.mubr.f32.mxu0 %v7518_v14  ;;  %v7551_v10 = vmax.f32 %v1693_v24, %v6602_v0  ;;  %v6040_v24 = vld [vmem:[%s9189_s5 + $0xd8] sm:$0xff] }
  0x7c   :  { %5178 = vmatprep.mubr.f32.mxu1 %v7408_v3  ;;  %v1854_v3 = vmax.f32 %v1850_v48, %v6602_v0  ;;  %v2103_v48 = vmax.f32 %v6602_v0, %v6040_v24  ;;  %v5971_v24 = vld [vmem:[%s9188_s4 + $0x50] sm:$0xff] }
  0x7e   :  { %4512 = vmatmul.mubr.f32.gmra.mrb[28].mxu0 %v7531_v47  ;;  %v7578_v53 = vmax.f32 %v1854_v3, %v6602_v0  ;;  %v2107_v3 = vmax.f32 %v2103_v48, %v6602_v0  ;;  %v2541_v48 = vmax.f32 %v6602_v0, %v5971_v24  ;;  %v6039_v24 = vld [vmem:[%s9188_s4 + $0xd8] sm:$0xff] }
  0x7f   :  { %5179 = vmatmul.mubr.f32.gmra.mrb[54].mxu1 %v7427_v15  ;;  %4517 = vmatprep.mubr.f32.mxu0 %v7538_v31  ;;  %v7571_v15 = vmax.f32 %v1762_v41, %v6602_v0  ;;  %v6052_v41 = vld [vmem:[%s9189_s5 + $0xf0] sm:$0xff] }
  0x80   :  { %5183 = vmatprep.mubr.f32.mxu1 %v7434_v22  ;;  %v1923_v22 = vmax.f32 %v1919_v33, %v6602_v0  ;;  %v2172_v33 = vmax.f32 %v6602_v0, %v6052_v41  ;;  %v2111_v34 = vmax.f32 %v2107_v3, %v6602_v0  ;;  %v2545_v41 = vmax.f32 %v2541_v48, %v6602_v0  ;;  %v5995_v3 = vld [vmem:[%s9188_s4 + $0x80] sm:$0xff] }
  0x81   :  { %v2679_v30 = vmax.f32 %v6602_v0, %v5995_v3  ;;  %v2932_v48 = vmax.f32 %v6602_v0, %v6039_v24  ;;  %v6063_v3 = vld [vmem:[%s9188_s4 + $0x108] sm:$0xff] }
  0x82   :  { %4518 = vmatmul.mubr.f32.gmra.mrb[30].mxu0 %v7551_v10  ;;  %v7598_v6 = vmax.f32 %v1923_v22, %v6602_v0 }
  0x83   :  { %5184 = vmatmul.mubr.f32.gmra.mrb[56].mxu1 %v7447_v32  ;;  %4523 = vmatprep.mubr.f32.mxu0 %v7558_v42  ;;  %v7591_v32 = vmax.f32 %v1831_v21, %v6602_v0  ;;  %v6064_v21 = vld [vmem:[%s9189_s5 + $0x108] sm:$0xff] }
  0x84   :  { %5188 = vmatprep.mubr.f32.mxu1 %v7456_v51  ;;  %v1992_v51 = vmax.f32 %v1988_v54, %v6602_v0  ;;  %v2241_v22 = vmax.f32 %v6602_v0, %v6064_v21  ;;  %v5991_v21 = vld [vmem:[%s9188_s4 + $0x78] sm:$0xff] }
  0x86   :  { %4524 = vmatmul.mubr.f32.gmra.mrb[32].mxu0 %v7571_v15  ;;  %v7618_v29 = vmax.f32 %v1992_v51, %v6602_v0  ;;  %v5947_v51 = vld [vmem:[%s9188_s4 + $0x20] sm:$0xff] }
  0x87   :  { %5189 = vmatmul.mubr.f32.gmra.mrb[58].mxu1 %v7471_v60  ;;  %4529 = vmatprep.mubr.f32.mxu0 %v7578_v53  ;;  %v7611_v60 = vmax.f32 %v1900_v35, %v6602_v0  ;;  %v2245_v35 = vmax.f32 %v2241_v22, %v6602_v0  ;;  %v2403_v17 = vmax.f32 %v6602_v0, %v5947_v51  ;;  %v6015_v51 = vld [vmem:[%s9188_s4 + $0xa8] sm:$0xff] }
  0x88   :  { %5193 = vmatprep.mubr.f32.mxu1 %v7478_v2  ;;  %v2061_v2 = vmax.f32 %v2057_v7, %v6602_v0  ;;  %v2656_v22 = vmax.f32 %v6602_v0, %v5991_v21 }
  0x89   :  { %v2249_v7 = vmax.f32 %v2245_v35, %v6602_v0 }
  0x8a   :  { %4530 = vmatmul.mubr.f32.gmra.mrb[34].mxu0 %v7591_v32  ;;  %v7638_v38 = vmax.f32 %v2061_v2, %v6602_v0  ;;  %v2407_v2 = vmax.f32 %v2403_v17, %v6602_v0  ;;  %v2660_v35 = vmax.f32 %v2656_v22, %v6602_v0  ;;  %v2794_v17 = vmax.f32 %v6602_v0, %v6015_v51 }
  0x8b   :  { %5194 = vmatmul.mubr.f32.gmra.mrb[60].mxu1 %v7491_v13  ;;  %4535 = vmatprep.mubr.f32.mxu0 %v7598_v6  ;;  %v7631_v13 = vmax.f32 %v1969_v59, %v6602_v0  ;;  %v5959_v59 = vld [vmem:[%s9188_s4 + $0x38] sm:$0xff] }
  0x8c   :  { %5198 = vmatprep.mubr.f32.mxu1 %v7498_v1  ;;  %v2130_v1 = vmax.f32 %v2126_v23, %v6602_v0  ;;  %v2472_v23 = vmax.f32 %v6602_v0, %v5959_v59  ;;  %v6027_v59 = vld [vmem:[%s9188_s4 + $0xc0] sm:$0xff] }
  0x8e   :  { %4536 = vmatmul.mubr.f32.gmra.mrb[36].mxu0 %v7611_v60  ;;  %v2134_v49 = vmax.f32 %v2130_v1, %v6602_v0  ;;  %v5983_v1 = vld [vmem:[%s9188_s4 + $0x68] sm:$0xff] }
  0x8f   :  { %5199 = vmatmul.mubr.f32.gmra.mrb[62].mxu1 %v7511_v36  ;;  %4541 = vmatprep.mubr.f32.mxu0 %v7618_v29  ;;  %v7651_v36 = vmax.f32 %v2038_v50, %v6602_v0  ;;  %v2476_v50 = vmax.f32 %v2472_v23, %v6602_v0  ;;  %v2610_v43 = vmax.f32 %v6602_v0, %v5983_v1  ;;  %v6051_v1 = vld [vmem:[%s9188_s4 + $0xf0] sm:$0xff] }
  0x90   :  { %5203 = vmatprep.mubr.f32.mxu1 %v7518_v14  ;;  %v2199_v14 = vmax.f32 %v2195_v40, %v6602_v0  ;;  %v2863_v23 = vmax.f32 %v6602_v0, %v6027_v59  ;;  %v5994_v59 = vld [vmem:[%s9186_s2 + $0x80] sm:$0xff] }
  0x92   :  { %4542 = vmatmul.mubr.f32.gmra.mrb[38].mxu0 %v7631_v13  ;;  %v2203_v54 = vmax.f32 %v2199_v14, %v6602_v0 }
  0x93   :  { %5204 = vmatmul.mubr.f32.gmra.mrb[64].mxu1 %v7531_v47  ;;  %4547 = vmatprep.mubr.f32.mxu0 %v7638_v38  ;;  %v2176_v47 = vmax.f32 %v2172_v33, %v6602_v0 }
  0x94   :  { %5208 = vmatprep.mubr.f32.mxu1 %v7538_v31  ;;  %v5935_v31 = vld [vmem:[%s9188_s4 + $0x8] sm:$0xff] }
  0x95   :  { %v2180_v61 = vmax.f32 %v2176_v47, %v6602_v0  ;;  %v2334_v5 = vmax.f32 %v6602_v0, %v5935_v31  ;;  %v6003_v31 = vld [vmem:[%s9188_s4 + $0x90] sm:$0xff] }
  0x96   :  { %4548 = vmatmul.mubr.f32.gmra.mrb[40].mxu0 %v7651_v36 }
  0x97   :  { %5209 = vmatmul.mubr.f32.gmra.mrb[66].mxu1 %v7551_v10  ;;  %4553 = vmatprep.mubr.f32.mxu0 %v2134_v49  ;;  %v2272_v10 = vmax.f32 %v2268_v63, %v6602_v0  ;;  %v2338_v12 = vmax.f32 %v2334_v5, %v6602_v0  ;;  %v2725_v5 = vmax.f32 %v6602_v0, %v6003_v31  ;;  %v5958_v31 = vld [vmem:[%s9186_s2 + $0x38] sm:$0xff] }
  0x98   :  { %5213 = vmatprep.mubr.f32.mxu1 %v7558_v42  ;;  %v155_v42 = vld [vmem:[%s9188_s4] sm:$0xff] }
  0x9a   :  { %4554 = vmatmul.mubr.f32.gmra.mrb[42].mxu0 %v2111_v34 }
  0x9b   :  { %5214 = vmatmul.mubr.f32.gmra.mrb[68].mxu1 %v7571_v15  ;;  %4559 = vmatprep.mubr.f32.mxu0 %v2203_v54  ;;  %v2311_v15 = vmax.f32 %v6602_v0, %v155_v42 }
  0x9c   :  { %5218 = vmatprep.mubr.f32.mxu1 %v7578_v53  ;;  %v5943_v53 = vld [vmem:[%s9188_s4 + $0x18] sm:$0xff] }
  0x9d   :  { %v2315_v20 = vmax.f32 %v2311_v15, %v6602_v0  ;;  %v2729_v15 = vmax.f32 %v2725_v5, %v6602_v0  ;;  %v5954_v5 = vld [vmem:[%s9186_s2 + $0x30] sm:$0xff] }
  0x9e   :  { %4560 = vmatmul.mubr.f32.gmra.mrb[44].mxu0 %v2180_v61 }
  0x9f   :  { %5219 = vmatmul.mubr.f32.gmra.mrb[70].mxu1 %v7591_v32  ;;  %4565 = vmatprep.mubr.f32.mxu0 %v2272_v10  ;;  %v2380_v32 = vmax.f32 %v6602_v0, %v5943_v53 }
  0xa0   :  { %5223 = vmatprep.mubr.f32.mxu1 %v7598_v6  ;;  %v5955_v6 = vld [vmem:[%s9188_s4 + $0x30] sm:$0xff] }
  0xa1   :  { %v2384_v28 = vmax.f32 %v2380_v32, %v6602_v0  ;;  %v2798_v32 = vmax.f32 %v2794_v17, %v6602_v0 }
  0xa2   :  { %4566 = vmatmul.mubr.f32.gmra.mrb[46].mxu0 %v2249_v7 }
  0xa3   :  { %5224 = vmatmul.mubr.f32.gmra.mrb[72].mxu1 %v7611_v60  ;;  %4571 = vmatprep.mubr.f32.mxu0 %v2338_v12  ;;  %v2449_v60 = vmax.f32 %v6602_v0, %v5955_v6 }
  0xa4   :  { %5228 = vmatprep.mubr.f32.mxu1 %v7618_v29  ;;  %v5967_v29 = vld [vmem:[%s9188_s4 + $0x48] sm:$0xff] }
  0xa5   :  { %v2453_v40 = vmax.f32 %v2449_v60, %v6602_v0  ;;  %v2867_v60 = vmax.f32 %v2863_v23, %v6602_v0  ;;  %v5990_v23 = vld [vmem:[%s9186_s2 + $0x78] sm:$0xff] }
  0xa6   :  { %4572 = vmatmul.mubr.f32.gmra.mrb[48].mxu0 %v2315_v20  ;;  %v7866_v24 = vmax.f32 %v6602_v0, %v5990_v23  ;;  %v6062_v23 = vld [vmem:[%s9186_s2 + $0x108] sm:$0xff] }
  0xa7   :  { %5229 = vmatmul.mubr.f32.gmra.mrb[74].mxu1 %v7631_v13  ;;  %4577 = vmatprep.mubr.f32.mxu0 %v2407_v2  ;;  %v2518_v13 = vmax.f32 %v6602_v0, %v5967_v29 }
  0xa8   :  { %5233 = vmatprep.mubr.f32.mxu1 %v7638_v38  ;;  %v5979_v38 = vld [vmem:[%s9188_s4 + $0x60] sm:$0xff] }
  0xa9   :  { %v2522_v33 = vmax.f32 %v2518_v13, %v6602_v0  ;;  %v2587_v14 = vmax.f32 %v6602_v0, %v5979_v38  ;;  %v2936_v13 = vmax.f32 %v2932_v48, %v6602_v0  ;;  %v6002_v48 = vld [vmem:[%s9186_s2 + $0x90] sm:$0xff] }
  0xaa   :  { %4578 = vmatmul.mubr.f32.gmra.mrb[50].mxu0 %v2384_v28 }
  0xab   :  { %5234 = vmatmul.mubr.f32.gmra.mrb[76].mxu1 %v7651_v36  ;;  %4583 = vmatprep.mubr.f32.mxu0 %v2476_v50  ;;  %v2614_v36 = vmax.f32 %v2610_v43, %v6602_v0  ;;  %v2591_v47 = vmax.f32 %v2587_v14, %v6602_v0  ;;  %v3001_v43 = vmax.f32 %v6602_v0, %v6051_v1 }
  0xac   :  { %5238 = vmatprep.mubr.f32.mxu1 %v2134_v49  ;;  %v6007_v49 = vld [vmem:[%s9188_s4 + $0x98] sm:$0xff]  ;;  %v3070_v14 = vmax.f32 %v6602_v0, %v6063_v3  ;;  %v7884_v1 = vmax.f32 %v6602_v0, %v6002_v48 }
  0xad   :  { %v2748_v63 = vmax.f32 %v6602_v0, %v6007_v49  ;;  %v151_v49 = vld [vmem:[%s9186_s2] sm:$0xff] }
  0xae   :  { %4584 = vmatmul.mubr.f32.gmra.mrb[52].mxu0 %v2453_v40  ;;  %v3074_v21 = vmax.f32 %v3070_v14, %v6602_v0  ;;  %v3140_v22 = vmax.f32 %v6602_v0, %v151_v49 }
  0xaf   :  { %5239 = vmatmul.mubr.f32.gmra.mrb[78].mxu1 %v2111_v34  ;;  %4589 = vmatprep.mubr.f32.mxu0 %v2545_v41  ;;  %v2683_v34 = vmax.f32 %v2679_v30, %v6602_v0 }
  0xb0   :  { %5243 = vmatprep.mubr.f32.mxu1 %v2203_v54  ;;  %v6019_v54 = vld [vmem:[%s9188_s4 + $0xb0] sm:$0xff] }
  0xb1   :  { %v2817_v42 = vmax.f32 %v6602_v0, %v6019_v54 }
  0xb2   :  { %4590 = vmatmul.mubr.f32.gmra.mrb[54].mxu0 %v2522_v33 }
  0xb3   :  { %5244 = vmatmul.mubr.f32.gmra.mrb[80].mxu1 %v2180_v61  ;;  %4595 = vmatprep.mubr.f32.mxu0 %v2614_v36  ;;  %v2752_v61 = vmax.f32 %v2748_v63, %v6602_v0  ;;  %v5942_v63 = vld [vmem:[%s9186_s2 + $0x18] sm:$0xff] }
  0xb4   :  { %5248 = vmatprep.mubr.f32.mxu1 %v2272_v10  ;;  %v6031_v10 = vld [vmem:[%s9188_s4 + $0xc8] sm:$0xff]  ;;  %v3209_v54 = vmax.f32 %v6602_v0, %v5942_v63  ;;  %v5941_v63 = vld [vmem:[%s9190_s6 + $0x10] sm:$0xff] }
  0xb5   :  { %v2886_v53 = vmax.f32 %v6602_v0, %v6031_v10  ;;  %v5966_v10 = vld [vmem:[%s9186_s2 + $0x48] sm:$0xff] }
  0xb6   :  { %4596 = vmatmul.mubr.f32.gmra.mrb[56].mxu0 %v2591_v47  ;;  %v3347_v17 = vmax.f32 %v6602_v0, %v5966_v10  ;;  %v5953_v10 = vld [vmem:[%s9190_s6 + $0x28] sm:$0xff] }
  0xb7   :  { %5249 = vmatmul.mubr.f32.gmra.mrb[82].mxu1 %v2249_v7  ;;  %4601 = vmatprep.mubr.f32.mxu0 %v2683_v34  ;;  %v2821_v7 = vmax.f32 %v2817_v42, %v6602_v0  ;;  %v3278_v42 = vmax.f32 %v6602_v0, %v5954_v5 }
  0xb8   :  { %5253 = vmatprep.mubr.f32.mxu1 %v2338_v12  ;;  %v6043_v12 = vld [vmem:[%s9188_s4 + $0xe0] sm:$0xff] }
  0xb9   :  { %v2955_v6 = vmax.f32 %v6602_v0, %v6043_v12 }
  0xba   :  { %4602 = vmatmul.mubr.f32.gmra.mrb[58].mxu0 %v2660_v35 }
  0xbb   :  { %5254 = vmatmul.mubr.f32.gmra.mrb[84].mxu1 %v2315_v20  ;;  %4607 = vmatprep.mubr.f32.mxu0 %v2752_v61  ;;  %v2890_v20 = vmax.f32 %v2886_v53, %v6602_v0  ;;  %v5978_v53 = vld [vmem:[%s9186_s2 + $0x60] sm:$0xff] }
  0xbc   :  { %5258 = vmatprep.mubr.f32.mxu1 %v2407_v2  ;;  %v6055_v2 = vld [vmem:[%s9188_s4 + $0xf8] sm:$0xff]  ;;  %v7850_v12 = vmax.f32 %v6602_v0, %v5978_v53 }
  0xbd   :  { %v3024_v29 = vmax.f32 %v6602_v0, %v6055_v2 }
  0xbe   :  { %4608 = vmatmul.mubr.f32.gmra.mrb[60].mxu0 %v2729_v15 }
  0xbf   :  { %5259 = vmatmul.mubr.f32.gmra.mrb[86].mxu1 %v2384_v28  ;;  %4613 = vmatprep.mubr.f32.mxu0 %v2821_v7  ;;  %v2959_v28 = vmax.f32 %v2955_v6, %v6602_v0 }
  0xc0   :  { %5263 = vmatprep.mubr.f32.mxu1 %v2476_v50  ;;  %v6067_v50 = vld [vmem:[%s9188_s4 + $0x110] sm:$0xff] }
  0xc1   :  { %v3093_v38 = vmax.f32 %v6602_v0, %v6067_v50 }
  0xc2   :  { %4614 = vmatmul.mubr.f32.gmra.mrb[62].mxu0 %v2798_v32 }
  0xc3   :  { %5264 = vmatmul.mubr.f32.gmra.mrb[88].mxu1 %v2453_v40  ;;  %4619 = vmatprep.mubr.f32.mxu0 %v2890_v20  ;;  %v3028_v40 = vmax.f32 %v3024_v29, %v6602_v0  ;;  %v3097_v30 = vmax.f32 %v3093_v38, %v6602_v0 }
  0xc4   :  { %5268 = vmatprep.mubr.f32.mxu1 %v2545_v41  ;;  %v3005_v41 = vmax.f32 %v3001_v43, %v6602_v0  ;;  %v6014_v43 = vld [vmem:[%s9186_s2 + $0xa8] sm:$0xff] }
  0xc5   :  { %v7902_v3 = vmax.f32 %v6602_v0, %v6014_v43 }
  0xc6   :  { %4620 = vmatmul.mubr.f32.gmra.mrb[64].mxu0 %v2867_v60 }
  0xc7   :  { %5269 = vmatmul.mubr.f32.gmra.mrb[90].mxu1 %v2522_v33  ;;  %4625 = vmatprep.mubr.f32.mxu0 %v2959_v28  ;;  %v5934_v33 = vld [vmem:[%s9186_s2 + $0x8] sm:$0xff] }
  0xc8   :  { %5273 = vmatprep.mubr.f32.mxu1 %v2614_v36  ;;  %v3163_v36 = vmax.f32 %v6602_v0, %v5934_v33  ;;  %v6042_v33 = vld [vmem:[%s9186_s2 + $0xe0] sm:$0xff] }
  0xca   :  { %4626 = vmatmul.mubr.f32.gmra.mrb[66].mxu0 %v2936_v13 }
  0xcb   :  { %5274 = vmatmul.mubr.f32.gmra.mrb[92].mxu1 %v2591_v47  ;;  %4631 = vmatprep.mubr.f32.mxu0 %v3028_v40  ;;  %v5946_v47 = vld [vmem:[%s9186_s2 + $0x20] sm:$0xff] }
  0xcc   :  { %5278 = vmatprep.mubr.f32.mxu1 %v2683_v34  ;;  %v3232_v34 = vmax.f32 %v6602_v0, %v5946_v47  ;;  %v7926_v47 = vmax.f32 %v6602_v0, %v6042_v33  ;;  %v5977_v33 = vld [vmem:[%s9190_s6 + $0x58] sm:$0xff] }
  0xce   :  { %4632 = vmatmul.mubr.f32.gmra.mrb[68].mxu0 %v3005_v41 }
  0xcf   :  { %5279 = vmatmul.mubr.f32.gmra.mrb[94].mxu1 %v2660_v35  ;;  %4637 = vmatprep.mubr.f32.mxu0 %v3097_v30  ;;  %v3301_v35 = vmax.f32 %v6602_v0, %v5958_v31 }
  0xd0   :  { %5283 = vmatprep.mubr.f32.mxu1 %v2752_v61  ;;  %v5970_v61 = vld [vmem:[%s9186_s2 + $0x50] sm:$0xff] }
  0xd1   :  { %v3370_v51 = vmax.f32 %v6602_v0, %v5970_v61  ;;  %v6050_v61 = vld [vmem:[%s9186_s2 + $0xf0] sm:$0xff] }
  0xd2   :  { %4638 = vmatmul.mubr.f32.gmra.mrb[70].mxu0 %v3074_v21 }
  0xd3   :  { %5284 = vmatmul.mubr.f32.gmra.mrb[96].mxu1 %v2729_v15  ;;  %4643 = vmatprep.mubr.f32.mxu0 %v3163_v36  ;;  %v5982_v15 = vld [vmem:[%s9186_s2 + $0x68] sm:$0xff] }
  0xd4   :  { %5288 = vmatprep.mubr.f32.mxu1 %v2821_v7  ;;  %v7841_v7 = vmax.f32 %v6602_v0, %v5982_v15 }
  0xd6   :  { %4644 = vmatmul.mubr.f32.gmra.mrb[72].mxu0 %v3140_v22 }
  0xd7   :  { %5289 = vmatmul.mubr.f32.gmra.mrb[98].mxu1 %v2798_v32  ;;  %4649 = vmatprep.mubr.f32.mxu0 %v3232_v34  ;;  %v7854_v32 = vmax.f32 %v6602_v0, %v5994_v59 }
  0xd8   :  { %5293 = vmatprep.mubr.f32.mxu1 %v2890_v20  ;;  %v6006_v20 = vld [vmem:[%s9186_s2 + $0x98] sm:$0xff] }
  0xda   :  { %4650 = vmatmul.mubr.f32.gmra.mrb[74].mxu0 %v3209_v54 }
  0xdb   :  { %5294 = vmatmul.mubr.f32.gmra.mrb[100].mxu1 %v2867_v60  ;;  %4655 = vmatprep.mubr.f32.mxu0 %v3301_v35  ;;  %v7872_v60 = vmax.f32 %v6602_v0, %v6006_v20  ;;  %v349_v20 = vsel %vm237_vm3, %v5953_v10, %v6602_v0 }
  0xdc   :  { %5298 = vmatprep.mubr.f32.mxu1 %v2959_v28  ;;  %v6018_v28 = vld [vmem:[%s9186_s2 + $0xb0] sm:$0xff] }
  0xde   :  { %4656 = vmatmul.mubr.f32.gmra.mrb[76].mxu0 %v3278_v42 }
  0xdf   :  { %5299 = vmatmul.mubr.f32.gmra.mrb[102].mxu1 %v2936_v13  ;;  %4661 = vmatprep.mubr.f32.mxu0 %v3370_v51  ;;  %v7890_v13 = vmax.f32 %v6602_v0, %v6018_v28  ;;  %v7990_v28 = vmax.f32 %v6602_v0, %v6062_v23 }
  0xe0   :  { %5303 = vmatprep.mubr.f32.mxu1 %v3028_v40  ;;  %v6030_v40 = vld [vmem:[%s9186_s2 + $0xc8] sm:$0xff] }
  0xe1   :  { %v7908_v14 = vmax.f32 %v6602_v0, %v6030_v40  ;;  %v352_v40 = vmax.f32 %v349_v20, %v6602_v0  ;;  %v6001_v20 = vld [vmem:[%s9190_s6 + $0x88] sm:$0xff] }
  0xe2   :  { %4662 = vmatmul.mubr.f32.gmra.mrb[78].mxu0 %v3347_v17 }
  0xe3   :  { %5304 = vmatmul.mubr.f32.gmra.mrb[104].mxu1 %v3005_v41  ;;  %4667 = vmatprep.mubr.f32.mxu0 %v7841_v7 }
  0xe4   :  { %5308 = vmatprep.mubr.f32.mxu1 %v3097_v30  ;;  %v6026_v30 = vld [vmem:[%s9186_s2 + $0xc0] sm:$0xff] }
  0xe6   :  { %4668 = vmatmul.mubr.f32.gmra.mrb[80].mxu0 %v7850_v12  ;;  %v7863_v6 = vpop.f32.mrb[0].mxu1 }
  0xe7   :  { %5309 = vmatmul.mubr.f32.gmra.mrb[106].mxu1 %v3074_v21  ;;  %4673 = vmatprep.mubr.f32.mxu0 %v7854_v32  ;;  %v7869_v2 = vpop.f32.mrb[1].mxu1 }
  0xe8   :  { %5313 = vmatprep.mubr.f32.mxu1 %v3163_v36  ;;  %v7920_v36 = vmax.f32 %v6602_v0, %v6026_v30 }
  0xea   :  { %4674 = vmatmul.mubr.f32.gmra.mrb[82].mxu0 %v7866_v24  ;;  %v7881_v29 = vpop.f32.mrb[2].mxu1 }
  0xeb   :  { %5314 = vmatmul.mubr.f32.gmra.mrb[108].mxu1 %v3140_v22  ;;  %4679 = vmatprep.mubr.f32.mxu0 %v7872_v60  ;;  %v7887_v50 = vpop.f32.mrb[3].mxu1  ;;  %v6038_v22 = vld [vmem:[%s9186_s2 + $0xd8] sm:$0xff] }
  0xec   :  { %5318 = vmatprep.mubr.f32.mxu1 %v3232_v34  ;;  %v6054_v34 = vld [vmem:[%s9186_s2 + $0xf8] sm:$0xff] }
  0xed   :  { %v7947_v5 = vmax.f32 %v6602_v0, %v6054_v34  ;;  %v356_v34 = vmax.f32 %v352_v40, %v6602_v0 }
  0xee   :  { %4680 = vmatmul.mubr.f32.gmra.mrb[84].mxu0 %v7884_v1  ;;  %v7899_v38 = vpop.f32.mrb[4].mxu1 }
  0xef   :  { %5319 = vmatmul.mubr.f32.gmra.mrb[110].mxu1 %v3209_v54  ;;  %4685 = vmatprep.mubr.f32.mxu0 %v7890_v13  ;;  %v7905_v41 = vpop.f32.mrb[5].mxu1  ;;  %v7941_v54 = vmax.f32 %v6602_v0, %v6038_v22 }
  0xf0   :  { %5323 = vmatprep.mubr.f32.mxu1 %v3301_v35 }
  0xf2   :  { %4686 = vmatmul.mubr.f32.gmra.mrb[86].mxu0 %v7902_v3  ;;  %v7917_v21 = vpop.f32.mrb[6].mxu1 }
  0xf3   :  { %5324 = vmatmul.mubr.f32.gmra.mrb[112].mxu1 %v3278_v42  ;;  %4691 = vmatprep.mubr.f32.mxu0 %v7908_v14  ;;  %v7923_v49 = vpop.f32.mrb[7].mxu1  ;;  %v238_v42 = vsel %vm237_vm3, %v5941_v63, %v6602_v0 }
  0xf4   :  { %5328 = vmatprep.mubr.f32.mxu1 %v3370_v51  ;;  %v6066_v51 = vld [vmem:[%s9186_s2 + $0x110] sm:$0xff]  ;;  %v241_v53 = vmax.f32 %v238_v42, %v6602_v0 }
  0xf5   :  { %v7974_v59 = vmax.f32 %v6602_v0, %v6066_v51  ;;  %v5989_v42 = vld [vmem:[%s9190_s6 + $0x70] sm:$0xff] }
  0xf6   :  { %4692 = vmatmul.mubr.f32.gmra.mrb[88].mxu0 %v7920_v36  ;;  %v7938_v31 = vpop.f32.mrb[8].mxu1  ;;  %v245_v43 = vmax.f32 %v241_v53, %v6602_v0  ;;  %v682_v23 = vsel %vm237_vm3, %v5989_v42, %v6602_v0 }
  0xf7   :  { %5329 = vmatmul.mubr.f32.gmra.mrb[114].mxu1 %v3347_v17  ;;  %4697 = vmatprep.mubr.f32.mxu0 %v7926_v47  ;;  %v7944_v35 = vpop.f32.mrb[9].mxu1  ;;  %v7966_v17 = vmax.f32 %v6602_v0, %v6050_v61  ;;  %v571_v61 = vsel %vm237_vm3, %v5977_v33, %v6602_v0  ;;  %v685_v40 = vmax.f32 %v682_v23, %v6602_v0  ;;  %v6013_v33 = vld [vmem:[%s9190_s6 + $0xa0] sm:$0xff] }
  0xf8   :  { %5333 = vmatprep.mubr.f32.mxu1 %v7841_v7  ;;  %v574_v53 = vmax.f32 %v571_v61, %v6602_v0 }
  0xfa   :  { %4698 = vmatmul.mubr.f32.gmra.mrb[90].mxu0 %v7941_v54  ;;  %v7963_v15 = vpop.f32.mrb[10].mxu1 }
  0xfb   :  { %5334 = vmatmul.mubr.f32.gmra.mrb[116].mxu1 %v7850_v12  ;;  %4703 = vmatprep.mubr.f32.mxu0 %v7947_v5  ;;  %v7971_v7 = vpop.f32.mrb[11].mxu1  ;;  %v5965_v12 = vld [vmem:[%s9190_s6 + $0x40] sm:$0xff] }
  0xfc   :  { %5338 = vmatprep.mubr.f32.mxu1 %v7854_v32  ;;  %v460_v30 = vsel %vm237_vm3, %v5965_v12, %v6602_v0 }
  0xfd   :  { %v463_v63 = vmax.f32 %v460_v30, %v6602_v0 }
  0xfe   :  { %4704 = vmatmul.mubr.f32.gmra.mrb[92].mxu0 %v7966_v17  ;;  %v7987_v48 = vpop.f32.mrb[12].mxu1 }
  0xff   :  { %5339 = vmatmul.mubr.f32.gmra.mrb[118].mxu1 %v7866_v24  ;;  %4709 = vmatprep.mubr.f32.mxu0 %v7974_v59  ;;  %v7996_v32 = vpop.f32.mrb[13].mxu1  ;;  %v8009_v24 = vmax.f32 %v245_v43, %v6602_v0  ;;  %v467_v10 = vmax.f32 %v463_v63, %v6602_v0  ;;  %v578_v43 = vmax.f32 %v574_v53, %v6602_v0 }
 0x100   :  { %5343 = vmatprep.mubr.f32.mxu1 %v7872_v60  ;;  %v689_v63 = vmax.f32 %v685_v40, %v6602_v0  ;;  %v6037_v40 = vld [vmem:[%s9190_s6 + $0xd0] sm:$0xff] }
 0x102   :  { %4710 = vmatmul.mubr.f32.gmra.mrb[94].mxu0 %v7990_v28  ;;  %v8006_v22 = vpop.f32.mrb[14].mxu1 }
 0x103   :  { %5344 = vmatmul.mubr.f32.gmra.mrb[120].mxu1 %v7884_v1  ;;  %4780 = vmatprep.mubr.f32.mxu0 %v9193_v9  ;;  %v8015_v60 = vpop.f32.mrb[15].mxu1  ;;  %v360_v1 = vmax.f32 %v356_v34, %v6602_v0 }
 0x104   :  { %5348 = vmatprep.mubr.f32.mxu1 %v7890_v13 }
 0x106   :  { %6076 = vmatmul.mubr.msk.f32.vlgmr.msra.gmra.mrb[0].mxu0 %vm4208_vm4, %v8009_v24  ;;  %v8026_v51 = vpop.f32.mrb[16].mxu1 }
 0x107   :  { %5349 = vmatmul.mubr.f32.gmra.mrb[122].mxu1 %v7902_v3  ;;  %4786 = vmatprep.mubr.f32.mxu0 %v9193_v9  ;;  %v8033_v13 = vpop.f32.mrb[17].mxu1  ;;  %v471_v3 = vmax.f32 %v467_v10, %v6602_v0  ;;  %v6025_v10 = vld [vmem:[%s9190_s6 + $0xb8] sm:$0xff] }
 0x108   :  { %5353 = vmatprep.mubr.f32.mxu1 %v7908_v14  ;;  %v793_v14 = vsel %vm237_vm3, %v6001_v20, %v6602_v0 }
 0x109   :  { %v796_v61 = vmax.f32 %v793_v14, %v6602_v0 }
 0x10a   :  { %6077 = vmatmul.mubr.msk.f32.gmra.mrb[2].mxu0 %vm4208_vm4, %v360_v1  ;;  %v8043_v12 = vpop.f32.mrb[18].mxu1 }
 0x10b   :  { %5354 = vmatmul.mubr.f32.gmra.mrb[124].mxu1 %v7920_v36  ;;  %4792 = vmatprep.mubr.f32.mxu0 %v9193_v9  ;;  %v8050_v30 = vpop.f32.mrb[19].mxu1  ;;  %v582_v36 = vmax.f32 %v578_v43, %v6602_v0  ;;  %v800_v23 = vmax.f32 %v796_v61, %v6602_v0 }
 0x10c   :  { %5358 = vmatprep.mubr.f32.mxu1 %v7926_v47  ;;  %v904_v47 = vsel %vm237_vm3, %v6013_v33, %v6602_v0 }
 0x10d   :  { %v907_v20 = vmax.f32 %v904_v47, %v6602_v0  ;;  %v6049_v47 = vld [vmem:[%s9190_s6 + $0xe8] sm:$0xff] }
 0x10e   :  { %6078 = vmatmul.mubr.msk.f32.gmra.mrb[4].mxu0 %vm4208_vm4, %v471_v3  ;;  %v8060_v34 = vpop.f32.mrb[20].mxu1 }
 0x10f   :  { %5359 = vmatmul.mubr.f32.gmra.mrb[126].mxu1 %v7941_v54  ;;  %4798 = vmatprep.mubr.f32.mxu0 %v9193_v9  ;;  %v8067_v42 = vpop.f32.mrb[21].mxu1  ;;  %v693_v54 = vmax.f32 %v689_v63, %v6602_v0  ;;  %v911_v33 = vmax.f32 %v907_v20, %v6602_v0 }
 0x110   :  { %5363 = vmatprep.mubr.f32.mxu1 %v7947_v5  ;;  %v1015_v5 = vsel %vm237_vm3, %v6025_v10, %v6602_v0 }
 0x111   :  { %v1018_v63 = vmax.f32 %v1015_v5, %v6602_v0  ;;  %v6061_v5 = vld [vmem:[%s9190_s6 + $0x100] sm:$0xff] }
 0x112   :  { %6079 = vmatmul.mubr.msk.f32.gmra.mrb[6].mxu0 %vm4208_vm4, %v582_v36  ;;  %v8077_v53 = vpop.f32.mrb[22].mxu1 }
 0x113   :  { %5364 = vmatmul.mubr.f32.gmra.mrb[128].mxu1 %v7966_v17  ;;  %4804 = vmatprep.mubr.f32.mxu0 %v9193_v9  ;;  %v8084_v43 = vpop.f32.mrb[23].mxu1  ;;  %v804_v17 = vmax.f32 %v800_v23, %v6602_v0  ;;  %v1022_v23 = vmax.f32 %v1018_v63, %v6602_v0  ;;  %v6073_v63 = vld [vmem:[%s9190_s6 + $0x118] sm:$0xff] }
 0x114   :  { %9213 = vst [vmem:[#allocation23_spill] sm:$0xff] %v8084_v43  ;;  %5368 = vmatprep.mubr.f32.mxu1 %v7974_v59  ;;  %v1126_v59 = vsel %vm237_vm3, %v6037_v40, %v6602_v0  ;;  %v1237_v40 = vsel %vm237_vm3, %v6049_v47, %v6602_v0 }
 0x115   :  { %v1129_v20 = vmax.f32 %v1126_v59, %v6602_v0  ;;  %v1026_v59 = vmax.f32 %v1022_v23, %v6602_v0  ;;  %v1240_v47 = vmax.f32 %v1237_v40, %v6602_v0  ;;  %v1459_v23 = vsel %vm237_vm3, %v6073_v63, %v6602_v0  ;;  %v5964_v63 = vld [vmem:[%s9189_s5 + $0x40] sm:$0xff] }
 0x116   :  { %6080 = vmatmul.mubr.msk.f32.gmra.mrb[8].mxu0 %vm4208_vm4, %v693_v54  ;;  %v8094_v14 = vpop.f32.mrb[24].mxu1 }
 0x117   :  { %9214 = vst [vmem:[#allocation24_spill] sm:$0xff] %v8094_v14  ;;  %5369 = vmatmul.mubr.f32.gmra.mrb[130].mxu1 %v7990_v28  ;;  %4810 = vmatprep.mubr.f32.mxu0 %v9193_v9  ;;  %v8101_v61 = vpop.f32.mrb[25].mxu1  ;;  %v915_v28 = vmax.f32 %v911_v33, %v6602_v0  ;;  %v1348_v33 = vsel %vm237_vm3, %v6061_v5, %v6602_v0 }
 0x118   :  { %9215 = vst [vmem:[#allocation25_spill] sm:$0xff] %v8101_v61  ;;  %6239 = vmatprep.mubr.msk.f32.mxu1 %vm4208_vm4, %v8009_v24  ;;  %v1133_v4 = vmax.f32 %v1129_v20, %v6602_v0 }
 0x11a   :  { %6081 = vmatmul.mubr.msk.f32.gmra.mrb[10].mxu0 %vm4208_vm4, %v804_v17  ;;  %v8112_v10 = vpop.f32.mrb[26].mxu1 }
 0x11b   :  { %9216 = vst [vmem:[#allocation26_spill] sm:$0xff] %v8112_v10  ;;  %6240 = vmatmul.mubr.msk.f32.vlgmr.msra.gmra.mrb[132].mxu1 %vm4208_vm4, %v360_v1  ;;  %4816 = vmatprep.mubr.f32.mxu0 %v9193_v9  ;;  %v8122_v24 = vpop.f32.mrb[27].mxu1 }
 0x11c   :  { %9217 = vst [vmem:[#allocation27_spill] sm:$0xff] %v8122_v24  ;;  %6242 = vmatprep.mubr.msk.f32.mxu1 %vm4208_vm4, %v471_v3  ;;  %v5940_v3 = vld [vmem:[%s9189_s5 + $0x10] sm:$0xff] }
 0x11d   :  { %v1525_v20 = vsel %vm237_vm3, %v5940_v3, %v6602_v0 }
 0x11e   :  { %6082 = vmatmul.mubr.msk.f32.gmra.mrb[12].mxu0 %vm4208_vm4, %v915_v28  ;;  %v8135_v1 = vpop.f32.mrb[28].mxu1 }
 0x11f   :  { %9218 = vst [vmem:[#allocation28_spill] sm:$0xff] %v8135_v1  ;;  %6243 = vmatmul.mubr.msk.f32.gmra.mrb[134].mxu1 %vm4208_vm4, %v582_v36  ;;  %4822 = vmatprep.mubr.f32.mxu0 %v9193_v9  ;;  %v8145_v5 = vpop.f32.mrb[29].mxu1  ;;  %v1351_v1 = vmax.f32 %v1348_v33, %v6602_v0  ;;  %v5952_v36 = vld [vmem:[%s9189_s5 + $0x28] sm:$0xff]  ;;  %v1244_v33 = vmax.f32 %v1240_v47, %v6602_v0 }
 0x120   :  { %9219 = vst [vmem:[#allocation29_spill] sm:$0xff] %v8145_v5  ;;  %6245 = vmatprep.mubr.msk.f32.mxu1 %vm4208_vm4, %v693_v54  ;;  %v1137_v54 = vmax.f32 %v1133_v4, %v6602_v0  ;;  %v1462_v5 = vmax.f32 %v1459_v23, %v6602_v0  ;;  %v1528_v4 = vmax.f32 %v6602_v0, %v1525_v20  ;;  %v9223_v20 = vmov 0.0  }
 0x121   :  { %v1594_v47 = vsel %vm237_vm3, %v5952_v36, %v6602_v0 }
 0x122   :  { %6083 = vmatmul.mubr.msk.f32.gmra.mrb[14].mxu0 %vm4208_vm4, %v1026_v59  ;;  %v8159_v40 = vpop.f32.mrb[30].mxu1 }
 0x123   :  { %9220 = vst [vmem:[#allocation30_spill] sm:$0xff] %v8159_v40  ;;  %6246 = vmatmul.mubr.msk.f32.gmra.mrb[136].mxu1 %vm4208_vm4, %v804_v17  ;;  %4828 = vmatprep.mubr.f32.mxu0 %v9193_v9  ;;  %v8168_v3 = vpop.f32.mrb[31].mxu1  ;;  %v1355_v40 = vmax.f32 %v1351_v1, %v6602_v0  ;;  %v1663_v17 = vsel %vm237_vm3, %v5964_v63, %v6602_v0  ;;  %v5976_v9 = vld [vmem:[%s9189_s5 + $0x58] sm:$0xff]  ;;  %v5988_v1 = vld [vmem:[%s9189_s5 + $0x70] sm:$0xff] }
 0x124   :  { %9221 = vst [vmem:[#allocation31_spill] sm:$0xff] %v8168_v3  ;;  %6248 = vmatprep.mubr.msk.f32.mxu1 %vm4208_vm4, %v915_v28  ;;  %v1248_v28 = vmax.f32 %v1244_v33, %v6602_v0  ;;  %v1466_v63 = vmax.f32 %v1462_v5, %v6602_v0  ;;  %v1597_v3 = vmax.f32 %v6602_v0, %v1594_v47  ;;  %v6000_v5 = vld [vmem:[%s9189_s5 + $0x88] sm:$0xff] }
 0x125   :  { %v1532_v33 = vmax.f32 %v1528_v4, %v6602_v0  ;;  %v1666_v24 = vmax.f32 %v6602_v0, %v1663_v17 }
 0x126   :  { %6084 = vmatmul.mubr.msk.f32.gmra.mrb[16].mxu0 %vm4208_vm4, %v1137_v54  ;;  %v8184_v23 = vpop.f32.mrb[32].mxu1  ;;  %v1470_v4 = vmax.f32 %v1466_v63, %v6602_v0  ;;  %v1601_v47 = vmax.f32 %v1597_v3, %v6602_v0  ;;  %v6024_v3 = vld [vmem:[%s9189_s5 + $0xb8] sm:$0xff] }
 0x127   :  { %9222 = vst [vmem:[#allocation32_spill] sm:$0xff] %v8184_v23  ;;  %6249 = vmatmul.mubr.msk.f32.gmra.mrb[138].mxu1 %vm4208_vm4, %v1026_v59  ;;  %4834 = vmatprep.mubr.f32.mxu0 %v9223_v20  ;;  %v8192_v36 = vpop.f32.mrb[33].mxu1  ;;  %v1359_v23 = vmax.f32 %v1355_v40, %v6602_v0  ;;  %v1732_v59 = vsel %vm237_vm3, %v5976_v9, %v6602_v0  ;;  %v6012_v40 = vld [vmem:[%s9189_s5 + $0xa0] sm:$0xff] }
 0x128   :  { %9224 = vst [vmem:[#allocation33_spill] sm:$0xff] %v8192_v36  ;;  %6251 = vmatprep.mubr.msk.f32.mxu1 %vm4208_vm4, %v1137_v54  ;;  %v1801_v36 = vsel %vm237_vm3, %v5988_v1, %v6602_v0  ;;  %v1735_v17 = vmax.f32 %v6602_v0, %v1732_v59  ;;  %v1536_v1 = vmax.f32 %v1532_v33, %v6602_v0 }
 0x129   :  { %v1804_v10 = vmax.f32 %v6602_v0, %v1801_v36  ;;  %v1939_v63 = vsel %vm237_vm3, %v6012_v40, %v6602_v0  ;;  %v1605_v33 = vmax.f32 %v1601_v47, %v6602_v0  ;;  %v2008_v61 = vsel %vm237_vm3, %v6024_v3, %v6602_v0 }
 0x12a   :  { %6085 = vmatmul.mubr.msk.f32.gmra.mrb[18].mxu0 %vm4208_vm4, %v1248_v28  ;;  %v8210_v54 = vpop.f32.mrb[34].mxu1 }
 0x12b   :  { %9225 = vst [vmem:[#allocation34_spill] sm:$0xff] %v8210_v54  ;;  %6252 = vmatmul.mubr.msk.f32.gmra.mrb[140].mxu1 %vm4208_vm4, %v1248_v28  ;;  %4840 = vmatprep.mubr.f32.mxu0 %v9223_v20  ;;  %v8217_v9 = vpop.f32.mrb[35].mxu1  ;;  %v1670_v54 = vmax.f32 %v1666_v24, %v6602_v0  ;;  %v1870_v28 = vsel %vm237_vm3, %v6000_v5, %v6602_v0  ;;  %v6036_v24 = vld [vmem:[%s9189_s5 + $0xd0] sm:$0xff] }
 0x12c   :  { %9226 = vst [vmem:[#allocation35_spill] sm:$0xff] %v8217_v9  ;;  %6254 = vmatprep.mubr.msk.f32.mxu1 %vm4208_vm4, %v1359_v23  ;;  %v1739_v5 = vmax.f32 %v1735_v17, %v6602_v0  ;;  %v1873_v40 = vmax.f32 %v6602_v0, %v1870_v28  ;;  %v1942_v9 = vmax.f32 %v6602_v0, %v1939_v63  ;;  %v6048_v17 = vld [vmem:[%s9189_s5 + $0xe8] sm:$0xff] }
 0x12d   :  { %v2077_v47 = vsel %vm237_vm3, %v6036_v24, %v6602_v0  ;;  %v2011_v24 = vmax.f32 %v6602_v0, %v2008_v61  ;;  %v2146_v14 = vsel %vm237_vm3, %v6048_v17, %v6602_v0  ;;  %v6072_v61 = vld [vmem:[%s9189_s5 + $0x118] sm:$0xff] }
 0x12e   :  { %6086 = vmatmul.mubr.msk.f32.gmra.mrb[20].mxu0 %vm4208_vm4, %v1359_v23  ;;  %v8236_v59 = vpop.f32.mrb[36].mxu1  ;;  %v1674_v23 = vmax.f32 %v1670_v54, %v6602_v0  ;;  %v1743_v63 = vmax.f32 %v1739_v5, %v6602_v0  ;;  %v1877_v3 = vmax.f32 %v1873_v40, %v6602_v0  ;;  %v2149_v17 = vmax.f32 %v6602_v0, %v2146_v14  ;;  %v5939_v14 = vld [vmem:[%s9188_s4 + $0x10] sm:$0xff] }
 0x12f   :  { %9227 = vst [vmem:[#allocation36_spill] sm:$0xff] %v8236_v59  ;;  %6255 = vmatmul.mubr.msk.f32.gmra.mrb[142].mxu1 %vm4208_vm4, %v1470_v4  ;;  %4846 = vmatprep.mubr.f32.mxu0 %v9223_v20  ;;  %v5137_v36 = vpop.f32.mrb[37].mxu1  ;;  %v1808_v59 = vmax.f32 %v1804_v10, %v6602_v0  ;;  %v6060_v10 = vld [vmem:[%s9189_s5 + $0x100] sm:$0xff] }
 0x130   :  { %6257 = vmatprep.mubr.msk.f32.mxu1 %vm4208_vm4, %v1536_v1  ;;  %v1946_v36 = vmax.f32 %v1942_v9, %v6602_v0  ;;  %v2215_v5 = vsel %vm237_vm3, %v6060_v10, %v6602_v0 }
 0x132   :  { %6087 = vmatmul.mubr.msk.f32.gmra.mrb[22].mxu0 %vm4208_vm4, %v1470_v4  ;;  %v8260_v28 = vpop.f32.mrb[38].mxu1  ;;  %v1812_v4 = vmax.f32 %v1808_v59, %v6602_v0  ;;  %v1881_v59 = vmax.f32 %v1877_v3, %v6602_v0  ;;  %v8293_v10 = vmax.f32 %v1946_v36, %v6602_v0  ;;  %v2153_v36 = vmax.f32 %v2149_v17, %v6602_v0 }
 0x133   :  { %9228 = vst [vmem:[#allocation37_spill] sm:$0xff] %v8260_v28  ;;  %6258 = vmatmul.mubr.msk.f32.gmra.mrb[144].mxu1 %vm4208_vm4, %v1605_v33  ;;  %4852 = vmatprep.mubr.f32.mxu0 %v9223_v20  ;;  %v5142_v54 = vpop.f32.mrb[39].mxu1  ;;  %v2080_v28 = vmax.f32 %v6602_v0, %v2077_v47  ;;  %v2015_v47 = vmax.f32 %v2011_v24, %v6602_v0 }
 0x134   :  { %6260 = vmatprep.mubr.msk.f32.mxu1 %vm4208_vm4, %v1674_v23  ;;  %v2218_v54 = vmax.f32 %v6602_v0, %v2215_v5 }
 0x136   :  { %6088 = vmatmul.mubr.msk.f32.gmra.mrb[24].mxu0 %vm4208_vm4, %v1536_v1  ;;  %v8284_v40 = vpop.f32.mrb[40].mxu1  ;;  %v2084_v1 = vmax.f32 %v2080_v28, %v6602_v0  ;;  %v8309_v28 = vmax.f32 %v2015_v47, %v6602_v0  ;;  %v5951_v47 = vld [vmem:[%s9188_s4 + $0x28] sm:$0xff] }
 0x137   :  { %9229 = vst [vmem:[#allocation38_spill] sm:$0xff] %v8284_v40  ;;  %6261 = vmatmul.mubr.msk.f32.gmra.mrb[146].mxu1 %vm4208_vm4, %v1743_v63  ;;  %4858 = vmatprep.mubr.f32.mxu0 %v9223_v20  ;;  %v5147_v9 = vpop.f32.mrb[41].mxu1  ;;  %v2284_v40 = vsel %vm237_vm3, %v6072_v61, %v6602_v0  ;;  %v2222_v61 = vmax.f32 %v2218_v54, %v6602_v0 }
 0x138   :  { %6263 = vmatprep.mubr.msk.f32.mxu1 %vm4208_vm4, %v1812_v4  ;;  %v2287_v5 = vmax.f32 %v6602_v0, %v2284_v40  ;;  %v2349_v9 = vsel %vm237_vm3, %v5939_v14, %v6602_v0  ;;  %v5963_v40 = vld [vmem:[%s9188_s4 + $0x40] sm:$0xff]  ;;  %v2157_v54 = vmax.f32 %v2153_v36, %v6602_v0  ;;  %v5975_v36 = vld [vmem:[%s9188_s4 + $0x58] sm:$0xff] }
 0x13a   :  { %6089 = vmatmul.mubr.msk.f32.gmra.mrb[26].mxu0 %vm4208_vm4, %v1605_v33  ;;  %v8301_v3 = vpop.f32.mrb[42].mxu1  ;;  %v8316_v33 = vmax.f32 %v2084_v1, %v6602_v0  ;;  %v2291_v14 = vmax.f32 %v2287_v5, %v6602_v0 }
 0x13b   :  { %9230 = vst [vmem:[#allocation39_spill] sm:$0xff] %v8301_v3  ;;  %6264 = vmatmul.mubr.msk.f32.gmra.mrb[148].mxu1 %vm4208_vm4, %v1881_v59  ;;  %4864 = vmatprep.mubr.f32.mxu0 %v9223_v20  ;;  %v5152_v24 = vpop.f32.mrb[43].mxu1  ;;  %v2556_v3 = vsel %vm237_vm3, %v5975_v36, %v6602_v0 }
 0x13c   :  { %6266 = vmatprep.mubr.msk.f32.mxu1 %vm4208_vm4, %v8293_v10  ;;  %v2357_v24 = vmax.f32 %v6602_v0, %v2349_v9  ;;  %v2564_v36 = vmax.f32 %v6602_v0, %v2556_v3 }
 0x13e   :  { %6090 = vmatmul.mubr.msk.f32.gmra.mrb[28].mxu0 %vm4208_vm4, %v1674_v23  ;;  %v8326_v17 = vpop.f32.mrb[44].mxu1  ;;  %v8339_v23 = vmax.f32 %v2222_v61, %v6602_v0  ;;  %v5987_v61 = vld [vmem:[%s9188_s4 + $0x70] sm:$0xff]  ;;  %v2568_v3 = vmax.f32 %v2564_v36, %v6602_v0 }
 0x13f   :  { %9231 = vst [vmem:[#allocation40_spill] sm:$0xff] %v8326_v17  ;;  %6267 = vmatmul.mubr.msk.f32.gmra.mrb[150].mxu1 %vm4208_vm4, %v8309_v28  ;;  %4870 = vmatprep.mubr.f32.mxu0 %v9223_v20  ;;  %v5157_v1 = vpop.f32.mrb[45].mxu1  ;;  %v2418_v17 = vsel %vm237_vm3, %v5951_v47, %v6602_v0  ;;  %v2295_v47 = vmax.f32 %v2291_v14, %v6602_v0  ;;  %v5999_v14 = vld [vmem:[%s9188_s4 + $0x88] sm:$0xff] }
 0x140   :  { %6269 = vmatprep.mubr.msk.f32.mxu1 %vm4208_vm4, %v8316_v33  ;;  %v2487_v1 = vsel %vm237_vm3, %v5963_v40, %v6602_v0  ;;  %v2426_v40 = vmax.f32 %v6602_v0, %v2418_v17  ;;  %v2625_v43 = vsel %vm237_vm3, %v5987_v61, %v6602_v0 }
 0x142   :  { %6091 = vmatmul.mubr.msk.f32.gmra.mrb[30].mxu0 %vm4208_vm4, %v1743_v63  ;;  %v8352_v5 = vpop.f32.mrb[46].mxu1  ;;  %v2361_v63 = vmax.f32 %v2357_v24, %v6602_v0 }
 0x143   :  { %9232 = vst [vmem:[#allocation41_spill] sm:$0xff] %v8352_v5  ;;  %6270 = vmatmul.mubr.msk.f32.gmra.mrb[152].mxu1 %vm4208_vm4, %v2157_v54  ;;  %4876 = vmatprep.mubr.f32.mxu0 %v9223_v20  ;;  %v5162_v9 = vpop.f32.mrb[47].mxu1  ;;  %v2495_v5 = vmax.f32 %v6602_v0, %v2487_v1  ;;  %v2430_v1 = vmax.f32 %v2426_v40, %v6602_v0 }
 0x144   :  { %6272 = vmatprep.mubr.msk.f32.mxu1 %vm4208_vm4, %v8339_v23  ;;  %v2633_v9 = vmax.f32 %v6602_v0, %v2625_v43 }
 0x145   :  { %v2499_v61 = vmax.f32 %v2495_v5, %v6602_v0 }
 0x146   :  { %6092 = vmatmul.mubr.msk.f32.gmra.mrb[32].mxu0 %vm4208_vm4, %v1812_v4  ;;  %v8375_v17 = vpop.f32.mrb[48].mxu1  ;;  %v2694_v4 = vsel %vm237_vm3, %v5999_v14, %v6602_v0  ;;  %v2637_v43 = vmax.f32 %v2633_v9, %v6602_v0 }
 0x147   :  { %9233 = vst [vmem:[#allocation42_spill] sm:$0xff] %v8375_v17  ;;  %6273 = vmatmul.mubr.msk.f32.gmra.mrb[154].mxu1 %vm4208_vm4, %v2295_v47  ;;  %4882 = vmatprep.mubr.f32.mxu0 %v9223_v20  ;;  %v5167_v24 = vpop.f32.mrb[49].mxu1 }
 0x148   :  { %6275 = vmatprep.mubr.msk.f32.mxu1 %vm4208_vm4, %v2361_v63  ;;  %v2702_v24 = vmax.f32 %v6602_v0, %v2694_v4 }
 0x14a   :  { %6093 = vmatmul.mubr.msk.f32.gmra.mrb[34].mxu0 %vm4208_vm4, %v1881_v59  ;;  %v8388_v17 = vpop.f32.mrb[50].mxu1  ;;  %v2706_v5 = vmax.f32 %v2702_v24, %v6602_v0 }
 0x14b   :  { %6276 = vmatmul.mubr.msk.f32.gmra.mrb[156].mxu1 %vm4208_vm4, %v2430_v1  ;;  %4888 = vmatprep.mubr.f32.mxu0 %v9223_v20  ;;  %v5172_v40 = vpop.f32.mrb[51].mxu1 }
 0x14c   :  { %6278 = vmatprep.mubr.msk.f32.mxu1 %vm4208_vm4, %v2499_v61 }
 0x14e   :  { %6094 = vmatmul.mubr.msk.f32.gmra.mrb[36].mxu0 %vm4208_vm4, %v8293_v10  ;;  %v8398_v25 = vpop.f32.mrb[52].mxu1 }
 0x14f   :  { %6279 = vmatmul.mubr.msk.f32.gmra.mrb[158].mxu1 %vm4208_vm4, %v2568_v3  ;;  %4894 = vmatprep.mubr.f32.mxu0 %v9223_v20  ;;  %v5177_v59 = vpop.f32.mrb[53].mxu1 }
 0x150   :  { %6281 = vmatprep.mubr.msk.f32.mxu1 %vm4208_vm4, %v2637_v43 }
 0x152   :  { %6095 = vmatmul.mubr.msk.f32.gmra.mrb[38].mxu0 %vm4208_vm4, %v8309_v28  ;;  %v8406_v14 = vpop.f32.mrb[54].mxu1 }
 0x153   :  { %6282 = vmatmul.mubr.msk.f32.gmra.mrb[160].mxu1 %vm4208_vm4, %v2706_v5  ;;  %4900 = vmatprep.mubr.f32.mxu0 %v9223_v20  ;;  %v5182_v10 = vpop.f32.mrb[55].mxu1 }
 0x154   :  { %6284 = vmatprep.mubr.msk.f32.mxu1 %vm4208_vm4, %v6747_v58 }
 0x156   :  { %6096 = vmatmul.mubr.msk.f32.gmra.mrb[40].mxu0 %vm4208_vm4, %v8316_v33  ;;  %v8414_v36 = vpop.f32.mrb[56].mxu1 }
 0x157   :  { %6285 = vmatmul.mubr.msk.f32.gmra.mrb[162].mxu1 %vm4208_vm4, %v6780_v11  ;;  %4906 = vmatprep.mubr.f32.mxu0 %v9223_v20  ;;  %v5187_v0 = vpop.f32.mrb[57].mxu1 }
 0x158   :  { %6287 = vmatprep.mubr.msk.f32.mxu1 %vm4208_vm4, %v6812_v27 }
 0x15a   :  { %6097 = vmatmul.mubr.msk.f32.gmra.mrb[42].mxu0 %vm4208_vm4, %v2157_v54  ;;  %v8422_v28 = vpop.f32.mrb[58].mxu1 }
 0x15b   :  { %6288 = vmatmul.mubr.msk.f32.gmra.mrb[164].mxu1 %vm4208_vm4, %v6844_v44  ;;  %4912 = vmatprep.mubr.f32.mxu0 %v9223_v20  ;;  %v5192_v58 = vpop.f32.mrb[59].mxu1 }
 0x15c   :  { %6290 = vmatprep.mubr.msk.f32.mxu1 %vm4208_vm4, %v6873_v56 }
 0x15e   :  { %6098 = vmatmul.mubr.msk.f32.gmra.mrb[44].mxu0 %vm4208_vm4, %v8339_v23  ;;  %v8431_v11 = vpop.f32.mrb[60].mxu1 }
 0x15f   :  { %6291 = vmatmul.mubr.msk.f32.gmra.mrb[166].mxu1 %vm4208_vm4, %v6902_v8  ;;  %4918 = vmatprep.mubr.f32.mxu0 %v9223_v20  ;;  %v5197_v27 = vpop.f32.mrb[61].mxu1 }
 0x160   :  { %6293 = vmatprep.mubr.msk.f32.mxu1 %vm4208_vm4, %v6933_v26 }
 0x162   :  { %6099 = vmatmul.mubr.msk.f32.gmra.mrb[46].mxu0 %vm4208_vm4, %v2295_v47  ;;  %v8439_v44 = vpop.f32.mrb[62].mxu1 }
 0x163   :  { %6294 = vmatmul.mubr.msk.f32.gmra.mrb[168].mxu1 %vm4208_vm4, %v6968_v46  ;;  %4924 = vmatprep.mubr.f32.mxu0 %v9223_v20  ;;  %v5202_v56 = vpop.f32.mrb[63].mxu1 }
 0x164   :  { %6296 = vmatprep.mubr.msk.f32.mxu1 %vm4208_vm4, %v7003_v62 }
 0x166   :  { %6100 = vmatmul.mubr.msk.f32.gmra.mrb[48].mxu0 %vm4208_vm4, %v2361_v63  ;;  %v8447_v8 = vpop.f32.mrb[64].mxu1 }
 0x167   :  { %6297 = vmatmul.mubr.msk.f32.gmra.mrb[170].mxu1 %vm4208_vm4, %v7035_v18  ;;  %4930 = vmatprep.mubr.f32.mxu0 %v9223_v20  ;;  %v5207_v26 = vpop.f32.mrb[65].mxu1 }
 0x168   :  { %6299 = vmatprep.mubr.msk.f32.mxu1 %vm4208_vm4, %v7066_v37 }
 0x16a   :  { %6101 = vmatmul.mubr.msk.f32.gmra.mrb[50].mxu0 %vm4208_vm4, %v2430_v1  ;;  %v8455_v46 = vpop.f32.mrb[66].mxu1 }
 0x16b   :  { %6300 = vmatmul.mubr.msk.f32.gmra.mrb[172].mxu1 %vm4208_vm4, %v7104_v55  ;;  %4936 = vmatprep.mubr.f32.mxu0 %v9223_v20  ;;  %v5212_v62 = vpop.f32.mrb[67].mxu1 }
 0x16c   :  { %6302 = vmatprep.mubr.msk.f32.mxu1 %vm4208_vm4, %v7138_v19 }
 0x16e   :  { %6102 = vmatmul.mubr.msk.f32.gmra.mrb[52].mxu0 %vm4208_vm4, %v2499_v61  ;;  %v8463_v18 = vpop.f32.mrb[68].mxu1 }
 0x16f   :  { %6303 = vmatmul.mubr.msk.f32.gmra.mrb[174].mxu1 %vm4208_vm4, %v7176_v45  ;;  %4942 = vmatprep.mubr.f32.mxu0 %v9223_v20  ;;  %v5217_v37 = vpop.f32.mrb[69].mxu1 }
 0x170   :  { %6305 = vmatprep.mubr.msk.f32.mxu1 %vm4208_vm4, %v7192_v52 }
 0x172   :  { %6103 = vmatmul.mubr.msk.f32.gmra.mrb[54].mxu0 %vm4208_vm4, %v2568_v3  ;;  %v8471_v55 = vpop.f32.mrb[70].mxu1 }
 0x173   :  { %6306 = vmatmul.mubr.msk.f32.gmra.mrb[176].mxu1 %vm4208_vm4, %v7230_v16  ;;  %4948 = vmatprep.mubr.f32.mxu0 %v9223_v20  ;;  %v5222_v19 = vpop.f32.mrb[71].mxu1 }
 0x174   :  { %6308 = vmatprep.mubr.msk.f32.mxu1 %vm4208_vm4, %v7270_v39 }
 0x176   :  { %6104 = vmatmul.mubr.msk.f32.gmra.mrb[56].mxu0 %vm4208_vm4, %v2637_v43  ;;  %v8479_v45 = vpop.f32.mrb[72].mxu1 }
 0x177   :  { %6309 = vmatmul.mubr.msk.f32.gmra.mrb[178].mxu1 %vm4208_vm4, %v7303_v57  ;;  %4954 = vmatprep.mubr.f32.mxu0 %v9223_v20  ;;  %v5227_v52 = vpop.f32.mrb[73].mxu1 }
 0x17a   :  { %6105 = vmatmul.mubr.msk.f32.gmra.mrb[58].mxu0 %vm4208_vm4, %v2706_v5  ;;  %v8485_v33 = vpop.f32.mrb[74].mxu1 }
 0x17b   :  { %v5232_v16 = vpop.f32.mrb[75].mxu1 }
 0x17e   :  { %v8487_v54 = vpop.f32.mrb[76].mxu1 }
 0x17f   :  { %v5237_v23 = vpop.f32.mrb[77].mxu1 }
 0x182   :  { %v8489_v47 = vpop.f32.mrb[78].mxu1 }
 0x183   :  { %v5242_v39 = vpop.f32.mrb[79].mxu1 }
 0x186   :  { %v8491_v63 = vpop.f32.mrb[80].mxu1 }
 0x187   :  { %v5247_v1 = vpop.f32.mrb[81].mxu1 }
 0x18a   :  { %v8493_v61 = vpop.f32.mrb[82].mxu1 }
 0x18b   :  { %v5252_v57 = vpop.f32.mrb[83].mxu1 }
 0x18e   :  { %v8495_v9 = vpop.f32.mrb[84].mxu1 }
 0x18f   :  { %v5257_v20 = vpop.f32.mrb[85].mxu1 }
 0x191   :  { %v4609_v4 = vpop.f32.mrb[60].mxu0 }
 0x192   :  { %v8498_v40 = vadd.f32 %v7863_v6, %v4609_v4  ;;  %v4611_v3 = vpop.f32.mrb[61].mxu0  ;;  %v8500_v24 = vpop.f32.mrb[86].mxu1 }
 0x193   :  { %v8503_v43 = vadd.f32 %v7869_v2, %v4611_v3  ;;  %v5262_v59 = vpop.f32.mrb[87].mxu1 }
 0x195   :  { %v4615_v5 = vpop.f32.mrb[62].mxu0 }
 0x196   :  { %v8506_v10 = vadd.f32 %v7881_v29, %v4615_v5  ;;  %v4617_v0 = vpop.f32.mrb[63].mxu0  ;;  %v8508_v58 = vpop.f32.mrb[88].mxu1 }
 0x197   :  { %v8511_v27 = vadd.f32 %v7887_v50, %v4617_v0  ;;  %v5267_v56 = vpop.f32.mrb[89].mxu1 }
 0x199   :  { %v4621_v6 = vpop.f32.mrb[64].mxu0 }
 0x19a   :  { %v8514_v26 = vadd.f32 %v7899_v38, %v4621_v6  ;;  %v4623_v62 = vpop.f32.mrb[65].mxu0  ;;  %v8516_v37 = vpop.f32.mrb[90].mxu1 }
 0x19b   :  { %v8519_v2 = vadd.f32 %v7905_v41, %v4623_v62  ;;  %v5272_v19 = vpop.f32.mrb[91].mxu1 }
 0x19c   :  { %9234 = vst [vmem:[#allocation43_spill] sm:$0xff] %v8514_v26  ;;  %v9307_v26 = vld [vmem:[#allocation42_spill] sm:$0xff] }
 0x19d   :  { %9235 = vst [vmem:[#allocation44_spill] sm:$0xff] %v8519_v2  ;;  %v4627_v29 = vpop.f32.mrb[66].mxu0 }
 0x19e   :  { %v8522_v52 = vadd.f32 %v7917_v21, %v4627_v29  ;;  %v4629_v16 = vpop.f32.mrb[67].mxu0  ;;  %v8524_v23 = vpop.f32.mrb[92].mxu1 }
 0x19f   :  { %v8527_v50 = vadd.f32 %v7923_v49, %v4629_v16  ;;  %v5277_v39 = vpop.f32.mrb[93].mxu1 }
 0x1a0   :  { %9236 = vst [vmem:[#allocation45_spill] sm:$0xff] %v8522_v52 }
 0x1a1   :  { %9237 = vst [vmem:[#allocation46_spill] sm:$0xff] %v8527_v50  ;;  %v4633_v38 = vpop.f32.mrb[68].mxu0  ;;  %v9301_v50 = vld [vmem:[#allocation39_spill] sm:$0xff] }
 0x1a2   :  { %v8530_v1 = vadd.f32 %v7938_v31, %v4633_v38  ;;  %v4635_v57 = vpop.f32.mrb[69].mxu0  ;;  %v8532_v20 = vpop.f32.mrb[94].mxu1 }
 0x1a3   :  { %v8535_v41 = vadd.f32 %v7944_v35, %v4635_v57  ;;  %v5282_v4 = vpop.f32.mrb[95].mxu1 }
 0x1a4   :  { %9238 = vst [vmem:[#allocation47_spill] sm:$0xff] %v8530_v1 }
 0x1a5   :  { %9239 = vst [vmem:[#allocation48_spill] sm:$0xff] %v8535_v41  ;;  %v4639_v21 = vpop.f32.mrb[70].mxu0 }
 0x1a6   :  { %v8538_v3 = vadd.f32 %v7963_v15, %v4639_v21  ;;  %v4641_v59 = vpop.f32.mrb[71].mxu0  ;;  %v8540_v5 = vpop.f32.mrb[96].mxu1 }
 0x1a7   :  { %9241 = vst [vmem:[#allocation50_spill] sm:$0xff] %v8540_v5  ;;  %v8543_v49 = vadd.f32 %v7971_v7, %v4641_v59  ;;  %v5287_v0 = vpop.f32.mrb[97].mxu1 }
 0x1a8   :  { %9240 = vst [vmem:[#allocation49_spill] sm:$0xff] %v8538_v3 }
 0x1a9   :  { %9242 = vst [vmem:[#allocation51_spill] sm:$0xff] %v8543_v49  ;;  %v4645_v31 = vpop.f32.mrb[72].mxu0 }
 0x1aa   :  { %v8546_v56 = vadd.f32 %v7987_v48, %v4645_v31  ;;  %v4647_v6 = vpop.f32.mrb[73].mxu0  ;;  %v8548_v62 = vpop.f32.mrb[98].mxu1 }
 0x1ab   :  { %9244 = vst [vmem:[#allocation53_spill] sm:$0xff] %v8548_v62  ;;  %v8551_v35 = vadd.f32 %v7996_v32, %v4647_v6  ;;  %v5292_v19 = vpop.f32.mrb[99].mxu1 }
 0x1ac   :  { %9243 = vst [vmem:[#allocation52_spill] sm:$0xff] %v8546_v56 }
 0x1ad   :  { %9245 = vst [vmem:[#allocation54_spill] sm:$0xff] %v8551_v35  ;;  %v4651_v15 = vpop.f32.mrb[74].mxu0 }
 0x1ae   :  { %v8554_v29 = vadd.f32 %v8006_v22, %v4651_v15  ;;  %v4653_v16 = vpop.f32.mrb[75].mxu0  ;;  %v8556_v39 = vpop.f32.mrb[100].mxu1 }
 0x1af   :  { %9247 = vst [vmem:[#allocation56_spill] sm:$0xff] %v8556_v39  ;;  %v8559_v7 = vadd.f32 %v8015_v60, %v4653_v16  ;;  %v5297_v38 = vpop.f32.mrb[101].mxu1  ;;  %v9302_v39 = vld [vmem:[#allocation38_spill] sm:$0xff] }
 0x1b0   :  { %9246 = vst [vmem:[#allocation55_spill] sm:$0xff] %v8554_v29 }
 0x1b1   :  { %9248 = vst [vmem:[#allocation57_spill] sm:$0xff] %v8559_v7  ;;  %v4657_v48 = vpop.f32.mrb[76].mxu0 }
 0x1b2   :  { %v8562_v57 = vadd.f32 %v8026_v51, %v4657_v48  ;;  %v4659_v4 = vpop.f32.mrb[77].mxu0  ;;  %v8564_v21 = vpop.f32.mrb[102].mxu1 }
 0x1b3   :  { %9250 = vst [vmem:[#allocation59_spill] sm:$0xff] %v8564_v21  ;;  %v8567_v32 = vadd.f32 %v8033_v13, %v4659_v4  ;;  %v5302_v59 = vpop.f32.mrb[103].mxu1 }
 0x1b4   :  { %9249 = vst [vmem:[#allocation58_spill] sm:$0xff] %v8562_v57 }
 0x1b5   :  { %9251 = vst [vmem:[#allocation60_spill] sm:$0xff] %v8567_v32  ;;  %v4663_v22 = vpop.f32.mrb[78].mxu0 }
 0x1b6   :  { %v8570_v0 = vadd.f32 %v8043_v12, %v4663_v22  ;;  %v4665_v31 = vpop.f32.mrb[79].mxu0  ;;  %v8572_v6 = vpop.f32.mrb[104].mxu1 }
 0x1b7   :  { %9253 = vst [vmem:[#allocation62_spill] sm:$0xff] %v8572_v6  ;;  %v8575_v60 = vadd.f32 %v8050_v30, %v4665_v31  ;;  %v5307_v19 = vpop.f32.mrb[105].mxu1  ;;  %v9260_v30 = vld [vmem:[#allocation23_spill] sm:$0xff] }
 0x1b8   :  { %9252 = vst [vmem:[#allocation61_spill] sm:$0xff] %v8570_v0 }
 0x1b9   :  { %9254 = vst [vmem:[#allocation63_spill] sm:$0xff] %v8575_v60  ;;  %v4669_v51 = vpop.f32.mrb[80].mxu0 }
 0x1ba   :  { %v8578_v15 = vadd.f32 %v8060_v34, %v4669_v51  ;;  %v4671_v16 = vpop.f32.mrb[81].mxu0  ;;  %v8580_v38 = vpop.f32.mrb[106].mxu1  ;;  %v9262_v51 = vld [vmem:[#allocation24_spill] sm:$0xff] }
 0x1bb   :  { %9256 = vst [vmem:[#allocation65_spill] sm:$0xff] %v8580_v38  ;;  %v8583_v13 = vadd.f32 %v8067_v42, %v4671_v16  ;;  %v5312_v48 = vpop.f32.mrb[107].mxu1  ;;  %v9264_v42 = vld [vmem:[#allocation25_spill] sm:$0xff]  ;;  %v9300_v38 = vld [vmem:[#allocation36_spill] sm:$0xff] }
 0x1bc   :  { %9255 = vst [vmem:[#allocation64_spill] sm:$0xff] %v8578_v15 }
 0x1bd   :  { %9257 = vst [vmem:[#allocation66_spill] sm:$0xff] %v8583_v13  ;;  %v4675_v12 = vpop.f32.mrb[82].mxu0 }
 0x1be   :  { %v8586_v4 = vadd.f32 %v8077_v53, %v4675_v12  ;;  %v4677_v59 = vpop.f32.mrb[83].mxu0  ;;  %v8588_v22 = vpop.f32.mrb[108].mxu1  ;;  %v9265_v12 = vld [vmem:[#allocation26_spill] sm:$0xff] }
 0x1bf   :  { %9259 = vst [vmem:[#allocation68_spill] sm:$0xff] %v8588_v22  ;;  %v8591_v31 = vadd.f32 %v9260_v30, %v4677_v59  ;;  %v5317_v19 = vpop.f32.mrb[109].mxu1  ;;  %v9267_v59 = vld [vmem:[#allocation27_spill] sm:$0xff] }
 0x1c0   :  { %9258 = vst [vmem:[#allocation67_spill] sm:$0xff] %v8586_v4 }
 0x1c1   :  { %9261 = vst [vmem:[#allocation23_spill] sm:$0xff] %v8591_v31  ;;  %v4681_v34 = vpop.f32.mrb[84].mxu0 }
 0x1c2   :  { %v8594_v15 = vadd.f32 %v9262_v51, %v4681_v34  ;;  %v4683_v60 = vpop.f32.mrb[85].mxu0  ;;  %v8596_v0 = vpop.f32.mrb[110].mxu1  ;;  %v9269_v51 = vld [vmem:[#allocation28_spill] sm:$0xff] }
 0x1c3   :  { %9263 = vst [vmem:[#allocation24_spill] sm:$0xff] %v8596_v0  ;;  %v8599_v16 = vadd.f32 %v9264_v42, %v4683_v60  ;;  %v5322_v48 = vpop.f32.mrb[111].mxu1  ;;  %v9272_v60 = vld [vmem:[#allocation29_spill] sm:$0xff] }
 0x1c5   :  { %v4687_v53 = vpop.f32.mrb[86].mxu0 }
 0x1c6   :  { %v8602_v4 = vadd.f32 %v9265_v12, %v4687_v53  ;;  %v4689_v13 = vpop.f32.mrb[87].mxu0  ;;  %v8604_v32 = vpop.f32.mrb[112].mxu1  ;;  %v9274_v12 = vld [vmem:[#allocation30_spill] sm:$0xff] }
 0x1c7   :  { %9266 = vst [vmem:[#allocation25_spill] sm:$0xff] %v8604_v32  ;;  %v8607_v30 = vadd.f32 %v9267_v59, %v4689_v13  ;;  %v5327_v19 = vpop.f32.mrb[113].mxu1  ;;  %v9277_v13 = vld [vmem:[#allocation31_spill] sm:$0xff] }
 0x1c9   :  { %9268 = vst [vmem:[#allocation26_spill] sm:$0xff] %v8607_v30  ;;  %v4693_v34 = vpop.f32.mrb[88].mxu0 }
 0x1ca   :  { %v8610_v31 = vadd.f32 %v9269_v51, %v4693_v34  ;;  %v4695_v57 = vpop.f32.mrb[89].mxu0  ;;  %v8612_v7 = vpop.f32.mrb[114].mxu1  ;;  %v9279_v51 = vld [vmem:[#allocation32_spill] sm:$0xff] }
 0x1cb   :  { %9271 = vst [vmem:[#allocation28_spill] sm:$0xff] %v8612_v7  ;;  %v8615_v42 = vadd.f32 %v9272_v60, %v4695_v57  ;;  %v5332_v48 = vpop.f32.mrb[115].mxu1  ;;  %v9282_v57 = vld [vmem:[#allocation33_spill] sm:$0xff] }
 0x1cc   :  { %9270 = vst [vmem:[#allocation27_spill] sm:$0xff] %v8610_v31  ;;  %v9304_v31 = vld [vmem:[#allocation40_spill] sm:$0xff] }
 0x1cd   :  { %9273 = vst [vmem:[#allocation29_spill] sm:$0xff] %v8615_v42  ;;  %v4699_v53 = vpop.f32.mrb[90].mxu0  ;;  %v9303_v42 = vld [vmem:[#allocation41_spill] sm:$0xff] }
 0x1ce   :  { %v8618_v29 = vadd.f32 %v9274_v12, %v4699_v53  ;;  %v4701_v35 = vpop.f32.mrb[91].mxu0  ;;  %v8620_v32 = vpop.f32.mrb[116].mxu1  ;;  %v9284_v12 = vld [vmem:[#allocation34_spill] sm:$0xff] }
 0x1cf   :  { %9276 = vst [vmem:[#allocation69_spill] sm:$0xff] %v8620_v32  ;;  %v8623_v59 = vadd.f32 %v9277_v13, %v4701_v35  ;;  %v5337_v19 = vpop.f32.mrb[117].mxu1  ;;  %v9287_v35 = vld [vmem:[#allocation35_spill] sm:$0xff] }
 0x1d0   :  { %9275 = vst [vmem:[#allocation30_spill] sm:$0xff] %v8618_v29 }
 0x1d1   :  { %9278 = vst [vmem:[#allocation31_spill] sm:$0xff] %v8623_v59  ;;  %v4705_v34 = vpop.f32.mrb[92].mxu0 }
 0x1d2   :  { %v8626_v56 = vadd.f32 %v9279_v51, %v4705_v34  ;;  %v4707_v7 = vpop.f32.mrb[93].mxu0  ;;  %v8628_v49 = vpop.f32.mrb[118].mxu1 }
 0x1d3   :  { %9281 = vst [vmem:[#allocation70_spill] sm:$0xff] %v8628_v49  ;;  %v8631_v60 = vadd.f32 %v9282_v57, %v4707_v7  ;;  %v5342_v48 = vpop.f32.mrb[119].mxu1 }
 0x1d4   :  { %9280 = vst [vmem:[#allocation32_spill] sm:$0xff] %v8626_v56 }
 0x1d5   :  { %9283 = vst [vmem:[#allocation33_spill] sm:$0xff] %v8631_v60  ;;  %v4711_v53 = vpop.f32.mrb[94].mxu0 }
 0x1d6   :  { %v8634_v22 = vadd.f32 %v9284_v12, %v4711_v53  ;;  %v4713_v32 = vpop.f32.mrb[95].mxu0  ;;  %v8636_v3 = vpop.f32.mrb[120].mxu1 }
 0x1d7   :  { %9286 = vst [vmem:[#allocation71_spill] sm:$0xff] %v8636_v3  ;;  %v8639_v13 = vadd.f32 %v9287_v35, %v4713_v32  ;;  %v5347_v19 = vpop.f32.mrb[121].mxu1 }
 0x1d8   :  { %9285 = vst [vmem:[#allocation34_spill] sm:$0xff] %v8634_v22 }
 0x1d9   :  { %9288 = vst [vmem:[#allocation35_spill] sm:$0xff] %v8639_v13  ;;  %v8641_v34 = vpop.f32.mrb[0].mxu0 }
 0x1da   :  { %v8643_v51 = vpop.f32.mrb[1].mxu0  ;;  %v8645_v49 = vpop.f32.mrb[122].mxu1 }
 0x1db   :  { %9289 = vst [vmem:[#allocation72_spill] sm:$0xff] %v8645_v49  ;;  %v5352_v7 = vpop.f32.mrb[123].mxu1 }
 0x1dd   :  { %v8647_v57 = vpop.f32.mrb[2].mxu0 }
 0x1de   :  { %v8649_v48 = vpop.f32.mrb[3].mxu0  ;;  %v8651_v53 = vpop.f32.mrb[124].mxu1 }
 0x1df   :  { %9290 = vst [vmem:[#allocation73_spill] sm:$0xff] %v8651_v53  ;;  %v5357_v12 = vpop.f32.mrb[125].mxu1 }
 0x1e1   :  { %v8653_v22 = vpop.f32.mrb[4].mxu0 }
 0x1e2   :  { %v8655_v3 = vpop.f32.mrb[5].mxu0  ;;  %v8657_v32 = vpop.f32.mrb[126].mxu1 }
 0x1e3   :  { %9291 = vst [vmem:[#allocation74_spill] sm:$0xff] %v8657_v32  ;;  %v5362_v35 = vpop.f32.mrb[127].mxu1 }
 0x1e4   :  { %v9299_v35 = vld [vmem:[#allocation37_spill] sm:$0xff] }
 0x1e5   :  { %v8659_v19 = vpop.f32.mrb[6].mxu0 }
 0x1e6   :  { %v8661_v13 = vpop.f32.mrb[7].mxu0  ;;  %v8663_v49 = vpop.f32.mrb[128].mxu1 }
 0x1e7   :  { %9292 = vst [vmem:[#allocation75_spill] sm:$0xff] %v8661_v13  ;;  %9293 = vst [vmem:[#allocation76_spill] sm:$0xff] %v8663_v49  ;;  %v5367_v7 = vpop.f32.mrb[129].mxu1 }
 0x1e9   :  { %v8665_v0 = vpop.f32.mrb[8].mxu0 }
 0x1ea   :  { %9294 = vst [vmem:[#allocation77_spill] sm:$0xff] %v8665_v0  ;;  %v8667_v60 = vpop.f32.mrb[9].mxu0  ;;  %v8669_v53 = vpop.f32.mrb[130].mxu1 }
 0x1eb   :  { %9295 = vst [vmem:[#allocation78_spill] sm:$0xff] %v8667_v60  ;;  %9296 = vst [vmem:[#allocation79_spill] sm:$0xff] %v8669_v53  ;;  %v5372_v12 = vpop.f32.mrb[131].mxu1 }
 0x1ed   :  { %v8671_v56 = vpop.f32.mrb[10].mxu0 }
 0x1ee   :  { %9297 = vst [vmem:[#allocation80_spill] sm:$0xff] %v8671_v56  ;;  %v6241_v41 = vpop.f32.mrb[132].mxu1  ;;  %v8673_v6 = vpop.f32.mrb[11].mxu0 }
 0x1ef   :  { %9298 = vst [vmem:[#allocation81_spill] sm:$0xff] %v8673_v6  ;;  %v8676_v32 = vadd.f32 %v6241_v41, %v9299_v35  ;;  %v5440_v1 = vpop.f32.mrb[133].mxu1 }
 0x1f0   :  { %v8679_v59 = vadd.f32 %v5440_v1, %v9300_v38 }
 0x1f1   :  { %v8681_v7 = vpop.f32.mrb[12].mxu0 }
 0x1f2   :  { %v6244_v49 = vpop.f32.mrb[134].mxu1  ;;  %v8683_v29 = vpop.f32.mrb[13].mxu0 }
 0x1f3   :  { %v8686_v53 = vadd.f32 %v6244_v49, %v9301_v50  ;;  %v5450_v12 = vpop.f32.mrb[135].mxu1 }
 0x1f4   :  { %v8689_v52 = vadd.f32 %v5450_v12, %v9302_v39 }
 0x1f5   :  { %v8691_v21 = vpop.f32.mrb[14].mxu0 }
 0x1f6   :  { %v6247_v41 = vpop.f32.mrb[136].mxu1  ;;  %v8693_v35 = vpop.f32.mrb[15].mxu0 }
 0x1f7   :  { %v8696_v1 = vadd.f32 %v6247_v41, %v9303_v42  ;;  %v5460_v38 = vpop.f32.mrb[137].mxu1 }
 0x1f8   :  { %v8699_v2 = vadd.f32 %v5460_v38, %v9304_v31 }
 0x1f9   :  { %v8701_v5 = vpop.f32.mrb[16].mxu0 }
 0x1fa   :  { %9305 = vst [vmem:[#allocation37_spill] sm:$0xff] %v8701_v5  ;;  %v6250_v50 = vpop.f32.mrb[138].mxu1  ;;  %v8703_v49 = vpop.f32.mrb[17].mxu0 }
 0x1fb   :  { %9306 = vst [vmem:[#allocation36_spill] sm:$0xff] %v8703_v49  ;;  %v8706_v39 = vadd.f32 %v6250_v50, %v8388_v17  ;;  %v5470_v12 = vpop.f32.mrb[139].mxu1 }
 0x1fc   :  { %v8709_v62 = vadd.f32 %v5470_v12, %v9307_v26 }
 0x1fd   :  { %v8711_v30 = vpop.f32.mrb[18].mxu0 }
 0x1fe   :  { %9308 = vst [vmem:[#allocation39_spill] sm:$0xff] %v8711_v30  ;;  %v6253_v42 = vpop.f32.mrb[140].mxu1  ;;  %v8713_v41 = vpop.f32.mrb[19].mxu0 }
 0x1ff   :  { %9309 = vst [vmem:[#allocation38_spill] sm:$0xff] %v8713_v41  ;;  %v8716_v31 = vadd.f32 %v6253_v42, %v8406_v14  ;;  %v5480_v38 = vpop.f32.mrb[141].mxu1 }
 0x200   :  { %v8719_v5 = vadd.f32 %v5480_v38, %v8398_v25 }
 0x201   :  { %v8721_v49 = vpop.f32.mrb[20].mxu0 }
 0x202   :  { %9310 = vst [vmem:[#allocation41_spill] sm:$0xff] %v8721_v49  ;;  %v6256_v17 = vpop.f32.mrb[142].mxu1  ;;  %v8723_v50 = vpop.f32.mrb[21].mxu0 }
 0x203   :  { %v8726_v26 = vadd.f32 %v6256_v17, %v8422_v28  ;;  %v5490_v12 = vpop.f32.mrb[143].mxu1 }
 0x204   :  { %v8729_v30 = vadd.f32 %v5490_v12, %v8414_v36 }
 0x205   :  { %v8731_v41 = vpop.f32.mrb[22].mxu0 }
 0x206   :  { %9311 = vst [vmem:[#allocation40_spill] sm:$0xff] %v8731_v41  ;;  %v6259_v14 = vpop.f32.mrb[144].mxu1  ;;  %v8733_v42 = vpop.f32.mrb[23].mxu0 }
 0x207   :  { %9312 = vst [vmem:[#allocation42_spill] sm:$0xff] %v8733_v42  ;;  %v8736_v25 = vadd.f32 %v6259_v14, %v8439_v44  ;;  %v5500_v38 = vpop.f32.mrb[145].mxu1 }
 0x208   :  { %v8739_v49 = vadd.f32 %v5500_v38, %v8431_v11 }
 0x209   :  { %v5694_v28 = vmax.f32 %v8676_v32, %v8736_v25  ;;  %v8743_v17 = vpop.f32.mrb[24].mxu0 }
 0x20a   :  { %v6262_v41 = vpop.f32.mrb[146].mxu1  ;;  %v8749_v42 = vpop.f32.mrb[25].mxu0 }
 0x20b   :  { %9313 = vst [vmem:[#allocation82_spill] sm:$0xff] %v8749_v42  ;;  %v8752_v44 = vadd.f32 %v6262_v41, %v8455_v46  ;;  %v5510_v14 = vpop.f32.mrb[147].mxu1 }
 0x20c   :  { %v8757_v32 = vadd.f32 %v5510_v14, %v8447_v8 }
 0x20d   :  { %v8761_v38 = vpop.f32.mrb[26].mxu0 }
 0x20e   :  { %9314 = vst [vmem:[#allocation83_spill] sm:$0xff] %v8761_v38  ;;  %v6265_v46 = vpop.f32.mrb[148].mxu1  ;;  %v8767_v41 = vpop.f32.mrb[27].mxu0 }
 0x20f   :  { %9315 = vst [vmem:[#allocation84_spill] sm:$0xff] %v8767_v41  ;;  %v8770_v11 = vadd.f32 %v6265_v46, %v8471_v55  ;;  %v5520_v14 = vpop.f32.mrb[149].mxu1 }
 0x210   :  { %v8775_v25 = vadd.f32 %v5520_v14, %v8463_v18 }
 0x211   :  { %v8779_v12 = vpop.f32.mrb[28].mxu0 }
 0x212   :  { %9316 = vst [vmem:[#allocation85_spill] sm:$0xff] %v8779_v12  ;;  %v6268_v55 = vpop.f32.mrb[150].mxu1  ;;  %v8785_v46 = vpop.f32.mrb[29].mxu0 }
 0x213   :  { %9317 = vst [vmem:[#allocation86_spill] sm:$0xff] %v8785_v46  ;;  %v8788_v8 = vadd.f32 %v6268_v55, %v8485_v33  ;;  %v5530_v14 = vpop.f32.mrb[151].mxu1 }
 0x214   :  { %v8793_v42 = vadd.f32 %v5530_v14, %v8479_v45 }
 0x215   :  { %v8797_v36 = vpop.f32.mrb[30].mxu0 }
 0x216   :  { %9318 = vst [vmem:[#allocation87_spill] sm:$0xff] %v8797_v36  ;;  %v6271_v33 = vpop.f32.mrb[152].mxu1  ;;  %v8803_v55 = vpop.f32.mrb[31].mxu0 }
 0x217   :  { %9319 = vst [vmem:[#allocation88_spill] sm:$0xff] %v8803_v55  ;;  %v8806_v18 = vadd.f32 %v6271_v33, %v8489_v47  ;;  %v5540_v14 = vpop.f32.mrb[153].mxu1  ;;  %v9322_v55 = vlaneseq }
 0x218   :  { %v8811_v41 = vadd.f32 %v5540_v14, %v8487_v54 }
 0x219   :  { %v8815_v38 = vpop.f32.mrb[32].mxu0  ;;  %v8832_v13 = vshrl.u32 %v9322_v55, 7 }
 0x21a   :  { %9320 = vst [vmem:[#allocation89_spill] sm:$0xff] %v8815_v38  ;;  %v6274_v47 = vpop.f32.mrb[154].mxu1  ;;  %v8821_v33 = vpop.f32.mrb[33].mxu0 }
 0x21b   :  { %9321 = vst [vmem:[#allocation90_spill] sm:$0xff] %v8821_v33  ;;  %v8824_v45 = vadd.f32 %v6274_v47, %v8493_v61  ;;  %v5550_v14 = vpop.f32.mrb[155].mxu1  ;;  %v5791_v12 = vsub.s32 0, %v8832_v13  ;;  %v8854_v61 = vld [vmem:[%s9185_s1] sm:$0x7]  ;;  %v5795_v38 = vsub.s32 1, %v8832_v13 }
 0x21c   :  { %v8829_v46 = vadd.f32 %v5550_v14, %v8491_v63 }
 0x21d   :  { %v8836_v36 = vpop.f32.mrb[34].mxu0 }
 0x21e   :  { %9323 = vst [vmem:[#allocation91_spill] sm:$0xff] %v8836_v36  ;;  %v6277_v47 = vpop.f32.mrb[156].mxu1  ;;  %v8842_v54 = vpop.f32.mrb[35].mxu0  ;;  %v8867_v36 = vrot.slane %v8854_v61, %v5791_v12 }
 0x21f   :  { %9324 = vst [vmem:[#allocation92_spill] sm:$0xff] %v8842_v54  ;;  %v5566_v63 = vadd.f32 %v6277_v47, %v8500_v24  ;;  %v5560_v14 = vpop.f32.mrb[157].mxu1  ;;  %v9325_v24 = vmax.f32 %v8679_v59, %v8739_v49  ;;  %v9326_v59 = vmax.f32 %v8686_v53, %v8752_v44 }
 0x220   :  { %v5561_v33 = vadd.f32 %v5560_v14, %v8495_v9 }
 0x221   :  { %v8849_v60 = vmax.f32 %v5694_v28, %v5566_v63  ;;  %v4890_v0 = vpop.f32.mrb[36].mxu0 }
 0x222   :  { %v8860_v47 = vmax.f32 %v9325_v24, %v5561_v33  ;;  %v5733_v55 = vmax.f32 %v8681_v7, %v4890_v0  ;;  %v6280_v9 = vpop.f32.mrb[158].mxu1  ;;  %v4892_v14 = vpop.f32.mrb[37].mxu0  ;;  %v8877_v7 = vrot.slane %v8854_v61, %v5795_v38  ;;  %v9329_v24 = vmax.f32 %v8699_v2, %v8775_v25 }
 0x223   :  { %v5576_v28 = vadd.f32 %v6280_v9, %v8516_v37  ;;  %v5736_v63 = vmax.f32 %v8683_v29, %v4892_v14  ;;  %v5570_v54 = vpop.f32.mrb[159].mxu1 }
 0x224   :  { %v5734_v6 = vmax.f32 %v5733_v55, %v8498_v40  ;;  %v5571_v56 = vadd.f32 %v5570_v54, %v8508_v58  ;;  %v9327_v40 = vmax.f32 %v8689_v52, %v8757_v32 }
 0x225   :  { %v8873_v49 = vmax.f32 %v9326_v59, %v5576_v28  ;;  %v5737_v0 = vmax.f32 %v5736_v63, %v8503_v43  ;;  %v4896_v37 = vpop.f32.mrb[38].mxu0  ;;  %v9331_v59 = vld [vmem:[#allocation26_spill] sm:$0xff] }
 0x226   :  { %v5735_v29 = vmax.f32 %v5734_v6, %v8594_v15  ;;  %v8883_v12 = vmax.f32 %v9327_v40, %v5571_v56  ;;  %v5742_v58 = vmax.f32 %v8691_v21, %v4896_v37  ;;  %v6283_v33 = vpop.f32.mrb[160].mxu1  ;;  %v4898_v54 = vpop.f32.mrb[39].mxu0  ;;  %v9328_v56 = vmax.f32 %v8696_v1, %v8770_v11  ;;  %v9332_v11 = vld [vmem:[#allocation53_spill] sm:$0xff]  ;;  %v9333_v37 = vld [vmem:[#allocation36_spill] sm:$0xff]  ;;  %v9335_v40 = vld [vmem:[#allocation50_spill] sm:$0xff] }
 0x227   :  { %v5738_v53 = vmax.f32 %v5737_v0, %v8599_v16  ;;  %v5586_v44 = vadd.f32 %v6283_v33, %v8532_v20  ;;  %v5745_v43 = vmax.f32 %v8693_v35, %v4898_v54  ;;  %v5580_v38 = vpop.f32.mrb[161].mxu1  ;;  %v9336_v54 = vmax.f32 %v8706_v39, %v8788_v8  ;;  %v9342_v8 = vld [vmem:[#allocation59_spill] sm:$0xff] }
 0x228   :  { %v5822_v55 = vadd.f32 %v8867_v36, %v5735_v29  ;;  %v5743_v6 = vmax.f32 %v5742_v58, %v8506_v10  ;;  %v5581_v15 = vadd.f32 %v5580_v38, %v8524_v23  ;;  %v9330_v10 = vld [vmem:[#allocation37_spill] sm:$0xff] }
 0x229   :  { %v5823_v52 = vadd.f32 %v8877_v7, %v5738_v53  ;;  %v8896_v21 = vmax.f32 %v9328_v56, %v5586_v44  ;;  %v5746_v16 = vmax.f32 %v5745_v43, %v8511_v27  ;;  %v4902_v32 = vpop.f32.mrb[40].mxu0  ;;  %v9337_v44 = vld [vmem:[#allocation44_spill] sm:$0xff] }
 0x22a   :  { %v5858_v20 = vmax.f32 %v5822_v55, 0.0  ;;  %v5744_v35 = vmax.f32 %v5743_v6, %v8602_v4  ;;  %v8903_v9 = vmax.f32 %v9329_v24, %v5581_v15  ;;  %v5751_v23 = vmax.f32 %v9330_v10, %v4902_v32  ;;  %v6286_v14 = vpop.f32.mrb[162].mxu1  ;;  %v4904_v28 = vpop.f32.mrb[41].mxu0  ;;  %v9334_v4 = vld [vmem:[#allocation43_spill] sm:$0xff]  ;;  %v9341_v10 = vld [vmem:[#allocation29_spill] sm:$0xff] }
 0x22b   :  { %v5859_v63 = vmax.f32 %v5823_v52, 0.0  ;;  %v5747_v1 = vmax.f32 %v5746_v16, %v9331_v59  ;;  %v5596_v0 = vadd.f32 %v6286_v14, %v9332_v11  ;;  %v5754_v27 = vmax.f32 %v9333_v37, %v4904_v28  ;;  %v5590_v29 = vpop.f32.mrb[163].mxu1  ;;  %v9338_v6 = vld [vmem:[#allocation27_spill] sm:$0xff]  ;;  %v9343_v14 = vld [vmem:[#allocation38_spill] sm:$0xff] }
 0x22c   :  { %5894 = vst [vmem:[%s9191_s7 + $0x90] sm:$0xff] %v5858_v20  ;;  %v5825_v2 = vadd.f32 %v8867_v36, %v5744_v35  ;;  %v5752_v25 = vmax.f32 %v5751_v23, %v9334_v4  ;;  %v5591_v58 = vadd.f32 %v5590_v29, %v9335_v40  ;;  %v9339_v52 = vmax.f32 %v8709_v62, %v8793_v42  ;;  %v9340_v16 = vld [vmem:[#allocation39_spill] sm:$0xff]  ;;  %v9344_v42 = vld [vmem:[#allocation45_spill] sm:$0xff]  ;;  %v9347_v29 = vld [vmem:[#allocation46_spill] sm:$0xff] }
 0x22d   :  { %5895 = vst [vmem:[%s9191_s7 + $0x98] sm:$0xff] %v5859_v63  ;;  %v5826_v33 = vadd.f32 %v8877_v7, %v5747_v1  ;;  %v8922_v53 = vmax.f32 %v9336_v54, %v5596_v0  ;;  %v5755_v43 = vmax.f32 %v5754_v27, %v9337_v44  ;;  %v4908_v38 = vpop.f32.mrb[42].mxu0  ;;  %v9345_v1 = vld [vmem:[#allocation56_spill] sm:$0xff]  ;;  %v9346_v37 = vmax.f32 %v8716_v31, %v8806_v18  ;;  %v9351_v18 = vld [vmem:[#allocation31_spill] sm:$0xff] }
 0x22e   :  { %v5861_v55 = vmax.f32 %v5825_v2, 0.0  ;;  %v5753_v15 = vmax.f32 %v5752_v25, %v9338_v6  ;;  %v8929_v56 = vmax.f32 %v9339_v52, %v5591_v58  ;;  %v5760_v32 = vmax.f32 %v9340_v16, %v4908_v38  ;;  %v6289_v20 = vpop.f32.mrb[164].mxu1  ;;  %v4910_v35 = vpop.f32.mrb[43].mxu0  ;;  %v9348_v58 = vld [vmem:[#allocation30_spill] sm:$0xff]  ;;  %v9352_v52 = vld [vmem:[#allocation65_spill] sm:$0xff] }
 0x22f   :  { %v5862_v24 = vmax.f32 %v5826_v33, 0.0  ;;  %v5756_v39 = vmax.f32 %v5755_v43, %v9341_v10  ;;  %v5606_v23 = vadd.f32 %v6289_v20, %v9342_v8  ;;  %v5763_v28 = vmax.f32 %v9343_v14, %v4910_v35  ;;  %v5600_v63 = vpop.f32.mrb[165].mxu1  ;;  %v9350_v43 = vld [vmem:[#allocation41_spill] sm:$0xff]  ;;  %v9354_v35 = vld [vmem:[#allocation62_spill] sm:$0xff]  ;;  %v9356_v8 = vld [vmem:[#allocation48_spill] sm:$0xff] }
 0x230   :  { %5897 = vst [vmem:[%s9191_s7 + $0xa8] sm:$0xff] %v5861_v55  ;;  %v5828_v62 = vadd.f32 %v8867_v36, %v5753_v15  ;;  %v5761_v59 = vmax.f32 %v5760_v32, %v9344_v42  ;;  %v5601_v11 = vadd.f32 %v5600_v63, %v9345_v1  ;;  %v5799_v25 = vsub.s32 2, %v8832_v13 }
 0x231   :  { %5898 = vst [vmem:[%s9191_s7 + $0xb0] sm:$0xff] %v5862_v24  ;;  %v5829_v0 = vadd.f32 %v8877_v7, %v5756_v39  ;;  %v8948_v27 = vmax.f32 %v9346_v37, %v5606_v23  ;;  %v5764_v2 = vmax.f32 %v5763_v28, %v9347_v29  ;;  %v4914_v4 = vpop.f32.mrb[44].mxu0  ;;  %v9349_v54 = vmax.f32 %v8719_v5, %v8811_v41  ;;  %v9353_v41 = vld [vmem:[#allocation47_spill] sm:$0xff]  ;;  %v9360_v29 = vld [vmem:[#allocation33_spill] sm:$0xff] }
 0x232   :  { %v5864_v40 = vmax.f32 %v5828_v62, 0.0  ;;  %v5762_v33 = vmax.f32 %v5761_v59, %v9348_v58  ;;  %v5769_v38 = vmax.f32 %v9350_v43, %v4914_v4  ;;  %v6292_v55 = vpop.f32.mrb[166].mxu1  ;;  %v4916_v6 = vpop.f32.mrb[45].mxu0  ;;  %v8979_v28 = vrot.slane %v8854_v61, %v5799_v25  ;;  %v9357_v62 = vld [vmem:[#allocation32_spill] sm:$0xff]  ;;  %v9362_v58 = vld [vmem:[#allocation42_spill] sm:$0xff] }
 0x233   :  { %v8956_v44 = vmax.f32 %v9349_v54, %v5601_v11  ;;  %v5865_v31 = vmax.f32 %v5829_v0, 0.0  ;;  %v5765_v15 = vmax.f32 %v5764_v2, %v9351_v18  ;;  %v5616_v16 = vadd.f32 %v6292_v55, %v9352_v52  ;;  %v5610_v13 = vpop.f32.mrb[167].mxu1  ;;  %v9359_v11 = vld [vmem:[#allocation40_spill] sm:$0xff]  ;;  %v9366_v52 = vld [vmem:[#allocation34_spill] sm:$0xff] }
 0x234   :  { %v5772_v32 = vmax.f32 %v8723_v50, %v4916_v6  ;;  %5900 = vst [vmem:[%s9191_s7 + $0xc0] sm:$0xff] %v5864_v40  ;;  %v5831_v5 = vadd.f32 %v8867_v36, %v5762_v33  ;;  %v5770_v20 = vmax.f32 %v5769_v38, %v9353_v41  ;;  %v5611_v24 = vadd.f32 %v5610_v13, %v9354_v35  ;;  %v9361_v4 = vld [vmem:[#allocation24_spill] sm:$0xff]  ;;  %v9365_v6 = vld [vmem:[#allocation51_spill] sm:$0xff] }
 0x235   :  { %5901 = vst [vmem:[%s9191_s7 + $0xc8] sm:$0xff] %v5865_v31  ;;  %v5832_v10 = vadd.f32 %v8877_v7, %v5765_v15  ;;  %v9355_v50 = vmax.f32 %v8726_v26, %v8824_v45  ;;  %v4920_v14 = vpop.f32.mrb[46].mxu0  ;;  %v9358_v59 = vmax.f32 %v8729_v30, %v8829_v46  ;;  %v9363_v46 = vld [vmem:[#allocation49_spill] sm:$0xff]  ;;  %v9364_v54 = vld [vmem:[#allocation68_spill] sm:$0xff]  ;;  %v9367_v13 = vmax.f32 %v8641_v34, %v8743_v17 }
 0x236   :  { %v5773_v23 = vmax.f32 %v5772_v32, %v9356_v8  ;;  %v5867_v63 = vmax.f32 %v5831_v5, 0.0  ;;  %v5771_v42 = vmax.f32 %v5770_v20, %v9357_v62  ;;  %v5778_v0 = vmax.f32 %v9359_v11, %v4920_v14  ;;  %v6295_v37 = vpop.f32.mrb[168].mxu1  ;;  %v4922_v26 = vpop.f32.mrb[47].mxu0  ;;  %v9370_v34 = vld [vmem:[#allocation52_spill] sm:$0xff] }
 0x237   :  { %v8975_v39 = vmax.f32 %v9355_v50, %v5616_v16  ;;  %v8985_v1 = vmax.f32 %v9358_v59, %v5611_v24  ;;  %v5868_v45 = vmax.f32 %v5832_v10, 0.0  ;;  %v5626_v40 = vadd.f32 %v6295_v37, %v9361_v4  ;;  %v5620_v25 = vpop.f32.mrb[169].mxu1  ;;  %v9368_v10 = vld [vmem:[#allocation35_spill] sm:$0xff]  ;;  %v9373_v37 = vld [vmem:[#allocation25_spill] sm:$0xff] }
 0x238   :  { %v5774_v2 = vmax.f32 %v5773_v23, %v9360_v29  ;;  %v5781_v61 = vmax.f32 %v9362_v58, %v4922_v26  ;;  %5903 = vst [vmem:[%s9191_s7 + $0xd8] sm:$0xff] %v5867_v63  ;;  %v5834_v30 = vadd.f32 %v8867_v36, %v5771_v42  ;;  %v5779_v33 = vmax.f32 %v5778_v0, %v9363_v46  ;;  %v9371_v63 = vld [vmem:[#allocation82_spill] sm:$0xff]  ;;  %v9375_v46 = vld [vmem:[#allocation83_spill] sm:$0xff] }
 0x239   :  { %v5621_v43 = vadd.f32 %v5620_v25, %v9364_v54  ;;  %5904 = vst [vmem:[%s9191_s7 + $0xe0] sm:$0xff] %v5868_v45  ;;  %v5696_v55 = vmax.f32 %v8849_v60, %v5626_v40  ;;  %v4926_v18 = vpop.f32.mrb[48].mxu0  ;;  %v9369_v60 = vld [vmem:[#allocation28_spill] sm:$0xff]  ;;  %v9372_v62 = vmax.f32 %v8643_v51, %v9371_v63  ;;  %v9374_v40 = vld [vmem:[#allocation54_spill] sm:$0xff] }
 0x23a   :  { %v5835_v38 = vadd.f32 %v8877_v7, %v5774_v2  ;;  %v5782_v31 = vmax.f32 %v5781_v61, %v9365_v6  ;;  %v5870_v15 = vmax.f32 %v5834_v30, 0.0  ;;  %v5780_v16 = vmax.f32 %v5779_v33, %v9366_v52  ;;  %v6298_v41 = vpop.f32.mrb[170].mxu1  ;;  %v4928_v20 = vpop.f32.mrb[49].mxu0  ;;  %v9377_v6 = vld [vmem:[#allocation70_spill] sm:$0xff] }
 0x23b   :  { %v5687_v32 = vmax.f32 %v8860_v47, %v5621_v43  ;;  %v5680_v5 = vmax.f32 %v9367_v13, %v4926_v18  ;;  %v5809_v24 = vadd.f32 %v8979_v28, %v5696_v55  ;;  %v5636_v8 = vadd.f32 %v6298_v41, %v9369_v60  ;;  %v5630_v23 = vpop.f32.mrb[171].mxu1  ;;  %v9381_v13 = vld [vmem:[#allocation69_spill] sm:$0xff] }
 0x23c   :  { %v5871_v35 = vmax.f32 %v5835_v38, 0.0  ;;  %v5783_v50 = vmax.f32 %v5782_v31, %v9368_v10  ;;  %5906 = vst [vmem:[%s9191_s7 + $0xf0] sm:$0xff] %v5870_v15  ;;  %v5837_v47 = vadd.f32 %v8867_v36, %v5780_v16  ;;  %v5683_v42 = vmax.f32 %v9372_v62, %v4928_v20  ;;  %v9380_v16 = vld [vmem:[#allocation55_spill] sm:$0xff]  ;;  %v9383_v10 = vld [vmem:[#allocation85_spill] sm:$0xff] }
 0x23d   :  { %v5806_v14 = vadd.f32 %v8979_v28, %v5687_v32  ;;  %v5681_v17 = vmax.f32 %v5680_v5, %v9370_v34  ;;  %v5845_v59 = vmax.f32 %v5809_v24, 0.0  ;;  %v5714_v0 = vmax.f32 %v8873_v49, %v5636_v8  ;;  %v4932_v45 = vpop.f32.mrb[50].mxu0 }
 0x23e   :  { %5907 = vst [vmem:[%s9191_s7 + $0xf8] sm:$0xff] %v5871_v35  ;;  %v5838_v11 = vadd.f32 %v8877_v7, %v5783_v50  ;;  %v5631_v26 = vadd.f32 %v5630_v23, %v9373_v37  ;;  %v5873_v29 = vmax.f32 %v5837_v47, 0.0  ;;  %v5684_v58 = vmax.f32 %v5683_v42, %v9374_v40  ;;  %v6301_v51 = vpop.f32.mrb[172].mxu1  ;;  %v4934_v61 = vpop.f32.mrb[51].mxu0  ;;  %v9382_v35 = vld [vmem:[#allocation57_spill] sm:$0xff]  ;;  %v9386_v42 = vld [vmem:[#allocation58_spill] sm:$0xff] }
 0x23f   :  { %v5842_v2 = vmax.f32 %v5806_v14, 0.0  ;;  %v5804_v4 = vadd.f32 %v8867_v36, %v5681_v17  ;;  %5881 = vst [vmem:[%s9191_s7 + $0x28] sm:$0xff] %v5845_v59  ;;  %v5815_v30 = vadd.f32 %v8979_v28, %v5714_v0  ;;  %v9376_v33 = vmax.f32 %v8647_v57, %v9375_v46  ;;  %v5640_v43 = vpop.f32.mrb[173].mxu1  ;;  %v9385_v17 = vld [vmem:[#allocation72_spill] sm:$0xff] }
 0x240   :  { %v5874_v25 = vmax.f32 %v5838_v11, 0.0  ;;  %v5705_v49 = vmax.f32 %v8883_v12, %v5631_v26  ;;  %5909 = vst [vmem:[%s9191_s7 + $0x108] sm:$0xff] %v5873_v29  ;;  %v5805_v55 = vadd.f32 %v8877_v7, %v5684_v58  ;;  %v5646_v31 = vadd.f32 %v6301_v51, %v9377_v6  ;;  %v9378_v12 = vld [vmem:[#allocation84_spill] sm:$0xff]  ;;  %v9387_v11 = vld [vmem:[#allocation86_spill] sm:$0xff]  ;;  %v9389_v29 = vld [vmem:[#allocation71_spill] sm:$0xff] }
 0x241   :  { %v5689_v54 = vmax.f32 %v9376_v33, %v4932_v45  ;;  %5878 = vst [vmem:[%s9191_s7 + $0x10] sm:$0xff] %v5842_v2  ;;  %v5840_v38 = vmax.f32 %v5804_v4, 0.0  ;;  %v9379_v18 = vmax.f32 %v8649_v48, %v9378_v12  ;;  %v5851_v57 = vmax.f32 %v5815_v30, 0.0  ;;  %v4938_v41 = vpop.f32.mrb[52].mxu0  ;;  %v9391_v33 = vld [vmem:[#allocation87_spill] sm:$0xff] }
 0x242   :  { %5910 = vst [vmem:[%s9191_s7 + $0x110] sm:$0xff] %v5874_v25  ;;  %v5812_v52 = vadd.f32 %v8979_v28, %v5705_v49  ;;  %v5641_v5 = vadd.f32 %v5640_v43, %v9381_v13  ;;  %v5841_v20 = vmax.f32 %v5805_v55, 0.0  ;;  %v5732_v48 = vmax.f32 %v8896_v21, %v5646_v31  ;;  %v6304_v8 = vpop.f32.mrb[174].mxu1  ;;  %v4940_v23 = vpop.f32.mrb[53].mxu0  ;;  %v9393_v31 = vld [vmem:[#allocation74_spill] sm:$0xff]  ;;  %v9398_v13 = vld [vmem:[#allocation73_spill] sm:$0xff] }
 0x243   :  { %v5692_v15 = vmax.f32 %v9379_v18, %v4934_v61  ;;  %v5690_v32 = vmax.f32 %v5689_v54, %v9380_v16  ;;  %5876 = vst [vmem:[%s9191_s7] sm:$0xff] %v5840_v38  ;;  %v9384_v50 = vmax.f32 %v8653_v22, %v9383_v10  ;;  %5887 = vst [vmem:[%s9191_s7 + $0x58] sm:$0xff] %v5851_v57  ;;  %v5650_v21 = vpop.f32.mrb[175].mxu1  ;;  %v9390_v61 = vld [vmem:[#allocation60_spill] sm:$0xff]  ;;  %v9394_v18 = vld [vmem:[#allocation75_spill] sm:$0xff] }
 0x244   :  { %v5848_v47 = vmax.f32 %v5812_v52, 0.0  ;;  %v5723_v34 = vmax.f32 %v8903_v9, %v5641_v5  ;;  %v5656_v63 = vadd.f32 %v6304_v8, %v9385_v17  ;;  %5877 = vst [vmem:[%s9191_s7 + $0x8] sm:$0xff] %v5841_v20  ;;  %v5821_v22 = vadd.f32 %v8979_v28, %v5732_v48  ;;  %v9397_v16 = vld [vmem:[#allocation61_spill] sm:$0xff] }
 0x245   :  { %v5693_v24 = vmax.f32 %v5692_v15, %v9382_v35  ;;  %v5698_v60 = vmax.f32 %v9384_v50, %v4938_v41  ;;  %v5807_v14 = vadd.f32 %v8867_v36, %v5690_v32  ;;  %v9388_v0 = vmax.f32 %v8655_v3, %v9387_v11  ;;  %v4944_v4 = vpop.f32.mrb[54].mxu0  ;;  %v9399_v35 = vld [vmem:[#allocation63_spill] sm:$0xff]  ;;  %v9400_v10 = vld [vmem:[#allocation77_spill] sm:$0xff]  ;;  %v9405_v11 = vld [vmem:[#allocation78_spill] sm:$0xff] }
 0x246   :  { %5884 = vst [vmem:[%s9191_s7 + $0x40] sm:$0xff] %v5848_v47  ;;  %v5818_v26 = vadd.f32 %v8979_v28, %v5723_v34  ;;  %v5750_v45 = vmax.f32 %v8922_v53, %v5656_v63  ;;  %v5651_v2 = vadd.f32 %v5650_v21, %v9389_v29  ;;  %v5857_v40 = vmax.f32 %v5821_v22, 0.0  ;;  %v6307_v3 = vpop.f32.mrb[176].mxu1  ;;  %v4946_v30 = vpop.f32.mrb[55].mxu0  ;;  %v9401_v50 = vld [vmem:[#allocation89_spill] sm:$0xff]  ;;  %v9403_v63 = vld [vmem:[#allocation79_spill] sm:$0xff] }
 0x247   :  { %v5808_v62 = vadd.f32 %v8877_v7, %v5693_v24  ;;  %v5699_v59 = vmax.f32 %v5698_v60, %v9386_v42  ;;  %v5701_v37 = vmax.f32 %v9388_v0, %v4940_v23  ;;  %v5843_v9 = vmax.f32 %v5807_v14, 0.0  ;;  %v5660_v38 = vpop.f32.mrb[177].mxu1  ;;  %v9404_v42 = vld [vmem:[#allocation64_spill] sm:$0xff]  ;;  %v9406_v0 = vld [vmem:[#allocation90_spill] sm:$0xff] }
 0x248   :  { %v5854_v49 = vmax.f32 %v5818_v26, 0.0  ;;  %v5827_v46 = vadd.f32 %v8979_v28, %v5750_v45  ;;  %v5741_v53 = vmax.f32 %v8929_v56, %v5651_v2  ;;  %v9392_v54 = vmax.f32 %v8659_v19, %v9391_v33  ;;  %5893 = vst [vmem:[%s9191_s7 + $0x88] sm:$0xff] %v5857_v40  ;;  %v9395_v56 = vld [vmem:[#allocation88_spill] sm:$0xff] }
 0x249   :  { %v5844_v58 = vmax.f32 %v5808_v62, 0.0  ;;  %v5810_v51 = vadd.f32 %v8867_v36, %v5699_v59  ;;  %v5702_v25 = vmax.f32 %v5701_v37, %v9390_v61  ;;  %5879 = vst [vmem:[%s9191_s7 + $0x18] sm:$0xff] %v5843_v9  ;;  %v5666_v12 = vadd.f32 %v6307_v3, %v9393_v31  ;;  %v4950_v41 = vpop.f32.mrb[56].mxu0  ;;  %v9408_v29 = vld [vmem:[#allocation76_spill] sm:$0xff]  ;;  %v9409_v61 = vld [vmem:[#allocation66_spill] sm:$0xff] }
 0x24a   :  { %v5707_v43 = vmax.f32 %v9392_v54, %v4944_v4  ;;  %v9396_v15 = vmax.f32 %v9394_v18, %v9395_v56  ;;  %5890 = vst [vmem:[%s9191_s7 + $0x70] sm:$0xff] %v5854_v49  ;;  %v5863_v19 = vmax.f32 %v5827_v46, 0.0  ;;  %v5824_v52 = vadd.f32 %v8979_v28, %v5741_v53  ;;  %v6310_v23 = vpop.f32.mrb[178].mxu1  ;;  %v4952_v47 = vpop.f32.mrb[57].mxu0  ;;  %v9411_v53 = vld [vmem:[#allocation91_spill] sm:$0xff] }
 0x24b   :  { %5880 = vst [vmem:[%s9191_s7 + $0x20] sm:$0xff] %v5844_v58  ;;  %v5846_v55 = vmax.f32 %v5810_v51, 0.0  ;;  %v5811_v6 = vadd.f32 %v8877_v7, %v5702_v25  ;;  %v5661_v5 = vadd.f32 %v5660_v38, %v9398_v13  ;;  %v5768_v48 = vmax.f32 %v8948_v27, %v5666_v12  ;;  %v5670_v27 = vpop.f32.mrb[179].mxu1  ;;  %v9416_v56 = vld [vmem:[#allocation67_spill] sm:$0xff] }
 0x24c   :  { %v5710_v57 = vmax.f32 %v9396_v15, %v4946_v30  ;;  %v5708_v32 = vmax.f32 %v5707_v43, %v9397_v16  ;;  %v9402_v60 = vmax.f32 %v9400_v10, %v9401_v50  ;;  %5899 = vst [vmem:[%s9191_s7 + $0xb8] sm:$0xff] %v5863_v19  ;;  %v5860_v14 = vmax.f32 %v5824_v52, 0.0  ;;  %v9417_v19 = vld [vmem:[#allocation23_spill] sm:$0xff] }
 0x24d   :  { %5882 = vst [vmem:[%s9191_s7 + $0x30] sm:$0xff] %v5846_v55  ;;  %v5847_v20 = vmax.f32 %v5811_v6, 0.0  ;;  %v5759_v17 = vmax.f32 %v8956_v44, %v5661_v5  ;;  %v5676_v21 = vadd.f32 %v6310_v23, %v9403_v63  ;;  %v5833_v22 = vadd.f32 %v8979_v28, %v5768_v48  ;;  %v4956_v4 = vpop.f32.mrb[58].mxu0  ;;  %v9413_v55 = vld [vmem:[#allocation81_spill] sm:$0xff]  ;;  %v9414_v6 = vld [vmem:[#allocation92_spill] sm:$0xff] }
 0x24e   :  { %v5711_v24 = vmax.f32 %v5710_v57, %v9399_v35  ;;  %v5716_v8 = vmax.f32 %v9402_v60, %v4950_v41  ;;  %v5813_v34 = vadd.f32 %v8867_v36, %v5708_v32  ;;  %v9407_v37 = vmax.f32 %v9405_v11, %v9406_v0  ;;  %5896 = vst [vmem:[%s9191_s7 + $0xa0] sm:$0xff] %v5860_v14  ;;  %v4958_v3 = vpop.f32.mrb[59].mxu0 }
 0x24f   :  { %5883 = vst [vmem:[%s9191_s7 + $0x38] sm:$0xff] %v5847_v20  ;;  %v5830_v26 = vadd.f32 %v8979_v28, %v5759_v17  ;;  %v5786_v45 = vmax.f32 %v8975_v39, %v5676_v21  ;;  %v5671_v2 = vadd.f32 %v5670_v27, %v9408_v29  ;;  %v5869_v40 = vmax.f32 %v5833_v22, 0.0  ;;  %v9410_v39 = vld [vmem:[#allocation80_spill] sm:$0xff] }
 0x250   :  { %v5814_v62 = vadd.f32 %v8877_v7, %v5711_v24  ;;  %v5717_v59 = vmax.f32 %v5716_v8, %v9404_v42  ;;  %v5719_v9 = vmax.f32 %v9407_v37, %v4952_v47  ;;  %v5849_v44 = vmax.f32 %v5813_v34, 0.0 }
 0x251   :  { %v5866_v30 = vmax.f32 %v5830_v26, 0.0  ;;  %v5839_v49 = vadd.f32 %v8979_v28, %v5786_v45  ;;  %v5777_v46 = vmax.f32 %v8985_v1, %v5671_v2  ;;  %v9412_v33 = vmax.f32 %v9410_v39, %v9411_v53  ;;  %5905 = vst [vmem:[%s9191_s7 + $0xe8] sm:$0xff] %v5869_v40 }
 0x252   :  { %v5850_v58 = vmax.f32 %v5814_v62, 0.0  ;;  %v5816_v51 = vadd.f32 %v8867_v36, %v5717_v59  ;;  %v5720_v25 = vmax.f32 %v5719_v9, %v9409_v61  ;;  %5885 = vst [vmem:[%s9191_s7 + $0x48] sm:$0xff] %v5849_v44  ;;  %v9415_v31 = vmax.f32 %v9413_v55, %v9414_v6 }
 0x253   :  { %v5725_v54 = vmax.f32 %v9412_v33, %v4956_v4  ;;  %5902 = vst [vmem:[%s9191_s7 + $0xd0] sm:$0xff] %v5866_v30  ;;  %v5875_v1 = vmax.f32 %v5839_v49, 0.0  ;;  %v5836_v18 = vadd.f32 %v8979_v28, %v5777_v46 }
 0x254   :  { %5886 = vst [vmem:[%s9191_s7 + $0x50] sm:$0xff] %v5850_v58  ;;  %v5852_v43 = vmax.f32 %v5816_v51, 0.0  ;;  %v5817_v38 = vadd.f32 %v8877_v7, %v5720_v25  ;;  %v5728_v12 = vmax.f32 %v9415_v31, %v4958_v3 }
 0x255   :  { %v5726_v15 = vmax.f32 %v5725_v54, %v9416_v56  ;;  %5911 = vst [vmem:[%s9191_s7 + $0x118] sm:$0xff] %v5875_v1  ;;  %v5872_v16 = vmax.f32 %v5836_v18, 0.0 }
 0x256   :  { %5888 = vst [vmem:[%s9191_s7 + $0x60] sm:$0xff] %v5852_v43  ;;  %v5853_v57 = vmax.f32 %v5817_v38, 0.0  ;;  %v5729_v52 = vmax.f32 %v5728_v12, %v9417_v19 }
 0x257   :  { %v5819_v32 = vadd.f32 %v8867_v36, %v5726_v15  ;;  %5908 = vst [vmem:[%s9191_s7 + $0x100] sm:$0xff] %v5872_v16 }
 0x258   :  { %5889 = vst [vmem:[%s9191_s7 + $0x68] sm:$0xff] %v5853_v57  ;;  %v5820_v28 = vadd.f32 %v8877_v7, %v5729_v52 }
 0x259   :  { %v5855_v13 = vmax.f32 %v5819_v32, 0.0 }
 0x25a   :  { %v5856_v5 = vmax.f32 %v5820_v28, 0.0 }
 0x25b   :  { %5891 = vst [vmem:[%s9191_s7 + $0x78] sm:$0xff] %v5855_v13 }
 0x25c   :  { %5892 = vst [vmem:[%s9191_s7 + $0x80] sm:$0xff] %v5856_v5 }

// kernel: _lambda_.5
= control target key start
LH: loop header
LB: loop body
LE: loop exit
PB: predicated region body
PF: predicated region fallthrough
CT: control target
= control target key end

     0   :  { %v261_v0 = vmov 0   ;;  %v262_v5 = vmov 1966171168   ;;  %v16_v7 = vlaneseq  ;;  %vm65_vm0 = vcmask 11264   ;;  %s332_s1 = inlined_call_operand.vmem [shape: f32[4,1,1], index: 1, kind: input, shape index: {}]   ;;  %s333_s0 = inlined_call_operand.vmem [shape: f32[4,2], index: 0, kind: input, shape index: {}]   ;;  %s334_s2 = inlined_call_operand.vmem [shape: f32[4,4,2], index: 2, kind: output, shape index: {}]  }
   0x1   :  { %244 = vset.pattern.permute.xlu1 %v261_v0  ;;  %243 = vset.pattern.permute.xlu0 %v261_v0  ;;  %v239_v1 = vld [vmem:[%s332_s1 + $0x2] ss:$0 sm:$0xff]  ;;  %v237_v2 = vld [vmem:[%s332_s1] ss:$0 sm:$0xff]  ;;  %v240_v3 = vld [vmem:[%s332_s1 + $0x3] ss:$0 sm:$0xff]  ;;  %v14_v6 = vunpack.c.l.s4 %v262_v5 }
   0x2   :  { %127 = vperm.xlu1 %244, %v239_v1   ;;  %119 = vperm.xlu0 %243, %v237_v2   ;;  %v238_v4 = vld [vmem:[%s332_s1 + $0x1] ss:$0 sm:$0xff]  ;;  %v17_v9 = vshrl.u32 %v16_v7, 7  ;;  %vm142_vm1 = vcmask 1041409   ;;  %vm144_vm2 = vcmask 1042434   ;;  %vm146_vm3 = vcmask 1043459  }
   0x3   :  { %v15_v8 = vunpack.c.0.s8 %v14_v6  ;;  %v293_v11 = vld [vmem:[%s333_s0] sm:$0xf] }
   0x4   :  { %v39_v15 = vsub.s32 0, %v17_v9 }
   0x5   :  { %v18_v10 = vsub.s32 %v15_v8, %v17_v9 }
   0x6   :  { %131 = vperm.xlu1 %244, %v240_v3   ;;  %123 = vperm.xlu0 %243, %v238_v4  }
   0x7   :  { %v19_v12 = vrot.slane %v293_v11, %v18_v10 }
   0x9   :  { %v20_v13 = vcombine.high %v19_v12, %v19_v12  ;;  %v27_v14 = vrot.slane %v19_v12, %v18_v10 }
   0xb   :  { %v34_v16 = vrot.slane %v20_v13, %v18_v10  ;;  %v35_v17 = vcombine.high %v27_v14, %v27_v14  ;;  %v40_v18 = vrot.slane %v27_v14, %v39_v15 }
   0xd   :  { %v44_v19 = vrot.slane %v34_v16, %v39_v15  ;;  %v36_v20 = vcombine.high %v34_v16, %v34_v16  ;;  %v48_v21 = vrot.slane %v35_v17, %v39_v15  ;;  %v57_v22 = vsub.f32 %v40_v18, %v293_v11 }
   0xf   :  { %v58_v23 = vsub.f32 %v44_v19, %v293_v11  ;;  %v52_v24 = vrot.slane %v36_v20, %v39_v15  ;;  %v59_v25 = vsub.f32 %v48_v21, %v293_v11  ;;  %v61_v26 = vand.u32 2147483647, %v57_v22 }
  0x11   :  { %v62_v27 = vand.u32 2147483647, %v58_v23  ;;  %v60_v28 = vsub.f32 %v52_v24, %v293_v11  ;;  %v63_v29 = vand.u32 2147483647, %v59_v25  ;;  %v66_v30 = vsel %vm65_vm0, %v61_v26, 0.0 }
  0x12   :  { %v67_v33 = vrot.slane %v66_v30, 4 }
  0x13   :  { %v73_v31 = vsel %vm65_vm0, %v62_v27, 0.0  ;;  %v64_v32 = vand.u32 2147483647, %v60_v28  ;;  %v80_v35 = vsel %vm65_vm0, %v63_v29, 0.0 }
  0x14   :  { %v74_v34 = vrot.slane %v73_v31, 4  ;;  %v81_v36 = vrot.slane %v80_v35, 4  ;;  %v68_v38 = vadd.f32 %v67_v33, %v66_v30 }
  0x15   :  { %v87_v37 = vsel %vm65_vm0, %v64_v32, 0.0 }
  0x16   :  { %v75_v39 = vadd.f32 %v74_v34, %v73_v31  ;;  %v88_v40 = vrot.slane %v87_v37, 4  ;;  %v82_v41 = vadd.f32 %v81_v36, %v80_v35  ;;  %v69_v42 = vrot.slane %v68_v38, 2 }
  0x18   :  { %v76_v43 = vrot.slane %v75_v39, 2  ;;  %v89_v44 = vadd.f32 %v88_v40, %v87_v37  ;;  %v83_v45 = vrot.slane %v82_v41, 2  ;;  %v70_v46 = vadd.f32 %v69_v42, %v68_v38 }
  0x1a   :  { %v77_v47 = vadd.f32 %v76_v43, %v75_v39  ;;  %v90_v48 = vrot.slane %v89_v44, 2  ;;  %v84_v49 = vadd.f32 %v83_v45, %v82_v41  ;;  %v71_v50 = vrot.slane %v70_v46, 1 }
  0x1c   :  { %v78_v51 = vrot.slane %v77_v47, 1  ;;  %v91_v52 = vadd.f32 %v90_v48, %v89_v44  ;;  %v85_v53 = vrot.slane %v84_v49, 1  ;;  %v72_v54 = vadd.f32 %v71_v50, %v70_v46 }
  0x1e   :  { %v79_v55 = vadd.f32 %v78_v51, %v77_v47  ;;  %v92_v56 = vrot.slane %v91_v52, 1  ;;  %v86_v57 = vadd.f32 %v85_v53, %v84_v49 }
  0x20   :  { %v143_v58 = vsel %vm142_vm1, %v79_v55, %v72_v54  ;;  %v93_v59 = vadd.f32 %v92_v56, %v91_v52 }
  0x21   :  { %v145_v60 = vsel %vm144_vm2, %v86_v57, %v143_v58 }
  0x22   :  { %v147_v62 = vsel %vm146_vm3, %v93_v59, %v145_v60 }
  0x81   :  { %v128_v61 = vpop.permute.xlu1 %127  ;;  %v120_v63 = vpop.permute.xlu0 %119 }
  0x82   :  { %v136_v0 = vmul.f32 %v128_v61, %v293_v11  ;;  %v134_v1 = vmul.f32 %v120_v63, %v293_v11 }
  0x84   :  { %v151_v2 = vsub.f32 %v136_v0, %v147_v62  ;;  %v149_v3 = vsub.f32 %v134_v1, %v147_v62 }
  0x85   :  { %v132_v4 = vpop.permute.xlu1 %131  ;;  %v124_v5 = vpop.permute.xlu0 %123 }
  0x86   :  { %v167_v6 = vsel %vm65_vm0, %v151_v2, -inf  ;;  %v153_v7 = vsel %vm65_vm0, %v149_v3, -inf  ;;  %v137_v8 = vmul.f32 %v132_v4, %v293_v11  ;;  %v135_v9 = vmul.f32 %v124_v5, %v293_v11 }
  0x87   :  { %v168_v10 = vrot.slane %v167_v6, 4  ;;  %v154_v12 = vrot.slane %v153_v7, 4 }
  0x88   :  { %v152_v13 = vsub.f32 %v137_v8, %v147_v62  ;;  %v150_v14 = vsub.f32 %v135_v9, %v147_v62 }
  0x89   :  { %v169_v15 = vmax.f32 %v167_v6, %v168_v10  ;;  %v155_v16 = vmax.f32 %v153_v7, %v154_v12 }
  0x8a   :  { %v174_v17 = vsel %vm65_vm0, %v152_v13, -inf  ;;  %v160_v18 = vsel %vm65_vm0, %v150_v14, -inf }
  0x8b   :  { %v170_v19 = vrot.slane %v169_v15, 2  ;;  %v156_v20 = vrot.slane %v155_v16, 2  ;;  %v175_v21 = vrot.slane %v174_v17, 4  ;;  %v161_v22 = vrot.slane %v160_v18, 4 }
  0x8d   :  { %v171_v23 = vmax.f32 %v169_v15, %v170_v19  ;;  %v157_v24 = vmax.f32 %v155_v16, %v156_v20  ;;  %v176_v25 = vmax.f32 %v174_v17, %v175_v21  ;;  %v162_v26 = vmax.f32 %v160_v18, %v161_v22 }
  0x8f   :  { %v172_v27 = vrot.slane %v171_v23, 1  ;;  %v158_v11 = vrot.slane %v157_v24, 1  ;;  %v177_v28 = vrot.slane %v176_v25, 2  ;;  %v163_v29 = vrot.slane %v162_v26, 2 }
  0x91   :  { %v173_v30 = vmax.f32 %v171_v23, %v172_v27  ;;  %v159_v31 = vmax.f32 %v157_v24, %v158_v11  ;;  %v178_v32 = vmax.f32 %v176_v25, %v177_v28  ;;  %v164_v33 = vmax.f32 %v162_v26, %v163_v29 }
  0x93   :  { %v183_v34 = vsub.f32 %v151_v2, %v173_v30  ;;  %v181_v35 = vsub.f32 %v149_v3, %v159_v31  ;;  %v179_v36 = vrot.slane %v178_v32, 1  ;;  %v165_v37 = vrot.slane %v164_v33, 1 }
  0x95   :  { %v189_v38 = vmul.f32 1.442695, %v183_v34  ;;  %v185_v39 = vmul.f32 1.442695, %v181_v35  ;;  %v180_v40 = vmax.f32 %v178_v32, %v179_v36  ;;  %v166_v41 = vmax.f32 %v164_v33, %v165_v37 }
  0x97   :  { %245 = vpow2.f32 %v189_v38  ;;  %v184_v42 = vsub.f32 %v152_v13, %v180_v40  ;;  %v182_v43 = vsub.f32 %v150_v14, %v166_v41 }
  0x98   :  { %247 = vpow2.f32 %v185_v39 }
  0x99   :  { %v191_v44 = vmul.f32 1.442695, %v184_v42  ;;  %v187_v45 = vmul.f32 1.442695, %v182_v43 }
  0x9b   :  { %249 = vpow2.f32 %v191_v44 }
  0x9c   :  { %251 = vpow2.f32 %v187_v45 }
  0xa1   :  { %v246_v46 = vpop.eup %245 }
  0xa2   :  { %v248_v47 = vpop.eup %247  ;;  %v207_v48 = vsel %vm65_vm0, %v246_v46, 0.0 }
  0xa3   :  { %v208_v49 = vrot.slane %v207_v48, 4  ;;  %v193_v50 = vsel %vm65_vm0, %v248_v47, 0.0 }
  0xa4   :  { %v194_v51 = vrot.slane %v193_v50, 4 }
  0xa5   :  { %v250_v52 = vpop.eup %249  ;;  %v209_v53 = vadd.f32 %v208_v49, %v207_v48 }
  0xa6   :  { %v252_v54 = vpop.eup %251  ;;  %v195_v55 = vadd.f32 %v194_v51, %v193_v50  ;;  %v214_v56 = vsel %vm65_vm0, %v250_v52, 0.0 }
  0xa7   :  { %v210_v57 = vrot.slane %v209_v53, 2  ;;  %v215_v58 = vrot.slane %v214_v56, 4  ;;  %v200_v59 = vsel %vm65_vm0, %v252_v54, 0.0 }
  0xa8   :  { %v196_v60 = vrot.slane %v195_v55, 2  ;;  %v201_v61 = vrot.slane %v200_v59, 4 }
  0xa9   :  { %v211_v62 = vadd.f32 %v210_v57, %v209_v53  ;;  %v216_v63 = vadd.f32 %v215_v58, %v214_v56 }
  0xaa   :  { %v197_v0 = vadd.f32 %v196_v60, %v195_v55  ;;  %v202_v1 = vadd.f32 %v201_v61, %v200_v59 }
  0xab   :  { %v212_v2 = vrot.slane %v211_v62, 1  ;;  %v217_v3 = vrot.slane %v216_v63, 2 }
  0xac   :  { %v198_v4 = vrot.slane %v197_v0, 1  ;;  %v203_v5 = vrot.slane %v202_v1, 2 }
  0xad   :  { %v213_v6 = vadd.f32 %v212_v2, %v211_v62  ;;  %v218_v7 = vadd.f32 %v217_v3, %v216_v63 }
  0xae   :  { %v199_v8 = vadd.f32 %v198_v4, %v197_v0  ;;  %v204_v9 = vadd.f32 %v203_v5, %v202_v1 }
  0xaf   :  { %253 = vrcp.f32 %v213_v6  ;;  %v219_v10 = vrot.slane %v218_v7, 1 }
  0xb0   :  { %255 = vrcp.f32 %v199_v8  ;;  %v205_v12 = vrot.slane %v204_v9, 1 }
  0xb1   :  { %v220_v13 = vadd.f32 %v219_v10, %v218_v7 }
  0xb2   :  { %v206_v14 = vadd.f32 %v205_v12, %v204_v9 }
  0xb3   :  { %257 = vrcp.f32 %v220_v13 }
  0xb4   :  { %259 = vrcp.f32 %v206_v14 }
  0xb9   :  { %v254_v15 = vpop.eup %253 }
  0xba   :  { %v256_v16 = vpop.eup %255  ;;  %v226_v17 = vmul.f32 %v254_v15, %v246_v46 }
  0xbb   :  { %v222_v18 = vmul.f32 %v256_v16, %v248_v47 }
  0xbc   :  { %231 = vst.msk [vmem:[%s334_s2 + $0x8] sm:$0xf] %vm65_vm0, %v226_v17 }
  0xbd   :  { %v258_v19 = vpop.eup %257  ;;  %229 = vst.msk [vmem:[%s334_s2] sm:$0xf] %vm65_vm0, %v222_v18 }
  0xbe   :  { %v260_v20 = vpop.eup %259  ;;  %v228_v21 = vmul.f32 %v258_v19, %v250_v52 }
  0xbf   :  { %v224_v22 = vmul.f32 %v260_v20, %v252_v54 }
  0xc0   :  { %232 = vst.msk [vmem:[%s334_s2 + $0xc] sm:$0xf] %vm65_vm0, %v228_v21 }
  0xc1   :  { %230 = vst.msk [vmem:[%s334_s2 + $0x4] sm:$0xf] %vm65_vm0, %v224_v22 }

// kernel: _lambda_.4
= control target key start
LH: loop header
LB: loop body
LE: loop exit
PB: predicated region body
PF: predicated region fallthrough
CT: control target
= control target key end

     0   :  { %v8263_v0 = vmov 0.0|0.0   ;;  %vm576_vm0 = vcmask 261120   ;;  %vm2309_vm1 = vcmask 523264   ;;  %vm5231_vm2 = vmmov 0   ;;  %s8255_s1 = inlined_call_operand.vmem [shape: f32[800,64], index: 1, kind: input, shape index: {}]   ;;  %s8256_s0 = inlined_call_operand.vmem [shape: f32[4,16,8,800], index: 0, kind: input, shape index: {}]   ;;  %s8257_s3 = inlined_call_operand.vmem [shape: f32[16,64,64], index: 3, kind: input, shape index: {}]   ;;  %s8258_s2 = inlined_call_operand.vmem [shape: f32[1,1,64], index: 2, kind: input, shape index: {}]   ;;  %s8259_s6 = inlined_call_operand.<no memory space> [shape: f32[1,1], index: 6, kind: input, shape index: {}]   ;;  %s8260_s4 = inlined_call_operand.vmem [shape: f32[1,64], index: 4, kind: input, shape index: {}]   ;;  %s8261_s5 = inlined_call_operand.vmem [shape: f32[1,64], index: 5, kind: input, shape index: {}]   ;;  %s8262_s7 = inlined_call_operand.vmem [shape: f32[8,1], index: 7, kind: output, shape index: {}]  }
   0x1   :  { %4644 = vmatprep.subr.bf16.mxu0 %v8263_v0  ;;  %v476_v1 = vld [vmem:[%s8255_s1] sm:$0xff]  ;;  %v477_v2 = vld [vmem:[%s8255_s1 + $0x8] sm:$0xff]  ;;  %v478_v3 = vld [vmem:[%s8255_s1 + $0x10] sm:$0xff]  ;;  %4988 = vmatprep.subr.bf16.mxu1 %v8263_v0  ;;  %vm3814_vm3 = vcmask 7168  }
   0x2   :  { %v4645_v4 = vpack.c.bf16 %v477_v2, %v476_v1  ;;  %v479_v5 = vld [vmem:[%s8255_s1 + $0x18] sm:$0xff]  ;;  %v480_v7 = vld [vmem:[%s8255_s1 + $0x20] sm:$0xff]  ;;  %v481_v8 = vld [vmem:[%s8255_s1 + $0x28] sm:$0xff] }
   0x3   :  { %v4648_v6 = vpack.c.bf16 %v479_v5, %v478_v3  ;;  %v4651_v9 = vpack.c.bf16 %v481_v8, %v480_v7  ;;  %v482_v10 = vld [vmem:[%s8255_s1 + $0x30] sm:$0xff]  ;;  %v483_v11 = vld [vmem:[%s8255_s1 + $0x38] sm:$0xff]  ;;  %v29_v12 = vld [vmem:[%s8256_s0 + $0x8] sm:$0xff] }
   0x4   :  { %4646 = vmatpush1.bf16.msra.mxu0 %v4645_v4  ;;  %v4654_v13 = vpack.c.bf16 %v483_v11, %v482_v10  ;;  %833 = vmatprep.mubr.f32.mxu0 %v29_v12  ;;  %v484_v14 = vld [vmem:[%s8255_s1 + $0x40] sm:$0xff]  ;;  %v485_v15 = vld [vmem:[%s8255_s1 + $0x48] sm:$0xff]  ;;  %v486_v17 = vld [vmem:[%s8255_s1 + $0x50] sm:$0xff] }
   0x5   :  { %4647 = vmatprep.subr.bf16.mxu0 %v8263_v0  ;;  %v4657_v16 = vpack.c.bf16 %v485_v15, %v484_v14  ;;  %v487_v18 = vld [vmem:[%s8255_s1 + $0x58] sm:$0xff]  ;;  %v540_v19 = vld [vmem:[%s8255_s1 + $0x200] sm:$0xff]  ;;  %v541_v20 = vld [vmem:[%s8255_s1 + $0x208] sm:$0xff] }
   0x6   :  { %v5324_v21 = vpack.c.bf16 %v541_v20, %v540_v19  ;;  %v4660_v22 = vpack.c.bf16 %v487_v18, %v486_v17  ;;  %v542_v23 = vld [vmem:[%s8255_s1 + $0x210] sm:$0xff]  ;;  %v543_v24 = vld [vmem:[%s8255_s1 + $0x218] sm:$0xff]  ;;  %v488_v25 = vld [vmem:[%s8255_s1 + $0x60] sm:$0xff] }
   0x7   :  { %v489_v26 = vld [vmem:[%s8255_s1 + $0x68] sm:$0xff]  ;;  %v5340_v27 = vpack.c.bf16 %v543_v24, %v542_v23  ;;  %v544_v28 = vld [vmem:[%s8255_s1 + $0x220] sm:$0xff]  ;;  %v490_v31 = vld [vmem:[%s8255_s1 + $0x70] sm:$0xff] }
   0x8   :  { %4649 = vmatpush1.bf16.msra.mxu0 %v4648_v6  ;;  %5004 = vmatpush1.bf16.msra.mxu1 %v5324_v21  ;;  %v545_v29 = vld [vmem:[%s8255_s1 + $0x228] sm:$0xff]  ;;  %v4663_v30 = vpack.c.bf16 %v489_v26, %v488_v25  ;;  %v491_v32 = vld [vmem:[%s8255_s1 + $0x78] sm:$0xff]  ;;  %v546_v34 = vld [vmem:[%s8255_s1 + $0x230] sm:$0xff] }
   0x9   :  { %4650 = vmatprep.subr.bf16.mxu0 %v8263_v0  ;;  %4989 = vmatprep.subr.bf16.mxu1 %v8263_v0  ;;  %v5357_v33 = vpack.c.bf16 %v545_v29, %v544_v28  ;;  %v547_v35 = vld [vmem:[%s8255_s1 + $0x238] sm:$0xff]  ;;  %v4666_v36 = vpack.c.bf16 %v491_v32, %v490_v31  ;;  %v492_v37 = vld [vmem:[%s8255_s1 + $0x80] sm:$0xff]  ;;  %v493_v38 = vld [vmem:[%s8255_s1 + $0x88] sm:$0xff] }
   0xa   :  { %v5374_v39 = vpack.c.bf16 %v547_v35, %v546_v34  ;;  %v548_v40 = vld [vmem:[%s8255_s1 + $0x240] sm:$0xff]  ;;  %v549_v41 = vld [vmem:[%s8255_s1 + $0x248] sm:$0xff]  ;;  %v4669_v42 = vpack.c.bf16 %v493_v38, %v492_v37  ;;  %v494_v43 = vld [vmem:[%s8255_s1 + $0x90] sm:$0xff] }
   0xb   :  { %v495_v44 = vld [vmem:[%s8255_s1 + $0x98] sm:$0xff]  ;;  %v5391_v45 = vpack.c.bf16 %v549_v41, %v548_v40  ;;  %v550_v46 = vld [vmem:[%s8255_s1 + $0x250] sm:$0xff]  ;;  %v496_v49 = vld [vmem:[%s8255_s1 + $0xa0] sm:$0xff] }
   0xc   :  { %4652 = vmatpush1.bf16.msra.mxu0 %v4651_v9  ;;  %5005 = vmatpush1.bf16.msra.mxu1 %v5340_v27  ;;  %v551_v47 = vld [vmem:[%s8255_s1 + $0x258] sm:$0xff]  ;;  %v4672_v48 = vpack.c.bf16 %v495_v44, %v494_v43  ;;  %v497_v50 = vld [vmem:[%s8255_s1 + $0xa8] sm:$0xff]  ;;  %v552_v52 = vld [vmem:[%s8255_s1 + $0x260] sm:$0xff] }
   0xd   :  { %4653 = vmatprep.subr.bf16.mxu0 %v8263_v0  ;;  %4990 = vmatprep.subr.bf16.mxu1 %v8263_v0  ;;  %v5408_v51 = vpack.c.bf16 %v551_v47, %v550_v46  ;;  %v553_v53 = vld [vmem:[%s8255_s1 + $0x268] sm:$0xff]  ;;  %v4675_v54 = vpack.c.bf16 %v497_v50, %v496_v49  ;;  %v498_v55 = vld [vmem:[%s8255_s1 + $0xb0] sm:$0xff]  ;;  %v499_v56 = vld [vmem:[%s8255_s1 + $0xb8] sm:$0xff] }
   0xe   :  { %v5425_v57 = vpack.c.bf16 %v553_v53, %v552_v52  ;;  %v554_v58 = vld [vmem:[%s8255_s1 + $0x270] sm:$0xff]  ;;  %v555_v59 = vld [vmem:[%s8255_s1 + $0x278] sm:$0xff]  ;;  %v4678_v61 = vpack.c.bf16 %v499_v56, %v498_v55  ;;  %v500_v62 = vld [vmem:[%s8255_s1 + $0xc0] sm:$0xff] }
   0xf   :  { %v138_v60 = vld [vmem:[%s8256_s0 + $0x370] sm:$0xff]  ;;  %v501_v63 = vld [vmem:[%s8255_s1 + $0xc8] sm:$0xff]  ;;  %v5445_v1 = vpack.c.bf16 %v555_v59, %v554_v58  ;;  %v556_v2 = vld [vmem:[%s8255_s1 + $0x280] sm:$0xff] }
  0x10   :  { %4655 = vmatpush1.bf16.msra.mxu0 %v4654_v13  ;;  %5006 = vmatpush1.bf16.msra.mxu1 %v5357_v33  ;;  %v557_v3 = vld [vmem:[%s8255_s1 + $0x288] sm:$0xff]  ;;  %v4681_v4 = vpack.c.bf16 %v501_v63, %v500_v62  ;;  %v502_v5 = vld [vmem:[%s8255_s1 + $0xd0] sm:$0xff]  ;;  %v503_v6 = vld [vmem:[%s8255_s1 + $0xd8] sm:$0xff] }
  0x11   :  { %4656 = vmatprep.subr.bf16.mxu0 %v8263_v0  ;;  %4991 = vmatprep.subr.bf16.mxu1 %v8263_v0  ;;  %v5462_v7 = vpack.c.bf16 %v557_v3, %v556_v2  ;;  %v558_v8 = vld [vmem:[%s8255_s1 + $0x290] sm:$0xff]  ;;  %v559_v9 = vld [vmem:[%s8255_s1 + $0x298] sm:$0xff]  ;;  %v4684_v10 = vpack.c.bf16 %v503_v6, %v502_v5  ;;  %v504_v11 = vld [vmem:[%s8255_s1 + $0xe0] sm:$0xff] }
  0x12   :  { %1678 = vmatprep.mubr.f32.mxu1 %v138_v60  ;;  %v505_v12 = vld [vmem:[%s8255_s1 + $0xe8] sm:$0xff]  ;;  %v5479_v13 = vpack.c.bf16 %v559_v9, %v558_v8  ;;  %v560_v14 = vld [vmem:[%s8255_s1 + $0x2a0] sm:$0xff]  ;;  %v506_v17 = vld [vmem:[%s8255_s1 + $0xf0] sm:$0xff] }
  0x13   :  { %v561_v15 = vld [vmem:[%s8255_s1 + $0x2a8] sm:$0xff]  ;;  %v507_v18 = vld [vmem:[%s8255_s1 + $0xf8] sm:$0xff]  ;;  %v562_v20 = vld [vmem:[%s8255_s1 + $0x2b0] sm:$0xff] }
  0x14   :  { %4658 = vmatpush1.bf16.msra.mxu0 %v4657_v16  ;;  %5007 = vmatpush1.bf16.msra.mxu1 %v5374_v39  ;;  %v4687_v16 = vpack.c.bf16 %v505_v12, %v504_v11  ;;  %v5496_v19 = vpack.c.bf16 %v561_v15, %v560_v14  ;;  %v4690_v23 = vpack.c.bf16 %v507_v18, %v506_v17  ;;  %v508_v24 = vld [vmem:[%s8255_s1 + $0x100] sm:$0xff]  ;;  %v509_v25 = vld [vmem:[%s8255_s1 + $0x108] sm:$0xff]  ;;  %v510_v34 = vld [vmem:[%s8255_s1 + $0x110] sm:$0xff] }
  0x15   :  { %4659 = vmatprep.subr.bf16.mxu0 %v8263_v0  ;;  %4992 = vmatprep.subr.bf16.mxu1 %v8263_v0  ;;  %v564_v28 = vld [vmem:[%s8255_s1 + $0x2c0] sm:$0xff]  ;;  %v565_v29 = vld [vmem:[%s8255_s1 + $0x2c8] sm:$0xff]  ;;  %v4693_v31 = vpack.c.bf16 %v509_v25, %v508_v24  ;;  %v511_v35 = vld [vmem:[%s8255_s1 + $0x118] sm:$0xff] }
  0x16   :  { %v36_v32 = vld [vmem:[%s8256_s0 + $0x40] sm:$0xff]  ;;  %v566_v37 = vld [vmem:[%s8255_s1 + $0x2d0] sm:$0xff]  ;;  %v567_v38 = vld [vmem:[%s8255_s1 + $0x2d8] sm:$0xff]  ;;  %v4696_v41 = vpack.c.bf16 %v511_v35, %v510_v34 }
  0x17   :  { %v35_v40 = vld [vmem:[%s8256_s0 + $0x38] sm:$0xff]  ;;  %v512_v43 = vld [vmem:[%s8255_s1 + $0x120] sm:$0xff]  ;;  %v513_v44 = vld [vmem:[%s8255_s1 + $0x128] sm:$0xff]  ;;  %v5559_v46 = vpack.c.bf16 %v567_v38, %v566_v37 }
  0x18   :  { %4661 = vmatpush1.bf16.msra.mxu0 %v4660_v22  ;;  %5008 = vmatpush1.bf16.msra.mxu1 %v5391_v45  ;;  %v563_v22 = vld [vmem:[%s8255_s1 + $0x2b8] sm:$0xff]  ;;  %v568_v47 = vld [vmem:[%s8255_s1 + $0x2e0] sm:$0xff]  ;;  %v42_v49 = vld [vmem:[%s8256_s0 + $0x70] sm:$0xff]  ;;  %v4699_v50 = vpack.c.bf16 %v513_v44, %v512_v43 }
  0x19   :  { %4662 = vmatprep.subr.bf16.mxu0 %v8263_v0  ;;  %4993 = vmatprep.subr.bf16.mxu1 %v8263_v0  ;;  %v5513_v26 = vpack.c.bf16 %v563_v22, %v562_v20  ;;  %v50_v52 = vld [vmem:[%s8256_s0 + $0xb0] sm:$0xff]  ;;  %v571_v58 = vld [vmem:[%s8255_s1 + $0x2f8] sm:$0xff]  ;;  %v49_v59 = vld [vmem:[%s8256_s0 + $0xa8] sm:$0xff] }
  0x1a   :  { %v514_v53 = vld [vmem:[%s8255_s1 + $0x130] sm:$0xff]  ;;  %v516_v62 = vld [vmem:[%s8255_s1 + $0x140] sm:$0xff]  ;;  %v517_v63 = vld [vmem:[%s8255_s1 + $0x148] sm:$0xff] }
  0x1b   :  { %v570_v56 = vld [vmem:[%s8255_s1 + $0x2f0] sm:$0xff]  ;;  %v56_v3 = vld [vmem:[%s8256_s0 + $0xe0] sm:$0xff]  ;;  %v519_v8 = vld [vmem:[%s8255_s1 + $0x158] sm:$0xff] }
  0x1c   :  { %4664 = vmatpush1.bf16.msra.mxu0 %v4663_v30  ;;  %5009 = vmatpush1.bf16.msra.mxu1 %v5408_v51  ;;  %v28_v30 = vld [vmem:[%s8256_s0] sm:$0xff]  ;;  %v5605_v2 = vpack.c.bf16 %v571_v58, %v570_v56  ;;  %v518_v6 = vld [vmem:[%s8255_s1 + $0x150] sm:$0xff]  ;;  %v137_v9 = vld [vmem:[%s8256_s0 + $0x368] sm:$0xff] }
  0x1d   :  { %4665 = vmatprep.subr.bf16.mxu0 %v8263_v0  ;;  %4994 = vmatprep.subr.bf16.mxu1 %v8263_v0  ;;  %v64_v5 = vld [vmem:[%s8256_s0 + $0x120] sm:$0xff]  ;;  %v63_v11 = vld [vmem:[%s8256_s0 + $0x118] sm:$0xff]  ;;  %v4708_v12 = vpack.c.bf16 %v519_v8, %v518_v6  ;;  %v70_v20 = vld [vmem:[%s8256_s0 + $0x150] sm:$0xff] }
  0x1e   :  { %v71_v14 = vld [vmem:[%s8256_s0 + $0x158] sm:$0xff]  ;;  %v520_v15 = vld [vmem:[%s8255_s1 + $0x160] sm:$0xff]  ;;  %v522_v24 = vld [vmem:[%s8255_s1 + $0x170] sm:$0xff] }
  0x1f   :  { %v144_v17 = vld [vmem:[%s8256_s0 + $0x3a0] sm:$0xff]  ;;  %v523_v25 = vld [vmem:[%s8255_s1 + $0x178] sm:$0xff]  ;;  %v525_v35 = vld [vmem:[%s8255_s1 + $0x188] sm:$0xff] }
  0x20   :  { %4667 = vmatpush1.bf16.msra.mxu0 %v4666_v36  ;;  %5010 = vmatpush1.bf16.msra.mxu1 %v5425_v57  ;;  %v5536_v36 = vpack.c.bf16 %v565_v29, %v564_v28  ;;  %v152_v18 = vld [vmem:[%s8256_s0 + $0x3e0] sm:$0xff]  ;;  %v151_v28 = vld [vmem:[%s8256_s0 + $0x3d8] sm:$0xff]  ;;  %v158_v37 = vld [vmem:[%s8256_s0 + $0x410] sm:$0xff] }
  0x21   :  { %4668 = vmatprep.subr.bf16.mxu0 %v8263_v0  ;;  %4995 = vmatprep.subr.bf16.mxu1 %v8263_v0  ;;  %v159_v29 = vld [vmem:[%s8256_s0 + $0x418] sm:$0xff]  ;;  %v524_v34 = vld [vmem:[%s8255_s1 + $0x180] sm:$0xff]  ;;  %v166_v38 = vld [vmem:[%s8256_s0 + $0x450] sm:$0xff] }
  0x22   :  { %v526_v43 = vld [vmem:[%s8255_s1 + $0x190] sm:$0xff]  ;;  %v527_v44 = vld [vmem:[%s8255_s1 + $0x198] sm:$0xff]  ;;  %v172_v56 = vld [vmem:[%s8256_s0 + $0x480] sm:$0xff] }
  0x23   :  { %v180_v58 = vld [vmem:[%s8256_s0 + $0x4c0] sm:$0xff]  ;;  %v194_v6 = vld [vmem:[%s8256_s0 + $0x530] sm:$0xff] }
  0x24   :  { %4670 = vmatpush1.bf16.msra.mxu0 %v4669_v42  ;;  %5011 = vmatpush1.bf16.msra.mxu1 %v5445_v1  ;;  %v43_v42 = vld [vmem:[%s8256_s0 + $0x78] sm:$0xff]  ;;  %v112_v8 = vld [vmem:[%s8256_s0 + $0x2a0] sm:$0xff] }
  0x25   :  { %4671 = vmatprep.subr.bf16.mxu0 %v8263_v0  ;;  %4996 = vmatprep.subr.bf16.mxu1 %v8263_v0 }
  0x28   :  { %4673 = vmatpush1.bf16.msra.mxu0 %v4672_v48  ;;  %5012 = vmatpush1.bf16.msra.mxu1 %v5462_v7  ;;  %v569_v48 = vld [vmem:[%s8255_s1 + $0x2e8] sm:$0xff] }
  0x29   :  { %4674 = vmatprep.subr.bf16.mxu0 %v8263_v0  ;;  %4997 = vmatprep.subr.bf16.mxu1 %v8263_v0  ;;  %v5582_v55 = vpack.c.bf16 %v569_v48, %v568_v47  ;;  %v165_v47 = vld [vmem:[%s8256_s0 + $0x448] sm:$0xff] }
  0x2a   :  { %v173_v48 = vld [vmem:[%s8256_s0 + $0x488] sm:$0xff] }
  0x2c   :  { %4676 = vmatpush1.bf16.msra.mxu0 %v4675_v54  ;;  %5013 = vmatpush1.bf16.msra.mxu1 %v5479_v13  ;;  %v515_v54 = vld [vmem:[%s8255_s1 + $0x138] sm:$0xff] }
  0x2d   :  { %4677 = vmatprep.subr.bf16.mxu0 %v8263_v0  ;;  %4998 = vmatprep.subr.bf16.mxu1 %v8263_v0  ;;  %v4702_v60 = vpack.c.bf16 %v515_v54, %v514_v53  ;;  %v528_v53 = vld [vmem:[%s8255_s1 + $0x1a0] sm:$0xff]  ;;  %v529_v54 = vld [vmem:[%s8255_s1 + $0x1a8] sm:$0xff] }
  0x30   :  { %4679 = vmatpush1.bf16.msra.mxu0 %v4678_v61  ;;  %5014 = vmatpush1.bf16.msra.mxu1 %v5496_v19  ;;  %v57_v61 = vld [vmem:[%s8256_s0 + $0xe8] sm:$0xff] }
  0x31   :  { %4680 = vmatprep.subr.bf16.mxu0 %v8263_v0  ;;  %4999 = vmatprep.subr.bf16.mxu1 %v8263_v0 }
  0x34   :  { %4682 = vmatpush1.bf16.msra.mxu0 %v4681_v4  ;;  %5015 = vmatpush1.bf16.msra.mxu1 %v5513_v26  ;;  %v4705_v4 = vpack.c.bf16 %v517_v63, %v516_v62  ;;  %v179_v62 = vld [vmem:[%s8256_s0 + $0x4b8] sm:$0xff] }
  0x35   :  { %4683 = vmatprep.subr.bf16.mxu0 %v8263_v0  ;;  %5000 = vmatprep.subr.bf16.mxu1 %v8263_v0  ;;  %v187_v63 = vld [vmem:[%s8256_s0 + $0x4f8] sm:$0xff] }
  0x38   :  { %4685 = vmatpush1.bf16.msra.mxu0 %v4684_v10  ;;  %5016 = vmatpush1.bf16.msra.mxu1 %v5536_v36  ;;  %v145_v10 = vld [vmem:[%s8256_s0 + $0x3a8] sm:$0xff] }
  0x39   :  { %4686 = vmatprep.subr.bf16.mxu0 %v8263_v0  ;;  %5001 = vmatprep.subr.bf16.mxu1 %v8263_v0 }
  0x3c   :  { %4688 = vmatpush1.bf16.msra.mxu0 %v4687_v16  ;;  %5017 = vmatpush1.bf16.msra.mxu1 %v5559_v46  ;;  %v521_v16 = vld [vmem:[%s8255_s1 + $0x168] sm:$0xff] }
  0x3d   :  { %4689 = vmatprep.subr.bf16.mxu0 %v8263_v0  ;;  %5002 = vmatprep.subr.bf16.mxu1 %v8263_v0  ;;  %v4711_v22 = vpack.c.bf16 %v521_v16, %v520_v15  ;;  %v119_v15 = vld [vmem:[%s8256_s0 + $0x2d8] sm:$0xff] }
  0x40   :  { %4691 = vmatpush1.bf16.msra.mxu0 %v4690_v23  ;;  %5018 = vmatpush1.bf16.msra.mxu1 %v5582_v55  ;;  %v78_v23 = vld [vmem:[%s8256_s0 + $0x190] sm:$0xff] }
  0x41   :  { %4692 = vmatprep.subr.bf16.mxu0 %v8263_v0  ;;  %5003 = vmatprep.subr.bf16.mxu1 %v8263_v0 }
  0x43   :  { %834 = vmatmul.mubr.f32.vlgmr.msra.gmra.mrb[0].mxu0 %v28_v30  ;;  %v77_v30 = vld [vmem:[%s8256_s0 + $0x188] sm:$0xff] }
  0x44   :  { %4694 = vmatpush1.bf16.msra.mxu0 %v4693_v31  ;;  %838 = vmatprep.mubr.f32.mxu0 %v36_v32  ;;  %v4714_v31 = vpack.c.bf16 %v523_v25, %v522_v24  ;;  %v85_v32 = vld [vmem:[%s8256_s0 + $0x1c8] sm:$0xff]  ;;  %v207_v24 = vld [vmem:[%s8256_s0 + $0x598] sm:$0xff] }
  0x45   :  { %4695 = vmatprep.subr.bf16.mxu0 %v8263_v0  ;;  %5019 = vmatpush1.bf16.msra.mxu1 %v5605_v2  ;;  %v215_v25 = vld [vmem:[%s8256_s0 + $0x5d8] sm:$0xff] }
  0x47   :  { %839 = vmatmul.mubr.f32.gmra.mrb[2].mxu0 %v35_v40  ;;  %v84_v40 = vld [vmem:[%s8256_s0 + $0x1c0] sm:$0xff] }
  0x48   :  { %843 = vmatprep.mubr.f32.mxu0 %v43_v42  ;;  %4697 = vmatpush1.bf16.msra.mxu0 %v4696_v41  ;;  %v4717_v41 = vpack.c.bf16 %v525_v35, %v524_v34  ;;  %v92_v42 = vld [vmem:[%s8256_s0 + $0x200] sm:$0xff]  ;;  %v221_v35 = vld [vmem:[%s8256_s0 + $0x608] sm:$0xff] }
  0x49   :  { %4698 = vmatprep.subr.bf16.mxu0 %v8263_v0  ;;  %1679 = vmatmul.mubr.f32.vlgmr.msra.gmra.mrb[0].mxu1 %v137_v9  ;;  %v120_v9 = vld [vmem:[%s8256_s0 + $0x2e0] sm:$0xff] }
  0x4a   :  { %1683 = vmatprep.mubr.f32.mxu1 %v145_v10  ;;  %v193_v10 = vld [vmem:[%s8256_s0 + $0x528] sm:$0xff]  ;;  %v148_v34 = vld [vmem:[%s8256_s0 + $0x3c0] sm:$0xff] }
  0x4b   :  { %844 = vmatmul.mubr.f32.gmra.mrb[4].mxu0 %v42_v49  ;;  %v91_v49 = vld [vmem:[%s8256_s0 + $0x1f8] sm:$0xff] }
  0x4c   :  { %848 = vmatprep.mubr.f32.mxu0 %v50_v52  ;;  %4700 = vmatpush1.bf16.msra.mxu0 %v4699_v50  ;;  %v4720_v50 = vpack.c.bf16 %v527_v44, %v526_v43  ;;  %v99_v52 = vld [vmem:[%s8256_s0 + $0x238] sm:$0xff]  ;;  %v228_v44 = vld [vmem:[%s8256_s0 + $0x640] sm:$0xff] }
  0x4d   :  { %4701 = vmatprep.subr.bf16.mxu0 %v8263_v0  ;;  %1684 = vmatmul.mubr.f32.gmra.mrb[2].mxu1 %v144_v17  ;;  %v127_v17 = vld [vmem:[%s8256_s0 + $0x318] sm:$0xff] }
  0x4e   :  { %1688 = vmatprep.mubr.f32.mxu1 %v152_v18  ;;  %v200_v18 = vld [vmem:[%s8256_s0 + $0x560] sm:$0xff]  ;;  %v155_v43 = vld [vmem:[%s8256_s0 + $0x3f8] sm:$0xff] }
  0x4f   :  { %849 = vmatmul.mubr.f32.gmra.mrb[6].mxu0 %v49_v59  ;;  %v98_v59 = vld [vmem:[%s8256_s0 + $0x230] sm:$0xff] }
  0x50   :  { %853 = vmatprep.mubr.f32.mxu0 %v57_v61  ;;  %4703 = vmatpush1.bf16.msra.mxu0 %v4702_v60  ;;  %v4723_v60 = vpack.c.bf16 %v529_v54, %v528_v53  ;;  %v106_v61 = vld [vmem:[%s8256_s0 + $0x270] sm:$0xff]  ;;  %v161_v53 = vld [vmem:[%s8256_s0 + $0x428] sm:$0xff] }
  0x51   :  { %4704 = vmatprep.subr.bf16.mxu0 %v8263_v0  ;;  %1689 = vmatmul.mubr.f32.gmra.mrb[4].mxu1 %v151_v28  ;;  %v133_v28 = vld [vmem:[%s8256_s0 + $0x348] sm:$0xff] }
  0x52   :  { %1693 = vmatprep.mubr.f32.mxu1 %v159_v29  ;;  %v141_v29 = vld [vmem:[%s8256_s0 + $0x388] sm:$0xff] }
  0x53   :  { %854 = vmatmul.mubr.f32.gmra.mrb[8].mxu0 %v56_v3  ;;  %v105_v3 = vld [vmem:[%s8256_s0 + $0x268] sm:$0xff] }
  0x54   :  { %858 = vmatprep.mubr.f32.mxu0 %v64_v5  ;;  %4706 = vmatpush1.bf16.msra.mxu0 %v4705_v4  ;;  %v113_v4 = vld [vmem:[%s8256_s0 + $0x2a8] sm:$0xff]  ;;  %v186_v5 = vld [vmem:[%s8256_s0 + $0x4f0] sm:$0xff] }
  0x55   :  { %4707 = vmatprep.subr.bf16.mxu0 %v8263_v0  ;;  %1694 = vmatmul.mubr.f32.gmra.mrb[6].mxu1 %v158_v37  ;;  %v229_v37 = vld [vmem:[%s8256_s0 + $0x648] sm:$0xff] }
  0x56   :  { %1698 = vmatprep.mubr.f32.mxu1 %v166_v38  ;;  %v532_v38 = vld [vmem:[%s8255_s1 + $0x1c0] sm:$0xff]  ;;  %v169_v54 = vld [vmem:[%s8256_s0 + $0x468] sm:$0xff] }
  0x57   :  { %859 = vmatmul.mubr.f32.gmra.mrb[10].mxu0 %v63_v11  ;;  %v201_v11 = vld [vmem:[%s8256_s0 + $0x568] sm:$0xff] }
  0x58   :  { %863 = vmatprep.mubr.f32.mxu0 %v71_v14  ;;  %4709 = vmatpush1.bf16.msra.mxu0 %v4708_v12  ;;  %v530_v12 = vld [vmem:[%s8255_s1 + $0x1b0] sm:$0xff]  ;;  %v531_v14 = vld [vmem:[%s8255_s1 + $0x1b8] sm:$0xff] }
  0x59   :  { %4710 = vmatprep.subr.bf16.mxu0 %v8263_v0  ;;  %1699 = vmatmul.mubr.f32.gmra.mrb[8].mxu1 %v165_v47  ;;  %v4726_v16 = vpack.c.bf16 %v531_v14, %v530_v12  ;;  %v236_v47 = vld [vmem:[%s8256_s0 + $0x680] sm:$0xff]  ;;  %v263_v12 = vld [vmem:[%s8256_s0 + $0x758] sm:$0xff] }
  0x5a   :  { %1703 = vmatprep.mubr.f32.mxu1 %v173_v48  ;;  %v154_v48 = vld [vmem:[%s8256_s0 + $0x3f0] sm:$0xff]  ;;  %v271_v14 = vld [vmem:[%s8256_s0 + $0x798] sm:$0xff] }
  0x5b   :  { %864 = vmatmul.mubr.f32.gmra.mrb[12].mxu0 %v70_v20  ;;  %v208_v20 = vld [vmem:[%s8256_s0 + $0x5a0] sm:$0xff] }
  0x5c   :  { %868 = vmatprep.mubr.f32.mxu0 %v78_v23  ;;  %4712 = vmatpush1.bf16.msra.mxu0 %v4711_v22  ;;  %v126_v22 = vld [vmem:[%s8256_s0 + $0x310] sm:$0xff] }
  0x5d   :  { %4713 = vmatprep.subr.bf16.mxu0 %v8263_v0  ;;  %1704 = vmatmul.mubr.f32.gmra.mrb[10].mxu1 %v172_v56  ;;  %v134_v23 = vld [vmem:[%s8256_s0 + $0x350] sm:$0xff] }
  0x5e   :  { %1708 = vmatprep.mubr.f32.mxu1 %v180_v58  ;;  %v242_v56 = vld [vmem:[%s8256_s0 + $0x6b0] sm:$0xff] }
  0x5f   :  { %869 = vmatmul.mubr.f32.gmra.mrb[14].mxu0 %v77_v30  ;;  %v214_v30 = vld [vmem:[%s8256_s0 + $0x5d0] sm:$0xff] }
  0x60   :  { %873 = vmatprep.mubr.f32.mxu0 %v85_v32  ;;  %4715 = vmatpush1.bf16.msra.mxu0 %v4714_v31  ;;  %v222_v31 = vld [vmem:[%s8256_s0 + $0x610] sm:$0xff]  ;;  %v140_v32 = vld [vmem:[%s8256_s0 + $0x380] sm:$0xff] }
  0x61   :  { %4716 = vmatprep.subr.bf16.mxu0 %v8263_v0  ;;  %1709 = vmatmul.mubr.f32.gmra.mrb[12].mxu1 %v179_v62  ;;  %v250_v58 = vld [vmem:[%s8256_s0 + $0x6f0] sm:$0xff]  ;;  %v257_v62 = vld [vmem:[%s8256_s0 + $0x728] sm:$0xff] }
  0x62   :  { %1713 = vmatprep.mubr.f32.mxu1 %v187_v63  ;;  %v534_v63 = vld [vmem:[%s8255_s1 + $0x1d0] sm:$0xff] }
  0x63   :  { %874 = vmatmul.mubr.f32.gmra.mrb[16].mxu0 %v84_v40  ;;  %v533_v40 = vld [vmem:[%s8255_s1 + $0x1c8] sm:$0xff] }
  0x64   :  { %878 = vmatprep.mubr.f32.mxu0 %v92_v42  ;;  %4718 = vmatpush1.bf16.msra.mxu0 %v4717_v41  ;;  %v147_v41 = vld [vmem:[%s8256_s0 + $0x3b8] sm:$0xff]  ;;  %v4729_v42 = vpack.c.bf16 %v533_v40, %v532_v38  ;;  %v210_v38 = vld [vmem:[%s8256_s0 + $0x5b0] sm:$0xff] }
  0x65   :  { %4719 = vmatprep.subr.bf16.mxu0 %v8263_v0  ;;  %1714 = vmatmul.mubr.f32.gmra.mrb[14].mxu1 %v186_v5 }
  0x66   :  { %1718 = vmatprep.mubr.f32.mxu1 %v194_v6  ;;  %v183_v6 = vld [vmem:[%s8256_s0 + $0x4d8] sm:$0xff] }
  0x67   :  { %879 = vmatmul.mubr.f32.gmra.mrb[18].mxu0 %v91_v49  ;;  %v162_v49 = vld [vmem:[%s8256_s0 + $0x430] sm:$0xff] }
  0x68   :  { %883 = vmatprep.mubr.f32.mxu0 %v99_v52  ;;  %4721 = vmatpush1.bf16.msra.mxu0 %v4720_v50  ;;  %v235_v50 = vld [vmem:[%s8256_s0 + $0x678] sm:$0xff] }
  0x69   :  { %4722 = vmatprep.subr.bf16.mxu0 %v8263_v0  ;;  %1719 = vmatmul.mubr.f32.gmra.mrb[16].mxu1 %v193_v10  ;;  %v243_v52 = vld [vmem:[%s8256_s0 + $0x6b8] sm:$0xff]  ;;  %v182_v10 = vld [vmem:[%s8256_s0 + $0x4d0] sm:$0xff] }
  0x6a   :  { %1723 = vmatprep.mubr.f32.mxu1 %v201_v11  ;;  %v190_v11 = vld [vmem:[%s8256_s0 + $0x510] sm:$0xff] }
  0x6b   :  { %884 = vmatmul.mubr.f32.gmra.mrb[20].mxu0 %v98_v59  ;;  %v168_v59 = vld [vmem:[%s8256_s0 + $0x460] sm:$0xff] }
  0x6c   :  { %888 = vmatprep.mubr.f32.mxu0 %v106_v61  ;;  %4724 = vmatpush1.bf16.msra.mxu0 %v4723_v60  ;;  %v176_v60 = vld [vmem:[%s8256_s0 + $0x4a0] sm:$0xff]  ;;  %v249_v61 = vld [vmem:[%s8256_s0 + $0x6e8] sm:$0xff] }
  0x6d   :  { %4725 = vmatprep.subr.bf16.mxu0 %v8263_v0  ;;  %1724 = vmatmul.mubr.f32.gmra.mrb[18].mxu1 %v200_v18  ;;  %v278_v18 = vld [vmem:[%s8256_s0 + $0x7d0] sm:$0xff] }
  0x6e   :  { %1728 = vmatprep.mubr.f32.mxu1 %v208_v20  ;;  %v196_v20 = vld [vmem:[%s8256_s0 + $0x540] sm:$0xff] }
  0x6f   :  { %889 = vmatmul.mubr.f32.gmra.mrb[22].mxu0 %v105_v3  ;;  %v535_v3 = vld [vmem:[%s8255_s1 + $0x1d8] sm:$0xff] }
  0x70   :  { %893 = vmatprep.mubr.f32.mxu0 %v113_v4  ;;  %4727 = vmatpush1.bf16.msra.mxu0 %v4726_v16  ;;  %v175_v4 = vld [vmem:[%s8256_s0 + $0x498] sm:$0xff]  ;;  %v4732_v5 = vpack.c.bf16 %v535_v3, %v534_v63  ;;  %v197_v16 = vld [vmem:[%s8256_s0 + $0x548] sm:$0xff]  ;;  %v320_v63 = vld [vmem:[%s8256_s0 + $0x920] sm:$0xff] }
  0x71   :  { %4728 = vmatprep.subr.bf16.mxu0 %v8263_v0  ;;  %1729 = vmatmul.mubr.f32.gmra.mrb[20].mxu1 %v207_v24  ;;  %v285_v24 = vld [vmem:[%s8256_s0 + $0x808] sm:$0xff]  ;;  %v238_v3 = vld [vmem:[%s8256_s0 + $0x690] sm:$0xff] }
  0x72   :  { %1733 = vmatprep.mubr.f32.mxu1 %v215_v25  ;;  %v536_v25 = vld [vmem:[%s8255_s1 + $0x1e0] sm:$0xff] }
  0x73   :  { %894 = vmatmul.mubr.f32.gmra.mrb[24].mxu0 %v112_v8  ;;  %v256_v8 = vld [vmem:[%s8256_s0 + $0x720] sm:$0xff] }
  0x74   :  { %898 = vmatprep.mubr.f32.mxu0 %v120_v9  ;;  %4730 = vmatpush1.bf16.msra.mxu0 %v4729_v42  ;;  %v264_v9 = vld [vmem:[%s8256_s0 + $0x760] sm:$0xff]  ;;  %v291_v42 = vld [vmem:[%s8256_s0 + $0x838] sm:$0xff] }
  0x75   :  { %1734 = vmatmul.mubr.f32.gmra.mrb[22].mxu1 %v214_v30  ;;  %4731 = vmatprep.subr.bf16.mxu0 %v8263_v0 }
  0x76   :  { %1738 = vmatprep.mubr.f32.mxu1 %v222_v31  ;;  %v211_v31 = vld [vmem:[%s8256_s0 + $0x5b8] sm:$0xff] }
  0x77   :  { %899 = vmatmul.mubr.f32.gmra.mrb[26].mxu0 %v119_v15  ;;  %v189_v15 = vld [vmem:[%s8256_s0 + $0x508] sm:$0xff] }
  0x78   :  { %903 = vmatprep.mubr.f32.mxu0 %v127_v17  ;;  %4733 = vmatpush1.bf16.msra.mxu0 %v4732_v5  ;;  %v270_v17 = vld [vmem:[%s8256_s0 + $0x790] sm:$0xff]  ;;  %v319_v5 = vld [vmem:[%s8256_s0 + $0x918] sm:$0xff] }
  0x79   :  { %1739 = vmatmul.mubr.f32.gmra.mrb[24].mxu1 %v221_v35  ;;  %4734 = vmatprep.subr.bf16.mxu0 %v8263_v0  ;;  %v572_v35 = vld [vmem:[%s8255_s1 + $0x300] sm:$0xff] }
  0x7a   :  { %1743 = vmatprep.mubr.f32.mxu1 %v229_v37  ;;  %v573_v37 = vld [vmem:[%s8255_s1 + $0x308] sm:$0xff] }
  0x7b   :  { %904 = vmatmul.mubr.f32.gmra.mrb[28].mxu0 %v126_v22  ;;  %v204_v22 = vld [vmem:[%s8256_s0 + $0x580] sm:$0xff]  ;;  %v4788_v40 = vpack.c.bf16 %v573_v37, %v572_v35  ;;  %v361_v37 = vld [vmem:[%s8256_s0 + $0xa68] sm:$0xff] }
  0x7c   :  { %908 = vmatprep.mubr.f32.mxu0 %v134_v23  ;;  %v277_v23 = vld [vmem:[%s8256_s0 + $0x7c8] sm:$0xff]  ;;  %v288_v35 = vld [vmem:[%s8256_s0 + $0x820] sm:$0xff] }
  0x7d   :  { %1744 = vmatmul.mubr.f32.gmra.mrb[26].mxu1 %v228_v44  ;;  %4789 = vmatprep.subr.bf16.mxu1 %v4788_v40  ;;  %v217_v44 = vld [vmem:[%s8256_s0 + $0x5e8] sm:$0xff] }
  0x7e   :  { %1748 = vmatprep.mubr.f32.mxu1 %v236_v47  ;;  %4791 = vmatpush3.bf16.msra.mxu1 %v4788_v40  ;;  %v225_v47 = vld [vmem:[%s8256_s0 + $0x628] sm:$0xff]  ;;  %v287_v40 = vld [vmem:[%s8256_s0 + $0x818] sm:$0xff] }
  0x7f   :  { %909 = vmatmul.mubr.f32.gmra.mrb[30].mxu0 %v133_v28  ;;  %v537_v28 = vld [vmem:[%s8255_s1 + $0x1e8] sm:$0xff] }
  0x80   :  { %913 = vmatprep.mubr.f32.mxu0 %v141_v29  ;;  %v203_v29 = vld [vmem:[%s8256_s0 + $0x578] sm:$0xff]  ;;  %v4735_v30 = vpack.c.bf16 %v537_v28, %v536_v25 }
  0x81   :  { %1749 = vmatmul.mubr.f32.gmra.mrb[28].mxu1 %v235_v50  ;;  %v224_v50 = vld [vmem:[%s8256_s0 + $0x620] sm:$0xff]  ;;  %v347_v25 = vld [vmem:[%s8256_s0 + $0x9f8] sm:$0xff] }
  0x82   :  { %1753 = vmatprep.mubr.f32.mxu1 %v243_v52  ;;  %4736 = vmatpush1.bf16.msra.mxu0 %v4735_v30  ;;  %v232_v52 = vld [vmem:[%s8256_s0 + $0x660] sm:$0xff]  ;;  %v355_v28 = vld [vmem:[%s8256_s0 + $0xa38] sm:$0xff]  ;;  %v281_v30 = vld [vmem:[%s8256_s0 + $0x7e8] sm:$0xff] }
  0x83   :  { %914 = vmatmul.mubr.f32.gmra.mrb[32].mxu0 %v140_v32  ;;  %v284_v32 = vld [vmem:[%s8256_s0 + $0x800] sm:$0xff]  ;;  %4737 = vmatprep.subr.bf16.mxu0 %v8263_v0 }
  0x84   :  { %918 = vmatprep.mubr.f32.mxu0 %v148_v34  ;;  %v292_v34 = vld [vmem:[%s8256_s0 + $0x840] sm:$0xff] }
  0x85   :  { %1754 = vmatmul.mubr.f32.gmra.mrb[30].mxu1 %v242_v56  ;;  %v538_v56 = vld [vmem:[%s8255_s1 + $0x1f0] sm:$0xff] }
  0x86   :  { %1758 = vmatprep.mubr.f32.mxu1 %v250_v58  ;;  %v539_v58 = vld [vmem:[%s8255_s1 + $0x1f8] sm:$0xff] }
  0x87   :  { %919 = vmatmul.mubr.f32.gmra.mrb[34].mxu0 %v147_v41  ;;  %v218_v41 = vld [vmem:[%s8256_s0 + $0x5f0] sm:$0xff] }
  0x88   :  { %923 = vmatprep.mubr.f32.mxu0 %v155_v43  ;;  %v299_v43 = vld [vmem:[%s8256_s0 + $0x878] sm:$0xff] }
  0x89   :  { %1759 = vmatmul.mubr.f32.gmra.mrb[32].mxu1 %v249_v61  ;;  %v239_v61 = vld [vmem:[%s8256_s0 + $0x698] sm:$0xff] }
  0x8a   :  { %1763 = vmatprep.mubr.f32.mxu1 %v257_v62  ;;  %v312_v62 = vld [vmem:[%s8256_s0 + $0x8e0] sm:$0xff] }
  0x8b   :  { %924 = vmatmul.mubr.f32.gmra.mrb[36].mxu0 %v154_v48  ;;  %v298_v48 = vld [vmem:[%s8256_s0 + $0x870] sm:$0xff] }
  0x8c   :  { %928 = vmatprep.mubr.f32.mxu0 %v162_v49  ;;  %v306_v49 = vld [vmem:[%s8256_s0 + $0x8b0] sm:$0xff] }
  0x8d   :  { %1764 = vmatmul.mubr.f32.gmra.mrb[34].mxu1 %v256_v8  ;;  %v245_v8 = vld [vmem:[%s8256_s0 + $0x6c8] sm:$0xff] }
  0x8e   :  { %1768 = vmatprep.mubr.f32.mxu1 %v264_v9  ;;  %v253_v9 = vld [vmem:[%s8256_s0 + $0x708] sm:$0xff] }
  0x8f   :  { %929 = vmatmul.mubr.f32.gmra.mrb[38].mxu0 %v161_v53  ;;  %v305_v53 = vld [vmem:[%s8256_s0 + $0x8a8] sm:$0xff] }
  0x90   :  { %933 = vmatprep.mubr.f32.mxu0 %v169_v54  ;;  %v313_v54 = vld [vmem:[%s8256_s0 + $0x8e8] sm:$0xff] }
  0x91   :  { %1769 = vmatmul.mubr.f32.gmra.mrb[36].mxu1 %v263_v12  ;;  %v252_v12 = vld [vmem:[%s8256_s0 + $0x700] sm:$0xff] }
  0x92   :  { %1773 = vmatprep.mubr.f32.mxu1 %v271_v14  ;;  %v260_v14 = vld [vmem:[%s8256_s0 + $0x740] sm:$0xff] }
  0x93   :  { %934 = vmatmul.mubr.f32.gmra.mrb[40].mxu0 %v168_v59  ;;  %v231_v59 = vld [vmem:[%s8256_s0 + $0x658] sm:$0xff] }
  0x94   :  { %938 = vmatprep.mubr.f32.mxu0 %v176_v60  ;;  %v4738_v60 = vpack.c.bf16 %v539_v58, %v538_v56  ;;  %v382_v56 = vld [vmem:[%s8256_s0 + $0xb10] sm:$0xff] }
  0x95   :  { %1774 = vmatmul.mubr.f32.gmra.mrb[38].mxu1 %v270_v17  ;;  %v259_v17 = vld [vmem:[%s8256_s0 + $0x738] sm:$0xff] }
  0x96   :  { %1778 = vmatprep.mubr.f32.mxu1 %v278_v18  ;;  %4739 = vmatpush1.bf16.msra.mxu0 %v4738_v60  ;;  %v267_v18 = vld [vmem:[%s8256_s0 + $0x778] sm:$0xff]  ;;  %v308_v60 = vld [vmem:[%s8256_s0 + $0x8c0] sm:$0xff] }
  0x97   :  { %939 = vmatmul.mubr.f32.gmra.mrb[42].mxu0 %v175_v4  ;;  %4740 = vmatprep.subr.bf16.mxu0 %v8263_v0  ;;  %v246_v4 = vld [vmem:[%s8256_s0 + $0x6d0] sm:$0xff] }
  0x98   :  { %943 = vmatprep.mubr.f32.mxu0 %v183_v6  ;;  %v327_v6 = vld [vmem:[%s8256_s0 + $0x958] sm:$0xff] }
  0x99   :  { %1779 = vmatmul.mubr.f32.gmra.mrb[40].mxu1 %v277_v23  ;;  %v266_v23 = vld [vmem:[%s8256_s0 + $0x770] sm:$0xff] }
  0x9a   :  { %1783 = vmatprep.mubr.f32.mxu1 %v285_v24  ;;  %v274_v24 = vld [vmem:[%s8256_s0 + $0x7b0] sm:$0xff] }
  0x9b   :  { %944 = vmatmul.mubr.f32.gmra.mrb[44].mxu0 %v182_v10  ;;  %v326_v10 = vld [vmem:[%s8256_s0 + $0x950] sm:$0xff] }
  0x9c   :  { %948 = vmatprep.mubr.f32.mxu0 %v190_v11  ;;  %v334_v11 = vld [vmem:[%s8256_s0 + $0x990] sm:$0xff] }
  0x9d   :  { %1784 = vmatmul.mubr.f32.gmra.mrb[42].mxu1 %v284_v32  ;;  %v362_v32 = vld [vmem:[%s8256_s0 + $0xa70] sm:$0xff] }
  0x9e   :  { %1788 = vmatprep.mubr.f32.mxu1 %v292_v34  ;;  %v280_v34 = vld [vmem:[%s8256_s0 + $0x7e0] sm:$0xff] }
  0x9f   :  { %949 = vmatmul.mubr.f32.gmra.mrb[46].mxu0 %v189_v15  ;;  %v333_v15 = vld [vmem:[%s8256_s0 + $0x988] sm:$0xff] }
  0xa0   :  { %953 = vmatprep.mubr.f32.mxu0 %v197_v16  ;;  %v341_v16 = vld [vmem:[%s8256_s0 + $0x9c8] sm:$0xff] }
  0xa1   :  { %1789 = vmatmul.mubr.f32.gmra.mrb[44].mxu1 %v291_v42  ;;  %v368_v42 = vld [vmem:[%s8256_s0 + $0xaa0] sm:$0xff] }
  0xa2   :  { %1793 = vmatprep.mubr.f32.mxu1 %v299_v43  ;;  %v376_v43 = vld [vmem:[%s8256_s0 + $0xae0] sm:$0xff] }
  0xa3   :  { %954 = vmatmul.mubr.f32.gmra.mrb[48].mxu0 %v196_v20  ;;  %v340_v20 = vld [vmem:[%s8256_s0 + $0x9c0] sm:$0xff] }
  0xa4   :  { %958 = vmatprep.mubr.f32.mxu0 %v204_v22  ;;  %v348_v22 = vld [vmem:[%s8256_s0 + $0xa00] sm:$0xff] }
  0xa5   :  { %1794 = vmatmul.mubr.f32.gmra.mrb[46].mxu1 %v298_v48  ;;  %v375_v48 = vld [vmem:[%s8256_s0 + $0xad8] sm:$0xff] }
  0xa6   :  { %1798 = vmatprep.mubr.f32.mxu1 %v306_v49  ;;  %v383_v49 = vld [vmem:[%s8256_s0 + $0xb18] sm:$0xff] }
  0xa7   :  { %959 = vmatmul.mubr.f32.gmra.mrb[50].mxu0 %v203_v29  ;;  %v273_v29 = vld [vmem:[%s8256_s0 + $0x7a8] sm:$0xff] }
  0xa8   :  { %963 = vmatprep.mubr.f32.mxu0 %v211_v31  ;;  %v354_v31 = vld [vmem:[%s8256_s0 + $0xa30] sm:$0xff] }
  0xa9   :  { %1799 = vmatmul.mubr.f32.gmra.mrb[48].mxu1 %v305_v53  ;;  %v574_v53 = vld [vmem:[%s8255_s1 + $0x310] sm:$0xff] }
  0xaa   :  { %1803 = vmatprep.mubr.f32.mxu1 %v313_v54  ;;  %v575_v54 = vld [vmem:[%s8255_s1 + $0x318] sm:$0xff] }
  0xab   :  { %964 = vmatmul.mubr.f32.gmra.mrb[52].mxu0 %v210_v38  ;;  %v369_v38 = vld [vmem:[%s8256_s0 + $0xaa8] sm:$0xff]  ;;  %v4792_v58 = vpack.c.bf16 %v575_v54, %v574_v53  ;;  %v459_v53 = vld [vmem:[%s8256_s0 + $0xd78] sm:$0xff] }
  0xac   :  { %968 = vmatprep.mubr.f32.mxu0 %v218_v41  ;;  %v295_v41 = vld [vmem:[%s8256_s0 + $0x858] sm:$0xff] }
  0xad   :  { %1804 = vmatmul.mubr.f32.gmra.mrb[50].mxu1 %v312_v62  ;;  %4793 = vmatprep.subr.bf16.mxu1 %v4792_v58  ;;  %v389_v62 = vld [vmem:[%s8256_s0 + $0xb48] sm:$0xff]  ;;  %v467_v54 = vld [vmem:[%s8256_s0 + $0xdb8] sm:$0xff] }
  0xae   :  { %1808 = vmatprep.mubr.f32.mxu1 %v320_v63  ;;  %4795 = vmatpush3.bf16.msra.mxu1 %v4792_v58  ;;  %v397_v63 = vld [vmem:[%s8256_s0 + $0xb88] sm:$0xff] }
  0xaf   :  { %969 = vmatmul.mubr.f32.gmra.mrb[54].mxu0 %v217_v44  ;;  %v294_v44 = vld [vmem:[%s8256_s0 + $0x850] sm:$0xff]  ;;  %4796 = vmatprep.subr.bf16.mxu1 %v8263_v0  ;;  %v393_v58 = vld [vmem:[%s8256_s0 + $0xb68] sm:$0xff] }
  0xb0   :  { %973 = vmatprep.mubr.f32.mxu0 %v225_v47  ;;  %v302_v47 = vld [vmem:[%s8256_s0 + $0x890] sm:$0xff] }
  0xb1   :  { %1809 = vmatmul.mubr.f32.gmra.mrb[52].mxu1 %v319_v5  ;;  %v396_v5 = vld [vmem:[%s8256_s0 + $0xb80] sm:$0xff] }
  0xb2   :  { %1813 = vmatprep.mubr.f32.mxu1 %v327_v6  ;;  %v404_v6 = vld [vmem:[%s8256_s0 + $0xbc0] sm:$0xff] }
  0xb3   :  { %974 = vmatmul.mubr.f32.gmra.mrb[56].mxu0 %v224_v50  ;;  %v301_v50 = vld [vmem:[%s8256_s0 + $0x888] sm:$0xff] }
  0xb4   :  { %978 = vmatprep.mubr.f32.mxu0 %v232_v52  ;;  %v309_v52 = vld [vmem:[%s8256_s0 + $0x8c8] sm:$0xff] }
  0xb5   :  { %1814 = vmatmul.mubr.f32.gmra.mrb[54].mxu1 %v326_v10  ;;  %v403_v10 = vld [vmem:[%s8256_s0 + $0xbb8] sm:$0xff] }
  0xb6   :  { %1818 = vmatprep.mubr.f32.mxu1 %v334_v11  ;;  %v411_v11 = vld [vmem:[%s8256_s0 + $0xbf8] sm:$0xff] }
  0xb7   :  { %979 = vmatmul.mubr.f32.gmra.mrb[58].mxu0 %v231_v59  ;;  %v390_v59 = vld [vmem:[%s8256_s0 + $0xb50] sm:$0xff] }
  0xb8   :  { %983 = vmatprep.mubr.f32.mxu0 %v239_v61  ;;  %v316_v61 = vld [vmem:[%s8256_s0 + $0x900] sm:$0xff] }
  0xb9   :  { %1819 = vmatmul.mubr.f32.gmra.mrb[56].mxu1 %v333_v15  ;;  %v410_v15 = vld [vmem:[%s8256_s0 + $0xbf0] sm:$0xff] }
  0xba   :  { %1823 = vmatprep.mubr.f32.mxu1 %v341_v16  ;;  %v418_v16 = vld [vmem:[%s8256_s0 + $0xc30] sm:$0xff] }
  0xbb   :  { %984 = vmatmul.mubr.f32.gmra.mrb[60].mxu0 %v238_v3  ;;  %v315_v3 = vld [vmem:[%s8256_s0 + $0x8f8] sm:$0xff] }
  0xbc   :  { %988 = vmatprep.mubr.f32.mxu0 %v246_v4  ;;  %v323_v4 = vld [vmem:[%s8256_s0 + $0x938] sm:$0xff] }
  0xbd   :  { %1824 = vmatmul.mubr.f32.gmra.mrb[58].mxu1 %v340_v20  ;;  %v417_v20 = vld [vmem:[%s8256_s0 + $0xc28] sm:$0xff] }
  0xbe   :  { %1828 = vmatprep.mubr.f32.mxu1 %v348_v22  ;;  %v425_v22 = vld [vmem:[%s8256_s0 + $0xc68] sm:$0xff] }
  0xbf   :  { %989 = vmatmul.mubr.f32.gmra.mrb[62].mxu0 %v245_v8  ;;  %v322_v8 = vld [vmem:[%s8256_s0 + $0x930] sm:$0xff] }
  0xc0   :  { %993 = vmatprep.mubr.f32.mxu0 %v253_v9  ;;  %v330_v9 = vld [vmem:[%s8256_s0 + $0x970] sm:$0xff] }
  0xc1   :  { %1829 = vmatmul.mubr.f32.gmra.mrb[60].mxu1 %v347_v25  ;;  %v424_v25 = vld [vmem:[%s8256_s0 + $0xc60] sm:$0xff] }
  0xc2   :  { %1833 = vmatprep.mubr.f32.mxu1 %v355_v28  ;;  %v432_v28 = vld [vmem:[%s8256_s0 + $0xca0] sm:$0xff] }
  0xc3   :  { %994 = vmatmul.mubr.f32.gmra.mrb[64].mxu0 %v252_v12  ;;  %v329_v12 = vld [vmem:[%s8256_s0 + $0x968] sm:$0xff] }
  0xc4   :  { %998 = vmatprep.mubr.f32.mxu0 %v260_v14  ;;  %v337_v14 = vld [vmem:[%s8256_s0 + $0x9a8] sm:$0xff] }
  0xc5   :  { %1834 = vmatmul.mubr.f32.gmra.mrb[62].mxu1 %v354_v31  ;;  %v431_v31 = vld [vmem:[%s8256_s0 + $0xc98] sm:$0xff] }
  0xc6   :  { %1838 = vmatprep.mubr.f32.mxu1 %v362_v32  ;;  %v439_v32 = vld [vmem:[%s8256_s0 + $0xcd8] sm:$0xff] }
  0xc7   :  { %999 = vmatmul.mubr.f32.gmra.mrb[66].mxu0 %v259_v17  ;;  %v336_v17 = vld [vmem:[%s8256_s0 + $0x9a0] sm:$0xff] }
  0xc8   :  { %1003 = vmatprep.mubr.f32.mxu0 %v267_v18  ;;  %v344_v18 = vld [vmem:[%s8256_s0 + $0x9e0] sm:$0xff] }
  0xc9   :  { %1839 = vmatmul.mubr.f32.gmra.mrb[64].mxu1 %v361_v37  ;;  %v438_v37 = vld [vmem:[%s8256_s0 + $0xcd0] sm:$0xff] }
  0xca   :  { %1843 = vmatprep.mubr.f32.mxu1 %v369_v38  ;;  %v446_v38 = vld [vmem:[%s8256_s0 + $0xd10] sm:$0xff] }
  0xcb   :  { %1004 = vmatmul.mubr.f32.gmra.mrb[68].mxu0 %v266_v23  ;;  %v343_v23 = vld [vmem:[%s8256_s0 + $0x9d8] sm:$0xff] }
  0xcc   :  { %1008 = vmatprep.mubr.f32.mxu0 %v274_v24  ;;  %v351_v24 = vld [vmem:[%s8256_s0 + $0xa18] sm:$0xff] }
  0xcd   :  { %1844 = vmatmul.mubr.f32.gmra.mrb[66].mxu1 %v368_v42  ;;  %v445_v42 = vld [vmem:[%s8256_s0 + $0xd08] sm:$0xff] }
  0xce   :  { %1848 = vmatprep.mubr.f32.mxu1 %v376_v43  ;;  %v453_v43 = vld [vmem:[%s8256_s0 + $0xd48] sm:$0xff] }
  0xcf   :  { %1009 = vmatmul.mubr.f32.gmra.mrb[70].mxu0 %v273_v29  ;;  %v350_v29 = vld [vmem:[%s8256_s0 + $0xa10] sm:$0xff] }
  0xd0   :  { %1013 = vmatprep.mubr.f32.mxu0 %v281_v30  ;;  %v358_v30 = vld [vmem:[%s8256_s0 + $0xa50] sm:$0xff] }
  0xd1   :  { %1849 = vmatmul.mubr.f32.gmra.mrb[68].mxu1 %v375_v48  ;;  %v452_v48 = vld [vmem:[%s8256_s0 + $0xd40] sm:$0xff] }
  0xd2   :  { %1853 = vmatprep.mubr.f32.mxu1 %v383_v49  ;;  %v460_v49 = vld [vmem:[%s8256_s0 + $0xd80] sm:$0xff] }
  0xd3   :  { %1014 = vmatmul.mubr.f32.gmra.mrb[72].mxu0 %v280_v34  ;;  %v357_v34 = vld [vmem:[%s8256_s0 + $0xa48] sm:$0xff] }
  0xd4   :  { %1018 = vmatprep.mubr.f32.mxu0 %v288_v35  ;;  %v365_v35 = vld [vmem:[%s8256_s0 + $0xa88] sm:$0xff] }
  0xd5   :  { %1854 = vmatmul.mubr.f32.gmra.mrb[70].mxu1 %v382_v56  ;;  %v385_v56 = vld [vmem:[%s8256_s0 + $0xb28] sm:$0xff] }
  0xd6   :  { %1858 = vmatprep.mubr.f32.mxu1 %v390_v59  ;;  %v466_v59 = vld [vmem:[%s8256_s0 + $0xdb0] sm:$0xff] }
  0xd7   :  { %1019 = vmatmul.mubr.f32.gmra.mrb[74].mxu0 %v287_v40  ;;  %v364_v40 = vld [vmem:[%s8256_s0 + $0xa80] sm:$0xff] }
  0xd8   :  { %1023 = vmatprep.mubr.f32.mxu0 %v295_v41  ;;  %v372_v41 = vld [vmem:[%s8256_s0 + $0xac0] sm:$0xff] }
  0xd9   :  { %1859 = vmatmul.mubr.f32.gmra.mrb[72].mxu1 %v389_v62  ;;  %v400_v62 = vld [vmem:[%s8256_s0 + $0xba0] sm:$0xff] }
  0xda   :  { %1863 = vmatprep.mubr.f32.mxu1 %v397_v63  ;;  %v473_v63 = vld [vmem:[%s8256_s0 + $0xde8] sm:$0xff] }
  0xdb   :  { %1024 = vmatmul.mubr.f32.gmra.mrb[76].mxu0 %v294_v44  ;;  %v371_v44 = vld [vmem:[%s8256_s0 + $0xab8] sm:$0xff] }
  0xdc   :  { %1028 = vmatprep.mubr.f32.mxu0 %v302_v47  ;;  %v379_v47 = vld [vmem:[%s8256_s0 + $0xaf8] sm:$0xff] }
  0xdd   :  { %1864 = vmatmul.mubr.f32.gmra.mrb[74].mxu1 %v396_v5  ;;  %v407_v5 = vld [vmem:[%s8256_s0 + $0xbd8] sm:$0xff] }
  0xde   :  { %1868 = vmatprep.mubr.f32.mxu1 %v404_v6  ;;  %v41_v6 = vld [vmem:[%s8256_s0 + $0x68] sm:$0xff] }
  0xdf   :  { %1029 = vmatmul.mubr.f32.gmra.mrb[78].mxu0 %v301_v50  ;;  %v378_v50 = vld [vmem:[%s8256_s0 + $0xaf0] sm:$0xff] }
  0xe0   :  { %1033 = vmatprep.mubr.f32.mxu0 %v309_v52  ;;  %v386_v52 = vld [vmem:[%s8256_s0 + $0xb30] sm:$0xff] }
  0xe1   :  { %1869 = vmatmul.mubr.f32.gmra.mrb[76].mxu1 %v403_v10  ;;  %v414_v10 = vld [vmem:[%s8256_s0 + $0xc10] sm:$0xff] }
  0xe2   :  { %1873 = vmatprep.mubr.f32.mxu1 %v411_v11  ;;  %v55_v11 = vld [vmem:[%s8256_s0 + $0xd8] sm:$0xff] }
  0xe3   :  { %1034 = vmatmul.mubr.f32.gmra.mrb[80].mxu0 %v308_v60  ;;  %v474_v60 = vld [vmem:[%s8256_s0 + $0xdf0] sm:$0xff] }
  0xe4   :  { %1038 = vmatprep.mubr.f32.mxu0 %v316_v61  ;;  %v392_v61 = vld [vmem:[%s8256_s0 + $0xb60] sm:$0xff] }
  0xe5   :  { %1874 = vmatmul.mubr.f32.gmra.mrb[78].mxu1 %v410_v15  ;;  %v421_v15 = vld [vmem:[%s8256_s0 + $0xc48] sm:$0xff] }
  0xe6   :  { %1878 = vmatprep.mubr.f32.mxu1 %v418_v16  ;;  %v69_v16 = vld [vmem:[%s8256_s0 + $0x148] sm:$0xff] }
  0xe7   :  { %1039 = vmatmul.mubr.f32.gmra.mrb[82].mxu0 %v315_v3  ;;  %v34_v3 = vld [vmem:[%s8256_s0 + $0x30] sm:$0xff] }
  0xe8   :  { %1043 = vmatprep.mubr.f32.mxu0 %v323_v4  ;;  %v399_v4 = vld [vmem:[%s8256_s0 + $0xb98] sm:$0xff] }
  0xe9   :  { %1879 = vmatmul.mubr.f32.gmra.mrb[80].mxu1 %v417_v20  ;;  %v428_v20 = vld [vmem:[%s8256_s0 + $0xc80] sm:$0xff] }
  0xea   :  { %1883 = vmatprep.mubr.f32.mxu1 %v425_v22  ;;  %v83_v22 = vld [vmem:[%s8256_s0 + $0x1b8] sm:$0xff] }
  0xeb   :  { %1044 = vmatmul.mubr.f32.gmra.mrb[84].mxu0 %v322_v8  ;;  %v48_v8 = vld [vmem:[%s8256_s0 + $0xa0] sm:$0xff] }
  0xec   :  { %1048 = vmatprep.mubr.f32.mxu0 %v330_v9  ;;  %v406_v9 = vld [vmem:[%s8256_s0 + $0xbd0] sm:$0xff] }
  0xed   :  { %1884 = vmatmul.mubr.f32.gmra.mrb[82].mxu1 %v424_v25  ;;  %v435_v25 = vld [vmem:[%s8256_s0 + $0xcb8] sm:$0xff] }
  0xee   :  { %1888 = vmatprep.mubr.f32.mxu1 %v432_v28  ;;  %v97_v28 = vld [vmem:[%s8256_s0 + $0x228] sm:$0xff] }
  0xef   :  { %1049 = vmatmul.mubr.f32.gmra.mrb[86].mxu0 %v329_v12  ;;  %v62_v12 = vld [vmem:[%s8256_s0 + $0x110] sm:$0xff] }
  0xf0   :  { %1053 = vmatprep.mubr.f32.mxu0 %v337_v14  ;;  %v413_v14 = vld [vmem:[%s8256_s0 + $0xc08] sm:$0xff] }
  0xf1   :  { %1889 = vmatmul.mubr.f32.gmra.mrb[84].mxu1 %v431_v31  ;;  %v442_v31 = vld [vmem:[%s8256_s0 + $0xcf0] sm:$0xff] }
  0xf2   :  { %1893 = vmatprep.mubr.f32.mxu1 %v439_v32  ;;  %v111_v32 = vld [vmem:[%s8256_s0 + $0x298] sm:$0xff] }
  0xf3   :  { %1054 = vmatmul.mubr.f32.gmra.mrb[88].mxu0 %v336_v17  ;;  %v76_v17 = vld [vmem:[%s8256_s0 + $0x180] sm:$0xff] }
  0xf4   :  { %1058 = vmatprep.mubr.f32.mxu0 %v344_v18  ;;  %v420_v18 = vld [vmem:[%s8256_s0 + $0xc40] sm:$0xff] }
  0xf5   :  { %1894 = vmatmul.mubr.f32.gmra.mrb[86].mxu1 %v438_v37  ;;  %v449_v37 = vld [vmem:[%s8256_s0 + $0xd28] sm:$0xff] }
  0xf6   :  { %1898 = vmatprep.mubr.f32.mxu1 %v446_v38  ;;  %v125_v38 = vld [vmem:[%s8256_s0 + $0x308] sm:$0xff] }
  0xf7   :  { %1059 = vmatmul.mubr.f32.gmra.mrb[90].mxu0 %v343_v23  ;;  %v90_v23 = vld [vmem:[%s8256_s0 + $0x1f0] sm:$0xff] }
  0xf8   :  { %1063 = vmatprep.mubr.f32.mxu0 %v351_v24  ;;  %v427_v24 = vld [vmem:[%s8256_s0 + $0xc78] sm:$0xff] }
  0xf9   :  { %1899 = vmatmul.mubr.f32.gmra.mrb[88].mxu1 %v445_v42  ;;  %v456_v42 = vld [vmem:[%s8256_s0 + $0xd60] sm:$0xff] }
  0xfa   :  { %1903 = vmatprep.mubr.f32.mxu1 %v453_v43  ;;  %v139_v43 = vld [vmem:[%s8256_s0 + $0x378] sm:$0xff] }
  0xfb   :  { %1064 = vmatmul.mubr.f32.gmra.mrb[92].mxu0 %v350_v29  ;;  %v104_v29 = vld [vmem:[%s8256_s0 + $0x260] sm:$0xff] }
  0xfc   :  { %1068 = vmatprep.mubr.f32.mxu0 %v358_v30  ;;  %v434_v30 = vld [vmem:[%s8256_s0 + $0xcb0] sm:$0xff] }
  0xfd   :  { %1904 = vmatmul.mubr.f32.gmra.mrb[90].mxu1 %v452_v48  ;;  %v463_v48 = vld [vmem:[%s8256_s0 + $0xd98] sm:$0xff] }
  0xfe   :  { %1908 = vmatprep.mubr.f32.mxu1 %v460_v49  ;;  %v153_v49 = vld [vmem:[%s8256_s0 + $0x3e8] sm:$0xff] }
  0xff   :  { %1069 = vmatmul.mubr.f32.gmra.mrb[94].mxu0 %v357_v34  ;;  %v118_v34 = vld [vmem:[%s8256_s0 + $0x2d0] sm:$0xff] }
 0x100   :  { %1073 = vmatprep.mubr.f32.mxu0 %v365_v35  ;;  %v441_v35 = vld [vmem:[%s8256_s0 + $0xce8] sm:$0xff] }
 0x101   :  { %1909 = vmatmul.mubr.f32.gmra.mrb[92].mxu1 %v459_v53  ;;  %v470_v53 = vld [vmem:[%s8256_s0 + $0xdd0] sm:$0xff] }
 0x102   :  { %1913 = vmatprep.mubr.f32.mxu1 %v467_v54  ;;  %v167_v54 = vld [vmem:[%s8256_s0 + $0x458] sm:$0xff] }
 0x103   :  { %1074 = vmatmul.mubr.f32.gmra.mrb[96].mxu0 %v364_v40  ;;  %v132_v40 = vld [vmem:[%s8256_s0 + $0x340] sm:$0xff] }
 0x104   :  { %1078 = vmatprep.mubr.f32.mxu0 %v372_v41  ;;  %v448_v41 = vld [vmem:[%s8256_s0 + $0xd20] sm:$0xff] }
 0x105   :  { %1914 = vmatmul.mubr.f32.gmra.mrb[94].mxu1 %v466_v59  ;;  %v31_v59 = vld [vmem:[%s8256_s0 + $0x18] sm:$0xff] }
 0x106   :  { %1918 = vmatprep.mubr.f32.mxu1 %v474_v60  ;;  %v181_v60 = vld [vmem:[%s8256_s0 + $0x4c8] sm:$0xff] }
 0x107   :  { %1079 = vmatmul.mubr.f32.gmra.mrb[98].mxu0 %v371_v44  ;;  %v146_v44 = vld [vmem:[%s8256_s0 + $0x3b0] sm:$0xff] }
 0x108   :  { %1083 = vmatprep.mubr.f32.mxu0 %v379_v47  ;;  %v455_v47 = vld [vmem:[%s8256_s0 + $0xd58] sm:$0xff] }
 0x109   :  { %1919 = vmatmul.mubr.f32.gmra.mrb[96].mxu1 %v473_v63  ;;  %v38_v63 = vld [vmem:[%s8256_s0 + $0x50] sm:$0xff] }
 0x10a   :  { %4244 = vmatprep.mubr.msk.f32.mxu1 %vm576_vm0, %v34_v3  ;;  %v195_v3 = vld [vmem:[%s8256_s0 + $0x538] sm:$0xff] }
 0x10b   :  { %1084 = vmatmul.mubr.f32.gmra.mrb[100].mxu0 %v378_v50  ;;  %v160_v50 = vld [vmem:[%s8256_s0 + $0x420] sm:$0xff] }
 0x10c   :  { %1088 = vmatprep.mubr.f32.mxu0 %v386_v52  ;;  %v462_v52 = vld [vmem:[%s8256_s0 + $0xd90] sm:$0xff] }
 0x10d   :  { %4245 = vmatmul.mubr.msk.f32.vlgmr.msra.gmra.mrb[98].mxu1 %vm576_vm0, %v41_v6  ;;  %v45_v6 = vld [vmem:[%s8256_s0 + $0x88] sm:$0xff] }
 0x10e   :  { %4247 = vmatprep.mubr.msk.f32.mxu1 %vm576_vm0, %v48_v8  ;;  %v209_v8 = vld [vmem:[%s8256_s0 + $0x5a8] sm:$0xff] }
 0x10f   :  { %1089 = vmatmul.mubr.f32.gmra.mrb[102].mxu0 %v385_v56  ;;  %v174_v56 = vld [vmem:[%s8256_s0 + $0x490] sm:$0xff] }
 0x110   :  { %1093 = vmatprep.mubr.f32.mxu0 %v393_v58  ;;  %v469_v58 = vld [vmem:[%s8256_s0 + $0xdc8] sm:$0xff] }
 0x111   :  { %4248 = vmatmul.mubr.msk.f32.gmra.mrb[100].mxu1 %vm576_vm0, %v55_v11  ;;  %v223_v11 = vld [vmem:[%s8256_s0 + $0x618] sm:$0xff] }
 0x112   :  { %4250 = vmatprep.mubr.msk.f32.mxu1 %vm576_vm0, %v62_v12  ;;  %v230_v12 = vld [vmem:[%s8256_s0 + $0x650] sm:$0xff] }
 0x113   :  { %1094 = vmatmul.mubr.f32.gmra.mrb[104].mxu0 %v392_v61  ;;  %v188_v61 = vld [vmem:[%s8256_s0 + $0x500] sm:$0xff] }
 0x114   :  { %1098 = vmatprep.mubr.f32.mxu0 %v400_v62  ;;  %v30_v62 = vld [vmem:[%s8256_s0 + $0x10] sm:$0xff] }
 0x115   :  { %4251 = vmatmul.mubr.msk.f32.gmra.mrb[102].mxu1 %vm576_vm0, %v69_v16  ;;  %v244_v16 = vld [vmem:[%s8256_s0 + $0x6c0] sm:$0xff] }
 0x116   :  { %4253 = vmatprep.mubr.msk.f32.mxu1 %vm576_vm0, %v76_v17  ;;  %v66_v17 = vld [vmem:[%s8256_s0 + $0x130] sm:$0xff] }
 0x117   :  { %1099 = vmatmul.mubr.f32.gmra.mrb[106].mxu0 %v399_v4  ;;  %v202_v4 = vld [vmem:[%s8256_s0 + $0x570] sm:$0xff] }
 0x118   :  { %1103 = vmatprep.mubr.f32.mxu0 %v407_v5  ;;  %v37_v5 = vld [vmem:[%s8256_s0 + $0x48] sm:$0xff] }
 0x119   :  { %4254 = vmatmul.mubr.msk.f32.gmra.mrb[104].mxu1 %vm576_vm0, %v83_v22  ;;  %v73_v22 = vld [vmem:[%s8256_s0 + $0x168] sm:$0xff] }
 0x11a   :  { %4256 = vmatprep.mubr.msk.f32.mxu1 %vm576_vm0, %v90_v23  ;;  %v265_v23 = vld [vmem:[%s8256_s0 + $0x768] sm:$0xff] }
 0x11b   :  { %1104 = vmatmul.mubr.f32.gmra.mrb[108].mxu0 %v406_v9  ;;  %v44_v9 = vld [vmem:[%s8256_s0 + $0x80] sm:$0xff] }
 0x11c   :  { %1108 = vmatprep.mubr.f32.mxu0 %v414_v10  ;;  %v52_v10 = vld [vmem:[%s8256_s0 + $0xc0] sm:$0xff] }
 0x11d   :  { %4257 = vmatmul.mubr.msk.f32.gmra.mrb[106].mxu1 %vm576_vm0, %v97_v28  ;;  %v279_v28 = vld [vmem:[%s8256_s0 + $0x7d8] sm:$0xff] }
 0x11e   :  { %4259 = vmatprep.mubr.msk.f32.mxu1 %vm576_vm0, %v104_v29  ;;  %v286_v29 = vld [vmem:[%s8256_s0 + $0x810] sm:$0xff] }
 0x11f   :  { %1109 = vmatmul.mubr.f32.gmra.mrb[110].mxu0 %v413_v14  ;;  %v59_v14 = vld [vmem:[%s8256_s0 + $0xf8] sm:$0xff] }
 0x120   :  { %1113 = vmatprep.mubr.f32.mxu0 %v421_v15  ;;  %v237_v15 = vld [vmem:[%s8256_s0 + $0x688] sm:$0xff] }
 0x121   :  { %4260 = vmatmul.mubr.msk.f32.gmra.mrb[108].mxu1 %vm576_vm0, %v111_v32  ;;  %v300_v32 = vld [vmem:[%s8256_s0 + $0x880] sm:$0xff] }
 0x122   :  { %4262 = vmatprep.mubr.msk.f32.mxu1 %vm576_vm0, %v118_v34  ;;  %v94_v34 = vld [vmem:[%s8256_s0 + $0x210] sm:$0xff] }
 0x123   :  { %1114 = vmatmul.mubr.f32.gmra.mrb[112].mxu0 %v420_v18  ;;  %v251_v18 = vld [vmem:[%s8256_s0 + $0x6f8] sm:$0xff] }
 0x124   :  { %1118 = vmatprep.mubr.f32.mxu0 %v428_v20  ;;  %v258_v20 = vld [vmem:[%s8256_s0 + $0x730] sm:$0xff] }
 0x125   :  { %4263 = vmatmul.mubr.msk.f32.gmra.mrb[110].mxu1 %vm576_vm0, %v125_v38  ;;  %v93_v38 = vld [vmem:[%s8256_s0 + $0x208] sm:$0xff] }
 0x126   :  { %4265 = vmatprep.mubr.msk.f32.mxu1 %vm576_vm0, %v132_v40 }
 0x127   :  { %1119 = vmatmul.mubr.f32.gmra.mrb[114].mxu0 %v427_v24  ;;  %v272_v24 = vld [vmem:[%s8256_s0 + $0x7a0] sm:$0xff] }
 0x128   :  { %1123 = vmatprep.mubr.f32.mxu0 %v435_v25  ;;  %v80_v25 = vld [vmem:[%s8256_s0 + $0x1a0] sm:$0xff] }
 0x129   :  { %4266 = vmatmul.mubr.msk.f32.gmra.mrb[112].mxu1 %vm576_vm0, %v139_v43  ;;  %v321_v43 = vld [vmem:[%s8256_s0 + $0x928] sm:$0xff] }
 0x12a   :  { %4268 = vmatprep.mubr.msk.f32.mxu1 %vm576_vm0, %v146_v44 }
 0x12b   :  { %1124 = vmatmul.mubr.f32.gmra.mrb[116].mxu0 %v434_v30  ;;  %v87_v30 = vld [vmem:[%s8256_s0 + $0x1d8] sm:$0xff] }
 0x12c   :  { %1128 = vmatprep.mubr.f32.mxu0 %v442_v31  ;;  %v293_v31 = vld [vmem:[%s8256_s0 + $0x848] sm:$0xff] }
 0x12d   :  { %4269 = vmatmul.mubr.msk.f32.gmra.mrb[114].mxu1 %vm576_vm0, %v153_v49  ;;  %v108_v49 = vld [vmem:[%s8256_s0 + $0x280] sm:$0xff] }
 0x12e   :  { %4271 = vmatprep.mubr.msk.f32.mxu1 %vm576_vm0, %v160_v50 }
 0x12f   :  { %1129 = vmatmul.mubr.f32.gmra.mrb[118].mxu0 %v441_v35  ;;  %v307_v35 = vld [vmem:[%s8256_s0 + $0x8b8] sm:$0xff] }
 0x130   :  { %1133 = vmatprep.mubr.f32.mxu0 %v449_v37  ;;  %v314_v37 = vld [vmem:[%s8256_s0 + $0x8f0] sm:$0xff] }
 0x131   :  { %4272 = vmatmul.mubr.msk.f32.gmra.mrb[116].mxu1 %vm576_vm0, %v167_v54  ;;  %v335_v54 = vld [vmem:[%s8256_s0 + $0x998] sm:$0xff] }
 0x132   :  { %4274 = vmatprep.mubr.msk.f32.mxu1 %vm576_vm0, %v174_v56  ;;  %v107_v56 = vld [vmem:[%s8256_s0 + $0x278] sm:$0xff] }
 0x133   :  { %1134 = vmatmul.mubr.f32.gmra.mrb[120].mxu0 %v448_v41  ;;  %v101_v41 = vld [vmem:[%s8256_s0 + $0x248] sm:$0xff] }
 0x134   :  { %1138 = vmatprep.mubr.f32.mxu0 %v456_v42 }
 0x135   :  { %4275 = vmatmul.mubr.msk.f32.gmra.mrb[118].mxu1 %vm576_vm0, %v181_v60 }
 0x136   :  { %4277 = vmatprep.mubr.msk.f32.mxu1 %vm576_vm0, %v188_v61 }
 0x137   :  { %1139 = vmatmul.mubr.f32.gmra.mrb[122].mxu0 %v455_v47  ;;  %v100_v47 = vld [vmem:[%s8256_s0 + $0x240] sm:$0xff] }
 0x138   :  { %1143 = vmatprep.mubr.f32.mxu0 %v463_v48 }
 0x139   :  { %4278 = vmatmul.mubr.msk.f32.gmra.mrb[120].mxu1 %vm576_vm0, %v195_v3  ;;  %v122_v3 = vld [vmem:[%s8256_s0 + $0x2f0] sm:$0xff] }
 0x13a   :  { %4280 = vmatprep.mubr.msk.f32.mxu1 %vm576_vm0, %v202_v4 }
 0x13b   :  { %1144 = vmatmul.mubr.f32.gmra.mrb[124].mxu0 %v462_v52 }
 0x13c   :  { %1148 = vmatprep.mubr.f32.mxu0 %v470_v53  ;;  %v328_v53 = vld [vmem:[%s8256_s0 + $0x960] sm:$0xff] }
 0x13d   :  { %4281 = vmatmul.mubr.msk.f32.gmra.mrb[122].mxu1 %vm576_vm0, %v209_v8 }
 0x13f   :  { %1149 = vmatmul.mubr.f32.gmra.mrb[126].mxu0 %v469_v58 }
 0x140   :  { %1218 = vmatprep.mubr.f32.mxu0 %v31_v59  ;;  %v115_v59 = vld [vmem:[%s8256_s0 + $0x2b8] sm:$0xff] }
 0x143   :  { %1219 = vmatmul.mubr.f32.vlgmr.msra.gmra.mrb[0].mxu0 %v30_v62 }
 0x144   :  { %4742 = vmatpush1.bf16.msra.mxu0 %v5324_v21  ;;  %1223 = vmatprep.mubr.f32.mxu0 %v38_v63  ;;  %v216_v21 = vld [vmem:[%s8256_s0 + $0x5e0] sm:$0xff] }
 0x145   :  { %4743 = vmatprep.subr.bf16.mxu0 %v8263_v0  ;;  %4283 = vmatprep.mubr.msk.f32.mxu1 %vm576_vm0, %v216_v21  ;;  %v121_v21 = vld [vmem:[%s8256_s0 + $0x2e8] sm:$0xff] }
 0x146   :  { %4284 = vmatmul.mubr.msk.f32.gmra.mrb[124].mxu1 %vm576_vm0, %v223_v11 }
 0x147   :  { %1224 = vmatmul.mubr.f32.gmra.mrb[2].mxu0 %v37_v5  ;;  %4286 = vmatprep.mubr.msk.f32.mxu1 %vm576_vm0, %v230_v12 }
 0x148   :  { %1228 = vmatprep.mubr.f32.mxu0 %v45_v6  ;;  %4745 = vmatpush1.bf16.msra.mxu0 %v5340_v27  ;;  %v51_v27 = vld [vmem:[%s8256_s0 + $0xb8] sm:$0xff]  ;;  %v342_v6 = vld [vmem:[%s8256_s0 + $0x9d0] sm:$0xff] }
 0x149   :  { %4746 = vmatprep.subr.bf16.mxu0 %v8263_v0 }
 0x14a   :  { %4287 = vmatmul.mubr.msk.f32.gmra.mrb[126].mxu1 %vm576_vm0, %v237_v15 }
 0x14b   :  { %1229 = vmatmul.mubr.f32.gmra.mrb[4].mxu0 %v44_v9  ;;  %4289 = vmatprep.mubr.msk.f32.mxu1 %vm576_vm0, %v244_v16  ;;  %v136_v16 = vld [vmem:[%s8256_s0 + $0x360] sm:$0xff] }
 0x14c   :  { %1233 = vmatprep.mubr.f32.mxu0 %v52_v10  ;;  %4748 = vmatpush1.bf16.msra.mxu0 %v5357_v33  ;;  %v58_v33 = vld [vmem:[%s8256_s0 + $0xf0] sm:$0xff]  ;;  %v129_v10 = vld [vmem:[%s8256_s0 + $0x328] sm:$0xff] }
 0x14d   :  { %4749 = vmatprep.subr.bf16.mxu0 %v8263_v0 }
 0x14e   :  { %4290 = vmatmul.mubr.msk.f32.gmra.mrb[128].mxu1 %vm576_vm0, %v251_v18 }
 0x14f   :  { %1234 = vmatmul.mubr.f32.gmra.mrb[6].mxu0 %v51_v27  ;;  %4292 = vmatprep.mubr.msk.f32.mxu1 %vm576_vm0, %v258_v20  ;;  %v363_v20 = vld [vmem:[%s8256_s0 + $0xa78] sm:$0xff] }
 0x150   :  { %1238 = vmatprep.mubr.f32.mxu0 %v59_v14  ;;  %4751 = vmatpush1.bf16.msra.mxu0 %v5374_v39  ;;  %v65_v39 = vld [vmem:[%s8256_s0 + $0x128] sm:$0xff]  ;;  %v128_v14 = vld [vmem:[%s8256_s0 + $0x320] sm:$0xff] }
 0x151   :  { %4752 = vmatprep.subr.bf16.mxu0 %v8263_v0 }
 0x152   :  { %4293 = vmatmul.mubr.msk.f32.gmra.mrb[130].mxu1 %vm576_vm0, %v265_v23 }
 0x153   :  { %1239 = vmatmul.mubr.f32.gmra.mrb[8].mxu0 %v58_v33  ;;  %4295 = vmatprep.mubr.msk.f32.mxu1 %vm576_vm0, %v272_v24 }
 0x154   :  { %1243 = vmatprep.mubr.f32.mxu0 %v66_v17  ;;  %4754 = vmatpush1.bf16.msra.mxu0 %v5391_v45  ;;  %v72_v45 = vld [vmem:[%s8256_s0 + $0x160] sm:$0xff] }
 0x155   :  { %4755 = vmatprep.subr.bf16.mxu0 %v8263_v0  ;;  %v356_v17 = vld [vmem:[%s8256_s0 + $0xa40] sm:$0xff] }
 0x156   :  { %4296 = vmatmul.mubr.msk.f32.gmra.mrb[132].mxu1 %vm576_vm0, %v279_v28 }
 0x157   :  { %1244 = vmatmul.mubr.f32.gmra.mrb[10].mxu0 %v65_v39  ;;  %4298 = vmatprep.mubr.msk.f32.mxu1 %vm576_vm0, %v286_v29  ;;  %v150_v29 = vld [vmem:[%s8256_s0 + $0x3d0] sm:$0xff] }
 0x158   :  { %1248 = vmatprep.mubr.f32.mxu0 %v73_v22  ;;  %4757 = vmatpush1.bf16.msra.mxu0 %v5408_v51  ;;  %v79_v51 = vld [vmem:[%s8256_s0 + $0x198] sm:$0xff] }
 0x159   :  { %4758 = vmatprep.subr.bf16.mxu0 %v8263_v0  ;;  %v143_v22 = vld [vmem:[%s8256_s0 + $0x398] sm:$0xff] }
 0x15a   :  { %4299 = vmatmul.mubr.msk.f32.gmra.mrb[134].mxu1 %vm576_vm0, %v293_v31 }
 0x15b   :  { %1249 = vmatmul.mubr.f32.gmra.mrb[12].mxu0 %v72_v45  ;;  %4301 = vmatprep.mubr.msk.f32.mxu1 %vm576_vm0, %v300_v32  ;;  %v377_v32 = vld [vmem:[%s8256_s0 + $0xae8] sm:$0xff] }
 0x15c   :  { %1253 = vmatprep.mubr.f32.mxu0 %v80_v25  ;;  %4760 = vmatpush1.bf16.msra.mxu0 %v5425_v57  ;;  %v86_v57 = vld [vmem:[%s8256_s0 + $0x1d0] sm:$0xff] }
 0x15d   :  { %4761 = vmatprep.subr.bf16.mxu0 %v8263_v0  ;;  %v142_v25 = vld [vmem:[%s8256_s0 + $0x390] sm:$0xff] }
 0x15e   :  { %4302 = vmatmul.mubr.msk.f32.gmra.mrb[136].mxu1 %vm576_vm0, %v307_v35 }
 0x15f   :  { %1254 = vmatmul.mubr.f32.gmra.mrb[14].mxu0 %v79_v51  ;;  %4304 = vmatprep.mubr.msk.f32.mxu1 %vm576_vm0, %v314_v37 }
 0x160   :  { %1258 = vmatprep.mubr.f32.mxu0 %v87_v30  ;;  %4763 = vmatpush1.bf16.msra.mxu0 %v5445_v1  ;;  %v6584_v1 = vpop.f32.mrb[0].mxu1  ;;  %v370_v30 = vld [vmem:[%s8256_s0 + $0xab0] sm:$0xff] }
 0x161   :  { %4764 = vmatprep.subr.bf16.mxu0 %v8263_v0  ;;  %v1682_v40 = vpop.f32.mrb[1].mxu1 }
 0x162   :  { %v6595_v42 = vpop.f32.mrb[2].mxu1  ;;  %4305 = vmatmul.mubr.msk.f32.gmra.mrb[138].mxu1 %vm576_vm0, %v321_v43  ;;  %v156_v40 = vld [vmem:[%s8256_s0 + $0x400] sm:$0xff] }
 0x163   :  { %1259 = vmatmul.mubr.f32.gmra.mrb[16].mxu0 %v86_v57  ;;  %v1687_v44 = vpop.f32.mrb[3].mxu1  ;;  %4307 = vmatprep.mubr.msk.f32.mxu1 %vm576_vm0, %v328_v53  ;;  %v149_v57 = vld [vmem:[%s8256_s0 + $0x3c8] sm:$0xff]  ;;  %v164_v43 = vld [vmem:[%s8256_s0 + $0x440] sm:$0xff]  ;;  %v163_v53 = vld [vmem:[%s8256_s0 + $0x438] sm:$0xff] }
 0x164   :  { %1263 = vmatprep.mubr.f32.mxu0 %v94_v34  ;;  %4766 = vmatpush1.bf16.msra.mxu0 %v5462_v7  ;;  %v6601_v7 = vpop.f32.mrb[4].mxu1  ;;  %v157_v34 = vld [vmem:[%s8256_s0 + $0x408] sm:$0xff] }
 0x165   :  { %4767 = vmatprep.subr.bf16.mxu0 %v8263_v0  ;;  %v1692_v48 = vpop.f32.mrb[5].mxu1 }
 0x166   :  { %v6612_v50 = vpop.f32.mrb[6].mxu1  ;;  %4308 = vmatmul.mubr.msk.f32.gmra.mrb[140].mxu1 %vm576_vm0, %v335_v54  ;;  %v384_v48 = vld [vmem:[%s8256_s0 + $0xb20] sm:$0xff] }
 0x167   :  { %1264 = vmatmul.mubr.f32.gmra.mrb[18].mxu0 %v93_v38  ;;  %v1697_v52 = vpop.f32.mrb[7].mxu1  ;;  %4310 = vmatprep.mubr.msk.f32.mxu1 %vm576_vm0, %v342_v6 }
 0x168   :  { %1268 = vmatprep.mubr.f32.mxu0 %v101_v41  ;;  %4769 = vmatpush1.bf16.msra.mxu0 %v5479_v13  ;;  %v6618_v13 = vpop.f32.mrb[8].mxu1  ;;  %v391_v52 = vld [vmem:[%s8256_s0 + $0xb58] sm:$0xff] }
 0x169   :  { %4770 = vmatprep.subr.bf16.mxu0 %v8263_v0  ;;  %v1702_v58 = vpop.f32.mrb[9].mxu1 }
 0x16a   :  { %v6631_v60 = vpop.f32.mrb[10].mxu1 }
 0x16b   :  { %1269 = vmatmul.mubr.f32.gmra.mrb[20].mxu0 %v100_v47  ;;  %v1707_v61 = vpop.f32.mrb[11].mxu1 }
 0x16c   :  { %1273 = vmatprep.mubr.f32.mxu0 %v108_v49  ;;  %4772 = vmatpush1.bf16.msra.mxu0 %v5496_v19  ;;  %v6634_v62 = vpop.f32.mrb[12].mxu1  ;;  %v114_v19 = vld [vmem:[%s8256_s0 + $0x2b0] sm:$0xff] }
 0x16d   :  { %4773 = vmatprep.subr.bf16.mxu0 %v8263_v0  ;;  %v1712_v63 = vpop.f32.mrb[13].mxu1 }
 0x16e   :  { %v6643_v4 = vpop.f32.mrb[14].mxu1 }
 0x16f   :  { %1274 = vmatmul.mubr.f32.gmra.mrb[22].mxu0 %v107_v56  ;;  %v1717_v5 = vpop.f32.mrb[15].mxu1  ;;  %v171_v56 = vld [vmem:[%s8256_s0 + $0x478] sm:$0xff] }
 0x170   :  { %1278 = vmatprep.mubr.f32.mxu0 %v115_v59  ;;  %4775 = vmatpush1.bf16.msra.mxu0 %v5513_v26  ;;  %v6650_v8 = vpop.f32.mrb[16].mxu1  ;;  %v349_v26 = vld [vmem:[%s8256_s0 + $0xa08] sm:$0xff] }
 0x171   :  { %4776 = vmatprep.subr.bf16.mxu0 %v8263_v0  ;;  %4311 = vmatmul.mubr.msk.f32.gmra.mrb[142].mxu1 %vm576_vm0, %v349_v26  ;;  %v1722_v9 = vpop.f32.mrb[17].mxu1  ;;  %v398_v26 = vld [vmem:[%s8256_s0 + $0xb90] sm:$0xff] }
 0x172   :  { %v6662_v11 = vpop.f32.mrb[18].mxu1  ;;  %4313 = vmatprep.mubr.msk.f32.mxu1 %vm576_vm0, %v356_v17  ;;  %v405_v9 = vld [vmem:[%s8256_s0 + $0xbc8] sm:$0xff]  ;;  %v184_v17 = vld [vmem:[%s8256_s0 + $0x4e0] sm:$0xff] }
 0x173   :  { %1279 = vmatmul.mubr.f32.gmra.mrb[24].mxu0 %v114_v19  ;;  %v1727_v12 = vpop.f32.mrb[19].mxu1  ;;  %v170_v19 = vld [vmem:[%s8256_s0 + $0x470] sm:$0xff] }
 0x174   :  { %1283 = vmatprep.mubr.f32.mxu0 %v122_v3  ;;  %4778 = vmatpush1.bf16.msra.mxu0 %v5536_v36  ;;  %v6666_v27 = vpop.f32.mrb[20].mxu1  ;;  %v178_v3 = vld [vmem:[%s8256_s0 + $0x4b0] sm:$0xff] }
 0x175   :  { %4779 = vmatprep.subr.bf16.mxu0 %v8263_v0  ;;  %v1732_v15 = vpop.f32.mrb[21].mxu1  ;;  %4314 = vmatmul.mubr.msk.f32.gmra.mrb[144].mxu1 %vm576_vm0, %v363_v20 }
 0x176   :  { %v6674_v33 = vpop.f32.mrb[22].mxu1  ;;  %4316 = vmatprep.mubr.msk.f32.mxu1 %vm576_vm0, %v370_v30  ;;  %v199_v30 = vld [vmem:[%s8256_s0 + $0x558] sm:$0xff] }
 0x177   :  { %1284 = vmatmul.mubr.f32.gmra.mrb[26].mxu0 %v121_v21  ;;  %v1737_v36 = vpop.f32.mrb[23].mxu1 }
 0x178   :  { %1288 = vmatprep.mubr.f32.mxu0 %v129_v10  ;;  %4781 = vmatpush1.bf16.msra.mxu0 %v5559_v46  ;;  %v6682_v18 = vpop.f32.mrb[24].mxu1  ;;  %v135_v46 = vld [vmem:[%s8256_s0 + $0x358] sm:$0xff]  ;;  %v177_v10 = vld [vmem:[%s8256_s0 + $0x4a8] sm:$0xff] }
 0x179   :  { %4782 = vmatprep.subr.bf16.mxu0 %v8263_v0  ;;  %v1742_v39 = vpop.f32.mrb[25].mxu1  ;;  %4317 = vmatmul.mubr.msk.f32.gmra.mrb[146].mxu1 %vm576_vm0, %v377_v32 }
 0x17a   :  { %v6694_v23 = vpop.f32.mrb[26].mxu1  ;;  %4319 = vmatprep.mubr.msk.f32.mxu1 %vm576_vm0, %v384_v48 }
 0x17b   :  { %1289 = vmatmul.mubr.f32.gmra.mrb[28].mxu0 %v128_v14  ;;  %v1747_v24 = vpop.f32.mrb[27].mxu1  ;;  %v185_v14 = vld [vmem:[%s8256_s0 + $0x4e8] sm:$0xff] }
 0x17c   :  { %1293 = vmatprep.mubr.f32.mxu0 %v136_v16  ;;  %4784 = vmatpush1.bf16.msra.mxu0 %v5582_v55  ;;  %v6698_v45 = vpop.f32.mrb[28].mxu1  ;;  %v412_v24 = vld [vmem:[%s8256_s0 + $0xc00] sm:$0xff] }
 0x17d   :  { %4785 = vmatprep.subr.bf16.mxu0 %v8263_v0  ;;  %v1752_v28 = vpop.f32.mrb[29].mxu1  ;;  %4320 = vmatmul.mubr.msk.f32.gmra.mrb[148].mxu1 %vm576_vm0, %v391_v52  ;;  %v213_v52 = vld [vmem:[%s8256_s0 + $0x5c8] sm:$0xff]  ;;  %v366_v0 = vld [vmem:[%s8256_s0 + $0xa90] sm:$0xff] }
 0x17e   :  { %v6706_v51 = vpop.f32.mrb[30].mxu1  ;;  %4322 = vmatprep.mubr.msk.f32.mxu1 %vm576_vm0, %v398_v26  ;;  %v419_v28 = vld [vmem:[%s8256_s0 + $0xc38] sm:$0xff] }
 0x17f   :  { %1294 = vmatmul.mubr.f32.gmra.mrb[30].mxu0 %v135_v46  ;;  %v1757_v55 = vpop.f32.mrb[31].mxu1  ;;  %v192_v46 = vld [vmem:[%s8256_s0 + $0x520] sm:$0xff] }
 0x180   :  { %1298 = vmatprep.mubr.f32.mxu0 %v143_v22  ;;  %4787 = vmatpush1.bf16.msra.mxu0 %v5605_v2  ;;  %v6713_v31 = vpop.f32.mrb[32].mxu1 }
 0x181   :  { %v1762_v2 = vpop.f32.mrb[33].mxu1  ;;  %4323 = vmatmul.mubr.msk.f32.gmra.mrb[150].mxu1 %vm576_vm0, %v405_v9  ;;  %v227_v9 = vld [vmem:[%s8256_s0 + $0x638] sm:$0xff] }
 0x182   :  { %v6725_v35 = vpop.f32.mrb[34].mxu1  ;;  %4325 = vmatprep.mubr.msk.f32.mxu1 %vm576_vm0, %v412_v24  ;;  %v198_v2 = vld [vmem:[%s8256_s0 + $0x550] sm:$0xff] }
 0x183   :  { %1299 = vmatmul.mubr.f32.gmra.mrb[32].mxu0 %v142_v25  ;;  %v1767_v37 = vpop.f32.mrb[35].mxu1 }
 0x184   :  { %1303 = vmatprep.mubr.f32.mxu0 %v150_v29  ;;  %v6727_v38 = vpop.f32.mrb[36].mxu1  ;;  %v191_v29 = vld [vmem:[%s8256_s0 + $0x518] sm:$0xff]  ;;  %v206_v37 = vld [vmem:[%s8256_s0 + $0x590] sm:$0xff] }
 0x185   :  { %v1772_v41 = vpop.f32.mrb[37].mxu1  ;;  %4326 = vmatmul.mubr.msk.f32.gmra.mrb[152].mxu1 %vm576_vm0, %v419_v28  ;;  %v241_v28 = vld [vmem:[%s8256_s0 + $0x6a8] sm:$0xff] }
 0x186   :  { %v6735_v44 = vpop.f32.mrb[38].mxu1  ;;  %v426_v41 = vld [vmem:[%s8256_s0 + $0xc70] sm:$0xff] }
 0x187   :  { %1304 = vmatmul.mubr.f32.gmra.mrb[34].mxu0 %v149_v57  ;;  %v1777_v47 = vpop.f32.mrb[39].mxu1  ;;  %4328 = vmatprep.mubr.msk.f32.mxu1 %vm576_vm0, %v426_v41  ;;  %v247_v41 = vld [vmem:[%s8256_s0 + $0x6d8] sm:$0xff] }
 0x188   :  { %1308 = vmatprep.mubr.f32.mxu0 %v157_v34  ;;  %v6741_v49 = vpop.f32.mrb[40].mxu1  ;;  %v205_v47 = vld [vmem:[%s8256_s0 + $0x588] sm:$0xff] }
 0x189   :  { %v1782_v54 = vpop.f32.mrb[41].mxu1 }
 0x18a   :  { %v6753_v58 = vpop.f32.mrb[42].mxu1  ;;  %v212_v54 = vld [vmem:[%s8256_s0 + $0x5c0] sm:$0xff] }
 0x18b   :  { %1309 = vmatmul.mubr.f32.gmra.mrb[36].mxu0 %v156_v40  ;;  %v1787_v59 = vpop.f32.mrb[43].mxu1 }
 0x18c   :  { %1313 = vmatprep.mubr.f32.mxu0 %v164_v43  ;;  %v6755_v61 = vpop.f32.mrb[44].mxu1  ;;  %v433_v43 = vld [vmem:[%s8256_s0 + $0xca8] sm:$0xff]  ;;  %v220_v59 = vld [vmem:[%s8256_s0 + $0x600] sm:$0xff] }
 0x18d   :  { %v1792_v63 = vpop.f32.mrb[45].mxu1  ;;  %4329 = vmatmul.mubr.msk.f32.gmra.mrb[154].mxu1 %vm576_vm0, %v433_v43 }
 0x18e   :  { %v6763_v5 = vpop.f32.mrb[46].mxu1  ;;  %v440_v63 = vld [vmem:[%s8256_s0 + $0xce0] sm:$0xff] }
 0x18f   :  { %1314 = vmatmul.mubr.f32.gmra.mrb[38].mxu0 %v163_v53  ;;  %v1797_v6 = vpop.f32.mrb[47].mxu1  ;;  %4331 = vmatprep.mubr.msk.f32.mxu1 %vm576_vm0, %v440_v63  ;;  %v261_v63 = vld [vmem:[%s8256_s0 + $0x748] sm:$0xff] }
 0x190   :  { %1318 = vmatprep.mubr.f32.mxu0 %v171_v56  ;;  %v6769_v21 = vpop.f32.mrb[48].mxu1  ;;  %v219_v6 = vld [vmem:[%s8256_s0 + $0x5f8] sm:$0xff] }
 0x191   :  { %v1802_v12 = vpop.f32.mrb[49].mxu1 }
 0x192   :  { %v6781_v15 = vpop.f32.mrb[50].mxu1  ;;  %v226_v12 = vld [vmem:[%s8256_s0 + $0x630] sm:$0xff] }
 0x193   :  { %1319 = vmatmul.mubr.f32.gmra.mrb[40].mxu0 %v170_v19  ;;  %v1807_v16 = vpop.f32.mrb[51].mxu1 }
 0x194   :  { %1323 = vmatprep.mubr.f32.mxu0 %v178_v3  ;;  %v6783_v36 = vpop.f32.mrb[52].mxu1  ;;  %v447_v3 = vld [vmem:[%s8256_s0 + $0xd18] sm:$0xff]  ;;  %v234_v16 = vld [vmem:[%s8256_s0 + $0x670] sm:$0xff] }
 0x195   :  { %8267 = vst [vmem:[#allocation3_spill] sm:$0xff] %v6783_v36  ;;  %v1812_v20 = vpop.f32.mrb[53].mxu1  ;;  %4332 = vmatmul.mubr.msk.f32.gmra.mrb[156].mxu1 %vm576_vm0, %v447_v3 }
 0x196   :  { %v6791_v39 = vpop.f32.mrb[54].mxu1  ;;  %v454_v20 = vld [vmem:[%s8256_s0 + $0xd50] sm:$0xff] }
 0x197   :  { %1324 = vmatmul.mubr.f32.gmra.mrb[42].mxu0 %v177_v10  ;;  %8268 = vst [vmem:[#allocation4_spill] sm:$0xff] %v6791_v39  ;;  %v1817_v22 = vpop.f32.mrb[55].mxu1  ;;  %4334 = vmatprep.mubr.msk.f32.mxu1 %vm576_vm0, %v454_v20  ;;  %v275_v20 = vld [vmem:[%s8256_s0 + $0x7b8] sm:$0xff] }
 0x198   :  { %1328 = vmatprep.mubr.f32.mxu0 %v185_v14  ;;  %v6797_v25 = vpop.f32.mrb[56].mxu1  ;;  %v233_v22 = vld [vmem:[%s8256_s0 + $0x668] sm:$0xff] }
 0x199   :  { %8269 = vst [vmem:[#allocation5_spill] sm:$0xff] %v6797_v25  ;;  %v1822_v55 = vpop.f32.mrb[57].mxu1 }
 0x19a   :  { %v6809_v32 = vpop.f32.mrb[58].mxu1  ;;  %v240_v55 = vld [vmem:[%s8256_s0 + $0x6a0] sm:$0xff] }
 0x19b   :  { %1329 = vmatmul.mubr.f32.gmra.mrb[44].mxu0 %v184_v17  ;;  %8270 = vst [vmem:[#allocation6_spill] sm:$0xff] %v6809_v32  ;;  %v1827_v57 = vpop.f32.mrb[59].mxu1  ;;  %v39_v32 = vld [vmem:[%s8256_s0 + $0x58] sm:$0xff] }
 0x19c   :  { %1333 = vmatprep.mubr.f32.mxu0 %v192_v46  ;;  %v6814_v34 = vpop.f32.mrb[60].mxu1  ;;  %v461_v46 = vld [vmem:[%s8256_s0 + $0xd88] sm:$0xff]  ;;  %v248_v57 = vld [vmem:[%s8256_s0 + $0x6e0] sm:$0xff] }
 0x19d   :  { %8271 = vst [vmem:[#allocation7_spill] sm:$0xff] %v6814_v34  ;;  %v1832_v40 = vpop.f32.mrb[61].mxu1  ;;  %4335 = vmatmul.mubr.msk.f32.gmra.mrb[158].mxu1 %vm576_vm0, %v461_v46 }
 0x19e   :  { %v6829_v48 = vpop.f32.mrb[62].mxu1  ;;  %v475_v40 = vld [vmem:[%s8256_s0 + $0xdf8] sm:$0xff] }
 0x19f   :  { %1334 = vmatmul.mubr.f32.gmra.mrb[46].mxu0 %v191_v29  ;;  %8272 = vst [vmem:[#allocation8_spill] sm:$0xff] %v6829_v48  ;;  %v1837_v53 = vpop.f32.mrb[63].mxu1  ;;  %v32_v48 = vld [vmem:[%s8256_s0 + $0x20] sm:$0xff] }
 0x1a0   :  { %1338 = vmatprep.mubr.f32.mxu0 %v199_v30  ;;  %v6838_v56 = vpop.f32.mrb[64].mxu1  ;;  %v254_v53 = vld [vmem:[%s8256_s0 + $0x710] sm:$0xff] }
 0x1a1   :  { %8273 = vst [vmem:[#allocation9_spill] sm:$0xff] %v6838_v56  ;;  %v1842_v19 = vpop.f32.mrb[65].mxu1 }
 0x1a2   :  { %v6853_v26 = vpop.f32.mrb[66].mxu1 }
 0x1a3   :  { %1339 = vmatmul.mubr.f32.gmra.mrb[48].mxu0 %v198_v2  ;;  %8274 = vst [vmem:[#allocation10_spill] sm:$0xff] %v6853_v26  ;;  %v1847_v10 = vpop.f32.mrb[67].mxu1  ;;  %v471_v26 = vld [vmem:[%s8256_s0 + $0xdd8] sm:$0xff] }
 0x1a4   :  { %1343 = vmatprep.mubr.f32.mxu0 %v206_v37  ;;  %v6862_v14 = vpop.f32.mrb[68].mxu1  ;;  %v468_v37 = vld [vmem:[%s8256_s0 + $0xdc0] sm:$0xff] }
 0x1a5   :  { %8275 = vst [vmem:[#allocation11_spill] sm:$0xff] %v6862_v14  ;;  %v1852_v17 = vpop.f32.mrb[69].mxu1  ;;  %4337 = vmatprep.mubr.msk.f32.mxu1 %vm576_vm0, %v468_v37  ;;  %v268_v10 = vld [vmem:[%s8256_s0 + $0x780] sm:$0xff]  ;;  %v289_v37 = vld [vmem:[%s8256_s0 + $0x828] sm:$0xff] }
 0x1a6   :  { %4338 = vmatmul.mubr.msk.f32.gmra.mrb[160].mxu1 %vm576_vm0, %v475_v40 }
 0x1a7   :  { %1344 = vmatmul.mubr.f32.gmra.mrb[50].mxu0 %v205_v47  ;;  %v255_v47 = vld [vmem:[%s8256_s0 + $0x718] sm:$0xff] }
 0x1a8   :  { %1348 = vmatprep.mubr.f32.mxu0 %v213_v52  ;;  %v6877_v24 = vpop.f32.mrb[70].mxu1 }
 0x1a9   :  { %8276 = vst [vmem:[#allocation12_spill] sm:$0xff] %v6877_v24  ;;  %v1857_v29 = vpop.f32.mrb[71].mxu1 }
 0x1aa   :  { %v282_v29 = vld [vmem:[%s8256_s0 + $0x7f0] sm:$0xff] }
 0x1ab   :  { %1349 = vmatmul.mubr.f32.gmra.mrb[52].mxu0 %v212_v54 }
 0x1ac   :  { %1353 = vmatprep.mubr.f32.mxu0 %v220_v59  ;;  %v6886_v30 = vpop.f32.mrb[72].mxu1  ;;  %v262_v59 = vld [vmem:[%s8256_s0 + $0x750] sm:$0xff] }
 0x1ad   :  { %8277 = vst [vmem:[#allocation13_spill] sm:$0xff] %v6886_v30  ;;  %v1862_v2 = vpop.f32.mrb[73].mxu1  ;;  %v458_v30 = vld [vmem:[%s8256_s0 + $0xd70] sm:$0xff] }
 0x1af   :  { %1354 = vmatmul.mubr.f32.gmra.mrb[54].mxu0 %v219_v6  ;;  %v269_v6 = vld [vmem:[%s8256_s0 + $0x788] sm:$0xff] }
 0x1b0   :  { %1358 = vmatprep.mubr.f32.mxu0 %v227_v9  ;;  %v6901_v43 = vpop.f32.mrb[74].mxu1 }
 0x1b1   :  { %8278 = vst [vmem:[#allocation14_spill] sm:$0xff] %v6901_v43  ;;  %v1867_v52 = vpop.f32.mrb[75].mxu1  ;;  %v8305_v43 = vmov 0.0|0.0  }
 0x1b2   :  { %v296_v52 = vld [vmem:[%s8256_s0 + $0x860] sm:$0xff] }
 0x1b3   :  { %1359 = vmatmul.mubr.f32.gmra.mrb[56].mxu0 %v226_v12 }
 0x1b4   :  { %1363 = vmatprep.mubr.f32.mxu0 %v234_v16  ;;  %v6910_v54 = vpop.f32.mrb[76].mxu1  ;;  %v276_v16 = vld [vmem:[%s8256_s0 + $0x7c0] sm:$0xff] }
 0x1b5   :  { %8279 = vst [vmem:[#allocation15_spill] sm:$0xff] %v6910_v54  ;;  %v1872_v19 = vpop.f32.mrb[77].mxu1 }
 0x1b7   :  { %1364 = vmatmul.mubr.f32.gmra.mrb[58].mxu0 %v233_v22  ;;  %v283_v22 = vld [vmem:[%s8256_s0 + $0x7f8] sm:$0xff] }
 0x1b8   :  { %1368 = vmatprep.mubr.f32.mxu0 %v241_v28  ;;  %v6918_v3 = vpop.f32.mrb[78].mxu1 }
 0x1b9   :  { %8280 = vst [vmem:[#allocation16_spill] sm:$0xff] %v6918_v3  ;;  %v1877_v9 = vpop.f32.mrb[79].mxu1  ;;  %v450_v3 = vld [vmem:[%s8256_s0 + $0xd30] sm:$0xff] }
 0x1ba   :  { %v311_v9 = vld [vmem:[%s8256_s0 + $0x8d8] sm:$0xff] }
 0x1bb   :  { %1369 = vmatmul.mubr.f32.gmra.mrb[60].mxu0 %v240_v55 }
 0x1bc   :  { %1373 = vmatprep.mubr.f32.mxu0 %v248_v57  ;;  %v6926_v12 = vpop.f32.mrb[80].mxu1  ;;  %v290_v57 = vld [vmem:[%s8256_s0 + $0x830] sm:$0xff] }
 0x1bd   :  { %8281 = vst [vmem:[#allocation17_spill] sm:$0xff] %v6926_v12  ;;  %v1882_v17 = vpop.f32.mrb[81].mxu1  ;;  %v451_v12 = vld [vmem:[%s8256_s0 + $0xd38] sm:$0xff] }
 0x1bf   :  { %1374 = vmatmul.mubr.f32.gmra.mrb[62].mxu0 %v247_v41  ;;  %v297_v41 = vld [vmem:[%s8256_s0 + $0x868] sm:$0xff] }
 0x1c0   :  { %1378 = vmatprep.mubr.f32.mxu0 %v255_v47  ;;  %v6934_v46 = vpop.f32.mrb[82].mxu1 }
 0x1c1   :  { %8282 = vst [vmem:[#allocation18_spill] sm:$0xff] %v6934_v46  ;;  %v1887_v28 = vpop.f32.mrb[83].mxu1  ;;  %v3886_v46 = vld [vmem:[%s8257_s3 + $0x48] sm:$0xff] }
 0x1c2   :  { %v317_v28 = vld [vmem:[%s8256_s0 + $0x908] sm:$0xff] }
 0x1c3   :  { %1379 = vmatmul.mubr.f32.gmra.mrb[64].mxu0 %v254_v53 }
 0x1c4   :  { %1383 = vmatprep.mubr.f32.mxu0 %v262_v59  ;;  %v6942_v55 = vpop.f32.mrb[84].mxu1  ;;  %v304_v59 = vld [vmem:[%s8256_s0 + $0x8a0] sm:$0xff] }
 0x1c5   :  { %8283 = vst [vmem:[#allocation19_spill] sm:$0xff] %v6942_v55  ;;  %v1892_v2 = vpop.f32.mrb[85].mxu1  ;;  %v443_v55 = vld [vmem:[%s8256_s0 + $0xcf8] sm:$0xff] }
 0x1c7   :  { %1384 = vmatmul.mubr.f32.gmra.mrb[66].mxu0 %v261_v63  ;;  %v303_v63 = vld [vmem:[%s8256_s0 + $0x898] sm:$0xff] }
 0x1c8   :  { %1388 = vmatprep.mubr.f32.mxu0 %v269_v6  ;;  %v6950_v40 = vpop.f32.mrb[86].mxu1 }
 0x1c9   :  { %8284 = vst [vmem:[#allocation20_spill] sm:$0xff] %v6950_v40  ;;  %v1897_v47 = vpop.f32.mrb[87].mxu1 }
 0x1ca   :  { %v332_v47 = vld [vmem:[%s8256_s0 + $0x980] sm:$0xff] }
 0x1cb   :  { %1389 = vmatmul.mubr.f32.gmra.mrb[68].mxu0 %v268_v10 }
 0x1cc   :  { %1393 = vmatprep.mubr.f32.mxu0 %v276_v16  ;;  %v6958_v53 = vpop.f32.mrb[88].mxu1  ;;  %v310_v16 = vld [vmem:[%s8256_s0 + $0x8d0] sm:$0xff] }
 0x1cd   :  { %8285 = vst [vmem:[#allocation21_spill] sm:$0xff] %v6958_v53  ;;  %v1902_v19 = vpop.f32.mrb[89].mxu1  ;;  %v436_v53 = vld [vmem:[%s8256_s0 + $0xcc0] sm:$0xff] }
 0x1cf   :  { %1394 = vmatmul.mubr.f32.gmra.mrb[70].mxu0 %v275_v20  ;;  %v318_v20 = vld [vmem:[%s8256_s0 + $0x910] sm:$0xff] }
 0x1d0   :  { %1398 = vmatprep.mubr.f32.mxu0 %v283_v22  ;;  %v6966_v6 = vpop.f32.mrb[90].mxu1 }
 0x1d1   :  { %8286 = vst [vmem:[#allocation22_spill] sm:$0xff] %v6966_v6  ;;  %v1907_v10 = vpop.f32.mrb[91].mxu1 }
 0x1d2   :  { %v338_v10 = vld [vmem:[%s8256_s0 + $0x9b0] sm:$0xff] }
 0x1d3   :  { %1399 = vmatmul.mubr.f32.gmra.mrb[72].mxu0 %v282_v29 }
 0x1d4   :  { %1403 = vmatprep.mubr.f32.mxu0 %v290_v57  ;;  %v6974_v17 = vpop.f32.mrb[92].mxu1  ;;  %v325_v57 = vld [vmem:[%s8256_s0 + $0x948] sm:$0xff] }
 0x1d5   :  { %8287 = vst [vmem:[#allocation23_spill] sm:$0xff] %v6974_v17  ;;  %v1912_v22 = vpop.f32.mrb[93].mxu1  ;;  %v429_v17 = vld [vmem:[%s8256_s0 + $0xc88] sm:$0xff] }
 0x1d7   :  { %1404 = vmatmul.mubr.f32.gmra.mrb[74].mxu0 %v289_v37  ;;  %v324_v37 = vld [vmem:[%s8256_s0 + $0x940] sm:$0xff] }
 0x1d8   :  { %1408 = vmatprep.mubr.f32.mxu0 %v297_v41  ;;  %v6982_v29 = vpop.f32.mrb[94].mxu1 }
 0x1d9   :  { %8288 = vst [vmem:[#allocation24_spill] sm:$0xff] %v6982_v29  ;;  %v1917_v2 = vpop.f32.mrb[95].mxu1 }
 0x1da   :  { %v353_v2 = vld [vmem:[%s8256_s0 + $0xa28] sm:$0xff] }
 0x1db   :  { %1409 = vmatmul.mubr.f32.gmra.mrb[76].mxu0 %v296_v52 }
 0x1dc   :  { %1413 = vmatprep.mubr.f32.mxu0 %v304_v59  ;;  %v6990_v41 = vpop.f32.mrb[96].mxu1  ;;  %v331_v59 = vld [vmem:[%s8256_s0 + $0x978] sm:$0xff] }
 0x1dd   :  { %8289 = vst [vmem:[#allocation25_spill] sm:$0xff] %v6990_v41  ;;  %v1922_v52 = vpop.f32.mrb[97].mxu1  ;;  %v422_v41 = vld [vmem:[%s8256_s0 + $0xc50] sm:$0xff] }
 0x1df   :  { %1414 = vmatmul.mubr.f32.gmra.mrb[78].mxu0 %v303_v63  ;;  %v339_v63 = vld [vmem:[%s8256_s0 + $0x9b8] sm:$0xff] }
 0x1e0   :  { %1418 = vmatprep.mubr.f32.mxu0 %v311_v9  ;;  %v6998_v19 = vpop.f32.mrb[98].mxu1 }
 0x1e1   :  { %8290 = vst [vmem:[#allocation26_spill] sm:$0xff] %v6998_v19  ;;  %v7003_v9 = vpop.f32.mrb[99].mxu1  ;;  %v415_v19 = vld [vmem:[%s8256_s0 + $0xc18] sm:$0xff] }
 0x1e2   :  { %8291 = vst [vmem:[#allocation27_spill] sm:$0xff] %v7003_v9 }
 0x1e3   :  { %1419 = vmatmul.mubr.f32.gmra.mrb[80].mxu0 %v310_v16 }
 0x1e4   :  { %1423 = vmatprep.mubr.f32.mxu0 %v318_v20  ;;  %v7008_v16 = vpop.f32.mrb[100].mxu1  ;;  %v346_v20 = vld [vmem:[%s8256_s0 + $0x9f0] sm:$0xff] }
 0x1e5   :  { %8292 = vst [vmem:[#allocation28_spill] sm:$0xff] %v7008_v16  ;;  %v7013_v22 = vpop.f32.mrb[101].mxu1  ;;  %v408_v16 = vld [vmem:[%s8256_s0 + $0xbe0] sm:$0xff] }
 0x1e6   :  { %8293 = vst [vmem:[#allocation29_spill] sm:$0xff] %v7013_v22 }
 0x1e7   :  { %1424 = vmatmul.mubr.f32.gmra.mrb[82].mxu0 %v317_v28  ;;  %v345_v28 = vld [vmem:[%s8256_s0 + $0x9e8] sm:$0xff] }
 0x1e8   :  { %1428 = vmatprep.mubr.f32.mxu0 %v325_v57  ;;  %v7018_v57 = vpop.f32.mrb[102].mxu1 }
 0x1e9   :  { %8294 = vst [vmem:[#allocation30_spill] sm:$0xff] %v7018_v57  ;;  %v401_v57 = vld [vmem:[%s8256_s0 + $0xba8] sm:$0xff] }
 0x1eb   :  { %1429 = vmatmul.mubr.f32.gmra.mrb[84].mxu0 %v324_v37  ;;  %v7023_v37 = vpop.f32.mrb[103].mxu1 }
 0x1ec   :  { %1433 = vmatprep.mubr.f32.mxu0 %v332_v47  ;;  %8295 = vst [vmem:[#allocation31_spill] sm:$0xff] %v7023_v37  ;;  %v352_v47 = vld [vmem:[%s8256_s0 + $0xa20] sm:$0xff]  ;;  %v7028_v52 = vpop.f32.mrb[104].mxu1 }
 0x1ed   :  { %8296 = vst [vmem:[#allocation32_spill] sm:$0xff] %v7028_v52 }
 0x1ef   :  { %1434 = vmatmul.mubr.f32.gmra.mrb[86].mxu0 %v331_v59  ;;  %v360_v59 = vld [vmem:[%s8256_s0 + $0xa60] sm:$0xff] }
 0x1f0   :  { %1438 = vmatprep.mubr.f32.mxu0 %v339_v63  ;;  %v7033_v63 = vpop.f32.mrb[105].mxu1 }
 0x1f1   :  { %8297 = vst [vmem:[#allocation33_spill] sm:$0xff] %v7033_v63 }
 0x1f3   :  { %1439 = vmatmul.mubr.f32.gmra.mrb[88].mxu0 %v338_v10  ;;  %v359_v10 = vld [vmem:[%s8256_s0 + $0xa58] sm:$0xff] }
 0x1f4   :  { %1443 = vmatprep.mubr.f32.mxu0 %v346_v20  ;;  %v7038_v20 = vpop.f32.mrb[106].mxu1 }
 0x1f5   :  { %8298 = vst [vmem:[#allocation34_spill] sm:$0xff] %v7038_v20  ;;  %v373_v20 = vld [vmem:[%s8256_s0 + $0xac8] sm:$0xff] }
 0x1f7   :  { %1444 = vmatmul.mubr.f32.gmra.mrb[90].mxu0 %v345_v28  ;;  %v367_v28 = vld [vmem:[%s8256_s0 + $0xa98] sm:$0xff] }
 0x1f8   :  { %1448 = vmatprep.mubr.f32.mxu0 %v353_v2  ;;  %v7043_v2 = vpop.f32.mrb[107].mxu1 }
 0x1f9   :  { %8299 = vst [vmem:[#allocation35_spill] sm:$0xff] %v7043_v2 }
 0x1fb   :  { %1449 = vmatmul.mubr.f32.gmra.mrb[92].mxu0 %v352_v47  ;;  %v7048_v47 = vpop.f32.mrb[108].mxu1 }
 0x1fc   :  { %1453 = vmatprep.mubr.f32.mxu0 %v360_v59  ;;  %8300 = vst [vmem:[#allocation36_spill] sm:$0xff] %v7048_v47  ;;  %v374_v59 = vld [vmem:[%s8256_s0 + $0xad0] sm:$0xff]  ;;  %v7053_v52 = vpop.f32.mrb[109].mxu1  ;;  %v380_v47 = vld [vmem:[%s8256_s0 + $0xb00] sm:$0xff] }
 0x1fd   :  { %8301 = vst [vmem:[#allocation37_spill] sm:$0xff] %v7053_v52 }
 0x1ff   :  { %1454 = vmatmul.mubr.f32.gmra.mrb[94].mxu0 %v359_v10  ;;  %v7058_v10 = vpop.f32.mrb[110].mxu1 }
 0x200   :  { %1458 = vmatprep.mubr.f32.mxu0 %v367_v28  ;;  %8302 = vst [vmem:[#allocation38_spill] sm:$0xff] %v7058_v10  ;;  %v381_v28 = vld [vmem:[%s8256_s0 + $0xb08] sm:$0xff]  ;;  %v7063_v2 = vpop.f32.mrb[111].mxu1  ;;  %v387_v10 = vld [vmem:[%s8256_s0 + $0xb38] sm:$0xff] }
 0x201   :  { %8303 = vst [vmem:[#allocation39_spill] sm:$0xff] %v7063_v2 }
 0x203   :  { %1459 = vmatmul.mubr.f32.gmra.mrb[96].mxu0 %v366_v0  ;;  %v7068_v0 = vpop.f32.mrb[112].mxu1 }
 0x204   :  { %1463 = vmatprep.mubr.f32.mxu0 %v374_v59  ;;  %v388_v59 = vld [vmem:[%s8256_s0 + $0xb40] sm:$0xff]  ;;  %v7073_v52 = vpop.f32.mrb[113].mxu1 }
 0x205   :  { %8304 = vst [vmem:[#allocation40_spill] sm:$0xff] %v7073_v52  ;;  %v394_v52 = vld [vmem:[%s8256_s0 + $0xb70] sm:$0xff] }
 0x207   :  { %1464 = vmatmul.mubr.f32.gmra.mrb[98].mxu0 %v373_v20  ;;  %v7078_v20 = vpop.f32.mrb[114].mxu1 }
 0x208   :  { %1468 = vmatprep.mubr.f32.mxu0 %v381_v28  ;;  %v395_v28 = vld [vmem:[%s8256_s0 + $0xb78] sm:$0xff]  ;;  %v7083_v2 = vpop.f32.mrb[115].mxu1 }
 0x20b   :  { %1469 = vmatmul.mubr.f32.gmra.mrb[100].mxu0 %v380_v47  ;;  %v7088_v47 = vpop.f32.mrb[116].mxu1 }
 0x20c   :  { %1473 = vmatprep.mubr.f32.mxu0 %v388_v59  ;;  %v402_v59 = vld [vmem:[%s8256_s0 + $0xbb0] sm:$0xff]  ;;  %v7093_v63 = vpop.f32.mrb[117].mxu1 }
 0x20f   :  { %1474 = vmatmul.mubr.f32.gmra.mrb[102].mxu0 %v387_v10  ;;  %v7098_v10 = vpop.f32.mrb[118].mxu1 }
 0x210   :  { %1478 = vmatprep.mubr.f32.mxu0 %v395_v28  ;;  %v409_v28 = vld [vmem:[%s8256_s0 + $0xbe8] sm:$0xff]  ;;  %v7103_v37 = vpop.f32.mrb[119].mxu1 }
 0x213   :  { %1479 = vmatmul.mubr.f32.gmra.mrb[104].mxu0 %v394_v52  ;;  %v7108_v52 = vpop.f32.mrb[120].mxu1 }
 0x214   :  { %1483 = vmatprep.mubr.f32.mxu0 %v402_v59  ;;  %v416_v59 = vld [vmem:[%s8256_s0 + $0xc20] sm:$0xff]  ;;  %v7113_v22 = vpop.f32.mrb[121].mxu1 }
 0x217   :  { %1484 = vmatmul.mubr.f32.gmra.mrb[106].mxu0 %v401_v57  ;;  %v7118_v57 = vpop.f32.mrb[122].mxu1 }
 0x218   :  { %1488 = vmatprep.mubr.f32.mxu0 %v409_v28  ;;  %v423_v28 = vld [vmem:[%s8256_s0 + $0xc58] sm:$0xff]  ;;  %v7123_v9 = vpop.f32.mrb[123].mxu1 }
 0x21b   :  { %1489 = vmatmul.mubr.f32.gmra.mrb[108].mxu0 %v408_v16  ;;  %v7128_v16 = vpop.f32.mrb[124].mxu1 }
 0x21c   :  { %1493 = vmatprep.mubr.f32.mxu0 %v416_v59  ;;  %v430_v59 = vld [vmem:[%s8256_s0 + $0xc90] sm:$0xff]  ;;  %v7133_v29 = vpop.f32.mrb[125].mxu1 }
 0x21f   :  { %1494 = vmatmul.mubr.f32.gmra.mrb[110].mxu0 %v415_v19  ;;  %v7138_v19 = vpop.f32.mrb[126].mxu1 }
 0x220   :  { %1498 = vmatprep.mubr.f32.mxu0 %v423_v28  ;;  %v437_v28 = vld [vmem:[%s8256_s0 + $0xcc8] sm:$0xff]  ;;  %v7143_v6 = vpop.f32.mrb[127].mxu1 }
 0x223   :  { %1499 = vmatmul.mubr.f32.gmra.mrb[112].mxu0 %v422_v41  ;;  %v7148_v41 = vpop.f32.mrb[128].mxu1 }
 0x224   :  { %1503 = vmatprep.mubr.f32.mxu0 %v430_v59  ;;  %v444_v59 = vld [vmem:[%s8256_s0 + $0xd00] sm:$0xff]  ;;  %v7153_v40 = vpop.f32.mrb[129].mxu1 }
 0x227   :  { %1504 = vmatmul.mubr.f32.gmra.mrb[114].mxu0 %v429_v17  ;;  %v7158_v17 = vpop.f32.mrb[130].mxu1 }
 0x228   :  { %1508 = vmatprep.mubr.f32.mxu0 %v437_v28  ;;  %v3885_v28 = vld [vmem:[%s8257_s3 + $0x40] sm:$0xff] }
 0x22b   :  { %1509 = vmatmul.mubr.f32.gmra.mrb[116].mxu0 %v436_v53  ;;  %v7169_v53 = vpop.f32.mrb[131].mxu1 }
 0x22c   :  { %1513 = vmatprep.mubr.f32.mxu0 %v444_v59  ;;  %v4797_v59 = vpack.c.bf16 %v3886_v46, %v3885_v28  ;;  %v7174_v54 = vpop.f32.mrb[132].mxu1 }
 0x22d   :  { %v7180_v24 = vpop.f32.mrb[133].mxu1 }
 0x22e   :  { %4798 = vmatpush3.bf16.msra.mxu1 %v4797_v59  ;;  %v7185_v46 = vpop.f32.mrb[134].mxu1  ;;  %v464_v59 = vld [vmem:[%s8256_s0 + $0xda0] sm:$0xff] }
 0x22f   :  { %1514 = vmatmul.mubr.f32.gmra.mrb[118].mxu0 %v443_v55  ;;  %4799 = vmatprep.subr.bf16.mxu1 %v8305_v43  ;;  %v465_v55 = vld [vmem:[%s8256_s0 + $0xda8] sm:$0xff]  ;;  %v7190_v28 = vpop.f32.mrb[135].mxu1 }
 0x230   :  { %1518 = vmatprep.mubr.f32.mxu0 %v451_v12  ;;  %v457_v12 = vld [vmem:[%s8256_s0 + $0xd68] sm:$0xff] }
 0x233   :  { %1519 = vmatmul.mubr.f32.gmra.mrb[120].mxu0 %v450_v3  ;;  %v7195_v3 = vpop.f32.mrb[136].mxu1 }
 0x234   :  { %1523 = vmatprep.mubr.f32.mxu0 %v458_v30  ;;  %v472_v30 = vld [vmem:[%s8256_s0 + $0xde0] sm:$0xff]  ;;  %v7200_v14 = vpop.f32.mrb[137].mxu1 }
 0x237   :  { %1524 = vmatmul.mubr.f32.gmra.mrb[122].mxu0 %v457_v12  ;;  %v7205_v12 = vpop.f32.mrb[138].mxu1 }
 0x238   :  { %1528 = vmatprep.mubr.f32.mxu0 %v465_v55  ;;  %8306 = vst [vmem:[#allocation41_spill] sm:$0xff] %v7205_v12  ;;  %v33_v55 = vld [vmem:[%s8256_s0 + $0x28] sm:$0xff]  ;;  %v7210_v56 = vpop.f32.mrb[139].mxu1 }
 0x23b   :  { %1529 = vmatmul.mubr.f32.gmra.mrb[124].mxu0 %v464_v59  ;;  %v7215_v59 = vpop.f32.mrb[140].mxu1 }
 0x23c   :  { %1533 = vmatprep.mubr.f32.mxu0 %v472_v30  ;;  %8307 = vst [vmem:[#allocation42_spill] sm:$0xff] %v7215_v59  ;;  %v40_v30 = vld [vmem:[%s8256_s0 + $0x60] sm:$0xff]  ;;  %v7220_v34 = vpop.f32.mrb[141].mxu1  ;;  %v46_v59 = vld [vmem:[%s8256_s0 + $0x90] sm:$0xff] }
 0x23d   :  { %8308 = vst [vmem:[#allocation43_spill] sm:$0xff] %v7220_v34 }
 0x23f   :  { %1534 = vmatmul.mubr.f32.gmra.mrb[126].mxu0 %v471_v26  ;;  %v47_v26 = vld [vmem:[%s8256_s0 + $0x98] sm:$0xff] }
 0x240   :  { %1603 = vmatprep.mubr.f32.mxu0 %v33_v55 }
 0x243   :  { %1604 = vmatmul.mubr.f32.vlgmr.msra.gmra.mrb[0].mxu0 %v32_v48  ;;  %v54_v48 = vld [vmem:[%s8256_s0 + $0xd0] sm:$0xff] }
 0x244   :  { %1608 = vmatprep.mubr.f32.mxu0 %v40_v30  ;;  %v7228_v55 = vpop.f32.mrb[142].mxu1  ;;  %v3887_v30 = vld [vmem:[%s8257_s3 + $0x50] sm:$0xff] }
 0x245   :  { %8309 = vst [vmem:[#allocation44_spill] sm:$0xff] %v7228_v55  ;;  %v7233_v25 = vpop.f32.mrb[143].mxu1 }
 0x246   :  { %8310 = vst [vmem:[#allocation45_spill] sm:$0xff] %v7233_v25  ;;  %v61_v25 = vld [vmem:[%s8256_s0 + $0x108] sm:$0xff] }
 0x247   :  { %1609 = vmatmul.mubr.f32.gmra.mrb[2].mxu0 %v39_v32  ;;  %v3888_v32 = vld [vmem:[%s8257_s3 + $0x58] sm:$0xff] }
 0x248   :  { %1613 = vmatprep.mubr.f32.mxu0 %v47_v26  ;;  %v53_v26 = vld [vmem:[%s8256_s0 + $0xc8] sm:$0xff]  ;;  %v4800_v55 = vpack.c.bf16 %v3888_v32, %v3887_v30  ;;  %v68_v30 = vld [vmem:[%s8256_s0 + $0x140] sm:$0xff] }
 0x24a   :  { %4801 = vmatpush3.bf16.msra.mxu1 %v4800_v55 }
 0x24b   :  { %1614 = vmatmul.mubr.f32.gmra.mrb[4].mxu0 %v46_v59  ;;  %v7250_v59 = vpop.f32.mrb[144].mxu1  ;;  %4802 = vmatprep.subr.bf16.mxu1 %v8305_v43 }
 0x24c   :  { %1618 = vmatprep.mubr.f32.mxu0 %v54_v48  ;;  %8311 = vst [vmem:[#allocation46_spill] sm:$0xff] %v7250_v59  ;;  %v60_v48 = vld [vmem:[%s8256_s0 + $0x100] sm:$0xff]  ;;  %v7256_v34 = vpop.f32.mrb[145].mxu1  ;;  %v75_v59 = vld [vmem:[%s8256_s0 + $0x178] sm:$0xff] }
 0x24d   :  { %8312 = vst [vmem:[#allocation47_spill] sm:$0xff] %v7256_v34 }
 0x24f   :  { %1619 = vmatmul.mubr.f32.gmra.mrb[6].mxu0 %v53_v26 }
 0x250   :  { %1623 = vmatprep.mubr.f32.mxu0 %v61_v25  ;;  %v67_v25 = vld [vmem:[%s8256_s0 + $0x138] sm:$0xff] }
 0x252   :  { %v1295_v32 = vpop.f32.mrb[30].mxu0 }
 0x253   :  { %v5020_v39 = vadd.f32 %v6584_v1, %v1295_v32  ;;  %v1297_v55 = vpop.f32.mrb[31].mxu0  ;;  %1624 = vmatmul.mubr.f32.gmra.mrb[8].mxu0 %v60_v48  ;;  %v7272_v1 = vpop.f32.mrb[146].mxu1  ;;  %v74_v48 = vld [vmem:[%s8256_s0 + $0x170] sm:$0xff] }
 0x254   :  { %1628 = vmatprep.mubr.f32.mxu0 %v68_v30  ;;  %v7277_v30 = vpop.f32.mrb[147].mxu1 }
 0x255   :  { %v7266_v26 = vadd.f32 %v5020_v39, %v7068_v0  ;;  %v82_v0 = vld [vmem:[%s8256_s0 + $0x1b0] sm:$0xff] }
 0x256   :  { %v1300_v34 = vpop.f32.mrb[32].mxu0 }
 0x257   :  { %v5021_v12 = vadd.f32 %v6595_v42, %v1300_v34  ;;  %v1302_v36 = vpop.f32.mrb[33].mxu0  ;;  %1629 = vmatmul.mubr.f32.gmra.mrb[10].mxu0 %v67_v25  ;;  %v81_v34 = vld [vmem:[%s8256_s0 + $0x1a8] sm:$0xff] }
 0x258   :  { %1633 = vmatprep.mubr.f32.mxu0 %v75_v59 }
 0x259   :  { %v7280_v39 = vadd.f32 %v5021_v12, %v7083_v2  ;;  %v89_v2 = vld [vmem:[%s8256_s0 + $0x1e8] sm:$0xff] }
 0x25a   :  { %v1305_v32 = vpop.f32.mrb[34].mxu0 }
 0x25b   :  { %v5022_v42 = vadd.f32 %v6601_v7, %v1305_v32  ;;  %v1307_v36 = vpop.f32.mrb[35].mxu0  ;;  %1634 = vmatmul.mubr.f32.gmra.mrb[12].mxu0 %v74_v48  ;;  %v7296_v7 = vpop.f32.mrb[148].mxu1  ;;  %v88_v48 = vld [vmem:[%s8256_s0 + $0x1e0] sm:$0xff] }
 0x25c   :  { %1638 = vmatprep.mubr.f32.mxu0 %v82_v0  ;;  %v7301_v0 = vpop.f32.mrb[149].mxu1  ;;  %v96_v32 = vld [vmem:[%s8256_s0 + $0x220] sm:$0xff] }
 0x25d   :  { %v7290_v59 = vadd.f32 %v5022_v42, %v7078_v20 }
 0x25e   :  { %v1310_v12 = vpop.f32.mrb[36].mxu0 }
 0x25f   :  { %v5023_v55 = vadd.f32 %v6612_v50, %v1310_v12  ;;  %v1312_v25 = vpop.f32.mrb[37].mxu0  ;;  %1639 = vmatmul.mubr.f32.gmra.mrb[14].mxu0 %v81_v34  ;;  %v95_v34 = vld [vmem:[%s8256_s0 + $0x218] sm:$0xff] }
 0x260   :  { %1643 = vmatprep.mubr.f32.mxu0 %v89_v2 }
 0x261   :  { %v7304_v20 = vadd.f32 %v5023_v55, %v7093_v63  ;;  %v103_v63 = vld [vmem:[%s8256_s0 + $0x258] sm:$0xff] }
 0x262   :  { %v1315_v42 = vpop.f32.mrb[38].mxu0 }
 0x263   :  { %v5024_v50 = vadd.f32 %v6618_v13, %v1315_v42  ;;  %v1317_v36 = vpop.f32.mrb[39].mxu0  ;;  %1644 = vmatmul.mubr.f32.gmra.mrb[16].mxu0 %v88_v48  ;;  %v7320_v13 = vpop.f32.mrb[150].mxu1  ;;  %v102_v48 = vld [vmem:[%s8256_s0 + $0x250] sm:$0xff] }
 0x264   :  { %1648 = vmatprep.mubr.f32.mxu0 %v96_v32  ;;  %v7325_v32 = vpop.f32.mrb[151].mxu1  ;;  %v110_v42 = vld [vmem:[%s8256_s0 + $0x290] sm:$0xff] }
 0x265   :  { %v7314_v2 = vadd.f32 %v5024_v50, %v7088_v47 }
 0x266   :  { %v1320_v12 = vpop.f32.mrb[40].mxu0 }
 0x267   :  { %v5025_v55 = vadd.f32 %v6631_v60, %v1320_v12  ;;  %v1322_v25 = vpop.f32.mrb[41].mxu0  ;;  %1649 = vmatmul.mubr.f32.gmra.mrb[18].mxu0 %v95_v34  ;;  %v3889_v34 = vld [vmem:[%s8257_s3 + $0x60] sm:$0xff] }
 0x268   :  { %1653 = vmatprep.mubr.f32.mxu0 %v103_v63  ;;  %v3890_v63 = vld [vmem:[%s8257_s3 + $0x68] sm:$0xff] }
 0x269   :  { %v7328_v47 = vadd.f32 %v5025_v55, %v7103_v37  ;;  %v109_v37 = vld [vmem:[%s8256_s0 + $0x288] sm:$0xff]  ;;  %v4803_v12 = vpack.c.bf16 %v3890_v63, %v3889_v34 }
 0x26a   :  { %v1325_v50 = vpop.f32.mrb[42].mxu0 }
 0x26b   :  { %v5026_v60 = vadd.f32 %v6634_v62, %v1325_v50  ;;  %v1327_v36 = vpop.f32.mrb[43].mxu0  ;;  %1654 = vmatmul.mubr.f32.gmra.mrb[20].mxu0 %v102_v48  ;;  %v117_v62 = vld [vmem:[%s8256_s0 + $0x2c8] sm:$0xff]  ;;  %4804 = vmatpush3.bf16.msra.mxu1 %v4803_v12  ;;  %v123_v12 = vld [vmem:[%s8256_s0 + $0x2f8] sm:$0xff] }
 0x26c   :  { %1658 = vmatprep.mubr.f32.mxu0 %v110_v42  ;;  %v7350_v36 = vpop.f32.mrb[152].mxu1  ;;  %4805 = vmatprep.subr.bf16.mxu1 %v8305_v43 }
 0x26d   :  { %v7344_v55 = vadd.f32 %v5026_v60, %v7098_v10  ;;  %v116_v10 = vld [vmem:[%s8256_s0 + $0x2c0] sm:$0xff]  ;;  %v7356_v42 = vpop.f32.mrb[153].mxu1 }
 0x26e   :  { %v1330_v25 = vpop.f32.mrb[44].mxu0 }
 0x26f   :  { %v5027_v48 = vadd.f32 %v6643_v4, %v1330_v25  ;;  %v1332_v50 = vpop.f32.mrb[45].mxu0  ;;  %1659 = vmatmul.mubr.f32.gmra.mrb[22].mxu0 %v109_v37  ;;  %v124_v4 = vld [vmem:[%s8256_s0 + $0x300] sm:$0xff] }
 0x270   :  { %1663 = vmatprep.mubr.f32.mxu0 %v117_v62 }
 0x271   :  { %v7359_v60 = vadd.f32 %v5027_v48, %v7113_v22  ;;  %v131_v22 = vld [vmem:[%s8256_s0 + $0x338] sm:$0xff] }
 0x272   :  { %v1335_v34 = vpop.f32.mrb[46].mxu0 }
 0x273   :  { %8313 = vst [vmem:[#allocation48_spill] sm:$0xff] %v7359_v60  ;;  %v5028_v63 = vadd.f32 %v6650_v8, %v1335_v34  ;;  %v1337_v37 = vpop.f32.mrb[47].mxu0  ;;  %1664 = vmatmul.mubr.f32.gmra.mrb[24].mxu0 %v116_v10  ;;  %v7375_v8 = vpop.f32.mrb[154].mxu1  ;;  %v130_v10 = vld [vmem:[%s8256_s0 + $0x330] sm:$0xff] }
 0x274   :  { %1668 = vmatprep.mubr.f32.mxu0 %v124_v4  ;;  %v7380_v4 = vpop.f32.mrb[155].mxu1 }
 0x275   :  { %v7369_v62 = vadd.f32 %v5028_v63, %v7108_v52 }
 0x276   :  { %v1340_v25 = vpop.f32.mrb[48].mxu0 }
 0x277   :  { %8314 = vst [vmem:[#allocation49_spill] sm:$0xff] %v7369_v62  ;;  %v5029_v48 = vadd.f32 %v6662_v11, %v1340_v25  ;;  %v1342_v50 = vpop.f32.mrb[49].mxu0  ;;  %1669 = vmatmul.mubr.f32.gmra.mrb[26].mxu0 %v123_v12 }
 0x278   :  { %1673 = vmatprep.mubr.f32.mxu0 %v131_v22  ;;  %v7390_v50 = vpop.f32.mrb[156].mxu1 }
 0x279   :  { %v7383_v52 = vadd.f32 %v5029_v48, %v7123_v9  ;;  %v7392_v62 = vpop.f32.mrb[157].mxu1 }
 0x27a   :  { %v1345_v34 = vpop.f32.mrb[50].mxu0 }
 0x27b   :  { %v5030_v63 = vadd.f32 %v6666_v27, %v1345_v34  ;;  %v1347_v37 = vpop.f32.mrb[51].mxu0  ;;  %1674 = vmatmul.mubr.f32.gmra.mrb[28].mxu0 %v130_v10 }
 0x27d   :  { %v7387_v11 = vadd.f32 %v5030_v63, %v7118_v57 }
 0x27e   :  { %v1350_v12 = vpop.f32.mrb[52].mxu0 }
 0x27f   :  { %v5031_v22 = vadd.f32 %v6674_v33, %v1350_v12  ;;  %v1352_v25 = vpop.f32.mrb[53].mxu0  ;;  %v7402_v33 = vpop.f32.mrb[158].mxu1 }
 0x280   :  { %v7404_v37 = vpop.f32.mrb[159].mxu1 }
 0x281   :  { %v7395_v60 = vadd.f32 %v5031_v22, %v7133_v29 }
 0x282   :  { %v1355_v9 = vpop.f32.mrb[54].mxu0 }
 0x283   :  { %v5032_v48 = vadd.f32 %v6682_v18, %v1355_v9  ;;  %v1357_v27 = vpop.f32.mrb[55].mxu0  ;;  %v3891_v18 = vld [vmem:[%s8257_s3 + $0x70] sm:$0xff] }
 0x285   :  { %v7399_v10 = vadd.f32 %v5032_v48, %v7128_v16 }
 0x286   :  { %v1360_v57 = vpop.f32.mrb[56].mxu0 }
 0x287   :  { %v5033_v34 = vadd.f32 %v6694_v23, %v1360_v57  ;;  %v1362_v63 = vpop.f32.mrb[57].mxu0  ;;  %v3892_v23 = vld [vmem:[%s8257_s3 + $0x78] sm:$0xff]  ;;  %v7420_v57 = vpop.f32.mrb[160].mxu1 }
 0x288   :  { %v4806_v16 = vpack.c.bf16 %v3892_v23, %v3891_v18 }
 0x289   :  { %v7407_v12 = vadd.f32 %v5033_v34, %v7143_v6 }
 0x28a   :  { %v1365_v29 = vpop.f32.mrb[58].mxu0  ;;  %4807 = vmatpush3.bf16.msra.mxu1 %v4806_v16 }
 0x28b   :  { %v5034_v22 = vadd.f32 %v6698_v45, %v1365_v29  ;;  %v1367_v25 = vpop.f32.mrb[59].mxu0  ;;  %4808 = vmatprep.subr.bf16.mxu1 %v8305_v43  ;;  %v7423_v45 = vpop.f32.mrb[161].mxu1 }
 0x28d   :  { %v7417_v9 = vadd.f32 %v5034_v22, %v7138_v19 }
 0x28e   :  { %v1370_v48 = vpop.f32.mrb[60].mxu0 }
 0x28f   :  { %v5035_v6 = vadd.f32 %v6706_v51, %v1370_v48  ;;  %v1372_v27 = vpop.f32.mrb[61].mxu0  ;;  %v7432_v51 = vsel %vm2309_vm1, %v7266_v26, -inf }
 0x291   :  { %v7426_v34 = vadd.f32 %v5035_v6, %v7153_v40 }
 0x292   :  { %v1375_v63 = vpop.f32.mrb[62].mxu0 }
 0x293   :  { %v5036_v29 = vadd.f32 %v6713_v31, %v1375_v63  ;;  %v1377_v25 = vpop.f32.mrb[63].mxu0 }
 0x295   :  { %v2146_v19 = vadd.f32 %v5036_v29, %v7148_v41 }
 0x296   :  { %v1380_v22 = vpop.f32.mrb[64].mxu0 }
 0x297   :  { %v7435_v18 = vsel %vm2309_vm1, %v2146_v19, -inf  ;;  %v5037_v23 = vadd.f32 %v6725_v35, %v1380_v22  ;;  %v1382_v16 = vpop.f32.mrb[65].mxu0 }
 0x299   :  { %v7441_v31 = vadd.f32 %v5037_v23, %v7169_v53 }
 0x29a   :  { %v1385_v48 = vpop.f32.mrb[66].mxu0 }
 0x29b   :  { %v5038_v41 = vadd.f32 %v6727_v38, %v1385_v48  ;;  %v1387_v6 = vpop.f32.mrb[67].mxu0 }
 0x29d   :  { %v7445_v27 = vadd.f32 %v5038_v41, %v7158_v17  ;;  %v8265_v17 = vmov 0.0  }
 0x29e   :  { %v1390_v26 = vpop.f32.mrb[68].mxu0  ;;  %4356 = vmatprep.mubr.msk.f32.mxu1 %vm5231_vm2, %v8265_v17 }
 0x29f   :  { %v5039_v63 = vadd.f32 %v6735_v44, %v1390_v26  ;;  %v1392_v29 = vpop.f32.mrb[69].mxu0 }
 0x2a1   :  { %v7449_v35 = vadd.f32 %v5039_v63, %v7180_v24 }
 0x2a2   :  { %v1395_v25 = vpop.f32.mrb[70].mxu0 }
 0x2a3   :  { %v5040_v19 = vadd.f32 %v6741_v49, %v1395_v25  ;;  %v1397_v22 = vpop.f32.mrb[71].mxu0 }
 0x2a5   :  { %v7453_v53 = vadd.f32 %v5040_v19, %v7174_v54 }
 0x2a6   :  { %v1400_v23 = vpop.f32.mrb[72].mxu0 }
 0x2a7   :  { %v5041_v38 = vadd.f32 %v6753_v58, %v1400_v23  ;;  %v1402_v16 = vpop.f32.mrb[73].mxu0 }
 0x2a9   :  { %v7459_v44 = vadd.f32 %v5041_v38, %v7190_v28 }
 0x2aa   :  { %v1405_v24 = vpop.f32.mrb[74].mxu0 }
 0x2ab   :  { %v5042_v48 = vadd.f32 %v6755_v61, %v1405_v24  ;;  %v1407_v49 = vpop.f32.mrb[75].mxu0 }
 0x2ad   :  { %v7463_v41 = vadd.f32 %v5042_v48, %v7185_v46 }
 0x2ae   :  { %v1410_v54 = vpop.f32.mrb[76].mxu0 }
 0x2af   :  { %v5043_v6 = vadd.f32 %v6763_v5, %v1410_v54  ;;  %v1412_v58 = vpop.f32.mrb[77].mxu0  ;;  %v8315_v5 = vld [vmem:[#allocation3_spill] sm:$0xff] }
 0x2b1   :  { %v7467_v26 = vadd.f32 %v5043_v6, %v7200_v14  ;;  %v8316_v14 = vld [vmem:[#allocation41_spill] sm:$0xff] }
 0x2b2   :  { %v1415_v63 = vpop.f32.mrb[78].mxu0 }
 0x2b3   :  { %v5044_v29 = vadd.f32 %v6769_v21, %v1415_v63  ;;  %v1417_v25 = vpop.f32.mrb[79].mxu0  ;;  %v8317_v21 = vld [vmem:[#allocation4_spill] sm:$0xff] }
 0x2b5   :  { %v7471_v28 = vadd.f32 %v5044_v29, %v7195_v3  ;;  %v8318_v3 = vld [vmem:[#allocation43_spill] sm:$0xff] }
 0x2b6   :  { %v1420_v19 = vpop.f32.mrb[80].mxu0 }
 0x2b7   :  { %v5045_v61 = vadd.f32 %v6781_v15, %v1420_v19  ;;  %v1422_v22 = vpop.f32.mrb[81].mxu0  ;;  %v8319_v15 = vld [vmem:[#allocation5_spill] sm:$0xff] }
 0x2b9   :  { %v7475_v46 = vadd.f32 %v5045_v61, %v7210_v56  ;;  %v8320_v56 = vld [vmem:[#allocation42_spill] sm:$0xff] }
 0x2ba   :  { %v1425_v23 = vpop.f32.mrb[82].mxu0  ;;  %v8321_v61 = vld [vmem:[#allocation6_spill] sm:$0xff] }
 0x2bb   :  { %v5046_v38 = vadd.f32 %v8315_v5, %v1425_v23  ;;  %v1427_v16 = vpop.f32.mrb[83].mxu0  ;;  %v8322_v5 = vld [vmem:[#allocation45_spill] sm:$0xff] }
 0x2bd   :  { %v7479_v24 = vadd.f32 %v5046_v38, %v8316_v14  ;;  %v8323_v14 = vld [vmem:[#allocation7_spill] sm:$0xff] }
 0x2be   :  { %v1430_v48 = vpop.f32.mrb[84].mxu0 }
 0x2bf   :  { %v5047_v49 = vadd.f32 %v8317_v21, %v1430_v48  ;;  %v1432_v54 = vpop.f32.mrb[85].mxu0 }
 0x2c1   :  { %v7483_v6 = vadd.f32 %v5047_v49, %v8318_v3  ;;  %v8324_v49 = vld [vmem:[#allocation44_spill] sm:$0xff] }
 0x2c2   :  { %v1435_v58 = vpop.f32.mrb[86].mxu0 }
 0x2c3   :  { %v5048_v63 = vadd.f32 %v8319_v15, %v1435_v58  ;;  %v1437_v29 = vpop.f32.mrb[87].mxu0  ;;  %v8325_v58 = vld [vmem:[#allocation8_spill] sm:$0xff] }
 0x2c5   :  { %v7487_v25 = vadd.f32 %v5048_v63, %v8320_v56  ;;  %v8326_v63 = vld [vmem:[#allocation47_spill] sm:$0xff] }
 0x2c6   :  { %v1440_v19 = vpop.f32.mrb[88].mxu0 }
 0x2c7   :  { %v5049_v22 = vadd.f32 %v8321_v61, %v1440_v19  ;;  %v1442_v23 = vpop.f32.mrb[89].mxu0  ;;  %v8327_v19 = vld [vmem:[#allocation9_spill] sm:$0xff] }
 0x2c9   :  { %v7491_v38 = vadd.f32 %v5049_v22, %v8322_v5  ;;  %v8328_v22 = vld [vmem:[#allocation46_spill] sm:$0xff] }
 0x2ca   :  { %v1445_v16 = vpop.f32.mrb[90].mxu0 }
 0x2cb   :  { %v5050_v48 = vadd.f32 %v8323_v14, %v1445_v16  ;;  %v1447_v21 = vpop.f32.mrb[91].mxu0  ;;  %v8329_v14 = vld [vmem:[#allocation10_spill] sm:$0xff] }
 0x2cd   :  { %v7495_v54 = vadd.f32 %v5050_v48, %v8324_v49  ;;  %v8330_v49 = vmax.f32 %v7432_v51, %v7435_v18  ;;  %v8333_v18 = vld [vmem:[#allocation13_spill] sm:$0xff] }
 0x2ce   :  { %v1450_v3 = vpop.f32.mrb[92].mxu0 }
 0x2cf   :  { %v5051_v15 = vadd.f32 %v8325_v58, %v1450_v3  ;;  %v1452_v29 = vpop.f32.mrb[93].mxu0 }
 0x2d0   :  { %v8331_v29 = vld [vmem:[#allocation11_spill] sm:$0xff] }
 0x2d1   :  { %v7499_v56 = vadd.f32 %v5051_v15, %v8326_v63 }
 0x2d2   :  { %v1455_v17 = vpop.f32.mrb[94].mxu0 }
 0x2d3   :  { %v5052_v61 = vadd.f32 %v8327_v19, %v1455_v17  ;;  %v1457_v23 = vpop.f32.mrb[95].mxu0 }
 0x2d4   :  { %v8332_v23 = vld [vmem:[#allocation12_spill] sm:$0xff] }
 0x2d5   :  { %v2226_v5 = vadd.f32 %v5052_v61, %v8328_v22 }
 0x2d6   :  { %v1460_v40 = vpop.f32.mrb[96].mxu0 }
 0x2d7   :  { %v2418_v16 = vsel %vm2309_vm1, %v2226_v5, -inf  ;;  %v5053_v21 = vadd.f32 %v8329_v14, %v1460_v40  ;;  %v1462_v48 = vpop.f32.mrb[97].mxu0 }
 0x2d8   :  { %v7508_v3 = vmax.f32 %v8330_v49, %v2418_v16  ;;  %v8334_v48 = vld [vmem:[#allocation14_spill] sm:$0xff] }
 0x2d9   :  { %v7511_v58 = vadd.f32 %v5053_v21, %v7277_v30 }
 0x2da   :  { %v1465_v15 = vpop.f32.mrb[98].mxu0 }
 0x2db   :  { %v5054_v17 = vadd.f32 %v8331_v29, %v1465_v15  ;;  %v1467_v63 = vpop.f32.mrb[99].mxu0 }
 0x2dd   :  { %v7515_v19 = vadd.f32 %v5054_v17, %v7272_v1  ;;  %v8335_v17 = vld [vmem:[#allocation15_spill] sm:$0xff] }
 0x2de   :  { %v1470_v61 = vpop.f32.mrb[100].mxu0 }
 0x2df   :  { %v5055_v22 = vadd.f32 %v8332_v23, %v1470_v61  ;;  %v1472_v40 = vpop.f32.mrb[101].mxu0 }
 0x2e1   :  { %v7519_v5 = vadd.f32 %v5055_v22, %v7301_v0  ;;  %v8336_v22 = vld [vmem:[#allocation16_spill] sm:$0xff] }
 0x2e2   :  { %v1475_v51 = vpop.f32.mrb[102].mxu0 }
 0x2e3   :  { %v5056_v16 = vadd.f32 %v8333_v18, %v1475_v51  ;;  %v1477_v14 = vpop.f32.mrb[103].mxu0 }
 0x2e5   :  { %v7523_v30 = vadd.f32 %v5056_v16, %v7296_v7  ;;  %v8337_v16 = vld [vmem:[#allocation17_spill] sm:$0xff] }
 0x2e6   :  { %v1480_v21 = vpop.f32.mrb[104].mxu0 }
 0x2e7   :  { %v5057_v49 = vadd.f32 %v8334_v48, %v1480_v21  ;;  %v1482_v15 = vpop.f32.mrb[105].mxu0 }
 0x2e9   :  { %v7527_v1 = vadd.f32 %v5057_v49, %v7325_v32  ;;  %v8338_v49 = vld [vmem:[#allocation18_spill] sm:$0xff] }
 0x2ea   :  { %v1485_v29 = vpop.f32.mrb[106].mxu0 }
 0x2eb   :  { %v5058_v63 = vadd.f32 %v8335_v17, %v1485_v29  ;;  %v1487_v61 = vpop.f32.mrb[107].mxu0 }
 0x2ed   :  { %v7531_v0 = vadd.f32 %v5058_v63, %v7320_v13  ;;  %v8339_v63 = vld [vmem:[#allocation19_spill] sm:$0xff] }
 0x2ee   :  { %v1490_v23 = vpop.f32.mrb[108].mxu0 }
 0x2ef   :  { %v5059_v40 = vadd.f32 %v8336_v22, %v1490_v23  ;;  %v1492_v51 = vpop.f32.mrb[109].mxu0 }
 0x2f1   :  { %v7535_v7 = vadd.f32 %v5059_v40, %v7356_v42  ;;  %v8340_v40 = vld [vmem:[#allocation20_spill] sm:$0xff] }
 0x2f2   :  { %v1495_v18 = vpop.f32.mrb[110].mxu0 }
 0x2f3   :  { %v5060_v14 = vadd.f32 %v8337_v16, %v1495_v18  ;;  %v1497_v21 = vpop.f32.mrb[111].mxu0 }
 0x2f5   :  { %v7539_v32 = vadd.f32 %v5060_v14, %v7350_v36  ;;  %v8341_v14 = vld [vmem:[#allocation21_spill] sm:$0xff] }
 0x2f6   :  { %v1500_v48 = vpop.f32.mrb[112].mxu0 }
 0x2f7   :  { %v5061_v15 = vadd.f32 %v8338_v49, %v1500_v48  ;;  %v1502_v29 = vpop.f32.mrb[113].mxu0 }
 0x2f9   :  { %v7543_v13 = vadd.f32 %v5061_v15, %v7380_v4  ;;  %v8342_v15 = vld [vmem:[#allocation22_spill] sm:$0xff] }
 0x2fa   :  { %v1505_v17 = vpop.f32.mrb[114].mxu0 }
 0x2fb   :  { %v5062_v61 = vadd.f32 %v8339_v63, %v1505_v17  ;;  %v1507_v23 = vpop.f32.mrb[115].mxu0 }
 0x2fd   :  { %v7547_v42 = vadd.f32 %v5062_v61, %v7375_v8  ;;  %v8343_v61 = vld [vmem:[#allocation23_spill] sm:$0xff] }
 0x2fe   :  { %v1510_v22 = vpop.f32.mrb[116].mxu0 }
 0x2ff   :  { %v5063_v51 = vadd.f32 %v8340_v40, %v1510_v22  ;;  %v1512_v18 = vpop.f32.mrb[117].mxu0 }
 0x301   :  { %v7551_v36 = vadd.f32 %v5063_v51, %v7392_v62  ;;  %v8344_v51 = vld [vmem:[#allocation24_spill] sm:$0xff] }
 0x302   :  { %v1515_v16 = vpop.f32.mrb[118].mxu0 }
 0x303   :  { %v5064_v21 = vadd.f32 %v8341_v14, %v1515_v16  ;;  %v1517_v48 = vpop.f32.mrb[119].mxu0 }
 0x305   :  { %v7555_v4 = vadd.f32 %v5064_v21, %v7390_v50  ;;  %v8345_v21 = vld [vmem:[#allocation25_spill] sm:$0xff] }
 0x306   :  { %v1520_v49 = vpop.f32.mrb[120].mxu0 }
 0x307   :  { %v5065_v29 = vadd.f32 %v8342_v15, %v1520_v49  ;;  %v1522_v17 = vpop.f32.mrb[121].mxu0 }
 0x308   :  { %v8346_v17 = vld [vmem:[#allocation27_spill] sm:$0xff] }
 0x309   :  { %v7559_v8 = vadd.f32 %v5065_v29, %v7404_v37 }
 0x30a   :  { %v1525_v63 = vpop.f32.mrb[122].mxu0 }
 0x30b   :  { %v5066_v23 = vadd.f32 %v8343_v61, %v1525_v63  ;;  %v1527_v22 = vpop.f32.mrb[123].mxu0 }
 0x30d   :  { %v7563_v62 = vadd.f32 %v5066_v23, %v7402_v33  ;;  %v7575_v33 = vld [vmem:[%s8258_s2] ss:$0 sm:$0xff]  ;;  %v2311_v23 = vsel %vm2309_vm1, %v7280_v39, -inf }
 0x30e   :  { %v1530_v40 = vpop.f32.mrb[124].mxu0 }
 0x30f   :  { %v5067_v18 = vadd.f32 %v8344_v51, %v1530_v40  ;;  %v1532_v16 = vpop.f32.mrb[125].mxu0 }
 0x310   :  { %v8347_v16 = vld [vmem:[#allocation26_spill] sm:$0xff] }
 0x311   :  { %v7567_v50 = vadd.f32 %v5067_v18, %v7423_v45  ;;  %v2313_v18 = vsel %vm2309_vm1, %v7441_v31, -inf  ;;  %v2320_v31 = vsel %vm2309_vm1, %v7445_v27, -inf  ;;  %v2462_v27 = vld [vmem:[%s8257_s3 + $0x8] sm:$0xff] }
 0x312   :  { %v1535_v14 = vpop.f32.mrb[126].mxu0 }
 0x313   :  { %v5068_v48 = vadd.f32 %v8345_v21, %v1535_v14  ;;  %v1537_v49 = vpop.f32.mrb[127].mxu0 }
 0x314   :  { %v2318_v49 = vsel %vm2309_vm1, %v7290_v59, -inf }
 0x315   :  { %v2306_v37 = vadd.f32 %v5068_v48, %v7420_v57 }
 0x316   :  { %v1605_v15 = vpop.f32.mrb[0].mxu0 }
 0x317   :  { %v2420_v29 = vsel %vm2309_vm1, %v2306_v37, -inf  ;;  %v1991_v63 = vadd.f32 %v8346_v17, %v1605_v15  ;;  %v1607_v61 = vpop.f32.mrb[1].mxu0  ;;  %v8348_v17 = vld [vmem:[#allocation29_spill] sm:$0xff] }
 0x318   :  { %v2421_v45 = vmax.f32 %v7508_v3, %v2420_v29  ;;  %v7592_v3 = vsel %vm2309_vm1, %v7511_v58, -inf  ;;  %v2325_v58 = vsel %vm2309_vm1, %v7304_v20, -inf  ;;  %v8349_v20 = vld [vmem:[#allocation28_spill] sm:$0xff] }
 0x319   :  { %v2310_v22 = vsel %vm2309_vm1, %v1991_v63, -inf }
 0x31a   :  { %v7583_v57 = vadd.f32 %v7575_v33, %v2421_v45  ;;  %v2312_v40 = vmax.f32 %v2310_v22, %v2311_v23  ;;  %v1610_v51 = vpop.f32.mrb[2].mxu0  ;;  %v2322_v23 = vsel %vm2309_vm1, %v7515_v19, -inf }
 0x31b   :  { %v1996_v14 = vadd.f32 %v8347_v16, %v1610_v51  ;;  %v1612_v21 = vpop.f32.mrb[3].mxu0  ;;  %v2327_v16 = vsel %vm2309_vm1, %v7449_v35, -inf }
 0x31c   :  { %v7588_v48 = vmax.f32 %v2312_v40, %v2313_v18  ;;  %v2461_v18 = vld [vmem:[%s8257_s3] sm:$0xff] }
 0x31d   :  { %v2317_v39 = vsel %vm2309_vm1, %v1996_v14, -inf }
 0x31e   :  { %v2316_v37 = vmax.f32 %v7588_v48, %v7592_v3  ;;  %v2319_v15 = vmax.f32 %v2317_v39, %v2318_v49  ;;  %v1615_v29 = vpop.f32.mrb[4].mxu0  ;;  %v7621_v49 = vsel %vm2309_vm1, %v7519_v5, -inf  ;;  %v2464_v5 = vld [vmem:[%s8257_s3 + $0x18] sm:$0xff] }
 0x31f   :  { %v2001_v63 = vadd.f32 %v8348_v17, %v1615_v29  ;;  %v1617_v61 = vpop.f32.mrb[5].mxu0  ;;  %v2332_v29 = vsel %vm2309_vm1, %v7314_v2, -inf }
 0x320   :  { %v2321_v45 = vmax.f32 %v2319_v15, %v2320_v31  ;;  %v4809_v31 = vpack.c.bf16 %v2462_v27, %v2461_v18 }
 0x321   :  { %v2324_v59 = vsel %vm2309_vm1, %v2001_v63, -inf }
 0x322   :  { %v2323_v22 = vmax.f32 %v2321_v45, %v2322_v23  ;;  %v2326_v40 = vmax.f32 %v2324_v59, %v2325_v58  ;;  %v1620_v51 = vpop.f32.mrb[6].mxu0  ;;  %v2463_v45 = vld [vmem:[%s8257_s3 + $0x10] sm:$0xff]  ;;  %v2334_v58 = vsel %vm2309_vm1, %v7453_v53, -inf  ;;  %v8350_v23 = vld [vmem:[#allocation31_spill] sm:$0xff] }
 0x323   :  { %v2006_v14 = vadd.f32 %v8349_v20, %v1620_v51  ;;  %v1622_v21 = vpop.f32.mrb[7].mxu0  ;;  %v7644_v51 = vsel %vm2309_vm1, %v7523_v30, -inf  ;;  %v4812_v27 = vpack.c.bf16 %v2464_v5, %v2463_v45  ;;  %v2466_v30 = vld [vmem:[%s8257_s3 + $0x28] sm:$0xff] }
 0x324   :  { %v2430_v19 = vadd.f32 %v7575_v33, %v2323_v22  ;;  %v7617_v39 = vmax.f32 %v2326_v40, %v2327_v16  ;;  %v2339_v40 = vsel %vm2309_vm1, %v7328_v47, -inf  ;;  %v8351_v16 = vmov 0.0   ;;  %v2465_v47 = vld [vmem:[%s8257_s3 + $0x20] sm:$0xff] }
 0x325   :  { %v2331_v15 = vsel %vm2309_vm1, %v2006_v14, -inf  ;;  %v2341_v21 = vsel %vm2309_vm1, %v7459_v44, -inf  ;;  %v4815_v45 = vpack.c.bf16 %v2466_v30, %v2465_v47  ;;  %v2467_v44 = vld [vmem:[%s8257_s3 + $0x30] sm:$0xff]  ;;  %v2350_v47 = vsel %vm2309_vm1, %v7531_v0, -inf  ;;  %v3896_v0 = vld [vmem:[%s8257_s3 + $0x88] sm:$0xff] }
 0x326   :  { %v2446_v17 = vmax.f32 %v2430_v19, 0.0  ;;  %v2330_v35 = vmax.f32 %v7617_v39, %v7621_v49  ;;  %v2333_v63 = vmax.f32 %v2331_v15, %v2332_v29  ;;  %v1625_v61 = vpop.f32.mrb[8].mxu0  ;;  %v8352_v19 = vld [vmem:[#allocation30_spill] sm:$0xff] }
 0x327   :  { %v2011_v2 = vadd.f32 %v8350_v23, %v1625_v61  ;;  %v1627_v59 = vpop.f32.mrb[9].mxu0  ;;  %v2346_v61 = vsel %vm2309_vm1, %v7344_v55, -inf }
 0x328   :  { %v7637_v22 = vmax.f32 %v2333_v63, %v2334_v58  ;;  %4357 = vmatmul.mubr.msk.f32.vlgmr.msra.gmra.mrb[162].mxu1 %vm2309_vm1, %v2446_v17  ;;  %v2343_v17 = vsel %vm2309_vm1, %v7527_v1, -inf  ;;  %v2468_v1 = vld [vmem:[%s8257_s3 + $0x38] sm:$0xff] }
 0x329   :  { %v2338_v18 = vsel %vm2309_vm1, %v2011_v2, -inf  ;;  %4810 = vmatpush3.bf16.msra.mxu1 %v4809_v31  ;;  %4375 = vmatprep.mubr.msk.f32.mxu1 %vm5231_vm2, %v8351_v16  ;;  %v2348_v2 = vsel %vm2309_vm1, %v7463_v41, -inf  ;;  %v8353_v59 = vld [vmem:[#allocation33_spill] sm:$0xff]  ;;  %v2429_v41 = vadd.f32 %v7575_v33, %v2316_v37 }
 0x32a   :  { %v2337_v53 = vmax.f32 %v7637_v22, %v7644_v51  ;;  %v2340_v20 = vmax.f32 %v2338_v18, %v2339_v40  ;;  %v1630_v14 = vpop.f32.mrb[10].mxu0  ;;  %4811 = vmatprep.subr.bf16.mxu1 %v8305_v43  ;;  %v2413_v51 = vsel %vm2309_vm1, %v7567_v50, -inf }
 0x32b   :  { %v2016_v15 = vadd.f32 %v8352_v19, %v1630_v14  ;;  %v1632_v29 = vpop.f32.mrb[11].mxu0 }
 0x32c   :  { %v2342_v31 = vmax.f32 %v2340_v20, %v2341_v21  ;;  %v8354_v20 = vld [vmem:[#allocation48_spill] sm:$0xff]  ;;  %v4818_v21 = vpack.c.bf16 %v2468_v1, %v2467_v44  ;;  %v2445_v1 = vmax.f32 %v2429_v41, 0.0  ;;  %v2364_v41 = vsel %vm2309_vm1, %v7539_v32, -inf }
 0x32d   :  { %v2345_v63 = vsel %vm2309_vm1, %v2016_v15, -inf  ;;  %4813 = vmatpush3.bf16.msra.mxu1 %v4812_v27  ;;  %v2353_v14 = vsel %vm2309_vm1, %v8354_v20, -inf  ;;  %v2369_v32 = vsel %vm2309_vm1, %v7475_v46, -inf }
 0x32e   :  { %v2344_v5 = vmax.f32 %v2342_v31, %v2343_v17  ;;  %v2347_v58 = vmax.f32 %v2345_v63, %v2346_v61  ;;  %v1635_v23 = vpop.f32.mrb[12].mxu0  ;;  %4814 = vmatprep.subr.bf16.mxu1 %v8305_v43  ;;  %v3895_v31 = vld [vmem:[%s8257_s3 + $0x80] sm:$0xff]  ;;  %v2355_v17 = vsel %vm2309_vm1, %v7467_v26, -inf  ;;  %v8355_v63 = vld [vmem:[#allocation32_spill] sm:$0xff] }
 0x32f   :  { %v2021_v55 = vadd.f32 %v8353_v59, %v1635_v23  ;;  %v1637_v40 = vpop.f32.mrb[13].mxu0  ;;  %v4821_v44 = vpack.c.bf16 %v3896_v0, %v3895_v31  ;;  %v3899_v0 = vld [vmem:[%s8257_s3 + $0xa0] sm:$0xff] }
 0x330   :  { %v7677_v18 = vadd.f32 %v7575_v33, %v2344_v5  ;;  %v2349_v27 = vmax.f32 %v2347_v58, %v2348_v2  ;;  %v8356_v58 = vld [vmem:[#allocation49_spill] sm:$0xff]  ;;  %v2362_v40 = vsel %vm2309_vm1, %v7471_v28, -inf }
 0x331   :  { %v2352_v30 = vsel %vm2309_vm1, %v2021_v55, -inf  ;;  %4816 = vmatpush3.bf16.msra.mxu1 %v4815_v45  ;;  %v2357_v45 = vsel %vm2309_vm1, %v7535_v7, -inf  ;;  %v2360_v23 = vsel %vm2309_vm1, %v8356_v58, -inf  ;;  %v3897_v55 = vld [vmem:[%s8257_s3 + $0x90] sm:$0xff]  ;;  %v3898_v7 = vld [vmem:[%s8257_s3 + $0x98] sm:$0xff]  ;;  %v2374_v58 = vsel %vm2309_vm1, %v7387_v11, -inf }
 0x332   :  { %v2351_v19 = vmax.f32 %v2349_v27, %v2350_v47  ;;  %v2354_v15 = vmax.f32 %v2352_v30, %v2353_v14  ;;  %v1640_v29 = vpop.f32.mrb[14].mxu0  ;;  %4817 = vmatprep.subr.bf16.mxu1 %v8305_v43  ;;  %v8357_v27 = vld [vmem:[#allocation35_spill] sm:$0xff] }
 0x333   :  { %v2026_v48 = vadd.f32 %v8355_v63, %v1640_v29  ;;  %v1642_v3 = vpop.f32.mrb[15].mxu0 }
 0x334   :  { %v7699_v37 = vadd.f32 %v7575_v33, %v2351_v19  ;;  %v2356_v61 = vmax.f32 %v2354_v15, %v2355_v17  ;;  %v4824_v15 = vpack.c.bf16 %v3898_v7, %v3897_v55  ;;  %v8358_v17 = vld [vmem:[#allocation34_spill] sm:$0xff] }
 0x335   :  { %v2359_v5 = vsel %vm2309_vm1, %v2026_v48, -inf  ;;  %4819 = vmatpush3.bf16.msra.mxu1 %v4818_v21  ;;  %v2367_v21 = vsel %vm2309_vm1, %v7383_v52, -inf  ;;  %v3900_v52 = vld [vmem:[%s8257_s3 + $0xa8] sm:$0xff] }
 0x336   :  { %v2358_v2 = vmax.f32 %v2356_v61, %v2357_v45  ;;  %v2361_v26 = vmax.f32 %v2359_v5, %v2360_v23  ;;  %v1645_v59 = vpop.f32.mrb[16].mxu0  ;;  %4820 = vmatprep.subr.bf16.mxu1 %v8305_v43  ;;  %v2371_v45 = vsel %vm2309_vm1, %v7543_v13, -inf  ;;  %v4827_v23 = vpack.c.bf16 %v3900_v52, %v3899_v0  ;;  %v3902_v13 = vld [vmem:[%s8257_s3 + $0xb8] sm:$0xff] }
 0x337   :  { %v2031_v20 = vadd.f32 %v8357_v27, %v1645_v59  ;;  %v1647_v14 = vpop.f32.mrb[17].mxu0  ;;  %v8359_v59 = vld [vmem:[#allocation37_spill] sm:$0xff]  ;;  %v2381_v27 = vsel %vm2309_vm1, %v7395_v60, -inf  ;;  %v3904_v60 = vld [vmem:[%s8257_s3 + $0xc0] sm:$0xff]  ;;  %v2388_v52 = vsel %vm2309_vm1, %v7399_v10, -inf }
 0x338   :  { %v7717_v47 = vadd.f32 %v7575_v33, %v2358_v2  ;;  %v2363_v30 = vmax.f32 %v2361_v26, %v2362_v40  ;;  %4376 = vmatmul.mubr.msk.f32.vlgmr.msra.gmra.mrb[164].mxu1 %vm2309_vm1, %v2445_v1  ;;  %v3901_v2 = vld [vmem:[%s8257_s3 + $0xb0] sm:$0xff]  ;;  %v2376_v26 = vsel %vm2309_vm1, %v7479_v24, -inf  ;;  %v2431_v24 = vadd.f32 %v7575_v33, %v2330_v35  ;;  %v8361_v10 = vld [vmem:[#allocation39_spill] sm:$0xff] }
 0x339   :  { %v2366_v19 = vsel %vm2309_vm1, %v2031_v20, -inf  ;;  %4822 = vmatpush3.bf16.msra.mxu1 %v4821_v44  ;;  %4394 = vmatprep.mubr.msk.f32.mxu1 %vm5231_vm2, %v8351_v16  ;;  %v2378_v20 = vsel %vm2309_vm1, %v7547_v42, -inf  ;;  %v3905_v42 = vld [vmem:[%s8257_s3 + $0xc8] sm:$0xff] }
 0x33a   :  { %v2365_v28 = vmax.f32 %v2363_v30, %v2364_v41  ;;  %v2368_v29 = vmax.f32 %v2366_v19, %v2367_v21  ;;  %v1650_v31 = vpop.f32.mrb[18].mxu0  ;;  %4823 = vmatprep.subr.bf16.mxu1 %v8305_v43  ;;  %v4830_v30 = vpack.c.bf16 %v3902_v13, %v3901_v2 }
 0x33b   :  { %v2036_v63 = vadd.f32 %v8358_v17, %v1650_v31  ;;  %v1652_v48 = vpop.f32.mrb[19].mxu0  ;;  %v2385_v31 = vsel %vm2309_vm1, %v7551_v36, -inf  ;;  %v2447_v17 = vmax.f32 %v2431_v24, 0.0  ;;  %v3907_v36 = vld [vmem:[%s8257_s3 + $0xd8] sm:$0xff] }
 0x33c   :  { %v7738_v3 = vadd.f32 %v7575_v33, %v2365_v28  ;;  %v2370_v61 = vmax.f32 %v2368_v29, %v2369_v32  ;;  %v8360_v28 = vld [vmem:[#allocation36_spill] sm:$0xff]  ;;  %v4833_v32 = vpack.c.bf16 %v3905_v42, %v3904_v60 }
 0x33d   :  { %v2373_v5 = vsel %vm2309_vm1, %v2036_v63, -inf  ;;  %4825 = vmatpush3.bf16.msra.mxu1 %v4824_v15  ;;  %v2383_v15 = vsel %vm2309_vm1, %v7483_v6, -inf  ;;  %v3910_v42 = vld [vmem:[%s8257_s3 + $0xf0] sm:$0xff] }
 0x33e   :  { %v2372_v44 = vmax.f32 %v2370_v61, %v2371_v45  ;;  %v2375_v1 = vmax.f32 %v2373_v5, %v2374_v58  ;;  %v1655_v46 = vpop.f32.mrb[20].mxu0  ;;  %4826 = vmatprep.subr.bf16.mxu1 %v8305_v43  ;;  %v3906_v61 = vld [vmem:[%s8257_s3 + $0xd0] sm:$0xff]  ;;  %v2390_v45 = vsel %vm2309_vm1, %v7487_v25, -inf }
 0x33f   :  { %v2041_v11 = vadd.f32 %v8359_v59, %v1655_v46  ;;  %v1657_v55 = vpop.f32.mrb[21].mxu0  ;;  %v2392_v46 = vsel %vm2309_vm1, %v7555_v4, -inf  ;;  %v4836_v13 = vpack.c.bf16 %v3907_v36, %v3906_v61  ;;  %v2397_v4 = vsel %vm2309_vm1, %v7491_v38, -inf }
 0x340   :  { %v7756_v7 = vadd.f32 %v7575_v33, %v2372_v44  ;;  %v2377_v40 = vmax.f32 %v2375_v1, %v2376_v26  ;;  %v2395_v1 = vsel %vm2309_vm1, %v7407_v12, -inf  ;;  %v3909_v12 = vld [vmem:[%s8257_s3 + $0xe8] sm:$0xff]  ;;  %v8362_v55 = vld [vmem:[#allocation38_spill] sm:$0xff] }
 0x341   :  { %v2380_v14 = vsel %vm2309_vm1, %v2041_v11, -inf  ;;  %4828 = vmatpush3.bf16.msra.mxu1 %v4827_v23  ;;  %v3908_v11 = vld [vmem:[%s8257_s3 + $0xe0] sm:$0xff] }
 0x342   :  { %v2379_v21 = vmax.f32 %v2377_v40, %v2378_v20  ;;  %v2382_v41 = vmax.f32 %v2380_v14, %v2381_v27  ;;  %v1660_v19 = vpop.f32.mrb[22].mxu0  ;;  %4829 = vmatprep.subr.bf16.mxu1 %v8305_v43 }
 0x343   :  { %v2046_v39 = vadd.f32 %v8360_v28, %v1660_v19  ;;  %v1662_v49 = vpop.f32.mrb[23].mxu0  ;;  %v8363_v28 = vld [vmem:[#allocation40_spill] sm:$0xff] }
 0x344   :  { %v7778_v35 = vadd.f32 %v7575_v33, %v2379_v21  ;;  %v2384_v29 = vmax.f32 %v2382_v41, %v2383_v15  ;;  %v2402_v21 = vsel %vm2309_vm1, %v7417_v9, -inf  ;;  %v4839_v41 = vpack.c.bf16 %v3909_v12, %v3908_v11  ;;  %v3925_v11 = vld [vmem:[%s8257_s3 + $0x158] sm:$0xff] }
 0x345   :  { %v2387_v0 = vsel %vm2309_vm1, %v2046_v39, -inf  ;;  %4831 = vmatpush3.bf16.msra.mxu1 %v4830_v30  ;;  %v2399_v30 = vsel %vm2309_vm1, %v7559_v8, -inf  ;;  %v3911_v8 = vld [vmem:[%s8257_s3 + $0xf8] sm:$0xff]  ;;  %v2404_v15 = vsel %vm2309_vm1, %v7495_v54, -inf  ;;  %v2432_v54 = vadd.f32 %v7575_v33, %v2337_v53 }
 0x346   :  { %v2386_v63 = vmax.f32 %v2384_v29, %v2385_v31  ;;  %v2389_v6 = vmax.f32 %v2387_v0, %v2388_v52  ;;  %v1665_v48 = vpop.f32.mrb[24].mxu0  ;;  %4832 = vmatprep.subr.bf16.mxu1 %v8305_v43  ;;  %v2409_v31 = vsel %vm2309_vm1, %v7426_v34, -inf  ;;  %v2406_v0 = vsel %vm2309_vm1, %v7563_v62, -inf  ;;  %v3913_v34 = vld [vmem:[%s8257_s3 + $0x100] sm:$0xff]  ;;  %v3914_v62 = vld [vmem:[%s8257_s3 + $0x108] sm:$0xff] }
 0x347   :  { %v2051_v5 = vadd.f32 %v8361_v10, %v1665_v48  ;;  %v1667_v58 = vpop.f32.mrb[25].mxu0  ;;  %v4845_v53 = vpack.c.bf16 %v3914_v62, %v3913_v34  ;;  %v2448_v61 = vmax.f32 %v2432_v54, 0.0  ;;  %v3946_v34 = vld [vmem:[%s8257_s3 + $0x1f0] sm:$0xff]  ;;  %v3947_v62 = vld [vmem:[%s8257_s3 + $0x1f8] sm:$0xff] }
 0x348   :  { %v7796_v23 = vadd.f32 %v7575_v33, %v2386_v63  ;;  %v2391_v44 = vmax.f32 %v2389_v6, %v2390_v45  ;;  %4395 = vmatmul.mubr.msk.f32.vlgmr.msra.gmra.mrb[166].mxu1 %vm2309_vm1, %v2447_v17  ;;  %v2411_v6 = vsel %vm2309_vm1, %v7499_v56, -inf  ;;  %v3915_v45 = vld [vmem:[%s8257_s3 + $0x110] sm:$0xff]  ;;  %v3916_v56 = vld [vmem:[%s8257_s3 + $0x118] sm:$0xff]  ;;  %v3918_v58 = vld [vmem:[%s8257_s3 + $0x128] sm:$0xff] }
 0x349   :  { %v2394_v2 = vsel %vm2309_vm1, %v2051_v5, -inf  ;;  %4834 = vmatpush3.bf16.msra.mxu1 %v4833_v32  ;;  %4413 = vmatprep.mubr.msk.f32.mxu1 %vm5231_vm2, %v8351_v16  ;;  %v4842_v32 = vpack.c.bf16 %v3911_v8, %v3910_v42  ;;  %v4848_v50 = vpack.c.bf16 %v3916_v56, %v3915_v45  ;;  %v3917_v5 = vld [vmem:[%s8257_s3 + $0x120] sm:$0xff]  ;;  %v3936_v42 = vld [vmem:[%s8257_s3 + $0x1a8] sm:$0xff]  ;;  %v3952_v45 = vld [vmem:[%s8257_s3 + $0x218] sm:$0xff] }
 0x34a   :  { %v2393_v25 = vmax.f32 %v2391_v44, %v2392_v46  ;;  %v2396_v26 = vmax.f32 %v2394_v2, %v2395_v1  ;;  %v1670_v59 = vpop.f32.mrb[26].mxu0  ;;  %4835 = vmatprep.subr.bf16.mxu1 %v8305_v43  ;;  %v3919_v44 = vld [vmem:[%s8257_s3 + $0x130] sm:$0xff]  ;;  %v3920_v1 = vld [vmem:[%s8257_s3 + $0x138] sm:$0xff]  ;;  %v3922_v2 = vld [vmem:[%s8257_s3 + $0x140] sm:$0xff] }
 0x34b   :  { %v2056_v40 = vadd.f32 %v8362_v55, %v1670_v59  ;;  %v1672_v27 = vpop.f32.mrb[27].mxu0  ;;  %v4854_v46 = vpack.c.bf16 %v3920_v1, %v3919_v44  ;;  %v3924_v59 = vld [vmem:[%s8257_s3 + $0x150] sm:$0xff]  ;;  %v3958_v1 = vld [vmem:[%s8257_s3 + $0x240] sm:$0xff] }
 0x34c   :  { %v7817_v20 = vadd.f32 %v7575_v33, %v2393_v25  ;;  %v2398_v14 = vmax.f32 %v2396_v26, %v2397_v4  ;;  %v2449_v26 = vmax.f32 %v7677_v18, 0.0  ;;  %v4860_v12 = vpack.c.bf16 %v3925_v11, %v3924_v59  ;;  %v3926_v18 = vld [vmem:[%s8257_s3 + $0x160] sm:$0xff]  ;;  %v3927_v4 = vld [vmem:[%s8257_s3 + $0x168] sm:$0xff]  ;;  %v3929_v27 = vld [vmem:[%s8257_s3 + $0x178] sm:$0xff] }
 0x34d   :  { %v2401_v24 = vsel %vm2309_vm1, %v2056_v40, -inf  ;;  %4837 = vmatpush3.bf16.msra.mxu1 %v4836_v13  ;;  %v3923_v13 = vld [vmem:[%s8257_s3 + $0x148] sm:$0xff]  ;;  %v4863_v55 = vpack.c.bf16 %v3927_v4, %v3926_v18  ;;  %v3928_v40 = vld [vmem:[%s8257_s3 + $0x170] sm:$0xff]  ;;  %v3965_v4 = vld [vmem:[%s8257_s3 + $0x278] sm:$0xff] }
 0x34e   :  { %v2400_v19 = vmax.f32 %v2398_v14, %v2399_v30  ;;  %v2403_v60 = vmax.f32 %v2401_v24, %v2402_v21  ;;  %v1675_v38 = vpop.f32.mrb[28].mxu0  ;;  %4838 = vmatprep.subr.bf16.mxu1 %v8305_v43  ;;  %v4857_v25 = vpack.c.bf16 %v3923_v13, %v3922_v2  ;;  %v4866_v14 = vpack.c.bf16 %v3929_v27, %v3928_v40  ;;  %v3931_v30 = vld [vmem:[%s8257_s3 + $0x180] sm:$0xff]  ;;  %v3932_v24 = vld [vmem:[%s8257_s3 + $0x188] sm:$0xff]  ;;  %v3964_v18 = vld [vmem:[%s8257_s3 + $0x270] sm:$0xff] }
 0x34f   :  { %v2061_v9 = vadd.f32 %v8363_v28, %v1675_v38  ;;  %v1677_v39 = vpop.f32.mrb[29].mxu0  ;;  %v4869_v21 = vpack.c.bf16 %v3932_v24, %v3931_v30  ;;  %v3938_v28 = vld [vmem:[%s8257_s3 + $0x1b8] sm:$0xff]  ;;  %v2453_v13 = vmax.f32 %v7756_v7, 0.0  ;;  %v3962_v7 = vld [vmem:[%s8257_s3 + $0x260] sm:$0xff]  ;;  %v3963_v11 = vld [vmem:[%s8257_s3 + $0x268] sm:$0xff]  ;;  %v2454_v30 = vmax.f32 %v7778_v35, 0.0 }
 0x350   :  { %v7835_v49 = vadd.f32 %v7575_v33, %v2400_v19  ;;  %v2405_v29 = vmax.f32 %v2403_v60, %v2404_v15  ;;  %v3933_v19 = vld [vmem:[%s8257_s3 + $0x190] sm:$0xff]  ;;  %v3934_v60 = vld [vmem:[%s8257_s3 + $0x198] sm:$0xff]  ;;  %v3940_v39 = vld [vmem:[%s8257_s3 + $0x1c0] sm:$0xff] }
 0x351   :  { %v2408_v52 = vsel %vm2309_vm1, %v2061_v9, -inf  ;;  %4840 = vmatpush3.bf16.msra.mxu1 %v4839_v41  ;;  %v2450_v41 = vmax.f32 %v7699_v37, 0.0  ;;  %v4872_v38 = vpack.c.bf16 %v3934_v60, %v3933_v19  ;;  %v3935_v37 = vld [vmem:[%s8257_s3 + $0x1a0] sm:$0xff]  ;;  %v3937_v15 = vld [vmem:[%s8257_s3 + $0x1b0] sm:$0xff]  ;;  %v3968_v27 = vld [vmem:[%s8257_s3 + $0x288] sm:$0xff] }
 0x352   :  { %v2407_v17 = vmax.f32 %v2405_v29, %v2406_v0  ;;  %v2410_v63 = vmax.f32 %v2408_v52, %v2409_v31  ;;  %4841 = vmatprep.subr.bf16.mxu1 %v8305_v43  ;;  %v4875_v8 = vpack.c.bf16 %v3936_v42, %v3935_v37  ;;  %v4878_v9 = vpack.c.bf16 %v3938_v28, %v3937_v15  ;;  %v3941_v29 = vld [vmem:[%s8257_s3 + $0x1c8] sm:$0xff]  ;;  %v3942_v52 = vld [vmem:[%s8257_s3 + $0x1d0] sm:$0xff]  ;;  %v3967_v40 = vld [vmem:[%s8257_s3 + $0x280] sm:$0xff] }
 0x353   :  { %v4881_v31 = vpack.c.bf16 %v3941_v29, %v3940_v39  ;;  %v2451_v0 = vmax.f32 %v7717_v47, 0.0  ;;  %v3944_v47 = vld [vmem:[%s8257_s3 + $0x1e0] sm:$0xff]  ;;  %v3969_v24 = vld [vmem:[%s8257_s3 + $0x290] sm:$0xff]  ;;  %v3972_v19 = vld [vmem:[%s8257_s3 + $0x2a8] sm:$0xff] }
 0x354   :  { %v7856_v48 = vadd.f32 %v7575_v33, %v2407_v17  ;;  %v2412_v22 = vmax.f32 %v2410_v63, %v2411_v6  ;;  %v3945_v17 = vld [vmem:[%s8257_s3 + $0x1e8] sm:$0xff]  ;;  %v4890_v6 = vpack.c.bf16 %v3947_v62, %v3946_v34  ;;  %v3971_v35 = vld [vmem:[%s8257_s3 + $0x2a0] sm:$0xff]  ;;  %v3974_v37 = vld [vmem:[%s8257_s3 + $0x2b8] sm:$0xff]  ;;  %v2456_v62 = vmax.f32 %v7817_v20, 0.0 }
 0x355   :  { %4843 = vmatpush3.bf16.msra.mxu1 %v4842_v32  ;;  %v3943_v32 = vld [vmem:[%s8257_s3 + $0x1d8] sm:$0xff]  ;;  %v4887_v63 = vpack.c.bf16 %v3945_v17, %v3944_v47  ;;  %v4923_v60 = vpack.c.bf16 %v3972_v19, %v3971_v35  ;;  %v3977_v15 = vld [vmem:[%s8257_s3 + $0x2c8] sm:$0xff]  ;;  %v3978_v39 = vld [vmem:[%s8257_s3 + $0x2d0] sm:$0xff] }
 0x356   :  { %v2414_v36 = vmax.f32 %v2412_v22, %v2413_v51  ;;  %4844 = vmatprep.subr.bf16.mxu1 %v8305_v43  ;;  %v4884_v54 = vpack.c.bf16 %v3943_v32, %v3942_v52  ;;  %v3949_v22 = vld [vmem:[%s8257_s3 + $0x200] sm:$0xff]  ;;  %v3950_v51 = vld [vmem:[%s8257_s3 + $0x208] sm:$0xff]  ;;  %v3979_v29 = vld [vmem:[%s8257_s3 + $0x2d8] sm:$0xff] }
 0x357   :  { %v3982_v32 = vld [vmem:[%s8257_s3 + $0x2f0] sm:$0xff]  ;;  %v3985_v17 = vld [vmem:[%s8257_s3 + $0x300] sm:$0xff]  ;;  %v4013_v19 = vld [vmem:[%s8257_s3 + $0x3c8] sm:$0xff] }
 0x358   :  { %v7868_v10 = vadd.f32 %v7575_v33, %v2414_v36  ;;  %4414 = vmatmul.mubr.msk.f32.vlgmr.msra.gmra.mrb[168].mxu1 %vm2309_vm1, %v2448_v61  ;;  %v4851_v33 = vpack.c.bf16 %v3918_v58, %v3917_v5  ;;  %v2452_v61 = vmax.f32 %v7738_v3, 0.0  ;;  %v3951_v36 = vld [vmem:[%s8257_s3 + $0x210] sm:$0xff]  ;;  %v3953_v3 = vld [vmem:[%s8257_s3 + $0x220] sm:$0xff] }
 0x359   :  { %4846 = vmatpush3.bf16.msra.mxu1 %v4845_v53  ;;  %4432 = vmatprep.mubr.msk.f32.mxu1 %vm5231_vm2, %v8351_v16  ;;  %v4893_v53 = vpack.c.bf16 %v3950_v51, %v3949_v22  ;;  %v4896_v56 = vpack.c.bf16 %v3952_v45, %v3951_v36  ;;  %v3955_v58 = vld [vmem:[%s8257_s3 + $0x230] sm:$0xff]  ;;  %v3988_v22 = vld [vmem:[%s8257_s3 + $0x318] sm:$0xff]  ;;  %v3989_v20 = vld [vmem:[%s8257_s3 + $0x320] sm:$0xff] }
 0x35a   :  { %4847 = vmatprep.subr.bf16.mxu1 %v8305_v43  ;;  %v3991_v36 = vld [vmem:[%s8257_s3 + $0x330] sm:$0xff]  ;;  %v3992_v45 = vld [vmem:[%s8257_s3 + $0x338] sm:$0xff]  ;;  %v4012_v35 = vld [vmem:[%s8257_s3 + $0x3c0] sm:$0xff] }
 0x35d   :  { %4849 = vmatpush3.bf16.msra.mxu1 %v4848_v50  ;;  %v3954_v50 = vld [vmem:[%s8257_s3 + $0x228] sm:$0xff] }
 0x35e   :  { %4850 = vmatprep.subr.bf16.mxu1 %v8305_v43  ;;  %v4899_v5 = vpack.c.bf16 %v3954_v50, %v3953_v3  ;;  %v3994_v3 = vld [vmem:[%s8257_s3 + $0x340] sm:$0xff]  ;;  %v3995_v50 = vld [vmem:[%s8257_s3 + $0x348] sm:$0xff] }
 0x361   :  { %4852 = vmatpush3.bf16.msra.mxu1 %v4851_v33  ;;  %v3956_v33 = vld [vmem:[%s8257_s3 + $0x238] sm:$0xff] }
 0x362   :  { %4853 = vmatprep.subr.bf16.mxu1 %v8305_v43  ;;  %v4902_v44 = vpack.c.bf16 %v3956_v33, %v3955_v58  ;;  %v2457_v58 = vmax.f32 %v7835_v49, 0.0  ;;  %v3996_v33 = vld [vmem:[%s8257_s3 + $0x350] sm:$0xff]  ;;  %v3998_v49 = vld [vmem:[%s8257_s3 + $0x360] sm:$0xff] }
 0x365   :  { %4855 = vmatpush3.bf16.msra.mxu1 %v4854_v46  ;;  %v3959_v46 = vld [vmem:[%s8257_s3 + $0x248] sm:$0xff] }
 0x366   :  { %4856 = vmatprep.subr.bf16.mxu1 %v8305_v43  ;;  %v4905_v2 = vpack.c.bf16 %v3959_v46, %v3958_v1  ;;  %v3999_v46 = vld [vmem:[%s8257_s3 + $0x368] sm:$0xff] }
 0x368   :  { %4433 = vmatmul.mubr.msk.f32.vlgmr.msra.gmra.mrb[170].mxu1 %vm2309_vm1, %v2449_v26  ;;  %v3961_v26 = vld [vmem:[%s8257_s3 + $0x258] sm:$0xff] }
 0x369   :  { %4858 = vmatpush3.bf16.msra.mxu1 %v4857_v25  ;;  %4451 = vmatprep.mubr.msk.f32.mxu1 %vm5231_vm2, %v8351_v16  ;;  %v3960_v25 = vld [vmem:[%s8257_s3 + $0x250] sm:$0xff] }
 0x36a   :  { %4859 = vmatprep.subr.bf16.mxu1 %v8305_v43  ;;  %v4908_v59 = vpack.c.bf16 %v3961_v26, %v3960_v25  ;;  %v4001_v25 = vld [vmem:[%s8257_s3 + $0x378] sm:$0xff] }
 0x36d   :  { %4861 = vmatpush3.bf16.msra.mxu1 %v4860_v12  ;;  %v4911_v12 = vpack.c.bf16 %v3963_v11, %v3962_v7  ;;  %v4004_v7 = vld [vmem:[%s8257_s3 + $0x388] sm:$0xff] }
 0x36e   :  { %4862 = vmatprep.subr.bf16.mxu1 %v8305_v43 }
 0x371   :  { %4864 = vmatpush3.bf16.msra.mxu1 %v4863_v55  ;;  %v4914_v55 = vpack.c.bf16 %v3965_v4, %v3964_v18  ;;  %v4005_v18 = vld [vmem:[%s8257_s3 + $0x390] sm:$0xff]  ;;  %v4006_v4 = vld [vmem:[%s8257_s3 + $0x398] sm:$0xff] }
 0x372   :  { %4865 = vmatprep.subr.bf16.mxu1 %v8305_v43 }
 0x375   :  { %4867 = vmatpush3.bf16.msra.mxu1 %v4866_v14  ;;  %v4917_v14 = vpack.c.bf16 %v3968_v27, %v3967_v40  ;;  %v4008_v40 = vld [vmem:[%s8257_s3 + $0x3a8] sm:$0xff] }
 0x376   :  { %4868 = vmatprep.subr.bf16.mxu1 %v8305_v43 }
 0x378   :  { %4452 = vmatmul.mubr.msk.f32.vlgmr.msra.gmra.mrb[172].mxu1 %vm2309_vm1, %v2450_v41 }
 0x379   :  { %4870 = vmatpush3.bf16.msra.mxu1 %v4869_v21  ;;  %4470 = vmatprep.mubr.msk.f32.mxu1 %vm5231_vm2, %v8351_v16  ;;  %v3970_v21 = vld [vmem:[%s8257_s3 + $0x298] sm:$0xff] }
 0x37a   :  { %4871 = vmatprep.subr.bf16.mxu1 %v8305_v43  ;;  %v4920_v41 = vpack.c.bf16 %v3970_v21, %v3969_v24  ;;  %v4009_v24 = vld [vmem:[%s8257_s3 + $0x3b0] sm:$0xff]  ;;  %v4010_v21 = vld [vmem:[%s8257_s3 + $0x3b8] sm:$0xff] }
 0x37d   :  { %4873 = vmatpush3.bf16.msra.mxu1 %v4872_v38  ;;  %v3973_v38 = vld [vmem:[%s8257_s3 + $0x2b0] sm:$0xff] }
 0x37e   :  { %4874 = vmatprep.subr.bf16.mxu1 %v8305_v43  ;;  %v4926_v42 = vpack.c.bf16 %v3974_v37, %v3973_v38  ;;  %v2459_v38 = vmax.f32 %v7868_v10, 0.0  ;;  %v4014_v37 = vld [vmem:[%s8257_s3 + $0x3d0] sm:$0xff]  ;;  %v4016_v10 = vld [vmem:[%s8257_s3 + $0x3e0] sm:$0xff] }
 0x381   :  { %4876 = vmatpush3.bf16.msra.mxu1 %v4875_v8  ;;  %v3976_v8 = vld [vmem:[%s8257_s3 + $0x2c0] sm:$0xff] }
 0x382   :  { %4877 = vmatprep.subr.bf16.mxu1 %v8305_v43  ;;  %v4929_v28 = vpack.c.bf16 %v3977_v15, %v3976_v8  ;;  %v4017_v15 = vld [vmem:[%s8257_s3 + $0x3e8] sm:$0xff] }
 0x385   :  { %4879 = vmatpush3.bf16.msra.mxu1 %v4878_v9  ;;  %v2455_v9 = vmax.f32 %v7796_v23, 0.0  ;;  %v3980_v23 = vld [vmem:[%s8257_s3 + $0x2e0] sm:$0xff] }
 0x386   :  { %4880 = vmatprep.subr.bf16.mxu1 %v8305_v43 }
 0x388   :  { %4471 = vmatmul.mubr.msk.f32.vlgmr.msra.gmra.mrb[174].mxu1 %vm2309_vm1, %v2451_v0  ;;  %v3981_v0 = vld [vmem:[%s8257_s3 + $0x2e8] sm:$0xff] }
 0x389   :  { %4882 = vmatpush3.bf16.msra.mxu1 %v4881_v31  ;;  %4489 = vmatprep.mubr.msk.f32.mxu1 %vm5231_vm2, %v8351_v16  ;;  %v4932_v31 = vpack.c.bf16 %v3979_v29, %v3978_v39  ;;  %v4935_v52 = vpack.c.bf16 %v3981_v0, %v3980_v23  ;;  %v4983_v29 = vpack.c.bf16 %v4017_v15, %v4016_v10  ;;  %v2460_v0 = vmax.f32 %v7583_v57, 0.0 }
 0x38a   :  { %4883 = vmatprep.subr.bf16.mxu1 %v8305_v43 }
 0x38d   :  { %4885 = vmatpush3.bf16.msra.mxu1 %v4884_v54  ;;  %v3983_v54 = vld [vmem:[%s8257_s3 + $0x2f8] sm:$0xff] }
 0x38e   :  { %4886 = vmatprep.subr.bf16.mxu1 %v8305_v43  ;;  %v4938_v47 = vpack.c.bf16 %v3983_v54, %v3982_v32 }
 0x391   :  { %4888 = vmatpush3.bf16.msra.mxu1 %v4887_v63  ;;  %v3986_v63 = vld [vmem:[%s8257_s3 + $0x308] sm:$0xff] }
 0x392   :  { %4889 = vmatprep.subr.bf16.mxu1 %v8305_v43  ;;  %v4941_v34 = vpack.c.bf16 %v3986_v63, %v3985_v17 }
 0x395   :  { %4891 = vmatpush3.bf16.msra.mxu1 %v4890_v6  ;;  %v3987_v6 = vld [vmem:[%s8257_s3 + $0x310] sm:$0xff] }
 0x396   :  { %4892 = vmatprep.subr.bf16.mxu1 %v8305_v43  ;;  %v4944_v51 = vpack.c.bf16 %v3988_v22, %v3987_v6 }
 0x398   :  { %4490 = vmatmul.mubr.msk.f32.vlgmr.msra.gmra.mrb[176].mxu1 %vm2309_vm1, %v2452_v61 }
 0x399   :  { %4894 = vmatpush3.bf16.msra.mxu1 %v4893_v53  ;;  %4508 = vmatprep.mubr.msk.f32.mxu1 %vm5231_vm2, %v8351_v16  ;;  %v3990_v53 = vld [vmem:[%s8257_s3 + $0x328] sm:$0xff] }
 0x39a   :  { %4895 = vmatprep.subr.bf16.mxu1 %v8305_v43  ;;  %v4947_v61 = vpack.c.bf16 %v3990_v53, %v3989_v20 }
 0x39d   :  { %4897 = vmatpush3.bf16.msra.mxu1 %v4896_v56  ;;  %v4950_v56 = vpack.c.bf16 %v3992_v45, %v3991_v36 }
 0x39e   :  { %4898 = vmatprep.subr.bf16.mxu1 %v8305_v43 }
 0x3a1   :  { %4900 = vmatpush3.bf16.msra.mxu1 %v4899_v5  ;;  %v4953_v5 = vpack.c.bf16 %v3995_v50, %v3994_v3 }
 0x3a2   :  { %4901 = vmatprep.subr.bf16.mxu1 %v8305_v43 }
 0x3a5   :  { %4903 = vmatpush3.bf16.msra.mxu1 %v4902_v44  ;;  %v3997_v44 = vld [vmem:[%s8257_s3 + $0x358] sm:$0xff] }
 0x3a6   :  { %4904 = vmatprep.subr.bf16.mxu1 %v8305_v43  ;;  %v4956_v1 = vpack.c.bf16 %v3997_v44, %v3996_v33 }
 0x3a8   :  { %4509 = vmatmul.mubr.msk.f32.vlgmr.msra.gmra.mrb[178].mxu1 %vm2309_vm1, %v2453_v13  ;;  %v4000_v13 = vld [vmem:[%s8257_s3 + $0x370] sm:$0xff] }
 0x3a9   :  { %4906 = vmatpush3.bf16.msra.mxu1 %v4905_v2  ;;  %4527 = vmatprep.mubr.msk.f32.mxu1 %vm5231_vm2, %v8351_v16  ;;  %v4959_v2 = vpack.c.bf16 %v3999_v46, %v3998_v49  ;;  %v4962_v26 = vpack.c.bf16 %v4001_v25, %v4000_v13 }
 0x3aa   :  { %4907 = vmatprep.subr.bf16.mxu1 %v8305_v43 }
 0x3ad   :  { %4909 = vmatpush3.bf16.msra.mxu1 %v4908_v59  ;;  %v4003_v59 = vld [vmem:[%s8257_s3 + $0x380] sm:$0xff] }
 0x3ae   :  { %4910 = vmatprep.subr.bf16.mxu1 %v8305_v43  ;;  %v4965_v11 = vpack.c.bf16 %v4004_v7, %v4003_v59 }
 0x3b1   :  { %4912 = vmatpush3.bf16.msra.mxu1 %v4911_v12  ;;  %v2458_v12 = vmax.f32 %v7856_v48, 0.0  ;;  %v4007_v48 = vld [vmem:[%s8257_s3 + $0x3a0] sm:$0xff] }
 0x3b2   :  { %4913 = vmatprep.subr.bf16.mxu1 %v8305_v43 }
 0x3b5   :  { %4915 = vmatpush3.bf16.msra.mxu1 %v4914_v55  ;;  %v4968_v55 = vpack.c.bf16 %v4006_v4, %v4005_v18 }
 0x3b6   :  { %4916 = vmatprep.subr.bf16.mxu1 %v8305_v43 }
 0x3b8   :  { %4528 = vmatmul.mubr.msk.f32.vlgmr.msra.gmra.mrb[180].mxu1 %vm2309_vm1, %v2454_v30  ;;  %v4971_v30 = vpack.c.bf16 %v4008_v40, %v4007_v48 }
 0x3b9   :  { %4918 = vmatpush3.bf16.msra.mxu1 %v4917_v14  ;;  %4546 = vmatprep.mubr.msk.f32.mxu1 %vm5231_vm2, %v8351_v16 }
 0x3ba   :  { %4919 = vmatprep.subr.bf16.mxu1 %v8305_v43 }
 0x3bd   :  { %4921 = vmatpush3.bf16.msra.mxu1 %v4920_v41  ;;  %v4974_v41 = vpack.c.bf16 %v4010_v21, %v4009_v24  ;;  %v4022_v21 = vld [vmem:[%s8261_s5] ss:$0 sm:$0xff] }
 0x3be   :  { %4922 = vmatprep.subr.bf16.mxu1 %v8305_v43 }
 0x3c1   :  { %4924 = vmatpush3.bf16.msra.mxu1 %v4923_v60  ;;  %v4977_v60 = vpack.c.bf16 %v4013_v19, %v4012_v35 }
 0x3c2   :  { %4925 = vmatprep.subr.bf16.mxu1 %v8305_v43 }
 0x3c5   :  { %4927 = vmatpush3.bf16.msra.mxu1 %v4926_v42  ;;  %v4015_v42 = vld [vmem:[%s8257_s3 + $0x3d8] sm:$0xff] }
 0x3c6   :  { %4928 = vmatprep.subr.bf16.mxu1 %v8305_v43  ;;  %v4980_v8 = vpack.c.bf16 %v4015_v42, %v4014_v37 }
 0x3c8   :  { %4547 = vmatmul.mubr.msk.f32.vlgmr.msra.gmra.mrb[182].mxu1 %vm2309_vm1, %v2455_v9 }
 0x3c9   :  { %4930 = vmatpush3.bf16.msra.mxu1 %v4929_v28  ;;  %4565 = vmatprep.mubr.msk.f32.mxu1 %vm5231_vm2, %v8351_v16 }
 0x3ca   :  { %4931 = vmatprep.subr.bf16.mxu1 %v8305_v43 }
 0x3cd   :  { %4933 = vmatpush3.bf16.msra.mxu1 %v4932_v31  ;;  %v4019_v31 = vld [vmem:[%s8257_s3 + $0x3f8] sm:$0xff] }
 0x3ce   :  { %4934 = vmatprep.subr.bf16.mxu1 %v8305_v43 }
 0x3d1   :  { %4936 = vmatpush3.bf16.msra.mxu1 %v4935_v52 }
 0x3d2   :  { %4937 = vmatprep.subr.bf16.mxu1 %v8305_v43 }
 0x3d5   :  { %4939 = vmatpush3.bf16.msra.mxu1 %v4938_v47 }
 0x3d6   :  { %4940 = vmatprep.subr.bf16.mxu1 %v8305_v43 }
 0x3d8   :  { %4566 = vmatmul.mubr.msk.f32.vlgmr.msra.gmra.mrb[184].mxu1 %vm2309_vm1, %v2456_v62 }
 0x3d9   :  { %4942 = vmatpush3.bf16.msra.mxu1 %v4941_v34  ;;  %4584 = vmatprep.mubr.msk.f32.mxu1 %vm5231_vm2, %v8351_v16 }
 0x3da   :  { %4943 = vmatprep.subr.bf16.mxu1 %v8305_v43 }
 0x3dd   :  { %4945 = vmatpush3.bf16.msra.mxu1 %v4944_v51 }
 0x3de   :  { %4946 = vmatprep.subr.bf16.mxu1 %v8305_v43 }
 0x3e1   :  { %4948 = vmatpush3.bf16.msra.mxu1 %v4947_v61 }
 0x3e2   :  { %4949 = vmatprep.subr.bf16.mxu1 %v8305_v43 }
 0x3e5   :  { %4951 = vmatpush3.bf16.msra.mxu1 %v4950_v56  ;;  %v12_v56 = vstv %s8259_s6 }
 0x3e6   :  { %4952 = vmatprep.subr.bf16.mxu1 %v8305_v43  ;;  %13 = vst [vmem:[#allocation2] sm:$0x1] %v12_v56 }
 0x3e8   :  { %4585 = vmatmul.mubr.msk.f32.vlgmr.msra.gmra.mrb[186].mxu1 %vm2309_vm1, %v2457_v58 }
 0x3e9   :  { %4954 = vmatpush3.bf16.msra.mxu1 %v4953_v5  ;;  %4603 = vmatprep.mubr.msk.f32.mxu1 %vm5231_vm2, %v8351_v16 }
 0x3ea   :  { %4955 = vmatprep.subr.bf16.mxu1 %v8305_v43 }
 0x3ed   :  { %4957 = vmatpush3.bf16.msra.mxu1 %v4956_v1 }
 0x3ee   :  { %4958 = vmatprep.subr.bf16.mxu1 %v8305_v43 }
 0x3f1   :  { %4960 = vmatpush3.bf16.msra.mxu1 %v4959_v2 }
 0x3f2   :  { %4961 = vmatprep.subr.bf16.mxu1 %v8305_v43 }
 0x3f5   :  { %4963 = vmatpush3.bf16.msra.mxu1 %v4962_v26 }
 0x3f6   :  { %4964 = vmatprep.subr.bf16.mxu1 %v8305_v43 }
 0x3f8   :  { %4604 = vmatmul.mubr.msk.f32.vlgmr.msra.gmra.mrb[188].mxu1 %vm2309_vm1, %v2458_v12 }
 0x3f9   :  { %4966 = vmatpush3.bf16.msra.mxu1 %v4965_v11  ;;  %4622 = vmatprep.mubr.msk.f32.mxu1 %vm5231_vm2, %v8351_v16 }
 0x3fa   :  { %4967 = vmatprep.subr.bf16.mxu1 %v8305_v43 }
 0x3fb   :  { %v2547_v27 = vpop.f32.mrb[162].mxu1 }
 0x3fc   :  { %v4358_v14 = vpop.f32.mrb[163].mxu1 }
 0x3fd   :  { %4969 = vmatpush3.bf16.msra.mxu1 %v4968_v55 }
 0x3fe   :  { %4970 = vmatprep.subr.bf16.mxu1 %v8305_v43 }
 0x401   :  { %4972 = vmatpush3.bf16.msra.mxu1 %v4971_v30 }
 0x402   :  { %4973 = vmatprep.subr.bf16.mxu1 %v8305_v43 }
 0x405   :  { %4975 = vmatpush3.bf16.msra.mxu1 %v4974_v41 }
 0x406   :  { %4976 = vmatprep.subr.bf16.mxu1 %v8305_v43 }
 0x408   :  { %4623 = vmatmul.mubr.msk.f32.vlgmr.msra.gmra.mrb[190].mxu1 %vm2309_vm1, %v2459_v38 }
 0x409   :  { %4978 = vmatpush3.bf16.msra.mxu1 %v4977_v60  ;;  %4641 = vmatprep.mubr.msk.f32.mxu1 %vm5231_vm2, %v8351_v16  ;;  %v4018_v16 = vld [vmem:[%s8257_s3 + $0x3f0] sm:$0xff]  ;;  %v4023_v60 = vld [vmem:[#allocation2] ss:$0 sm:$0xff] }
 0x40a   :  { %4979 = vmatprep.subr.bf16.mxu1 %v8305_v43  ;;  %v4986_v23 = vpack.c.bf16 %v4019_v31, %v4018_v16 }
 0x40b   :  { %v2620_v28 = vpop.f32.mrb[164].mxu1 }
 0x40c   :  { %v2621_v9 = vadd.f32 %v2620_v28, %v2547_v27  ;;  %v4377_v39 = vpop.f32.mrb[165].mxu1  ;;  %v4021_v27 = vld [vmem:[%s8260_s4] ss:$0 sm:$0xff] }
 0x40d   :  { %4981 = vmatpush3.bf16.msra.mxu1 %v4980_v8 }
 0x40e   :  { %4982 = vmatprep.subr.bf16.mxu1 %v8305_v43 }
 0x411   :  { %4984 = vmatpush3.bf16.msra.mxu1 %v4983_v29 }
 0x412   :  { %4985 = vmatprep.subr.bf16.mxu1 %v8305_v43 }
 0x415   :  { %4987 = vmatpush3.bf16.msra.mxu1 %v4986_v23 }
 0x418   :  { %4642 = vmatmul.mubr.msk.f32.vlgmr.msra.gmra.mrb[192].mxu1 %vm2309_vm1, %v2460_v0 }
 0x41b   :  { %v2702_v52 = vpop.f32.mrb[166].mxu1 }
 0x41c   :  { %v2706_v32 = vadd.f32 %v2702_v52, %v2621_v9  ;;  %v4396_v54 = vpop.f32.mrb[167].mxu1 }
 0x42b   :  { %v2785_v47 = vpop.f32.mrb[168].mxu1 }
 0x42c   :  { %v2789_v17 = vadd.f32 %v2785_v47, %v2706_v32  ;;  %v4415_v63 = vpop.f32.mrb[169].mxu1 }
 0x43b   :  { %v2868_v34 = vpop.f32.mrb[170].mxu1 }
 0x43c   :  { %v2872_v62 = vadd.f32 %v2868_v34, %v2789_v17  ;;  %v4434_v6 = vpop.f32.mrb[171].mxu1 }
 0x44b   :  { %v2951_v22 = vpop.f32.mrb[172].mxu1 }
 0x44c   :  { %v2955_v51 = vadd.f32 %v2951_v22, %v2872_v62  ;;  %v4453_v20 = vpop.f32.mrb[173].mxu1 }
 0x45b   :  { %v3034_v53 = vpop.f32.mrb[174].mxu1 }
 0x45c   :  { %v3038_v61 = vadd.f32 %v3034_v53, %v2955_v51  ;;  %v4472_v43 = vpop.f32.mrb[175].mxu1 }
 0x46b   :  { %v3117_v36 = vpop.f32.mrb[176].mxu1 }
 0x46c   :  { %v3121_v45 = vadd.f32 %v3117_v36, %v3038_v61  ;;  %v4491_v57 = vpop.f32.mrb[177].mxu1 }
 0x47b   :  { %v3200_v3 = vpop.f32.mrb[178].mxu1 }
 0x47c   :  { %v3204_v50 = vadd.f32 %v3200_v3, %v3121_v45  ;;  %v4510_v5 = vpop.f32.mrb[179].mxu1 }
 0x48b   :  { %v3283_v58 = vpop.f32.mrb[180].mxu1 }
 0x48c   :  { %v3287_v33 = vadd.f32 %v3283_v58, %v3204_v50  ;;  %v4529_v44 = vpop.f32.mrb[181].mxu1 }
 0x49b   :  { %v3366_v1 = vpop.f32.mrb[182].mxu1 }
 0x49c   :  { %v3370_v49 = vadd.f32 %v3366_v1, %v3287_v33  ;;  %v4548_v46 = vpop.f32.mrb[183].mxu1 }
 0x4ab   :  { %v3449_v2 = vpop.f32.mrb[184].mxu1 }
 0x4ac   :  { %v3453_v13 = vadd.f32 %v3449_v2, %v3370_v49  ;;  %v4567_v25 = vpop.f32.mrb[185].mxu1 }
 0x4bb   :  { %v3532_v26 = vpop.f32.mrb[186].mxu1 }
 0x4bc   :  { %v3536_v59 = vadd.f32 %v3532_v26, %v3453_v13  ;;  %v4586_v7 = vpop.f32.mrb[187].mxu1 }
 0x4cb   :  { %v3615_v11 = vpop.f32.mrb[188].mxu1 }
 0x4cc   :  { %v3619_v12 = vadd.f32 %v3615_v11, %v3536_v59  ;;  %v4605_v18 = vpop.f32.mrb[189].mxu1 }
 0x4db   :  { %v3698_v4 = vpop.f32.mrb[190].mxu1 }
 0x4dc   :  { %v3702_v55 = vadd.f32 %v3698_v4, %v3619_v12  ;;  %v4624_v48 = vpop.f32.mrb[191].mxu1 }
 0x4eb   :  { %v3781_v40 = vpop.f32.mrb[192].mxu1 }
 0x4ec   :  { %v3785_v14 = vadd.f32 %v3781_v40, %v3702_v55  ;;  %v4643_v30 = vpop.f32.mrb[193].mxu1 }
 0x4ee   :  { %v3793_v24 = vadd.f32 %v4021_v27, %v3785_v14 }
 0x4f0   :  { %v3794_v41 = vmax.f32 %v3793_v24, 0.0 }
 0x4f2   :  { %v3802_v35 = vmul.f32 %v4022_v21, %v3794_v41 }
 0x4f4   :  { %v3803_v19 = vsel %vm2309_vm1, %v3802_v35, 0.0 }
 0x4f5   :  { %3804 = vadd.xlane.f32.xlu0 %v3803_v19 }
 0x582   :  { %v3805_v38 = vpop.xlane.xlu0 %3804 }
 0x583   :  { %v3813_v37 = vadd.f32 %v4023_v60, %v3805_v38 }
 0x585   :  { %3815 = vst.msk [vmem:[%s8262_s7] sm:$0xff] %vm3814_vm3, %v3813_v37 }

</bundles_post_ra>
